<compile_context>
chip_gen: v7x
topology: tpu7x:2x2x1
jax: 0.10.0
libtpu: 0.0.40
codegen_flags: <defaults>
</compile_context>

<pallas_src>
import functools

import numpy as np
import jax
import jax.numpy as jnp
from jax.experimental import pallas as pl
from jax.experimental.pallas import tpu as pltpu

K = 5          # kernel size of every Conv2d
STRIDE = 2
EPS = 1e-5     # BatchNorm eps (PyTorch default)


def _round_up(x, m):
    return ((x + m - 1) // m) * m


# ----------------------------- Pallas kernel -----------------------------
# One kernel serves every layer:
#   y = relu?(x * in_scale + in_shift) @ W + b
# plus per-tile channel sum / sumsq of y (pre-BN conv output) for the following BatchNorm fold.

def _fused_matmul_kernel(x_ref, w_ref, b_ref, s_ref, t_ref,
                         y_ref, sum_ref, ssq_ref,
                         *, tm, m_true, input_relu):
    x = x_ref[...]                                    # (tm, Kin), f32
    x = x * s_ref[...] + t_ref[...]                   # previous layer's BN folded per-feature
    if input_relu:
        x = jnp.maximum(x, 0.0)
    y = jnp.dot(x, w_ref[...], preferred_element_type=jnp.float32) + b_ref[...]
    y_ref[...] = y

    # channel statistics for the next BatchNorm; mask rows that are only M-padding
    row = jax.lax.broadcasted_iota(jnp.int32, (tm, 1), 0) + pl.program_id(0) * tm
    valid = (row < m_true).astype(jnp.float32)
    yv = y * valid
    cout = y.shape[1]
    sum_ref[...] = jnp.sum(yv, axis=0, keepdims=True).reshape(1, 1, cout)
    ssq_ref[...] = jnp.sum(yv * yv, axis=0, keepdims=True).reshape(1, 1, cout)


def fused_layer(x, w, b, in_scale, in_shift, *, input_relu, tm=512):
    """y = relu?(x*in_scale+in_shift) @ w + b, tiled over rows.
    Also returns per-channel sum and sum-of-squares of y over the true rows."""
    M, Kin = x.shape
    Cout = w.shape[1]
    if M > tm:
        mp = _round_up(M, tm)
    else:
        tm = _round_up(M, 8)
        mp = tm
    nt = mp // tm
    if mp != M:
        x = jnp.pad(x, ((0, mp - M), (0, 0)))

    kernel = functools.partial(_fused_matmul_kernel, tm=tm, m_true=M, input_relu=input_relu)
    y, psum, pssq = pl.pallas_call(
        kernel,
        grid=(nt,),
        in_specs=[
            pl.BlockSpec((tm, Kin), lambda i: (i, 0)),       # cols tile
            pl.BlockSpec((Kin, Cout), lambda i: (0, 0)),     # weight, resident across grid
            pl.BlockSpec((1, Cout), lambda i: (0, 0)),       # bias
            pl.BlockSpec((1, Kin), lambda i: (0, 0)),        # folded BN scale
            pl.BlockSpec((1, Kin), lambda i: (0, 0)),        # folded BN shift
        ],
        out_specs=(
            pl.BlockSpec((tm, Cout), lambda i: (i, 0)),
            pl.BlockSpec((1, 1, Cout), lambda i: (i, 0, 0)),
            pl.BlockSpec((1, 1, Cout), lambda i: (i, 0, 0)),
        ),
        out_shape=(
            jax.ShapeDtypeStruct((mp, Cout), jnp.float32),
            jax.ShapeDtypeStruct((nt, 1, Cout), jnp.float32),
            jax.ShapeDtypeStruct((nt, 1, Cout), jnp.float32),
        ),
        compiler_params=pltpu.CompilerParams(dimension_semantics=("parallel",)),
    )(x, w, b.reshape(1, Cout), in_scale, in_shift)

    return y[:M], jnp.sum(psum, axis=0)[0], jnp.sum(pssq, axis=0)[0]


# ----------------------------- XLA glue -----------------------------

def im2col(x_nhwc, k, s):
    """Strided patch extraction, channels-last.  Returns ((N*Ho*Wo, k*k*C), Ho, Wo)."""
    # TODO(synk): at much larger shapes, gather the tap windows in-kernel (pl.Element offsets /
    # manual DMA) instead of materializing the ~k*k/s^2-times-larger cols slab via XLA concat.
    N, H, W, C = x_nhwc.shape
    Ho = (H - k) // s + 1
    Wo = (W - k) // s + 1
    slabs = [x_nhwc[:, kh:kh + (Ho - 1) * s + 1:s, kw:kw + (Wo - 1) * s + 1:s, :]
             for kh in range(k) for kw in range(k)]
    cols = jnp.concatenate(slabs, axis=-1).reshape(N * Ho * Wo, k * k * C)
    return cols, Ho, Wo


def bn_fold(ch_sum, ch_ssq, count, gamma, beta):
    """Training-mode BatchNorm (biased variance) folded to per-channel scale/shift."""
    mean = ch_sum / count
    var = ch_ssq / count - mean * mean
    scale = gamma / jnp.sqrt(var + EPS)
    return scale, beta - mean * scale


# ----------------------------- thetaNet wrapper -----------------------------

class ThetaNetPallas:
    def __init__(self, key, h=80, w=80, outputs=512):
        def cso(s, k=5, st=2):
            return (s - (k - 1) - 1) // st + 1

        self.convw = cso(cso(cso(w)))
        self.convh = cso(cso(cso(h)))
        lin_in = self.convw * self.convh * 64
        self.outputs = outputs

        ks = jax.random.split(key, 14)
        u = lambda k_, shp, s=0.05: jax.random.uniform(k_, shp, jnp.float32, -s, s)
        self.p = dict(
            conv1_w=u(ks[0], (32, 3, K, K)), conv1_b=u(ks[1], (32,)),
            bn1_g=jax.random.uniform(ks[2], (32,), jnp.float32, 0.8, 1.2), bn1_b=u(ks[3], (32,), 0.1),
            conv2_w=u(ks[4], (64, 32, K, K)), conv2_b=u(ks[5], (64,)),
            bn2_g=jax.random.uniform(ks[6], (64,), jnp.float32, 0.8, 1.2), bn2_b=u(ks[7], (64,), 0.1),
            conv3_w=u(ks[8], (64, 64, K, K)), conv3_b=u(ks[9], (64,)),
            bn3_g=jax.random.uniform(ks[10], (64,), jnp.float32, 0.8, 1.2), bn3_b=u(ks[11], (64,), 0.1),
            head_w=u(ks[12], (outputs, lin_in)), head_b=u(ks[13], (outputs,)),
        )

        # One-time weight permutations into the NHWC / im2col layouts used by the kernels.
        def conv_mat(wt):  # (Cout, Cin, K, K) -> (K*K*Cin, Cout), tap-major / channel-minor
            cout, cin, k, _ = wt.shape
            return jnp.transpose(wt, (2, 3, 1, 0)).reshape(k * k * cin, cout)

        hw = self.p['head_w'].reshape(outputs, 64, self.convh, self.convw)     # PyTorch NCHW flatten
        self.km = dict(
            w1=conv_mat(self.p['conv1_w']),
            w2=conv_mat(self.p['conv2_w']),
            w3=conv_mat(self.p['conv3_w']),
            wh=jnp.transpose(hw, (2, 3, 1, 0)).reshape(lin_in, outputs),       # NHWC flatten order
        )

    def __call__(self, x_nchw):
        p, km = self.p, self.km
        N = x_nchw.shape[0]
        x = jnp.transpose(x_nchw, (0, 2, 3, 1))               # the only activation transpose

        # ---- layer 1: conv1 (no preceding BN/ReLU) ----
        cols, H1, W1 = im2col(x, K, STRIDE)
        kin = cols.shape[1]
        y1, s1, q1 = fused_layer(cols, km['w1'], p['conv1_b'],
                                 jnp.ones((1, kin), jnp.float32),
                                 jnp.zeros((1, kin), jnp.float32),
                                 input_relu=False)
        sc1, sh1 = bn_fold(s1, q1, float(y1.shape[0]), p['bn1_g'], p['bn1_b'])

        # ---- layer 2: BN1+ReLU folded into conv2's input path ----
        cols, H2, W2 = im2col(y1.reshape(N, H1, W1, 32), K, STRIDE)
        y2, s2, q2 = fused_layer(cols, km['w2'], p['conv2_b'],
                                 jnp.tile(sc1.reshape(1, -1), (1, K * K)),
                                 jnp.tile(sh1.reshape(1, -1), (1, K * K)),
                                 input_relu=True)
        sc2, sh2 = bn_fold(s2, q2, float(y2.shape[0]), p['bn2_g'], p['bn2_b'])

        # ---- layer 3: BN2+ReLU folded into conv3's input path ----
        cols, H3, W3 = im2col(y2.reshape(N, H2, W2, 64), K, STRIDE)
        y3, s3, q3 = fused_layer(cols, km['w3'], p['conv3_b'],
                                 jnp.tile(sc2.reshape(1, -1), (1, K * K)),
                                 jnp.tile(sh2.reshape(1, -1), (1, K * K)),
                                 input_relu=True)
        sc3, sh3 = bn_fold(s3, q3, float(y3.shape[0]), p['bn3_g'], p['bn3_b'])

        # ---- head: BN3+ReLU folded into the Linear input path (NHWC flatten) ----
        flat = y3.reshape(N, H3 * W3 * 64)
        out, _, _ = fused_layer(flat, km['wh'], p['head_b'],
                                jnp.tile(sc3.reshape(1, -1), (1, H3 * W3)),
                                jnp.tile(sh3.reshape(1, -1), (1, H3 * W3)),
                                input_relu=True)
        return out                                             # (N, outputs), lane-dense (512)


# ----------------------------- NumPy reference (PyTorch semantics, float64) -----------------------------

def np_forward(x, p):
    x = np.asarray(x, np.float64)
    g = lambda n: np.asarray(p[n], np.float64)

    def conv(xx, wt, b, s):                                    # NCHW, padding=0
        N, Cin, H, W = xx.shape
        Cout, _, k, _ = wt.shape
        Ho = (H - k) // s + 1
        Wo = (W - k) // s + 1
        y = np.zeros((N, Cout, Ho, Wo), np.float64)
        for kh in range(k):
            for kw in range(k):
                patch = xx[:, :, kh:kh + (Ho - 1) * s + 1:s, kw:kw + (Wo - 1) * s + 1:s]
                y += np.einsum('nchw,oc->nohw', patch, wt[:, :, kh, kw])
        return y + b.reshape(1, Cout, 1, 1)

    def bn(xx, gamma, beta):                                   # training-mode batch stats
        mean = xx.mean(axis=(0, 2, 3), keepdims=True)
        var = xx.var(axis=(0, 2, 3), keepdims=True)
        return (xx - mean) / np.sqrt(var + EPS) * gamma.reshape(1, -1, 1, 1) + beta.reshape(1, -1, 1, 1)

    y = np.maximum(bn(conv(x, g('conv1_w'), g('conv1_b'), STRIDE), g('bn1_g'), g('bn1_b')), 0.0)
    y = np.maximum(bn(conv(y, g('conv2_w'), g('conv2_b'), STRIDE), g('bn2_g'), g('bn2_b')), 0.0)
    y = np.maximum(bn(conv(y, g('conv3_w'), g('conv3_b'), STRIDE), g('bn3_g'), g('bn3_b')), 0.0)
    flat = y.reshape(x.shape[0], -1)                           # PyTorch .view -> NCHW flatten
    return flat @ g('head_w').T + g('head_b')


# ----------------------------- main -----------------------------

if __name__ == "__main__":
    # Small shapes consistent with the module: h=w=48 -> convh=convw=3, batch=2, outputs=512.
    B, Himg, Wimg, OUTPUTS = 2, 48, 48, 512

    key = jax.random.PRNGKey(0)
    k_param, k_x = jax.random.split(key)
    net = ThetaNetPallas(k_param, h=Himg, w=Wimg, outputs=OUTPUTS)
    x = jax.random.normal(k_x, (B, 3, Himg, Wimg), jnp.float32)

    out = jax.jit(net.__call__)(x)
    out = jax.block_until_ready(out)
    assert out.shape == (B, OUTPUTS), out.shape

    ref = np_forward(np.asarray(x), net.p)
    if not np.allclose(np.asarray(out), ref, atol=2e-3, rtol=1e-2):
        err = np.max(np.abs(np.asarray(out) - ref))
        raise AssertionError(f"Pallas output mismatch vs reference, max abs err = {err}")

    print("KERNEL_OK")
</pallas_src>

<mosaic_0001>
module attributes {stable_mosaic.version = 11 : i64} {
  func.func @_fused_matmul_kernel(%arg0: i32, %arg1: memref<512x75xf32, #tpu.memory_space<vmem>>, %arg2: memref<75x32xf32, #tpu.memory_space<vmem>>, %arg3: memref<1x32xf32, #tpu.memory_space<vmem>>, %arg4: memref<1x75xf32, #tpu.memory_space<vmem>>, %arg5: memref<1x75xf32, #tpu.memory_space<vmem>>, %arg6: memref<512x32xf32, #tpu.memory_space<vmem>>, %arg7: memref<1x1x32xf32, #tpu.memory_space<vmem>>, %arg8: memref<1x1x32xf32, #tpu.memory_space<vmem>>) attributes {dimension_semantics = [#tpu.dimension_semantics<parallel>], iteration_bounds = array<i64: 2>, scalar_prefetch = 0 : i64, scratch_operands = 0 : i64, tpu.core_type = #tpu.core_type<tc>, window_params = [{transform_indices = @transform_0, window_bounds = array<i64: 512, 75>}, {pipeline_mode = #tpu.pipeline_mode<synchronous>, transform_indices = @transform_1, window_bounds = array<i64: 75, 32>}, {pipeline_mode = #tpu.pipeline_mode<synchronous>, transform_indices = @transform_2, window_bounds = array<i64: 1, 32>}, {pipeline_mode = #tpu.pipeline_mode<synchronous>, transform_indices = @transform_3, window_bounds = array<i64: 1, 75>}, {pipeline_mode = #tpu.pipeline_mode<synchronous>, transform_indices = @transform_4, window_bounds = array<i64: 1, 75>}, {transform_indices = @transform_5, window_bounds = array<i64: 512, 32>}, {transform_indices = @transform_6, window_bounds = array<i64: 1, 1, 32>}, {transform_indices = @transform_7, window_bounds = array<i64: 1, 1, 32>}]} {
    %c0 = arith.constant 0 : index
    %c0_0 = arith.constant 0 : index
    %0 = vector.load %arg1[%c0, %c0_0] : memref<512x75xf32, #tpu.memory_space<vmem>>, vector<512x75xf32>
    %c0_1 = arith.constant 0 : index
    %c0_2 = arith.constant 0 : index
    %1 = vector.load %arg4[%c0_1, %c0_2] : memref<1x75xf32, #tpu.memory_space<vmem>>, vector<1x75xf32>
    %2 = vector.broadcast %1 : vector<1x75xf32> to vector<512x75xf32>
    %3 = arith.mulf %0, %2 : vector<512x75xf32>
    %c0_3 = arith.constant 0 : index
    %c0_4 = arith.constant 0 : index
    %4 = vector.load %arg5[%c0_3, %c0_4] : memref<1x75xf32, #tpu.memory_space<vmem>>, vector<1x75xf32>
    %5 = vector.broadcast %4 : vector<1x75xf32> to vector<512x75xf32>
    %6 = arith.addf %3, %5 : vector<512x75xf32>
    %c0_5 = arith.constant 0 : index
    %c0_6 = arith.constant 0 : index
    %7 = vector.load %arg2[%c0_5, %c0_6] : memref<75x32xf32, #tpu.memory_space<vmem>>, vector<75x32xf32>
    %cst = arith.constant dense<0.000000e+00> : vector<512x32xf32>
    %8 = tpu.matmul %6, %7, %cst {dimension_numbers = #tpu.dot_dimension_numbers<[1], [0], [0], [1], [0, 0, 1, 1], [], []>} : vector<512x75xf32>, vector<75x32xf32>, vector<512x32xf32> -> vector<512x32xf32>
    %c0_7 = arith.constant 0 : index
    %c0_8 = arith.constant 0 : index
    %9 = vector.load %arg3[%c0_7, %c0_8] : memref<1x32xf32, #tpu.memory_space<vmem>>, vector<1x32xf32>
    %10 = vector.broadcast %9 : vector<1x32xf32> to vector<512x32xf32>
    %11 = arith.addf %8, %10 : vector<512x32xf32>
    %c0_9 = arith.constant 0 : index
    %c0_10 = arith.constant 0 : index
    %12 = vector.load %arg6[%c0_9, %c0_10] : memref<512x32xf32, #tpu.memory_space<vmem>>, vector<512x32xf32>
    tpu.vector_store %arg6[%c0_9, %c0_10], %11 {strides = array<i32>} : memref<512x32xf32, #tpu.memory_space<vmem>>, vector<512x32xf32>,
    %13 = tpu.iota {dimensions = array<i32: 0>} : vector<512x1xi32>
    %c512_i32 = arith.constant 512 : i32
    %14 = arith.muli %arg0, %c512_i32 : i32
    %15 = vector.broadcast %14 : i32 to vector<512x1xi32>
    %16 = arith.addi %13, %15 : vector<512x1xi32>
    %c968_i32 = arith.constant 968 : i32
    %17 = vector.broadcast %c968_i32 : i32 to vector<512x1xi32>
    %18 = arith.cmpi slt, %16, %17 : vector<512x1xi32>
    %19 = arith.extui %18 : vector<512x1xi1> to vector<512x1xi32>
    %20 = arith.sitofp %19 : vector<512x1xi32> to vector<512x1xf32>
    %21 = vector.broadcast %20 : vector<512x1xf32> to vector<512x32xf32>
    %22 = arith.mulf %11, %21 : vector<512x32xf32>
    %cst_11 = arith.constant dense<0.000000e+00> : vector<32xf32>
    %23 = vector.multi_reduction <add>, %22, %cst_11 [0] : vector<512x32xf32> to vector<32xf32>
    %24 = vector.shape_cast %23 : vector<32xf32> to vector<1x32xf32>
    %25 = vector.shape_cast %24 : vector<1x32xf32> to vector<1x1x32xf32>
    %c0_12 = arith.constant 0 : index
    %c0_13 = arith.constant 0 : index
    %c0_14 = arith.constant 0 : index
    %26 = vector.load %arg7[%c0_12, %c0_13, %c0_14] : memref<1x1x32xf32, #tpu.memory_space<vmem>>, vector<1x1x32xf32>
    tpu.vector_store %arg7[%c0_12, %c0_13, %c0_14], %25 {strides = array<i32>} : memref<1x1x32xf32, #tpu.memory_space<vmem>>, vector<1x1x32xf32>,
    %27 = arith.mulf %22, %22 : vector<512x32xf32>
    %cst_15 = arith.constant dense<0.000000e+00> : vector<32xf32>
    %28 = vector.multi_reduction <add>, %27, %cst_15 [0] : vector<512x32xf32> to vector<32xf32>
    %29 = vector.shape_cast %28 : vector<32xf32> to vector<1x32xf32>
    %30 = vector.shape_cast %29 : vector<1x32xf32> to vector<1x1x32xf32>
    %c0_16 = arith.constant 0 : index
    %c0_17 = arith.constant 0 : index
    %c0_18 = arith.constant 0 : index
    %31 = vector.load %arg8[%c0_16, %c0_17, %c0_18] : memref<1x1x32xf32, #tpu.memory_space<vmem>>, vector<1x1x32xf32>
    tpu.vector_store %arg8[%c0_16, %c0_17, %c0_18], %30 {strides = array<i32>} : memref<1x1x32xf32, #tpu.memory_space<vmem>>, vector<1x1x32xf32>,
    return
  }
  func.func @transform_0(%arg0: i32) -> (i32, i32) {
    %c0_i32 = arith.constant 0 : i32
    %c0_i32_0 = arith.constant 0 : i32
    return %arg0, %c0_i32 : i32, i32
  }
  func.func @transform_1(%arg0: i32) -> (i32, i32) {
    %c0_i32 = arith.constant 0 : i32
    %c0_i32_0 = arith.constant 0 : i32
    %c0_i32_1 = arith.constant 0 : i32
    return %c0_i32, %c0_i32_0 : i32, i32
  }
  func.func @transform_2(%arg0: i32) -> (i32, i32) {
    %c0_i32 = arith.constant 0 : i32
    %c0_i32_0 = arith.constant 0 : i32
    %c0_i32_1 = arith.constant 0 : i32
    return %c0_i32, %c0_i32_0 : i32, i32
  }
  func.func @transform_3(%arg0: i32) -> (i32, i32) {
    %c0_i32 = arith.constant 0 : i32
    %c0_i32_0 = arith.constant 0 : i32
    %c0_i32_1 = arith.constant 0 : i32
    return %c0_i32, %c0_i32_0 : i32, i32
  }
  func.func @transform_4(%arg0: i32) -> (i32, i32) {
    %c0_i32 = arith.constant 0 : i32
    %c0_i32_0 = arith.constant 0 : i32
    %c0_i32_1 = arith.constant 0 : i32
    return %c0_i32, %c0_i32_0 : i32, i32
  }
  func.func @transform_5(%arg0: i32) -> (i32, i32) {
    %c0_i32 = arith.constant 0 : i32
    %c0_i32_0 = arith.constant 0 : i32
    return %arg0, %c0_i32 : i32, i32
  }
  func.func @transform_6(%arg0: i32) -> (i32, i32, i32) {
    %c0_i32 = arith.constant 0 : i32
    %c0_i32_0 = arith.constant 0 : i32
    %c0_i32_1 = arith.constant 0 : i32
    return %arg0, %c0_i32, %c0_i32_0 : i32, i32, i32
  }
  func.func @transform_7(%arg0: i32) -> (i32, i32, i32) {
    %c0_i32 = arith.constant 0 : i32
    %c0_i32_0 = arith.constant 0 : i32
    %c0_i32_1 = arith.constant 0 : i32
    return %arg0, %c0_i32, %c0_i32_0 : i32, i32, i32
  }
}

module attributes {stable_mosaic.version = 11 : i64} {
  func.func @_fused_matmul_kernel(%arg0: i32, %arg1: memref<168x800xf32, #tpu.memory_space<vmem>>, %arg2: memref<800x64xf32, #tpu.memory_space<vmem>>, %arg3: memref<1x64xf32, #tpu.memory_space<vmem>>, %arg4: memref<1x800xf32, #tpu.memory_space<vmem>>, %arg5: memref<1x800xf32, #tpu.memory_space<vmem>>, %arg6: memref<168x64xf32, #tpu.memory_space<vmem>>, %arg7: memref<1x1x64xf32, #tpu.memory_space<vmem>>, %arg8: memref<1x1x64xf32, #tpu.memory_space<vmem>>) attributes {dimension_semantics = [#tpu.dimension_semantics<parallel>], iteration_bounds = array<i64: 1>, scalar_prefetch = 0 : i64, scratch_operands = 0 : i64, tpu.core_type = #tpu.core_type<tc>, window_params = [{transform_indices = @transform_0, window_bounds = array<i64: 168, 800>}, {pipeline_mode = #tpu.pipeline_mode<synchronous>, transform_indices = @transform_1, window_bounds = array<i64: 800, 64>}, {pipeline_mode = #tpu.pipeline_mode<synchronous>, transform_indices = @transform_2, window_bounds = array<i64: 1, 64>}, {pipeline_mode = #tpu.pipeline_mode<synchronous>, transform_indices = @transform_3, window_bounds = array<i64: 1, 800>}, {pipeline_mode = #tpu.pipeline_mode<synchronous>, transform_indices = @transform_4, window_bounds = array<i64: 1, 800>}, {transform_indices = @transform_5, window_bounds = array<i64: 168, 64>}, {transform_indices = @transform_6, window_bounds = array<i64: 1, 1, 64>}, {transform_indices = @transform_7, window_bounds = array<i64: 1, 1, 64>}]} {
    %c0 = arith.constant 0 : index
    %c0_0 = arith.constant 0 : index
    %0 = vector.load %arg1[%c0, %c0_0] : memref<168x800xf32, #tpu.memory_space<vmem>>, vector<168x800xf32>
    %c0_1 = arith.constant 0 : index
    %c0_2 = arith.constant 0 : index
    %1 = vector.load %arg4[%c0_1, %c0_2] : memref<1x800xf32, #tpu.memory_space<vmem>>, vector<1x800xf32>
    %2 = vector.broadcast %1 : vector<1x800xf32> to vector<168x800xf32>
    %3 = arith.mulf %0, %2 : vector<168x800xf32>
    %c0_3 = arith.constant 0 : index
    %c0_4 = arith.constant 0 : index
    %4 = vector.load %arg5[%c0_3, %c0_4] : memref<1x800xf32, #tpu.memory_space<vmem>>, vector<1x800xf32>
    %5 = vector.broadcast %4 : vector<1x800xf32> to vector<168x800xf32>
    %6 = arith.addf %3, %5 : vector<168x800xf32>
    %cst = arith.constant 0.000000e+00 : f32
    %7 = vector.broadcast %cst : f32 to vector<168x800xf32>
    %8 = arith.maximumf %6, %7 : vector<168x800xf32>
    %c0_5 = arith.constant 0 : index
    %c0_6 = arith.constant 0 : index
    %9 = vector.load %arg2[%c0_5, %c0_6] : memref<800x64xf32, #tpu.memory_space<vmem>>, vector<800x64xf32>
    %cst_7 = arith.constant dense<0.000000e+00> : vector<168x64xf32>
    %10 = tpu.matmul %8, %9, %cst_7 {dimension_numbers = #tpu.dot_dimension_numbers<[1], [0], [0], [1], [0, 0, 1, 1], [], []>} : vector<168x800xf32>, vector<800x64xf32>, vector<168x64xf32> -> vector<168x64xf32>
    %c0_8 = arith.constant 0 : index
    %c0_9 = arith.constant 0 : index
    %11 = vector.load %arg3[%c0_8, %c0_9] : memref<1x64xf32, #tpu.memory_space<vmem>>, vector<1x64xf32>
    %12 = vector.broadcast %11 : vector<1x64xf32> to vector<168x64xf32>
    %13 = arith.addf %10, %12 : vector<168x64xf32>
    %c0_10 = arith.constant 0 : index
    %c0_11 = arith.constant 0 : index
    %14 = vector.load %arg6[%c0_10, %c0_11] : memref<168x64xf32, #tpu.memory_space<vmem>>, vector<168x64xf32>
    tpu.vector_store %arg6[%c0_10, %c0_11], %13 {strides = array<i32>} : memref<168x64xf32, #tpu.memory_space<vmem>>, vector<168x64xf32>,
    %15 = tpu.iota {dimensions = array<i32: 0>} : vector<168x1xi32>
    %c168_i32 = arith.constant 168 : i32
    %16 = arith.muli %arg0, %c168_i32 : i32
    %17 = vector.broadcast %16 : i32 to vector<168x1xi32>
    %18 = arith.addi %15, %17 : vector<168x1xi32>
    %c162_i32 = arith.constant 162 : i32
    %19 = vector.broadcast %c162_i32 : i32 to vector<168x1xi32>
    %20 = arith.cmpi slt, %18, %19 : vector<168x1xi32>
    %21 = arith.extui %20 : vector<168x1xi1> to vector<168x1xi32>
    %22 = arith.sitofp %21 : vector<168x1xi32> to vector<168x1xf32>
    %23 = vector.broadcast %22 : vector<168x1xf32> to vector<168x64xf32>
    %24 = arith.mulf %13, %23 : vector<168x64xf32>
    %cst_12 = arith.constant dense<0.000000e+00> : vector<64xf32>
    %25 = vector.multi_reduction <add>, %24, %cst_12 [0] : vector<168x64xf32> to vector<64xf32>
    %26 = vector.shape_cast %25 : vector<64xf32> to vector<1x64xf32>
    %27 = vector.shape_cast %26 : vector<1x64xf32> to vector<1x1x64xf32>
    %c0_13 = arith.constant 0 : index
    %c0_14 = arith.constant 0 : index
    %c0_15 = arith.constant 0 : index
    %28 = vector.load %arg7[%c0_13, %c0_14, %c0_15] : memref<1x1x64xf32, #tpu.memory_space<vmem>>, vector<1x1x64xf32>
    tpu.vector_store %arg7[%c0_13, %c0_14, %c0_15], %27 {strides = array<i32>} : memref<1x1x64xf32, #tpu.memory_space<vmem>>, vector<1x1x64xf32>,
    %29 = arith.mulf %24, %24 : vector<168x64xf32>
    %cst_16 = arith.constant dense<0.000000e+00> : vector<64xf32>
    %30 = vector.multi_reduction <add>, %29, %cst_16 [0] : vector<168x64xf32> to vector<64xf32>
    %31 = vector.shape_cast %30 : vector<64xf32> to vector<1x64xf32>
    %32 = vector.shape_cast %31 : vector<1x64xf32> to vector<1x1x64xf32>
    %c0_17 = arith.constant 0 : index
    %c0_18 = arith.constant 0 : index
    %c0_19 = arith.constant 0 : index
    %33 = vector.load %arg8[%c0_17, %c0_18, %c0_19] : memref<1x1x64xf32, #tpu.memory_space<vmem>>, vector<1x1x64xf32>
    tpu.vector_store %arg8[%c0_17, %c0_18, %c0_19], %32 {strides = array<i32>} : memref<1x1x64xf32, #tpu.memory_space<vmem>>, vector<1x1x64xf32>,
    return
  }
  func.func @transform_0(%arg0: i32) -> (i32, i32) {
    %c0_i32 = arith.constant 0 : i32
    %c0_i32_0 = arith.constant 0 : i32
    return %arg0, %c0_i32 : i32, i32
  }
  func.func @transform_1(%arg0: i32) -> (i32, i32) {
    %c0_i32 = arith.constant 0 : i32
    %c0_i32_0 = arith.constant 0 : i32
    %c0_i32_1 = arith.constant 0 : i32
    return %c0_i32, %c0_i32_0 : i32, i32
  }
  func.func @transform_2(%arg0: i32) -> (i32, i32) {
    %c0_i32 = arith.constant 0 : i32
    %c0_i32_0 = arith.constant 0 : i32
    %c0_i32_1 = arith.constant 0 : i32
    return %c0_i32, %c0_i32_0 : i32, i32
  }
  func.func @transform_3(%arg0: i32) -> (i32, i32) {
    %c0_i32 = arith.constant 0 : i32
    %c0_i32_0 = arith.constant 0 : i32
    %c0_i32_1 = arith.constant 0 : i32
    return %c0_i32, %c0_i32_0 : i32, i32
  }
  func.func @transform_4(%arg0: i32) -> (i32, i32) {
    %c0_i32 = arith.constant 0 : i32
    %c0_i32_0 = arith.constant 0 : i32
    %c0_i32_1 = arith.constant 0 : i32
    return %c0_i32, %c0_i32_0 : i32, i32
  }
  func.func @transform_5(%arg0: i32) -> (i32, i32) {
    %c0_i32 = arith.constant 0 : i32
    %c0_i32_0 = arith.constant 0 : i32
    return %arg0, %c0_i32 : i32, i32
  }
  func.func @transform_6(%arg0: i32) -> (i32, i32, i32) {
    %c0_i32 = arith.constant 0 : i32
    %c0_i32_0 = arith.constant 0 : i32
    %c0_i32_1 = arith.constant 0 : i32
    return %arg0, %c0_i32, %c0_i32_0 : i32, i32, i32
  }
  func.func @transform_7(%arg0: i32) -> (i32, i32, i32) {
    %c0_i32 = arith.constant 0 : i32
    %c0_i32_0 = arith.constant 0 : i32
    %c0_i32_1 = arith.constant 0 : i32
    return %arg0, %c0_i32, %c0_i32_0 : i32, i32, i32
  }
}

module attributes {stable_mosaic.version = 11 : i64} {
  func.func @_fused_matmul_kernel(%arg0: i32, %arg1: memref<24x1600xf32, #tpu.memory_space<vmem>>, %arg2: memref<1600x64xf32, #tpu.memory_space<vmem>>, %arg3: memref<1x64xf32, #tpu.memory_space<vmem>>, %arg4: memref<1x1600xf32, #tpu.memory_space<vmem>>, %arg5: memref<1x1600xf32, #tpu.memory_space<vmem>>, %arg6: memref<24x64xf32, #tpu.memory_space<vmem>>, %arg7: memref<1x1x64xf32, #tpu.memory_space<vmem>>, %arg8: memref<1x1x64xf32, #tpu.memory_space<vmem>>) attributes {dimension_semantics = [#tpu.dimension_semantics<parallel>], iteration_bounds = array<i64: 1>, scalar_prefetch = 0 : i64, scratch_operands = 0 : i64, tpu.core_type = #tpu.core_type<tc>, window_params = [{transform_indices = @transform_0, window_bounds = array<i64: 24, 1600>}, {pipeline_mode = #tpu.pipeline_mode<synchronous>, transform_indices = @transform_1, window_bounds = array<i64: 1600, 64>}, {pipeline_mode = #tpu.pipeline_mode<synchronous>, transform_indices = @transform_2, window_bounds = array<i64: 1, 64>}, {pipeline_mode = #tpu.pipeline_mode<synchronous>, transform_indices = @transform_3, window_bounds = array<i64: 1, 1600>}, {pipeline_mode = #tpu.pipeline_mode<synchronous>, transform_indices = @transform_4, window_bounds = array<i64: 1, 1600>}, {transform_indices = @transform_5, window_bounds = array<i64: 24, 64>}, {transform_indices = @transform_6, window_bounds = array<i64: 1, 1, 64>}, {transform_indices = @transform_7, window_bounds = array<i64: 1, 1, 64>}]} {
    %c0 = arith.constant 0 : index
    %c0_0 = arith.constant 0 : index
    %0 = vector.load %arg1[%c0, %c0_0] : memref<24x1600xf32, #tpu.memory_space<vmem>>, vector<24x1600xf32>
    %c0_1 = arith.constant 0 : index
    %c0_2 = arith.constant 0 : index
    %1 = vector.load %arg4[%c0_1, %c0_2] : memref<1x1600xf32, #tpu.memory_space<vmem>>, vector<1x1600xf32>
    %2 = vector.broadcast %1 : vector<1x1600xf32> to vector<24x1600xf32>
    %3 = arith.mulf %0, %2 : vector<24x1600xf32>
    %c0_3 = arith.constant 0 : index
    %c0_4 = arith.constant 0 : index
    %4 = vector.load %arg5[%c0_3, %c0_4] : memref<1x1600xf32, #tpu.memory_space<vmem>>, vector<1x1600xf32>
    %5 = vector.broadcast %4 : vector<1x1600xf32> to vector<24x1600xf32>
    %6 = arith.addf %3, %5 : vector<24x1600xf32>
    %cst = arith.constant 0.000000e+00 : f32
    %7 = vector.broadcast %cst : f32 to vector<24x1600xf32>
    %8 = arith.maximumf %6, %7 : vector<24x1600xf32>
    %c0_5 = arith.constant 0 : index
    %c0_6 = arith.constant 0 : index
    %9 = vector.load %arg2[%c0_5, %c0_6] : memref<1600x64xf32, #tpu.memory_space<vmem>>, vector<1600x64xf32>
    %cst_7 = arith.constant dense<0.000000e+00> : vector<24x64xf32>
    %10 = tpu.matmul %8, %9, %cst_7 {dimension_numbers = #tpu.dot_dimension_numbers<[1], [0], [0], [1], [0, 0, 1, 1], [], []>} : vector<24x1600xf32>, vector<1600x64xf32>, vector<24x64xf32> -> vector<24x64xf32>
    %c0_8 = arith.constant 0 : index
    %c0_9 = arith.constant 0 : index
    %11 = vector.load %arg3[%c0_8, %c0_9] : memref<1x64xf32, #tpu.memory_space<vmem>>, vector<1x64xf32>
    %12 = vector.broadcast %11 : vector<1x64xf32> to vector<24x64xf32>
    %13 = arith.addf %10, %12 : vector<24x64xf32>
    %c0_10 = arith.constant 0 : index
    %c0_11 = arith.constant 0 : index
    %14 = vector.load %arg6[%c0_10, %c0_11] : memref<24x64xf32, #tpu.memory_space<vmem>>, vector<24x64xf32>
    tpu.vector_store %arg6[%c0_10, %c0_11], %13 {strides = array<i32>} : memref<24x64xf32, #tpu.memory_space<vmem>>, vector<24x64xf32>,
    %15 = tpu.iota {dimensions = array<i32: 0>} : vector<24x1xi32>
    %c24_i32 = arith.constant 24 : i32
    %16 = arith.muli %arg0, %c24_i32 : i32
    %17 = vector.broadcast %16 : i32 to vector<24x1xi32>
    %18 = arith.addi %15, %17 : vector<24x1xi32>
    %c18_i32 = arith.constant 18 : i32
    %19 = vector.broadcast %c18_i32 : i32 to vector<24x1xi32>
    %20 = arith.cmpi slt, %18, %19 : vector<24x1xi32>
    %21 = arith.extui %20 : vector<24x1xi1> to vector<24x1xi32>
    %22 = arith.sitofp %21 : vector<24x1xi32> to vector<24x1xf32>
    %23 = vector.broadcast %22 : vector<24x1xf32> to vector<24x64xf32>
    %24 = arith.mulf %13, %23 : vector<24x64xf32>
    %cst_12 = arith.constant dense<0.000000e+00> : vector<64xf32>
    %25 = vector.multi_reduction <add>, %24, %cst_12 [0] : vector<24x64xf32> to vector<64xf32>
    %26 = vector.shape_cast %25 : vector<64xf32> to vector<1x64xf32>
    %27 = vector.shape_cast %26 : vector<1x64xf32> to vector<1x1x64xf32>
    %c0_13 = arith.constant 0 : index
    %c0_14 = arith.constant 0 : index
    %c0_15 = arith.constant 0 : index
    %28 = vector.load %arg7[%c0_13, %c0_14, %c0_15] : memref<1x1x64xf32, #tpu.memory_space<vmem>>, vector<1x1x64xf32>
    tpu.vector_store %arg7[%c0_13, %c0_14, %c0_15], %27 {strides = array<i32>} : memref<1x1x64xf32, #tpu.memory_space<vmem>>, vector<1x1x64xf32>,
    %29 = arith.mulf %24, %24 : vector<24x64xf32>
    %cst_16 = arith.constant dense<0.000000e+00> : vector<64xf32>
    %30 = vector.multi_reduction <add>, %29, %cst_16 [0] : vector<24x64xf32> to vector<64xf32>
    %31 = vector.shape_cast %30 : vector<64xf32> to vector<1x64xf32>
    %32 = vector.shape_cast %31 : vector<1x64xf32> to vector<1x1x64xf32>
    %c0_17 = arith.constant 0 : index
    %c0_18 = arith.constant 0 : index
    %c0_19 = arith.constant 0 : index
    %33 = vector.load %arg8[%c0_17, %c0_18, %c0_19] : memref<1x1x64xf32, #tpu.memory_space<vmem>>, vector<1x1x64xf32>
    tpu.vector_store %arg8[%c0_17, %c0_18, %c0_19], %32 {strides = array<i32>} : memref<1x1x64xf32, #tpu.memory_space<vmem>>, vector<1x1x64xf32>,
    return
  }
  func.func @transform_0(%arg0: i32) -> (i32, i32) {
    %c0_i32 = arith.constant 0 : i32
    %c0_i32_0 = arith.constant 0 : i32
    return %arg0, %c0_i32 : i32, i32
  }
  func.func @transform_1(%arg0: i32) -> (i32, i32) {
    %c0_i32 = arith.constant 0 : i32
    %c0_i32_0 = arith.constant 0 : i32
    %c0_i32_1 = arith.constant 0 : i32
    return %c0_i32, %c0_i32_0 : i32, i32
  }
  func.func @transform_2(%arg0: i32) -> (i32, i32) {
    %c0_i32 = arith.constant 0 : i32
    %c0_i32_0 = arith.constant 0 : i32
    %c0_i32_1 = arith.constant 0 : i32
    return %c0_i32, %c0_i32_0 : i32, i32
  }
  func.func @transform_3(%arg0: i32) -> (i32, i32) {
    %c0_i32 = arith.constant 0 : i32
    %c0_i32_0 = arith.constant 0 : i32
    %c0_i32_1 = arith.constant 0 : i32
    return %c0_i32, %c0_i32_0 : i32, i32
  }
  func.func @transform_4(%arg0: i32) -> (i32, i32) {
    %c0_i32 = arith.constant 0 : i32
    %c0_i32_0 = arith.constant 0 : i32
    %c0_i32_1 = arith.constant 0 : i32
    return %c0_i32, %c0_i32_0 : i32, i32
  }
  func.func @transform_5(%arg0: i32) -> (i32, i32) {
    %c0_i32 = arith.constant 0 : i32
    %c0_i32_0 = arith.constant 0 : i32
    return %arg0, %c0_i32 : i32, i32
  }
  func.func @transform_6(%arg0: i32) -> (i32, i32, i32) {
    %c0_i32 = arith.constant 0 : i32
    %c0_i32_0 = arith.constant 0 : i32
    %c0_i32_1 = arith.constant 0 : i32
    return %arg0, %c0_i32, %c0_i32_0 : i32, i32, i32
  }
  func.func @transform_7(%arg0: i32) -> (i32, i32, i32) {
    %c0_i32 = arith.constant 0 : i32
    %c0_i32_0 = arith.constant 0 : i32
    %c0_i32_1 = arith.constant 0 : i32
    return %arg0, %c0_i32, %c0_i32_0 : i32, i32, i32
  }
}

module attributes {stable_mosaic.version = 11 : i64} {
  func.func @_fused_matmul_kernel(%arg0: i32, %arg1: memref<8x576xf32, #tpu.memory_space<vmem>>, %arg2: memref<576x512xf32, #tpu.memory_space<vmem>>, %arg3: memref<1x512xf32, #tpu.memory_space<vmem>>, %arg4: memref<1x576xf32, #tpu.memory_space<vmem>>, %arg5: memref<1x576xf32, #tpu.memory_space<vmem>>, %arg6: memref<8x512xf32, #tpu.memory_space<vmem>>, %arg7: memref<1x1x512xf32, #tpu.memory_space<vmem>>, %arg8: memref<1x1x512xf32, #tpu.memory_space<vmem>>) attributes {dimension_semantics = [#tpu.dimension_semantics<parallel>], iteration_bounds = array<i64: 1>, scalar_prefetch = 0 : i64, scratch_operands = 0 : i64, tpu.core_type = #tpu.core_type<tc>, window_params = [{transform_indices = @transform_0, window_bounds = array<i64: 8, 576>}, {pipeline_mode = #tpu.pipeline_mode<synchronous>, transform_indices = @transform_1, window_bounds = array<i64: 576, 512>}, {pipeline_mode = #tpu.pipeline_mode<synchronous>, transform_indices = @transform_2, window_bounds = array<i64: 1, 512>}, {pipeline_mode = #tpu.pipeline_mode<synchronous>, transform_indices = @transform_3, window_bounds = array<i64: 1, 576>}, {pipeline_mode = #tpu.pipeline_mode<synchronous>, transform_indices = @transform_4, window_bounds = array<i64: 1, 576>}, {transform_indices = @transform_5, window_bounds = array<i64: 8, 512>}, {transform_indices = @transform_6, window_bounds = array<i64: 1, 1, 512>}, {transform_indices = @transform_7, window_bounds = array<i64: 1, 1, 512>}]} {
    %c0 = arith.constant 0 : index
    %c0_0 = arith.constant 0 : index
    %0 = vector.load %arg1[%c0, %c0_0] : memref<8x576xf32, #tpu.memory_space<vmem>>, vector<8x576xf32>
    %c0_1 = arith.constant 0 : index
    %c0_2 = arith.constant 0 : index
    %1 = vector.load %arg4[%c0_1, %c0_2] : memref<1x576xf32, #tpu.memory_space<vmem>>, vector<1x576xf32>
    %2 = vector.broadcast %1 : vector<1x576xf32> to vector<8x576xf32>
    %3 = arith.mulf %0, %2 : vector<8x576xf32>
    %c0_3 = arith.constant 0 : index
    %c0_4 = arith.constant 0 : index
    %4 = vector.load %arg5[%c0_3, %c0_4] : memref<1x576xf32, #tpu.memory_space<vmem>>, vector<1x576xf32>
    %5 = vector.broadcast %4 : vector<1x576xf32> to vector<8x576xf32>
    %6 = arith.addf %3, %5 : vector<8x576xf32>
    %cst = arith.constant 0.000000e+00 : f32
    %7 = vector.broadcast %cst : f32 to vector<8x576xf32>
    %8 = arith.maximumf %6, %7 : vector<8x576xf32>
    %c0_5 = arith.constant 0 : index
    %c0_6 = arith.constant 0 : index
    %9 = vector.load %arg2[%c0_5, %c0_6] : memref<576x512xf32, #tpu.memory_space<vmem>>, vector<576x512xf32>
    %cst_7 = arith.constant dense<0.000000e+00> : vector<8x512xf32>
    %10 = tpu.matmul %8, %9, %cst_7 {dimension_numbers = #tpu.dot_dimension_numbers<[1], [0], [0], [1], [0, 0, 1, 1], [], []>} : vector<8x576xf32>, vector<576x512xf32>, vector<8x512xf32> -> vector<8x512xf32>
    %c0_8 = arith.constant 0 : index
    %c0_9 = arith.constant 0 : index
    %11 = vector.load %arg3[%c0_8, %c0_9] : memref<1x512xf32, #tpu.memory_space<vmem>>, vector<1x512xf32>
    %12 = vector.broadcast %11 : vector<1x512xf32> to vector<8x512xf32>
    %13 = arith.addf %10, %12 : vector<8x512xf32>
    %c0_10 = arith.constant 0 : index
    %c0_11 = arith.constant 0 : index
    %14 = vector.load %arg6[%c0_10, %c0_11] : memref<8x512xf32, #tpu.memory_space<vmem>>, vector<8x512xf32>
    tpu.vector_store %arg6[%c0_10, %c0_11], %13 {strides = array<i32>} : memref<8x512xf32, #tpu.memory_space<vmem>>, vector<8x512xf32>,
    %15 = tpu.iota {dimensions = array<i32: 0>} : vector<8x1xi32>
    %c8_i32 = arith.constant 8 : i32
    %16 = arith.muli %arg0, %c8_i32 : i32
    %17 = vector.broadcast %16 : i32 to vector<8x1xi32>
    %18 = arith.addi %15, %17 : vector<8x1xi32>
    %c2_i32 = arith.constant 2 : i32
    %19 = vector.broadcast %c2_i32 : i32 to vector<8x1xi32>
    %20 = arith.cmpi slt, %18, %19 : vector<8x1xi32>
    %21 = arith.extui %20 : vector<8x1xi1> to vector<8x1xi32>
    %22 = arith.sitofp %21 : vector<8x1xi32> to vector<8x1xf32>
    %23 = vector.broadcast %22 : vector<8x1xf32> to vector<8x512xf32>
    %24 = arith.mulf %13, %23 : vector<8x512xf32>
    %cst_12 = arith.constant dense<0.000000e+00> : vector<512xf32>
    %25 = vector.multi_reduction <add>, %24, %cst_12 [0] : vector<8x512xf32> to vector<512xf32>
    %26 = vector.shape_cast %25 : vector<512xf32> to vector<1x512xf32>
    %27 = vector.shape_cast %26 : vector<1x512xf32> to vector<1x1x512xf32>
    %c0_13 = arith.constant 0 : index
    %c0_14 = arith.constant 0 : index
    %c0_15 = arith.constant 0 : index
    %28 = vector.load %arg7[%c0_13, %c0_14, %c0_15] : memref<1x1x512xf32, #tpu.memory_space<vmem>>, vector<1x1x512xf32>
    tpu.vector_store %arg7[%c0_13, %c0_14, %c0_15], %27 {strides = array<i32>} : memref<1x1x512xf32, #tpu.memory_space<vmem>>, vector<1x1x512xf32>,
    %29 = arith.mulf %24, %24 : vector<8x512xf32>
    %cst_16 = arith.constant dense<0.000000e+00> : vector<512xf32>
    %30 = vector.multi_reduction <add>, %29, %cst_16 [0] : vector<8x512xf32> to vector<512xf32>
    %31 = vector.shape_cast %30 : vector<512xf32> to vector<1x512xf32>
    %32 = vector.shape_cast %31 : vector<1x512xf32> to vector<1x1x512xf32>
    %c0_17 = arith.constant 0 : index
    %c0_18 = arith.constant 0 : index
    %c0_19 = arith.constant 0 : index
    %33 = vector.load %arg8[%c0_17, %c0_18, %c0_19] : memref<1x1x512xf32, #tpu.memory_space<vmem>>, vector<1x1x512xf32>
    tpu.vector_store %arg8[%c0_17, %c0_18, %c0_19], %32 {strides = array<i32>} : memref<1x1x512xf32, #tpu.memory_space<vmem>>, vector<1x1x512xf32>,
    return
  }
  func.func @transform_0(%arg0: i32) -> (i32, i32) {
    %c0_i32 = arith.constant 0 : i32
    %c0_i32_0 = arith.constant 0 : i32
    return %arg0, %c0_i32 : i32, i32
  }
  func.func @transform_1(%arg0: i32) -> (i32, i32) {
    %c0_i32 = arith.constant 0 : i32
    %c0_i32_0 = arith.constant 0 : i32
    %c0_i32_1 = arith.constant 0 : i32
    return %c0_i32, %c0_i32_0 : i32, i32
  }
  func.func @transform_2(%arg0: i32) -> (i32, i32) {
    %c0_i32 = arith.constant 0 : i32
    %c0_i32_0 = arith.constant 0 : i32
    %c0_i32_1 = arith.constant 0 : i32
    return %c0_i32, %c0_i32_0 : i32, i32
  }
  func.func @transform_3(%arg0: i32) -> (i32, i32) {
    %c0_i32 = arith.constant 0 : i32
    %c0_i32_0 = arith.constant 0 : i32
    %c0_i32_1 = arith.constant 0 : i32
    return %c0_i32, %c0_i32_0 : i32, i32
  }
  func.func @transform_4(%arg0: i32) -> (i32, i32) {
    %c0_i32 = arith.constant 0 : i32
    %c0_i32_0 = arith.constant 0 : i32
    %c0_i32_1 = arith.constant 0 : i32
    return %c0_i32, %c0_i32_0 : i32, i32
  }
  func.func @transform_5(%arg0: i32) -> (i32, i32) {
    %c0_i32 = arith.constant 0 : i32
    %c0_i32_0 = arith.constant 0 : i32
    return %arg0, %c0_i32 : i32, i32
  }
  func.func @transform_6(%arg0: i32) -> (i32, i32, i32) {
    %c0_i32 = arith.constant 0 : i32
    %c0_i32_0 = arith.constant 0 : i32
    %c0_i32_1 = arith.constant 0 : i32
    return %arg0, %c0_i32, %c0_i32_0 : i32, i32, i32
  }
  func.func @transform_7(%arg0: i32) -> (i32, i32, i32) {
    %c0_i32 = arith.constant 0 : i32
    %c0_i32_0 = arith.constant 0 : i32
    %c0_i32_1 = arith.constant 0 : i32
    return %arg0, %c0_i32, %c0_i32_0 : i32, i32, i32
  }
}

</mosaic_0001>

<bundles_post_ra>
// kernel: a_call__.4
= control target key start
LH: loop header
LB: loop body
LE: loop exit
PB: predicated region body
PF: predicated region fallthrough
CT: control target
= control target key end

     0   :  { %s2422_s24 = smov 0   ;;  %s3770_s0 = inlined_call_operand.vmem [shape: f32[1024,75], index: 0, kind: input, shape index: {}]   ;;  %s3771_s1 = inlined_call_operand.vmem [shape: f32[75,32], index: 1, kind: input, shape index: {}]   ;;  %s3772_s2 = inlined_call_operand.vmem [shape: f32[1,32], index: 2, kind: input, shape index: {}]   ;;  %s3773_s3 = inlined_call_operand.vmem [shape: f32[1,75], index: 3, kind: input, shape index: {}]   ;;  %s3774_s4 = inlined_call_operand.vmem [shape: f32[1,75], index: 4, kind: input, shape index: {}]   ;;  %s3775_s5 = inlined_call_operand.vmem [shape: f32[1024,32], index: 5, kind: output, shape index: {0}]   ;;  %s3776_s6 = inlined_call_operand.vmem [shape: f32[2,1,32], index: 6, kind: output, shape index: {1}]   ;;  %s3777_s7 = inlined_call_operand.vmem [shape: f32[2,1,32], index: 7, kind: output, shape index: {2}]  }
   0x1 LB: > { %s2428_s25 = sadd.s32 4294967295, %s2378_s24   ;;  %p1999_p0 = scmp.ge.s32.totalorder %s2378_s24, 1  ;;  %s2378_s24 = sphi %s2422_s24, %s18_s24  }
   0x2   : > { %p243_p1 = scmp.lt.s32.totalorder %s2378_s24, 3 }
   0x4   : > { %p244_p2 = pnand %p1999_p0, %p243_p1 }
   0x6   : > { %247 = sbr.rel (%p244_p2) target bundleno = 399 (0x18f), region = 40 }
   0xd   : > { %v505_v0 = vld [vmem:[%s3771_s1] sm:$0xff]  ;;  %v506_v1 = vld [vmem:[%s3771_s1 + $0x8] sm:$0xff]  ;;  %v507_v2 = vld [vmem:[%s3771_s1 + $0x10] sm:$0xff]  ;;  %s2000_s9 = sshll.u32 %s2428_s25, 6  ;;  %vm522_vm0 = vcmask 613376   ;;  %vm715_vm1 = vcmask 1042432  }
   0xe   : > { %v2329_v3 = vpack.c.bf16 %v506_v1, %v505_v0  ;;  %v508_v4 = vld [vmem:[%s3771_s1 + $0x18] sm:$0xff]  ;;  %p282_p3 = scmp.lt.s32.totalorder %s2000_s9, 127  ;;  %v509_v6 = vld [vmem:[%s3771_s1 + $0x20] sm:$0xff]  ;;  %v510_v7 = vld [vmem:[%s3771_s1 + $0x28] sm:$0xff]  ;;  %vm2380_vm2 = vmmov 1   ;;  %s2072_s12 = sshll.u32 %s2428_s25, 9 }
   0xf   : > { %v2333_v5 = vpack.c.bf16 %v508_v4, %v507_v2  ;;  %v2337_v8 = vpack.c.bf16 %v510_v7, %v509_v6  ;;  %v2457_v9 = vld [vmem:[%s3773_s3] ss:$0 sm:$0xff]  ;;  %v511_v10 = vld [vmem:[%s3771_s1 + $0x30] sm:$0xff]  ;;  %v512_v11 = vld [vmem:[%s3771_s1 + $0x38] sm:$0xff]  ;;  %p293_p4 = scmp.lt.s32.totalorder %s2428_s25, 1 }
  0x10   : > { %2330 = vmatprep.subr.bf16.mxu0 %v2329_v3  ;;  %s3814_s9 = smov (!%p282_p3, %s2000_s9), 127  ;;  %2351 = vmatprep.subr.bf16.mxu1 %v2329_v3  ;;  %v2476_v13 = vld [vmem:[%s3774_s4] ss:$0 sm:$0xff]  ;;  %v2341_v15 = vpack.c.bf16 %v512_v11, %v511_v10  ;;  %v514_v17 = vld [vmem:[%s3771_s1 + $0x48] sm:$0x7]  ;;  %vm2489_vm3 = vmpackc.low %vm715_vm1, %vm2380_vm2 }
  0x11   : > { %2332 = vmatpush3.bf16.msra.mxu0 %v2329_v3  ;;  %2356 = vmatpush3.bf16.msra.mxu1 %v2329_v3  ;;  %s2001_s16 = sshll.u32 %s3814_s9, 3  ;;  %v513_v16 = vld [vmem:[%s3771_s1 + $0x40] sm:$0xff]  ;;  %s3816_s25 = smov (!%p293_p4, %s2428_s25), 1 }
  0x12   : > { %2334 = vmatprep.subr.bf16.mxu0 %v2333_v5  ;;  %2352 = vmatprep.subr.bf16.mxu1 %v2333_v5  ;;  %s2470_s27 = scalar_lea.vmem %s3770_s0, %s2001_s16  ;;  %v2345_v20 = vpack.c.bf16 %v514_v17, %v513_v16  ;;  %s3032_s18 = scalar_lea.vmem %s3775_s5, %s2001_s16 }
  0x13   : > { %v299_v12 = vld [vmem:[%s2470_s27] sm:$0xff]  ;;  %v300_v19 = vld [vmem:[%s2470_s27 + $0x8] sm:$0xff]  ;;  %v301_v21 = vld [vmem:[%s2470_s27 + $0x10] sm:$0xff]  ;;  %s295_s21 = scalar_lea.vmem %s3776_s6, %s3816_s25  ;;  %s298_s26 = scalar_lea.vmem %s3777_s7, %s3816_s25 }
  0x14   : > { %v370_v14 = vmul.f32 %v2457_v9, %v299_v12  ;;  %v371_v23 = vmul.f32 %v2457_v9, %v300_v19  ;;  %v372_v24 = vmul.f32 %v2457_v9, %v301_v21  ;;  %v302_v25 = vld [vmem:[%s2470_s27 + $0x18] sm:$0xff]  ;;  %v303_v26 = vld [vmem:[%s2470_s27 + $0x20] sm:$0xff]  ;;  %v304_v27 = vld [vmem:[%s2470_s27 + $0x28] sm:$0xff] }
  0x15   : > { %2336 = vmatpush3.bf16.msra.mxu0 %v2333_v5  ;;  %2357 = vmatpush3.bf16.msra.mxu1 %v2333_v5  ;;  %v327_v28 = vld [vmem:[%s2470_s27 + $0xe0] sm:$0xff]  ;;  %v373_v30 = vmul.f32 %v2457_v9, %v302_v25  ;;  %v374_v31 = vmul.f32 %v2457_v9, %v303_v26  ;;  %v305_v32 = vld [vmem:[%s2470_s27 + $0x30] sm:$0xff]  ;;  %v328_v33 = vld [vmem:[%s2470_s27 + $0xe8] sm:$0xff]  ;;  %v375_v40 = vmul.f32 %v2457_v9, %v304_v27 }
  0x16   : > { %2338 = vmatprep.subr.bf16.mxu0 %v2337_v8  ;;  %2353 = vmatprep.subr.bf16.mxu1 %v2337_v8  ;;  %v441_v18 = vadd.f32 %v2476_v13, %v370_v14  ;;  %v442_v29 = vadd.f32 %v2476_v13, %v371_v23  ;;  %v329_v34 = vld [vmem:[%s2470_s27 + $0xf0] sm:$0xff]  ;;  %v443_v35 = vadd.f32 %v2476_v13, %v372_v24  ;;  %v330_v36 = vld [vmem:[%s2470_s27 + $0xf8] sm:$0xff]  ;;  %v331_v38 = vld [vmem:[%s2470_s27 + $0x100] sm:$0xff] }
  0x17   : > { %v398_v37 = vmul.f32 %v2457_v9, %v327_v28  ;;  %v332_v39 = vld [vmem:[%s2470_s27 + $0x108] sm:$0xff]  ;;  %v376_v41 = vmul.f32 %v2457_v9, %v305_v32  ;;  %v399_v42 = vmul.f32 %v2457_v9, %v328_v33  ;;  %v400_v43 = vmul.f32 %v2457_v9, %v329_v34  ;;  %v333_v44 = vld [vmem:[%s2470_s27 + $0x110] sm:$0xff]  ;;  %v334_v45 = vld [vmem:[%s2470_s27 + $0x118] sm:$0xff] }
  0x18   : > { %2233 = vmatprep.mubr.msk.f32.mxu0 %vm522_vm0, %v441_v18  ;;  %v444_v46 = vadd.f32 %v2476_v13, %v373_v30  ;;  %v445_v47 = vadd.f32 %v2476_v13, %v374_v31  ;;  %v401_v49 = vmul.f32 %v2457_v9, %v330_v36  ;;  %v335_v50 = vld [vmem:[%s2470_s27 + $0x120] sm:$0xff]  ;;  %v306_v51 = vld [vmem:[%s2470_s27 + $0x38] sm:$0xff]  ;;  %v402_v54 = vmul.f32 %v2457_v9, %v331_v38  ;;  %v336_v63 = vld [vmem:[%s2470_s27 + $0x128] sm:$0xff] }
  0x19   : > { %2340 = vmatpush3.bf16.msra.mxu0 %v2337_v8  ;;  %2358 = vmatpush3.bf16.msra.mxu1 %v2337_v8  ;;  %v2528_v48 = vadd.f32 %v2476_v13, %v398_v37  ;;  %v2535_v52 = vadd.f32 %v2476_v13, %v399_v42  ;;  %v2538_v53 = vadd.f32 %v2476_v13, %v400_v43  ;;  %v307_v56 = vld [vmem:[%s2470_s27 + $0x40] sm:$0xff]  ;;  %v337_v3 = vld [vmem:[%s2470_s27 + $0x130] sm:$0xff]  ;;  %v308_v6 = vld [vmem:[%s2470_s27 + $0x48] sm:$0xff] }
  0x1a   : > { %2342 = vmatprep.subr.bf16.mxu0 %v2341_v15  ;;  %2354 = vmatprep.subr.bf16.mxu1 %v2341_v15  ;;  %v403_v55 = vmul.f32 %v2457_v9, %v332_v39  ;;  %v2544_v57 = vadd.f32 %v2476_v13, %v401_v49  ;;  %v404_v58 = vmul.f32 %v2457_v9, %v333_v44  ;;  %v309_v7 = vld [vmem:[%s2470_s27 + $0x50] sm:$0xff]  ;;  %v310_v8 = vld [vmem:[%s2470_s27 + $0x58] sm:$0xff]  ;;  %v339_v18 = vld [vmem:[%s2470_s27 + $0x140] sm:$0xff] }
  0x1b   : > { %v405_v59 = vmul.f32 %v2457_v9, %v334_v45  ;;  %v473_v60 = vadd.f32 %v2476_v13, %v402_v54  ;;  %v406_v62 = vmul.f32 %v2457_v9, %v335_v50  ;;  %v446_v0 = vadd.f32 %v2476_v13, %v375_v40  ;;  %v338_v12 = vld [vmem:[%s2470_s27 + $0x138] sm:$0xff]  ;;  %v311_v22 = vld [vmem:[%s2470_s27 + $0x60] sm:$0xff]  ;;  %v312_v23 = vld [vmem:[%s2470_s27 + $0x68] sm:$0xff] }
  0x1c   : > { %v474_v61 = vadd.f32 %v2476_v13, %v403_v55  ;;  %v377_v1 = vmul.f32 %v2457_v9, %v306_v51  ;;  %v475_v2 = vadd.f32 %v2476_v13, %v404_v58  ;;  %v447_v4 = vadd.f32 %v2476_v13, %v376_v41  ;;  %v313_v24 = vld [vmem:[%s2470_s27 + $0x70] sm:$0xff]  ;;  %v340_v27 = vld [vmem:[%s2470_s27 + $0x148] sm:$0xff]  ;;  %v358_v33 = vld [vmem:[%s2470_s27 + $0x1d8] sm:$0xff] }
  0x1d   : > { %2344 = vmatpush3.bf16.msra.mxu0 %v2341_v15  ;;  %2359 = vmatpush3.bf16.msra.mxu1 %v2341_v15  ;;  %v378_v5 = vmul.f32 %v2457_v9, %v307_v56  ;;  %v476_v10 = vadd.f32 %v2476_v13, %v405_v59  ;;  %v407_v11 = vmul.f32 %v2457_v9, %v336_v63  ;;  %v341_v28 = vld [vmem:[%s2470_s27 + $0x150] sm:$0xff]  ;;  %v356_v31 = vld [vmem:[%s2470_s27 + $0x1c8] sm:$0xff]  ;;  %v359_v38 = vld [vmem:[%s2470_s27 + $0x1e0] sm:$0xff] }
  0x1e   : > { %2347 = vmatprep.subr.msk.bf16.mxu0 %vm2489_vm3, %v2345_v20  ;;  %2355 = vmatprep.subr.msk.bf16.mxu1 %vm2489_vm3, %v2345_v20  ;;  %v477_v14 = vadd.f32 %v2476_v13, %v406_v62  ;;  %v408_v15 = vmul.f32 %v2457_v9, %v337_v3  ;;  %v448_v16 = vadd.f32 %v2476_v13, %v377_v1  ;;  %v357_v32 = vld [vmem:[%s2470_s27 + $0x1d0] sm:$0xff]  ;;  %v360_v39 = vld [vmem:[%s2470_s27 + $0x1e8] sm:$0xff]  ;;  %v362_v45 = vld [vmem:[%s2470_s27 + $0x1f8] sm:$0xff] }
  0x1f   : > { %2281 = vmatprep.mubr.msk.f32.mxu1 %vm522_vm0, %v473_v60  ;;  %v379_v17 = vmul.f32 %v2457_v9, %v308_v6  ;;  %v449_v19 = vadd.f32 %v2476_v13, %v378_v5  ;;  %v381_v21 = vmul.f32 %v2457_v9, %v310_v8  ;;  %v409_v25 = vmul.f32 %v2457_v9, %v338_v12  ;;  %v361_v40 = vld [vmem:[%s2470_s27 + $0x1f0] sm:$0xff]  ;;  %v342_v54 = vld [vmem:[%s2470_s27 + $0x158] sm:$0xff]  ;;  %v343_v59 = vld [vmem:[%s2470_s27 + $0x160] sm:$0xff] }
  0x20   : > { %v478_v26 = vadd.f32 %v2476_v13, %v407_v11  ;;  %v410_v30 = vmul.f32 %v2457_v9, %v339_v18  ;;  %v383_v36 = vmul.f32 %v2457_v9, %v312_v23  ;;  %v384_v37 = vmul.f32 %v2457_v9, %v313_v24  ;;  %v314_v1 = vld [vmem:[%s2470_s27 + $0x78] sm:$0xff]  ;;  %v315_v5 = vld [vmem:[%s2470_s27 + $0x80] sm:$0xff]  ;;  %v344_v12 = vld [vmem:[%s2470_s27 + $0x168] sm:$0xff] }
  0x21   : > { %2350 = vmatpush3.bf16.msk.msra.mxu0 %vm2489_vm3, %v2345_v20  ;;  %2360 = vmatpush3.bf16.msk.msra.mxu1 %vm2489_vm3, %v2345_v20  ;;  %v380_v20 = vmul.f32 %v2457_v9, %v309_v7  ;;  %v450_v34 = vadd.f32 %v2476_v13, %v379_v17  ;;  %v452_v42 = vadd.f32 %v2476_v13, %v381_v21 }
  0x22   : > { %v480_v43 = vadd.f32 %v2476_v13, %v409_v25  ;;  %v411_v44 = vmul.f32 %v2457_v9, %v340_v27  ;;  %v428_v49 = vmul.f32 %v2457_v9, %v357_v32  ;;  %v429_v50 = vmul.f32 %v2457_v9, %v358_v33  ;;  %v346_v25 = vld [vmem:[%s2470_s27 + $0x178] sm:$0xff]  ;;  %v319_v32 = vld [vmem:[%s2470_s27 + $0xa0] sm:$0xff] }
  0x23   : > { %v451_v41 = vadd.f32 %v2476_v13, %v380_v20  ;;  %v481_v51 = vadd.f32 %v2476_v13, %v410_v30  ;;  %v430_v55 = vmul.f32 %v2457_v9, %v359_v38  ;;  %v431_v56 = vmul.f32 %v2457_v9, %v360_v39  ;;  %v317_v20 = vld [vmem:[%s2470_s27 + $0x90] sm:$0xff] }
  0x24   : > { %2234 = vmatmul.mubr.msk.f32.vlgmr.msra.gmra.mrb[0].mxu0 %vm522_vm0, %v442_v29  ;;  %2282 = vmatmul.mubr.msk.f32.vlgmr.msra.gmra.mrb[0].mxu1 %vm522_vm0, %v474_v61  ;;  %v479_v29 = vadd.f32 %v2476_v13, %v408_v15  ;;  %v432_v58 = vmul.f32 %v2457_v9, %v361_v40  ;;  %v2624_v61 = vadd.f32 %v2476_v13, %v428_v49  ;;  %v349_v40 = vld [vmem:[%s2470_s27 + $0x190] sm:$0xff] }
  0x25   : > { %2236 = vmatprep.mubr.msk.f32.mxu0 %vm522_vm0, %v443_v35  ;;  %2284 = vmatprep.mubr.msk.f32.mxu1 %vm522_vm0, %v475_v2  ;;  %v382_v35 = vmul.f32 %v2457_v9, %v311_v22  ;;  %v2627_v62 = vadd.f32 %v2476_v13, %v429_v50  ;;  %v433_v63 = vmul.f32 %v2457_v9, %v362_v45  ;;  %v350_v50 = vld [vmem:[%s2470_s27 + $0x198] sm:$0xff] }
  0x26   : > { %v2634_v2 = vadd.f32 %v2476_v13, %v430_v55  ;;  %v2637_v3 = vadd.f32 %v2476_v13, %v431_v56  ;;  %v482_v6 = vadd.f32 %v2476_v13, %v411_v44  ;;  %v413_v7 = vmul.f32 %v2457_v9, %v342_v54  ;;  %v321_v44 = vld [vmem:[%s2470_s27 + $0xb0] sm:$0xff]  ;;  %v351_v55 = vld [vmem:[%s2470_s27 + $0x1a0] sm:$0xff] }
  0x27   : > { %v2647_v8 = vadd.f32 %v2476_v13, %v433_v63  ;;  %v414_v11 = vmul.f32 %v2457_v9, %v343_v59  ;;  %v385_v15 = vmul.f32 %v2457_v9, %v314_v1  ;;  %v455_v17 = vadd.f32 %v2476_v13, %v384_v37  ;;  %v348_v37 = vld [vmem:[%s2470_s27 + $0x188] sm:$0xff]  ;;  %v322_v59 = vld [vmem:[%s2470_s27 + $0xb8] sm:$0xff]  ;;  %v323_v63 = vld [vmem:[%s2470_s27 + $0xc0] sm:$0xff] }
  0x28   : > { %2237 = vmatmul.mubr.msk.f32.gmra.mrb[2].mxu0 %vm522_vm0, %v444_v46  ;;  %2285 = vmatmul.mubr.msk.f32.gmra.mrb[2].mxu1 %vm522_vm0, %v476_v10  ;;  %v412_v46 = vmul.f32 %v2457_v9, %v341_v28  ;;  %v386_v18 = vmul.f32 %v2457_v9, %v315_v5  ;;  %v484_v21 = vadd.f32 %v2476_v13, %v413_v7  ;;  %v347_v28 = vld [vmem:[%s2470_s27 + $0x180] sm:$0xff]  ;;  %v352_v7 = vld [vmem:[%s2470_s27 + $0x1a8] sm:$0xff] }
  0x29   : > { %2239 = vmatprep.mubr.msk.f32.mxu0 %vm522_vm0, %v445_v47  ;;  %2287 = vmatprep.mubr.msk.f32.mxu1 %vm522_vm0, %v477_v14  ;;  %v427_v47 = vmul.f32 %v2457_v9, %v356_v31  ;;  %v454_v14 = vadd.f32 %v2476_v13, %v383_v36  ;;  %v415_v22 = vmul.f32 %v2457_v9, %v344_v12  ;;  %v318_v31 = vld [vmem:[%s2470_s27 + $0x98] sm:$0xff]  ;;  %v353_v12 = vld [vmem:[%s2470_s27 + $0x1b0] sm:$0xff] }
  0x2a   : > { %v483_v10 = vadd.f32 %v2476_v13, %v412_v46  ;;  %v485_v23 = vadd.f32 %v2476_v13, %v414_v11  ;;  %v388_v30 = vmul.f32 %v2457_v9, %v317_v20  ;;  %v418_v36 = vmul.f32 %v2457_v9, %v347_v28  ;;  %v326_v28 = vld [vmem:[%s2470_s27 + $0xd8] sm:$0xff] }
  0x2b   : > { %v2621_v60 = vadd.f32 %v2476_v13, %v427_v47  ;;  %v486_v33 = vadd.f32 %v2476_v13, %v415_v22  ;;  %v389_v39 = vmul.f32 %v2457_v9, %v318_v31  ;;  %v419_v46 = vmul.f32 %v2457_v9, %v348_v37  ;;  %v354_v22 = vld [vmem:[%s2470_s27 + $0x1b8] sm:$0xff] }
  0x2c   : > { %2240 = vmatmul.mubr.msk.f32.gmra.mrb[4].mxu0 %vm522_vm0, %v446_v0  ;;  %2288 = vmatmul.mubr.msk.f32.gmra.mrb[4].mxu1 %vm522_vm0, %v478_v26  ;;  %v453_v0 = vadd.f32 %v2476_v13, %v382_v35  ;;  %v456_v26 = vadd.f32 %v2476_v13, %v385_v15  ;;  %v489_v47 = vadd.f32 %v2476_v13, %v418_v36 }
  0x2d   : > { %2242 = vmatprep.mubr.msk.f32.mxu0 %vm522_vm0, %v447_v4  ;;  %2290 = vmatprep.mubr.msk.f32.mxu1 %vm522_vm0, %v479_v29  ;;  %v2640_v4 = vadd.f32 %v2476_v13, %v432_v58  ;;  %v457_v29 = vadd.f32 %v2476_v13, %v386_v18  ;;  %v420_v49 = vmul.f32 %v2457_v9, %v349_v40 }
  0x2e   : > { %v392_v58 = vmul.f32 %v2457_v9, %v321_v44  ;;  %v421_v1 = vmul.f32 %v2457_v9, %v350_v50  ;;  %v393_v11 = vmul.f32 %v2457_v9, %v322_v59  ;;  %v394_v15 = vmul.f32 %v2457_v9, %v323_v63 }
  0x2f   : > { %v491_v5 = vadd.f32 %v2476_v13, %v420_v49  ;;  %v3778_v63 = vmov 0.0  }
  0x30   : > { %2243 = vmatmul.mubr.msk.f32.gmra.mrb[6].mxu0 %vm522_vm0, %v448_v16  ;;  %2291 = vmatmul.mubr.msk.f32.gmra.mrb[6].mxu1 %vm522_vm0, %v480_v43  ;;  %v345_v16 = vld [vmem:[%s2470_s27 + $0x170] sm:$0xff]  ;;  %v320_v43 = vld [vmem:[%s2470_s27 + $0xa8] sm:$0xff]  ;;  %v492_v18 = vadd.f32 %v2476_v13, %v421_v1 }
  0x31   : > { %2245 = vmatprep.mubr.msk.f32.mxu0 %vm522_vm0, %v449_v19  ;;  %2293 = vmatprep.mubr.msk.f32.mxu1 %vm522_vm0, %v481_v51  ;;  %v316_v19 = vld [vmem:[%s2470_s27 + $0x88] sm:$0xff]  ;;  %v416_v24 = vmul.f32 %v2457_v9, %v345_v16  ;;  %v460_v51 = vadd.f32 %v2476_v13, %v389_v39  ;;  %v391_v54 = vmul.f32 %v2457_v9, %v320_v43 }
  0x32   : > { %v387_v27 = vmul.f32 %v2457_v9, %v316_v19  ;;  %v324_v16 = vld [vmem:[%s2470_s27 + $0xc8] sm:$0xff]  ;;  %v423_v19 = vmul.f32 %v2457_v9, %v352_v7 }
  0x33   : > { %v487_v35 = vadd.f32 %v2476_v13, %v416_v24  ;;  %v395_v24 = vmul.f32 %v2457_v9, %v324_v16 }
  0x34   : > { %2246 = vmatmul.mubr.msk.f32.gmra.mrb[8].mxu0 %vm522_vm0, %v450_v34  ;;  %2294 = vmatmul.mubr.msk.f32.gmra.mrb[8].mxu1 %vm522_vm0, %v482_v6  ;;  %v417_v34 = vmul.f32 %v2457_v9, %v346_v25  ;;  %v458_v38 = vadd.f32 %v2476_v13, %v387_v27  ;;  %v422_v6 = vmul.f32 %v2457_v9, %v351_v55  ;;  %v355_v25 = vld [vmem:[%s2470_s27 + $0x1c0] sm:$0xff] }
  0x35   : > { %2248 = vmatprep.mubr.msk.f32.mxu0 %vm522_vm0, %v451_v41  ;;  %2296 = vmatprep.mubr.msk.f32.mxu1 %vm522_vm0, %v483_v10  ;;  %v459_v41 = vadd.f32 %v2476_v13, %v388_v30  ;;  %v462_v10 = vadd.f32 %v2476_v13, %v391_v54  ;;  %v425_v30 = vmul.f32 %v2457_v9, %v354_v22 }
  0x36   : > { %v488_v45 = vadd.f32 %v2476_v13, %v417_v34  ;;  %v493_v20 = vadd.f32 %v2476_v13, %v422_v6  ;;  %v397_v34 = vmul.f32 %v2457_v9, %v326_v28 }
  0x37   : > { %v496_v36 = vadd.f32 %v2476_v13, %v425_v30 }
  0x38   : > { %2249 = vmatmul.mubr.msk.f32.gmra.mrb[10].mxu0 %vm522_vm0, %v452_v42  ;;  %2297 = vmatmul.mubr.msk.f32.gmra.mrb[10].mxu1 %vm522_vm0, %v484_v21  ;;  %v390_v42 = vmul.f32 %v2457_v9, %v319_v32  ;;  %v424_v21 = vmul.f32 %v2457_v9, %v353_v12  ;;  %v426_v32 = vmul.f32 %v2457_v9, %v355_v25 }
  0x39   : > { %2251 = vmatprep.mubr.msk.f32.mxu0 %vm522_vm0, %v453_v0  ;;  %2299 = vmatprep.mubr.msk.f32.mxu1 %vm522_vm0, %v485_v23  ;;  %v490_v0 = vadd.f32 %v2476_v13, %v419_v46  ;;  %v464_v23 = vadd.f32 %v2476_v13, %v393_v11 }
  0x3a   : > { %v461_v56 = vadd.f32 %v2476_v13, %v390_v42  ;;  %v495_v31 = vadd.f32 %v2476_v13, %v424_v21  ;;  %v497_v37 = vadd.f32 %v2476_v13, %v426_v32 }
  0x3c   : > { %2252 = vmatmul.mubr.msk.f32.gmra.mrb[12].mxu0 %vm522_vm0, %v454_v14  ;;  %2300 = vmatmul.mubr.msk.f32.gmra.mrb[12].mxu1 %vm522_vm0, %v486_v33  ;;  %v463_v14 = vadd.f32 %v2476_v13, %v392_v58  ;;  %v466_v33 = vadd.f32 %v2476_v13, %v395_v24 }
  0x3d   : > { %2254 = vmatprep.mubr.msk.f32.mxu0 %vm522_vm0, %v455_v17  ;;  %2302 = vmatprep.mubr.msk.f32.mxu1 %vm522_vm0, %v487_v35  ;;  %v325_v17 = vld [vmem:[%s2470_s27 + $0xd0] sm:$0xff] }
  0x3e   : > { %v396_v27 = vmul.f32 %v2457_v9, %v325_v17  ;;  %v1169_v9 = vlaneseq }
  0x40   : > { %2255 = vmatmul.mubr.msk.f32.gmra.mrb[14].mxu0 %vm522_vm0, %v456_v26  ;;  %2303 = vmatmul.mubr.msk.f32.gmra.mrb[14].mxu1 %vm522_vm0, %v488_v45  ;;  %v465_v26 = vadd.f32 %v2476_v13, %v394_v15  ;;  %v467_v35 = vadd.f32 %v2476_v13, %v396_v27 }
  0x41   : > { %2257 = vmatprep.mubr.msk.f32.mxu0 %vm522_vm0, %v457_v29  ;;  %2305 = vmatprep.mubr.msk.f32.mxu1 %vm522_vm0, %v489_v47  ;;  %v494_v29 = vadd.f32 %v2476_v13, %v423_v19 }
  0x44   : > { %2258 = vmatmul.mubr.msk.f32.gmra.mrb[16].mxu0 %vm522_vm0, %v458_v38  ;;  %2306 = vmatmul.mubr.msk.f32.gmra.mrb[16].mxu1 %vm522_vm0, %v490_v0  ;;  %v468_v38 = vadd.f32 %v2476_v13, %v397_v34  ;;  %v2784_v13 = vshrl.u32 %v1169_v9, 7 }
  0x45   : > { %2260 = vmatprep.mubr.msk.f32.mxu0 %vm522_vm0, %v459_v41  ;;  %2308 = vmatprep.mubr.msk.f32.mxu1 %vm522_vm0, %v491_v5 }
  0x46   : > { %v1176_v41 = vadd.s32 48, %v2784_v13  ;;  %v1179_v43 = vadd.s32 72, %v2784_v13  ;;  %v1178_v44 = vadd.s32 64, %v2784_v13  ;;  %v1181_v45 = vadd.s32 88, %v2784_v13 }
  0x47   : > { %v1180_v46 = vadd.s32 80, %v2784_v13  ;;  %v1183_v47 = vadd.s32 104, %v2784_v13  ;;  %v1182_v58 = vadd.s32 96, %v2784_v13  ;;  %v1185_v59 = vadd.s32 120, %v2784_v13 }
  0x48   : > { %2261 = vmatmul.mubr.msk.f32.gmra.mrb[18].mxu0 %vm522_vm0, %v460_v51  ;;  %2309 = vmatmul.mubr.msk.f32.gmra.mrb[18].mxu1 %vm522_vm0, %v492_v18  ;;  %v1184_v6 = vadd.s32 112, %v2784_v13  ;;  %v1187_v17 = vadd.s32 136, %v2784_v13  ;;  %v1186_v18 = vadd.s32 128, %v2784_v13  ;;  %v1189_v19 = vadd.s32 152, %v2784_v13 }
  0x49   : > { %2263 = vmatprep.mubr.msk.f32.mxu0 %vm522_vm0, %v461_v56  ;;  %2311 = vmatprep.mubr.msk.f32.mxu1 %vm522_vm0, %v493_v20  ;;  %v1188_v21 = vadd.s32 144, %v2784_v13  ;;  %v1191_v22 = vadd.s32 168, %v2784_v13  ;;  %v1193_v27 = vadd.s32 184, %v2784_v13  ;;  %v1194_v9 = vadd.s32 192, %v2784_v13 }
  0x4c   : > { %2264 = vmatmul.mubr.msk.f32.gmra.mrb[20].mxu0 %vm522_vm0, %v462_v10  ;;  %2312 = vmatmul.mubr.msk.f32.gmra.mrb[20].mxu1 %vm522_vm0, %v494_v29 }
  0x4d   : > { %2266 = vmatprep.mubr.msk.f32.mxu0 %vm522_vm0, %v463_v14  ;;  %2314 = vmatprep.mubr.msk.f32.mxu1 %vm522_vm0, %v495_v31 }
  0x50   : > { %2267 = vmatmul.mubr.msk.f32.gmra.mrb[22].mxu0 %vm522_vm0, %v464_v23  ;;  %2315 = vmatmul.mubr.msk.f32.gmra.mrb[22].mxu1 %vm522_vm0, %v496_v36  ;;  %v1190_v23 = vadd.s32 160, %v2784_v13  ;;  %v1192_v36 = vadd.s32 176, %v2784_v13 }
  0x51   : > { %2269 = vmatprep.mubr.msk.f32.mxu0 %vm522_vm0, %v465_v26  ;;  %2317 = vmatprep.mubr.msk.f32.mxu1 %vm522_vm0, %v497_v37 }
  0x54   : > { %2270 = vmatmul.mubr.msk.f32.gmra.mrb[24].mxu0 %vm522_vm0, %v466_v33  ;;  %2318 = vmatmul.mubr.msk.f32.gmra.mrb[24].mxu1 %vm522_vm0, %v2621_v60  ;;  %v1175_v60 = vadd.s32 40, %v2784_v13 }
  0x55   : > { %2272 = vmatprep.mubr.msk.f32.mxu0 %vm522_vm0, %v467_v35  ;;  %2320 = vmatprep.mubr.msk.f32.mxu1 %vm522_vm0, %v2624_v61  ;;  %v1174_v61 = vadd.s32 32, %v2784_v13 }
  0x58   : > { %2273 = vmatmul.mubr.msk.f32.gmra.mrb[26].mxu0 %vm522_vm0, %v468_v38  ;;  %2321 = vmatmul.mubr.msk.f32.gmra.mrb[26].mxu1 %vm522_vm0, %v2627_v62  ;;  %v1177_v62 = vadd.s32 56, %v2784_v13  ;;  %v1195_v38 = vadd.s32 200, %v2784_v13 }
  0x59   : > { %2275 = vmatprep.mubr.msk.f32.mxu0 %vm522_vm0, %v2528_v48  ;;  %2323 = vmatprep.mubr.msk.f32.mxu1 %vm522_vm0, %v2634_v2  ;;  %v1171_v48 = vadd.s32 8, %v2784_v13 }
  0x5c   : > { %2276 = vmatmul.mubr.msk.f32.gmra.mrb[28].mxu0 %vm522_vm0, %v2535_v52  ;;  %2324 = vmatmul.mubr.msk.f32.gmra.mrb[28].mxu1 %vm522_vm0, %v2637_v3  ;;  %v1173_v52 = vadd.s32 24, %v2784_v13 }
  0x5d   : > { %2278 = vmatprep.mubr.msk.f32.mxu0 %vm522_vm0, %v2538_v53  ;;  %2326 = vmatprep.mubr.msk.f32.mxu1 %vm522_vm0, %v2640_v4  ;;  %v2789_v53 = vstv %s2072_s12 }
  0x5e   : > { %v1237_v2 = vadd.s32 %v2789_v53, %v1171_v48  ;;  %v1236_v3 = vadd.s32 %v2789_v53, %v2784_v13  ;;  %v1239_v4 = vadd.s32 %v2789_v53, %v1173_v52  ;;  %v1241_v39 = vadd.s32 %v2789_v53, %v1175_v60 }
  0x5f   : > { %v1240_v40 = vadd.s32 %v2789_v53, %v1174_v61  ;;  %v1243_v42 = vadd.s32 %v2789_v53, %v1177_v62  ;;  %v1242_v49 = vadd.s32 %v2789_v53, %v1176_v41  ;;  %v1245_v50 = vadd.s32 %v2789_v53, %v1179_v43 }
  0x60   : > { %2279 = vmatmul.mubr.msk.f32.gmra.mrb[30].mxu0 %vm522_vm0, %v2544_v57  ;;  %2327 = vmatmul.mubr.msk.f32.gmra.mrb[30].mxu1 %vm522_vm0, %v2647_v8  ;;  %v1172_v57 = vadd.s32 16, %v2784_v13  ;;  %vm1301_vm4 = vcmp.lt.s32.totalorder %v1237_v2, 968  ;;  %vm1300_vm5 = vcmp.lt.s32.totalorder %v1236_v3, 968  ;;  %vm1303_vm6 = vcmp.lt.s32.totalorder %v1239_v4, 968 }
  0x61   : > { %vm1305_vm8 = vcmp.lt.s32.totalorder %v1241_v39, 968  ;;  %vm1304_vm9 = vcmp.lt.s32.totalorder %v1240_v40, 968  ;;  %vm1307_vm10 = vcmp.lt.s32.totalorder %v1243_v42, 968  ;;  %v1244_v51 = vadd.s32 %v2789_v53, %v1178_v44 }
  0x62   : > { %v1238_v8 = vadd.s32 %v2789_v53, %v1172_v57  ;;  %v1247_v54 = vadd.s32 %v2789_v53, %v1181_v45  ;;  %v1246_v55 = vadd.s32 %v2789_v53, %v1180_v46  ;;  %v1249_v56 = vadd.s32 %v2789_v53, %v1183_v47 }
  0x63   : > { %v2819_v0 = vsel %vm1301_vm4, 1.0, %v3778_v63  ;;  %v2823_v1 = vsel %vm1300_vm5, 1.0, %v3778_v63  ;;  %v2827_v5 = vsel %vm1303_vm6, 1.0, %v3778_v63  ;;  %v2836_v10 = vsel %vm1305_vm8, 1.0, %v3778_v63 }
  0x64   : > { %vm1302_vm7 = vcmp.lt.s32.totalorder %v1238_v8, 968  ;;  %v2840_v11 = vsel %vm1304_vm9, 1.0, %v3778_v63  ;;  %v2844_v12 = vsel %vm1307_vm10, 1.0, %v3778_v63  ;;  %vm1306_vm11 = vcmp.lt.s32.totalorder %v1242_v49, 968 }
  0x65   : > { %v2832_v7 = vsel %vm1302_vm7, 1.0, %v3778_v63  ;;  %vm1309_vm12 = vcmp.lt.s32.totalorder %v1245_v50, 968  ;;  %vm1308_vm13 = vcmp.lt.s32.totalorder %v1244_v51, 968  ;;  %vm1311_vm14 = vcmp.lt.s32.totalorder %v1247_v54, 968 }
  0x66   : > { %vm1310_vm15 = vcmp.lt.s32.totalorder %v1246_v55, 968  ;;  %vm1313_vm0 = vcmp.lt.s32.totalorder %v1249_v56, 968  ;;  %v1248_v14 = vadd.s32 %v2789_v53, %v1182_v58  ;;  %v1251_v15 = vadd.s32 %v2789_v53, %v1185_v59 }
  0x67   : > { %v1250_v16 = vadd.s32 %v2789_v53, %v1184_v6  ;;  %v2853_v20 = vsel %vm1306_vm11, 1.0, %v3778_v63  ;;  %v2859_v24 = vsel %vm1309_vm12, 1.0, %v3778_v63  ;;  %v2862_v25 = vsel %vm1308_vm13, 1.0, %v3778_v63 }
  0x68   : > { %v2865_v26 = vsel %vm1311_vm14, 1.0, %v3778_v63  ;;  %v2870_v28 = vsel %vm1310_vm15, 1.0, %v3778_v63  ;;  %v2874_v29 = vsel %vm1313_vm0, 1.0, %v3778_v63  ;;  %vm1312_vm1 = vcmp.lt.s32.totalorder %v1248_v14, 968 }
  0x69   : > { %vm1315_vm2 = vcmp.lt.s32.totalorder %v1251_v15, 968  ;;  %vm1314_vm3 = vcmp.lt.s32.totalorder %v1250_v16, 968  ;;  %v1253_v30 = vadd.s32 %v2789_v53, %v1187_v17  ;;  %v1252_v31 = vadd.s32 %v2789_v53, %v1186_v18 }
  0x6a   : > { %v1255_v32 = vadd.s32 %v2789_v53, %v1189_v19  ;;  %v1254_v33 = vadd.s32 %v2789_v53, %v1188_v21  ;;  %v1257_v34 = vadd.s32 %v2789_v53, %v1191_v22  ;;  %v1256_v35 = vadd.s32 %v2789_v53, %v1190_v23 }
  0x6b   : > { %v1259_v37 = vadd.s32 %v2789_v53, %v1193_v27  ;;  %v1197_v48 = vadd.s32 216, %v2784_v13  ;;  %v2888_v52 = vsel %vm1312_vm1, 1.0, %v3778_v63  ;;  %v2891_v57 = vsel %vm1315_vm2, 1.0, %v3778_v63 }
  0x6c   : > { %v1196_v60 = vadd.s32 208, %v2784_v13  ;;  %v1199_v61 = vadd.s32 232, %v2784_v13  ;;  %v2897_v62 = vsel %vm1314_vm3, 1.0, %v3778_v63  ;;  %vm1317_vm4 = vcmp.lt.s32.totalorder %v1253_v30, 968 }
  0x6d   : > { %vm1316_vm5 = vcmp.lt.s32.totalorder %v1252_v31, 968  ;;  %vm1319_vm6 = vcmp.lt.s32.totalorder %v1255_v32, 968  ;;  %vm1318_vm7 = vcmp.lt.s32.totalorder %v1254_v33, 968  ;;  %vm1321_vm8 = vcmp.lt.s32.totalorder %v1257_v34, 968 }
  0x6e   : > { %vm1320_vm9 = vcmp.lt.s32.totalorder %v1256_v35, 968  ;;  %v1258_v2 = vadd.s32 %v2789_v53, %v1192_v36  ;;  %vm1323_vm10 = vcmp.lt.s32.totalorder %v1259_v37, 968  ;;  %v1261_v3 = vadd.s32 %v2789_v53, %v1195_v38 }
  0x6f   : > { %v1260_v4 = vadd.s32 %v2789_v53, %v1194_v9  ;;  %v1263_v8 = vadd.s32 %v2789_v53, %v1197_v48  ;;  %v1262_v39 = vadd.s32 %v2789_v53, %v1196_v60  ;;  %v1265_v40 = vadd.s32 %v2789_v53, %v1199_v61 }
  0x70   : > { %v1198_v41 = vadd.s32 224, %v2784_v13  ;;  %v1201_v42 = vadd.s32 248, %v2784_v13  ;;  %v2908_v43 = vsel %vm1317_vm4, 1.0, %v3778_v63  ;;  %v2911_v44 = vsel %vm1316_vm5, 1.0, %v3778_v63 }
  0x71   : > { %v2914_v45 = vsel %vm1319_vm6, 1.0, %v3778_v63  ;;  %v1200_v46 = vadd.s32 240, %v2784_v13  ;;  %v2919_v47 = vsel %vm1318_vm7, 1.0, %v3778_v63  ;;  %v2923_v49 = vsel %vm1321_vm8, 1.0, %v3778_v63 }
  0x72   : > { %v2927_v50 = vsel %vm1320_vm9, 1.0, %v3778_v63  ;;  %v2930_v51 = vsel %vm1323_vm10, 1.0, %v3778_v63  ;;  %vm1322_vm11 = vcmp.lt.s32.totalorder %v1258_v2, 968  ;;  %vm1325_vm12 = vcmp.lt.s32.totalorder %v1261_v3, 968 }
  0x73   : > { %vm1324_vm13 = vcmp.lt.s32.totalorder %v1260_v4, 968  ;;  %vm1327_vm14 = vcmp.lt.s32.totalorder %v1263_v8, 968  ;;  %vm1326_vm15 = vcmp.lt.s32.totalorder %v1262_v39, 968  ;;  %vm1329_vm0 = vcmp.lt.s32.totalorder %v1265_v40, 968 }
  0x74   : > { %v1264_v54 = vadd.s32 %v2789_v53, %v1198_v41  ;;  %v1267_v55 = vadd.s32 %v2789_v53, %v1201_v42  ;;  %v1266_v56 = vadd.s32 %v2789_v53, %v1200_v46  ;;  %v1203_v58 = vadd.s32 264, %v2784_v13 }
  0x75   : > { %v1202_v59 = vadd.s32 256, %v2784_v13  ;;  %v1205_v6 = vadd.s32 280, %v2784_v13  ;;  %v2939_v14 = vsel %vm1322_vm11, 1.0, %v3778_v63  ;;  %v1204_v15 = vadd.s32 272, %v2784_v13 }
  0x76   : > { %v1207_v16 = vadd.s32 296, %v2784_v13  ;;  %v1206_v17 = vadd.s32 288, %v2784_v13  ;;  %v2945_v18 = vsel %vm1325_vm12, 1.0, %v3778_v63  ;;  %v2948_v19 = vsel %vm1324_vm13, 1.0, %v3778_v63 }
  0x77   : > { %v2951_v21 = vsel %vm1327_vm14, 1.0, %v3778_v63  ;;  %v1209_v22 = vadd.s32 312, %v2784_v13  ;;  %v2956_v23 = vsel %vm1326_vm15, 1.0, %v3778_v63  ;;  %v2960_v27 = vsel %vm1329_vm0, 1.0, %v3778_v63 }
  0x78   : > { %vm1328_vm1 = vcmp.lt.s32.totalorder %v1264_v54, 968  ;;  %vm1331_vm2 = vcmp.lt.s32.totalorder %v1267_v55, 968  ;;  %vm1330_vm3 = vcmp.lt.s32.totalorder %v1266_v56, 968  ;;  %v1269_v30 = vadd.s32 %v2789_v53, %v1203_v58 }
  0x79   : > { %v1268_v31 = vadd.s32 %v2789_v53, %v1202_v59  ;;  %v1271_v32 = vadd.s32 %v2789_v53, %v1205_v6  ;;  %v1270_v33 = vadd.s32 %v2789_v53, %v1204_v15  ;;  %v1273_v34 = vadd.s32 %v2789_v53, %v1207_v16  ;;  %v3008_v15 = vld [vmem:[%s3772_s2] ss:$0 sm:$0xff] }
  0x7a   : > { %v1272_v35 = vadd.s32 %v2789_v53, %v1206_v17  ;;  %v1208_v36 = vadd.s32 304, %v2784_v13  ;;  %v2970_v37 = vsel %vm1328_vm1, 1.0, %v3778_v63  ;;  %v1275_v38 = vadd.s32 %v2789_v53, %v1209_v22 }
  0x7b   : > { %v1211_v9 = vadd.s32 328, %v2784_v13  ;;  %v1210_v48 = vadd.s32 320, %v2784_v13  ;;  %vm1104_vm4 = vcmask 261120   ;;  %v2976_v60 = vsel %vm1331_vm2, 1.0, %v3778_v63 }
  0x7c   : > { %v2979_v61 = vsel %vm1330_vm3, 1.0, %v3778_v63  ;;  %v1213_v2 = vadd.s32 344, %v2784_v13  ;;  %v1212_v3 = vadd.s32 336, %v2784_v13  ;;  %vm1333_vm5 = vcmp.lt.s32.totalorder %v1269_v30, 968 }
  0x7d   : > { %vm1332_vm6 = vcmp.lt.s32.totalorder %v1268_v31, 968  ;;  %vm1335_vm7 = vcmp.lt.s32.totalorder %v1271_v32, 968  ;;  %v1215_v4 = vadd.s32 360, %v2784_v13  ;;  %vm1334_vm8 = vcmp.lt.s32.totalorder %v1270_v33, 968 }
  0x7e   : > { %vm1337_vm9 = vcmp.lt.s32.totalorder %v1273_v34, 968  ;;  %vm1336_vm10 = vcmp.lt.s32.totalorder %v1272_v35, 968  ;;  %v1274_v8 = vadd.s32 %v2789_v53, %v1208_v36  ;;  %vm1339_vm11 = vcmp.lt.s32.totalorder %v1275_v38, 968 }
  0x7f   : > { %v1277_v39 = vadd.s32 %v2789_v53, %v1211_v9  ;;  %v1276_v40 = vadd.s32 %v2789_v53, %v1210_v48  ;;  %v1214_v41 = vadd.s32 352, %v2784_v13  ;;  %v1279_v42 = vadd.s32 %v2789_v53, %v1213_v2 }
  0x80   : > { %v1278_v46 = vadd.s32 %v2789_v53, %v1212_v3  ;;  %v1217_v54 = vadd.s32 376, %v2784_v13  ;;  %v1216_v55 = vadd.s32 368, %v2784_v13  ;;  %v2994_v56 = vsel %vm1333_vm5, 1.0, %v3778_v63 }
  0x81   : > { %v2998_v58 = vsel %vm1332_vm6, 1.0, %v3778_v63  ;;  %v3002_v59 = vsel %vm1335_vm7, 1.0, %v3778_v63  ;;  %v1281_v6 = vadd.s32 %v2789_v53, %v1215_v4  ;;  %v3012_v16 = vsel %vm1334_vm8, 1.0, %v3778_v63 }
  0x82   : > { %v3016_v17 = vsel %vm1337_vm9, 1.0, %v3778_v63  ;;  %v3020_v22 = vsel %vm1336_vm10, 1.0, %v3778_v63  ;;  %vm1338_vm12 = vcmp.lt.s32.totalorder %v1274_v8, 968  ;;  %v3024_v30 = vsel %vm1339_vm11, 1.0, %v3778_v63 }
  0x83   : > { %3782 = vst [vmem:[#allocation2_spill] sm:$0xff] %v3016_v17  ;;  %3783 = vst [vmem:[#allocation3_spill] sm:$0xff] %v3024_v30  ;;  %vm1341_vm13 = vcmp.lt.s32.totalorder %v1277_v39, 968  ;;  %vm1340_vm14 = vcmp.lt.s32.totalorder %v1276_v40, 968  ;;  %v1280_v31 = vadd.s32 %v2789_v53, %v1214_v41  ;;  %vm1343_vm15 = vcmp.lt.s32.totalorder %v1279_v42, 968 }
  0x84   : > { %vm1342_vm0 = vcmp.lt.s32.totalorder %v1278_v46, 968  ;;  %v1283_v33 = vadd.s32 %v2789_v53, %v1217_v54  ;;  %v1282_v34 = vadd.s32 %v2789_v53, %v1216_v55  ;;  %v3038_v38 = vsel %vm1338_vm12, 1.0, %v3778_v63 }
  0x85   : > { %3784 = vst [vmem:[#allocation4_spill] sm:$0xff] %v3038_v38  ;;  %vm1345_vm1 = vcmp.lt.s32.totalorder %v1281_v6, 968  ;;  %v1219_v9 = vadd.s32 392, %v2784_v13  ;;  %v3043_v2 = vsel %vm1341_vm13, 1.0, %v3778_v63  ;;  %v3046_v3 = vsel %vm1340_vm14, 1.0, %v3778_v63 }
  0x86   : > { %3785 = vst [vmem:[#allocation5_spill] sm:$0xff] %v3043_v2  ;;  %3786 = vst [vmem:[#allocation6_spill] sm:$0xff] %v3046_v3  ;;  %v1218_v4 = vadd.s32 384, %v2784_v13  ;;  %v3053_v39 = vsel %vm1343_vm15, 1.0, %v3778_v63  ;;  %v3056_v40 = vsel %vm1342_vm0, 1.0, %v3778_v63  ;;  %vm1344_vm2 = vcmp.lt.s32.totalorder %v1280_v31, 968 }
  0x87   : > { %3787 = vst [vmem:[#allocation7_spill] sm:$0xff] %v3053_v39  ;;  %3788 = vst [vmem:[#allocation8_spill] sm:$0xff] %v3056_v40  ;;  %v3062_v46 = vsel %vm1345_vm1, 1.0, %v3778_v63  ;;  %vm1347_vm3 = vcmp.lt.s32.totalorder %v1283_v33, 968  ;;  %vm1346_vm5 = vcmp.lt.s32.totalorder %v1282_v34, 968 }
  0x88   : > { %3789 = vst [vmem:[#allocation9_spill] sm:$0xff] %v3062_v46  ;;  %v3070_v63 = vadd.s32 %v2789_v53, %v1218_v4 }
  0x8a   : > { %vm1348_vm7 = vcmp.lt.s32.totalorder %v3070_v63, 968 }
  0xf7   : > { %v2235_v32 = vpop.f32.mrb[0].mxu0 }
  0xf8   : > { %v791_v35 = vadd.f32 %v2235_v32, %v3008_v15  ;;  %v785_v36 = vpop.f32.mrb[1].mxu0  ;;  %v1285_v32 = vadd.s32 %v2789_v53, %v1219_v9 }
  0xf9   : > { %v786_v48 = vadd.f32 %v3008_v15, %v785_v36 }
  0xfa   : > { %1106 = vst.msk [vmem:[%s3032_s18 + $0x8] sm:$0xff] %vm1104_vm4, %v791_v35  ;;  %v1493_v8 = vmul.f32 %v2819_v0, %v791_v35  ;;  %vm1349_vm6 = vcmp.lt.s32.totalorder %v1285_v32, 968 }
  0xfb   : > { %1105 = vst.msk [vmem:[%s3032_s18] sm:$0xff] %vm1104_vm4, %v786_v48  ;;  %v1492_v41 = vmul.f32 %v2823_v1, %v786_v48  ;;  %v2238_v42 = vpop.f32.mrb[2].mxu0  ;;  %v2283_v48 = vpop.f32.mrb[0].mxu1 }
  0xfc   : > { %v1557_v0 = vsel %vm1104_vm4, %v1493_v8, 0.0  ;;  %v1692_v54 = vmul.f32 %v1493_v8, %v1493_v8  ;;  %v801_v55 = vadd.f32 %v2238_v42, %v3008_v15  ;;  %v795_v6 = vpop.f32.mrb[3].mxu0  ;;  %v3077_v42 = vadd.f32 %v2283_v48, %v3008_v15  ;;  %v945_v9 = vpop.f32.mrb[1].mxu1 }
  0xfd   : > { %v1556_v35 = vsel %vm1104_vm4, %v1492_v41, 0.0  ;;  %v1691_v36 = vmul.f32 %v1492_v41, %v1492_v41  ;;  %v796_v1 = vadd.f32 %v3008_v15, %v795_v6 }
  0xfe   : > { %v1756_v46 = vsel %vm1104_vm4, %v1692_v54, 0.0  ;;  %v1558_v39 = vadd.f32 %v1557_v0, %v1556_v35  ;;  %1108 = vst.msk [vmem:[%s3032_s18 + $0x18] sm:$0xff] %vm1104_vm4, %v801_v55  ;;  %v1495_v8 = vmul.f32 %v2827_v5, %v801_v55  ;;  %v3084_v54 = vadd.f32 %v3008_v15, %v945_v9  ;;  %1138 = vst.msk [vmem:[%s3032_s18 + $0x108] sm:$0xff] %vm1104_vm4, %v3077_v42 }
  0xff   : > { %v1755_v41 = vsel %vm1104_vm4, %v1691_v36, 0.0  ;;  %1107 = vst.msk [vmem:[%s3032_s18 + $0x10] sm:$0xff] %vm1104_vm4, %v796_v1  ;;  %v1494_v4 = vmul.f32 %v2832_v7, %v796_v1  ;;  %v2241_v6 = vpop.f32.mrb[4].mxu0  ;;  %v3790_v0 = vmov 0.0  }
 0x100   : > { %v3088_v35 = vsel %vm1344_vm2, 1.0, %v3790_v0  ;;  %v1757_v5 = vadd.f32 %v1756_v46, %v1755_v41  ;;  %v1694_v55 = vmul.f32 %v1495_v8, %v1495_v8  ;;  %v811_v48 = vadd.f32 %v2241_v6, %v3008_v15  ;;  %v805_v40 = vpop.f32.mrb[5].mxu0  ;;  %1137 = vst.msk [vmem:[%s3032_s18 + $0x100] sm:$0xff] %vm1104_vm4, %v3084_v54  ;;  %v2286_v46 = vpop.f32.mrb[2].mxu1 }
 0x101   : > { %3791 = vst [vmem:[#allocation10_spill] sm:$0xff] %v3088_v35  ;;  %v3096_v7 = vsel %vm1347_vm3, 1.0, %v3790_v0  ;;  %v1559_v36 = vsel %vm1104_vm4, %v1494_v4, 0.0  ;;  %v1693_v1 = vmul.f32 %v1494_v4, %v1494_v4  ;;  %v806_v31 = vadd.f32 %v3008_v15, %v805_v40  ;;  %v3110_v6 = vpop.f32.mrb[3].mxu1 }
 0x102   : > { %3792 = vst [vmem:[#allocation11_spill] sm:$0xff] %v3096_v7  ;;  %v3105_v9 = vsel %vm1346_vm5, 1.0, %v3790_v0  ;;  %v1560_v41 = vadd.f32 %v1559_v36, %v1558_v39  ;;  %1110 = vst.msk [vmem:[%s3032_s18 + $0x28] sm:$0xff] %vm1104_vm4, %v811_v48  ;;  %v1497_v33 = vmul.f32 %v2836_v10, %v811_v48  ;;  %v1561_v40 = vsel %vm1104_vm4, %v1495_v8, 0.0  ;;  %v3123_v30 = vpop.f32.mrb[4].mxu1 }
 0x103   : > { %3793 = vst [vmem:[#allocation12_spill] sm:$0xff] %v3105_v9  ;;  %v1758_v4 = vsel %vm1104_vm4, %v1693_v1, 0.0  ;;  %1109 = vst.msk [vmem:[%s3032_s18 + $0x20] sm:$0xff] %vm1104_vm4, %v806_v31  ;;  %v1496_v34 = vmul.f32 %v2840_v11, %v806_v31  ;;  %v2244_v7 = vpop.f32.mrb[6].mxu0  ;;  %v1221_v39 = vadd.s32 408, %v2784_v13  ;;  %v1760_v36 = vsel %vm1104_vm4, %v1694_v55, 0.0 }
 0x104   : > { %v1759_v9 = vadd.f32 %v1758_v4, %v1757_v5  ;;  %v1696_v10 = vmul.f32 %v1497_v33, %v1497_v33  ;;  %v1562_v48 = vadd.f32 %v1561_v40, %v1560_v41  ;;  %v815_v35 = vpop.f32.mrb[7].mxu0  ;;  %v821_v1 = vadd.f32 %v2244_v7, %v3008_v15  ;;  %v3125_v38 = vpop.f32.mrb[5].mxu1 }
 0x105   : > { %v1563_v2 = vsel %vm1104_vm4, %v1496_v34, 0.0  ;;  %v1695_v8 = vmul.f32 %v1496_v34, %v1496_v34  ;;  %v816_v3 = vadd.f32 %v3008_v15, %v815_v35  ;;  %v3129_v5 = vsel %vm1349_vm6, 1.0, %v3790_v0 }
 0x106   : > { %v1564_v11 = vadd.f32 %v1563_v2, %v1562_v48  ;;  %v1761_v31 = vadd.f32 %v1760_v36, %v1759_v9  ;;  %3794 = vst [vmem:[#allocation13_spill] sm:$0xff] %v3129_v5  ;;  %v1220_v55 = vadd.s32 400, %v2784_v13  ;;  %v1565_v41 = vsel %vm1104_vm4, %v1497_v33, 0.0  ;;  %1112 = vst.msk [vmem:[%s3032_s18 + $0x38] sm:$0xff] %vm1104_vm4, %v821_v1 }
 0x107   : > { %v1762_v40 = vsel %vm1104_vm4, %v1695_v8, 0.0  ;;  %v1499_v35 = vmul.f32 %v2844_v12, %v821_v1  ;;  %1111 = vst.msk [vmem:[%s3032_s18 + $0x30] sm:$0xff] %vm1104_vm4, %v816_v3  ;;  %v1498_v2 = vmul.f32 %v2853_v20, %v816_v3  ;;  %v2247_v7 = vpop.f32.mrb[8].mxu0  ;;  %v3142_v36 = vadd.s32 %v2789_v53, %v1221_v39  ;;  %v3146_v1 = vpop.f32.mrb[6].mxu1 }
 0x108   : > { %v1763_v9 = vadd.f32 %v1762_v40, %v1761_v31  ;;  %v1566_v32 = vadd.f32 %v1565_v41, %v1564_v11  ;;  %v831_v4 = vadd.f32 %v2247_v7, %v3008_v15  ;;  %v825_v34 = vpop.f32.mrb[9].mxu0  ;;  %v1764_v33 = vsel %vm1104_vm4, %v1696_v10, 0.0  ;;  %v3152_v31 = vpop.f32.mrb[7].mxu1 }
 0x109   : > { %v1698_v48 = vmul.f32 %v1499_v35, %v1499_v35  ;;  %v1567_v8 = vsel %vm1104_vm4, %v1498_v2, 0.0  ;;  %v1697_v12 = vmul.f32 %v1498_v2, %v1498_v2  ;;  %v826_v11 = vadd.f32 %v3008_v15, %v825_v34 }
 0x10a   : > { %v1568_v5 = vadd.f32 %v1567_v8, %v1566_v32  ;;  %v1765_v20 = vadd.f32 %v1764_v33, %v1763_v9  ;;  %1114 = vst.msk [vmem:[%s3032_s18 + $0x48] sm:$0xff] %vm1104_vm4, %v831_v4  ;;  %v1501_v3 = vmul.f32 %v2859_v24, %v831_v4  ;;  %v3156_v41 = vadd.f32 %v2286_v46, %v3008_v15 }
 0x10b   : > { %v1766_v39 = vsel %vm1104_vm4, %v1697_v12, 0.0  ;;  %v2250_v10 = vpop.f32.mrb[10].mxu0  ;;  %v3161_v40 = vsel %vm1348_vm7, 1.0, %v3790_v0  ;;  %v3164_v2 = vadd.s32 %v2789_v53, %v1220_v55  ;;  %v1569_v24 = vsel %vm1104_vm4, %v1499_v35, 0.0  ;;  %1113 = vst.msk [vmem:[%s3032_s18 + $0x40] sm:$0xff] %vm1104_vm4, %v826_v11  ;;  %v3176_v55 = vpop.f32.mrb[8].mxu1 }
 0x10c   : > { %3795 = vst [vmem:[#allocation14_spill] sm:$0xff] %v3161_v40  ;;  %v1768_v7 = vsel %vm1104_vm4, %v1698_v48, 0.0  ;;  %v1767_v9 = vadd.f32 %v1766_v39, %v1765_v20  ;;  %v1500_v32 = vmul.f32 %v2862_v25, %v826_v11  ;;  %v835_v46 = vpop.f32.mrb[11].mxu0  ;;  %v1700_v4 = vmul.f32 %v1501_v3, %v1501_v3  ;;  %1140 = vst.msk [vmem:[%s3032_s18 + $0x118] sm:$0xff] %vm1104_vm4, %v3156_v41  ;;  %v3179_v12 = vpop.f32.mrb[9].mxu1 }
 0x10d   : > { %v1570_v34 = vadd.f32 %v1569_v24, %v1568_v5  ;;  %v841_v63 = vadd.f32 %v2250_v10, %v3008_v15  ;;  %v836_v33 = vadd.f32 %v3008_v15, %v835_v46  ;;  %vm1351_vm8 = vcmp.lt.s32.totalorder %v3142_v36, 968 }
 0x10e   : > { %v1571_v35 = vsel %vm1104_vm4, %v1500_v32, 0.0  ;;  %v1699_v48 = vmul.f32 %v1500_v32, %v1500_v32  ;;  %v1769_v8 = vadd.f32 %v1768_v7, %v1767_v9  ;;  %v1223_v39 = vadd.s32 424, %v2784_v13 }
 0x10f   : > { %v1572_v25 = vadd.f32 %v1571_v35, %v1570_v34  ;;  %1116 = vst.msk [vmem:[%s3032_s18 + $0x58] sm:$0xff] %vm1104_vm4, %v841_v63  ;;  %v1503_v5 = vmul.f32 %v2865_v26, %v841_v63  ;;  %1115 = vst.msk [vmem:[%s3032_s18 + $0x50] sm:$0xff] %vm1104_vm4, %v836_v33  ;;  %v1502_v20 = vmul.f32 %v2870_v28, %v836_v33  ;;  %v2253_v11 = vpop.f32.mrb[12].mxu0  ;;  %v1573_v10 = vsel %vm1104_vm4, %v1501_v3, 0.0  ;;  %v3198_v63 = vpop.f32.mrb[10].mxu1 }
 0x110   : > { %v1770_v24 = vsel %vm1104_vm4, %v1699_v48, 0.0  ;;  %v851_v7 = vadd.f32 %v2253_v11, %v3008_v15  ;;  %v845_v9 = vpop.f32.mrb[13].mxu0  ;;  %v3194_v32 = vadd.f32 %v3008_v15, %v3110_v6  ;;  %vm1350_vm9 = vcmp.lt.s32.totalorder %v3164_v2, 968  ;;  %v3208_v48 = vpop.f32.mrb[11].mxu1 }
 0x111   : > { %v1772_v26 = vsel %vm1104_vm4, %v1700_v4, 0.0  ;;  %v1771_v28 = vadd.f32 %v1770_v24, %v1769_v8  ;;  %v1702_v46 = vmul.f32 %v1503_v5, %v1503_v5  ;;  %v1574_v34 = vadd.f32 %v1573_v10, %v1572_v25 }
 0x112   : > { %v1575_v3 = vsel %vm1104_vm4, %v1502_v20, 0.0  ;;  %v1701_v33 = vmul.f32 %v1502_v20, %v1502_v20  ;;  %1118 = vst.msk [vmem:[%s3032_s18 + $0x68] sm:$0xff] %vm1104_vm4, %v851_v7  ;;  %v1505_v35 = vmul.f32 %v2874_v29, %v851_v7  ;;  %v846_v6 = vadd.f32 %v3008_v15, %v845_v9  ;;  %1139 = vst.msk [vmem:[%s3032_s18 + $0x110] sm:$0xff] %vm1104_vm4, %v3194_v32 }
 0x113   : > { %v1576_v4 = vadd.f32 %v1575_v3, %v1574_v34  ;;  %v1773_v8 = vadd.f32 %v1772_v26, %v1771_v28  ;;  %v2256_v25 = vpop.f32.mrb[14].mxu0  ;;  %v3213_v11 = vsel %vm1351_vm8, 1.0, %v3790_v0  ;;  %v1222_v20 = vadd.s32 416, %v2784_v13  ;;  %v3223_v3 = vpop.f32.mrb[12].mxu1 }
 0x114   : > { %3796 = vst [vmem:[#allocation15_spill] sm:$0xff] %v3213_v11  ;;  %v1577_v10 = vsel %vm1104_vm4, %v1503_v5, 0.0  ;;  %v1774_v29 = vsel %vm1104_vm4, %v1701_v33, 0.0  ;;  %v1704_v24 = vmul.f32 %v1505_v35, %v1505_v35  ;;  %1117 = vst.msk [vmem:[%s3032_s18 + $0x60] sm:$0xff] %vm1104_vm4, %v846_v6  ;;  %v1504_v7 = vmul.f32 %v2888_v52, %v846_v6  ;;  %v855_v9 = vpop.f32.mrb[15].mxu0  ;;  %v3227_v40 = vpop.f32.mrb[13].mxu1 }
 0x115   : > { %v1775_v26 = vadd.f32 %v1774_v29, %v1773_v8  ;;  %v1578_v28 = vadd.f32 %v1577_v10, %v1576_v4  ;;  %v861_v36 = vadd.f32 %v2256_v25, %v3008_v15  ;;  %v856_v34 = vadd.f32 %v3008_v15, %v855_v9 }
 0x116   : > { %v1776_v5 = vsel %vm1104_vm4, %v1702_v46, 0.0  ;;  %v1579_v33 = vsel %vm1104_vm4, %v1504_v7, 0.0  ;;  %v1703_v11 = vmul.f32 %v1504_v7, %v1504_v7  ;;  %v3230_v17 = vadd.s32 %v2789_v53, %v1223_v39 }
 0x117   : > { %v1580_v52 = vadd.f32 %v1579_v33, %v1578_v28  ;;  %v1777_v6 = vadd.f32 %v1776_v5, %v1775_v26  ;;  %1120 = vst.msk [vmem:[%s3032_s18 + $0x78] sm:$0xff] %vm1104_vm4, %v861_v36  ;;  %v1507_v4 = vmul.f32 %v2891_v57, %v861_v36  ;;  %1119 = vst.msk [vmem:[%s3032_s18 + $0x70] sm:$0xff] %vm1104_vm4, %v856_v34  ;;  %v2259_v46 = vpop.f32.mrb[16].mxu0  ;;  %v1581_v25 = vsel %vm1104_vm4, %v1505_v35, 0.0  ;;  %v3245_v36 = vpop.f32.mrb[14].mxu1 }
 0x118   : > { %v1506_v8 = vmul.f32 %v2897_v62, %v856_v34  ;;  %v1778_v10 = vsel %vm1104_vm4, %v1703_v11, 0.0  ;;  %v871_v29 = vadd.f32 %v2259_v46, %v3008_v15  ;;  %v865_v39 = vpop.f32.mrb[17].mxu0  ;;  %v3242_v7 = vadd.s32 %v2789_v53, %v1222_v20  ;;  %v3252_v5 = vpop.f32.mrb[15].mxu1 }
 0x119   : > { %v1780_v9 = vsel %vm1104_vm4, %v1704_v24, 0.0  ;;  %v1779_v26 = vadd.f32 %v1778_v10, %v1777_v6  ;;  %v1706_v57 = vmul.f32 %v1507_v4, %v1507_v4  ;;  %v1582_v28 = vadd.f32 %v1581_v25, %v1580_v52 }
 0x11a   : > { %v1583_v62 = vsel %vm1104_vm4, %v1506_v8, 0.0  ;;  %v1705_v34 = vmul.f32 %v1506_v8, %v1506_v8  ;;  %1122 = vst.msk [vmem:[%s3032_s18 + $0x88] sm:$0xff] %vm1104_vm4, %v871_v29  ;;  %v1509_v35 = vmul.f32 %v2908_v43, %v871_v29  ;;  %v866_v11 = vadd.f32 %v3008_v15, %v865_v39 }
 0x11b   : > { %v1584_v20 = vadd.f32 %v1583_v62, %v1582_v28  ;;  %v1781_v33 = vadd.f32 %v1780_v9, %v1779_v26  ;;  %v2262_v24 = vpop.f32.mrb[18].mxu0  ;;  %v3257_v52 = vsel %vm1350_vm9, 1.0, %v3790_v0  ;;  %vm1353_vm10 = vcmp.lt.s32.totalorder %v3230_v17, 968  ;;  %v3267_v9 = vpop.f32.mrb[16].mxu1 }
 0x11c   : > { %3797 = vst [vmem:[#allocation16_spill] sm:$0xff] %v3257_v52  ;;  %v1585_v6 = vsel %vm1104_vm4, %v1507_v4, 0.0  ;;  %v1782_v8 = vsel %vm1104_vm4, %v1705_v34, 0.0  ;;  %v1708_v46 = vmul.f32 %v1509_v35, %v1509_v35  ;;  %1121 = vst.msk [vmem:[%s3032_s18 + $0x80] sm:$0xff] %vm1104_vm4, %v866_v11  ;;  %v1508_v43 = vmul.f32 %v2911_v44, %v866_v11  ;;  %v875_v25 = vpop.f32.mrb[19].mxu0  ;;  %v3276_v62 = vpop.f32.mrb[17].mxu1 }
 0x11d   : > { %v1783_v10 = vadd.f32 %v1782_v8, %v1781_v33  ;;  %v1586_v29 = vadd.f32 %v1585_v6, %v1584_v20  ;;  %v881_v2 = vadd.f32 %v2262_v24, %v3008_v15  ;;  %v876_v39 = vadd.f32 %v3008_v15, %v875_v25 }
 0x11e   : > { %vm1352_vm11 = vcmp.lt.s32.totalorder %v3242_v7, 968  ;;  %v1784_v4 = vsel %vm1104_vm4, %v1706_v57, 0.0  ;;  %v1587_v26 = vsel %vm1104_vm4, %v1508_v43, 0.0  ;;  %v1707_v28 = vmul.f32 %v1508_v43, %v1508_v43 }
 0x11f   : > { %v3274_v44 = vadd.f32 %v3123_v30, %v3008_v15  ;;  %v1588_v34 = vadd.f32 %v1587_v26, %v1586_v29  ;;  %v1785_v11 = vadd.f32 %v1784_v4, %v1783_v10  ;;  %1124 = vst.msk [vmem:[%s3032_s18 + $0x98] sm:$0xff] %vm1104_vm4, %v881_v2  ;;  %v1511_v20 = vmul.f32 %v2914_v45, %v881_v2  ;;  %v2265_v33 = vpop.f32.mrb[20].mxu0  ;;  %v3295_v29 = vpop.f32.mrb[18].mxu1 }
 0x120   : > { %1123 = vst.msk [vmem:[%s3032_s18 + $0x90] sm:$0xff] %vm1104_vm4, %v876_v39  ;;  %v1510_v57 = vmul.f32 %v2919_v47, %v876_v39  ;;  %v1589_v24 = vsel %vm1104_vm4, %v1509_v35, 0.0  ;;  %v1786_v30 = vsel %vm1104_vm4, %v1707_v28, 0.0  ;;  %v891_v6 = vadd.f32 %v2265_v33, %v3008_v15  ;;  %v885_v8 = vpop.f32.mrb[21].mxu0 }
 0x121   : > { %1142 = vst.msk [vmem:[%s3032_s18 + $0x128] sm:$0xff] %vm1104_vm4, %v3274_v44  ;;  %v3292_v45 = vadd.f32 %v3008_v15, %v3125_v38  ;;  %v1788_v43 = vsel %vm1104_vm4, %v1708_v46, 0.0  ;;  %v1787_v25 = vadd.f32 %v1786_v30, %v1785_v11  ;;  %v1710_v47 = vmul.f32 %v1511_v20, %v1511_v20  ;;  %v3305_v38 = vpop.f32.mrb[19].mxu1 }
 0x122   : > { %v1590_v10 = vadd.f32 %v1589_v24, %v1588_v34  ;;  %v1591_v35 = vsel %vm1104_vm4, %v1510_v57, 0.0  ;;  %v1709_v2 = vmul.f32 %v1510_v57, %v1510_v57  ;;  %1126 = vst.msk [vmem:[%s3032_s18 + $0xa8] sm:$0xff] %vm1104_vm4, %v891_v6  ;;  %v1513_v39 = vmul.f32 %v2923_v49, %v891_v6 }
 0x123   : > { %v886_v4 = vadd.f32 %v3008_v15, %v885_v8  ;;  %1141 = vst.msk [vmem:[%s3032_s18 + $0x120] sm:$0xff] %vm1104_vm4, %v3292_v45  ;;  %v1789_v26 = vadd.f32 %v1788_v43, %v1787_v25  ;;  %v2268_v28 = vpop.f32.mrb[22].mxu0  ;;  %v1225_v34 = vadd.s32 440, %v2784_v13  ;;  %v1224_v11 = vadd.s32 432, %v2784_v13 }
 0x124   : > { %v1592_v46 = vadd.f32 %v1591_v35, %v1590_v10  ;;  %v1593_v57 = vsel %vm1104_vm4, %v1511_v20, 0.0  ;;  %v1790_v33 = vsel %vm1104_vm4, %v1709_v2, 0.0  ;;  %v1712_v24 = vmul.f32 %v1513_v39, %v1513_v39  ;;  %v895_v30 = vpop.f32.mrb[23].mxu0  ;;  %v3316_v10 = vpop.f32.mrb[20].mxu1 }
 0x125   : > { %1125 = vst.msk [vmem:[%s3032_s18 + $0xa0] sm:$0xff] %vm1104_vm4, %v886_v4  ;;  %v1512_v49 = vmul.f32 %v2927_v50, %v886_v4  ;;  %v1791_v6 = vadd.f32 %v1790_v33, %v1789_v26  ;;  %v901_v43 = vadd.f32 %v2268_v28, %v3008_v15  ;;  %v896_v25 = vadd.f32 %v3008_v15, %v895_v30  ;;  %v3325_v50 = vpop.f32.mrb[21].mxu1 }
 0x126   : > { %v1594_v8 = vadd.f32 %v1593_v57, %v1592_v46  ;;  %v1792_v20 = vsel %vm1104_vm4, %v1710_v47, 0.0  ;;  %v3323_v52 = vsel %vm1353_vm10, 1.0, %v3790_v0  ;;  %v1597_v57 = vsel %vm1104_vm4, %v1513_v39, 0.0 }
 0x127   : > { %v1595_v35 = vsel %vm1104_vm4, %v1512_v49, 0.0  ;;  %v1711_v2 = vmul.f32 %v1512_v49, %v1512_v49  ;;  %v1793_v46 = vadd.f32 %v1792_v20, %v1791_v6  ;;  %1128 = vst.msk [vmem:[%s3032_s18 + $0xb8] sm:$0xff] %vm1104_vm4, %v901_v43  ;;  %v1515_v26 = vmul.f32 %v2930_v51, %v901_v43  ;;  %1127 = vst.msk [vmem:[%s3032_s18 + $0xb0] sm:$0xff] %vm1104_vm4, %v896_v25  ;;  %v2271_v28 = vpop.f32.mrb[24].mxu0 }
 0x128   : > { %v1596_v4 = vadd.f32 %v1595_v35, %v1594_v8  ;;  %v1514_v47 = vmul.f32 %v2939_v14, %v896_v25  ;;  %v911_v33 = vadd.f32 %v2271_v28, %v3008_v15  ;;  %v905_v49 = vpop.f32.mrb[25].mxu0  ;;  %v3339_v30 = vsel %vm1352_vm11, 1.0, %v3790_v0  ;;  %v3342_v14 = vpop.f32.mrb[22].mxu1 }
 0x129   : > { %v1794_v17 = vsel %vm1104_vm4, %v1711_v2, 0.0  ;;  %v1796_v51 = vsel %vm1104_vm4, %v1712_v24, 0.0  ;;  %v1714_v8 = vmul.f32 %v1515_v26, %v1515_v26  ;;  %v906_v35 = vadd.f32 %v3008_v15, %v905_v49  ;;  %v3349_v7 = vpop.f32.mrb[23].mxu1 }
 0x12a   : > { %v1795_v6 = vadd.f32 %v1794_v17, %v1793_v46  ;;  %v1598_v43 = vadd.f32 %v1597_v57, %v1596_v4  ;;  %v1599_v39 = vsel %vm1104_vm4, %v1514_v47, 0.0  ;;  %v1713_v25 = vmul.f32 %v1514_v47, %v1514_v47  ;;  %1130 = vst.msk [vmem:[%s3032_s18 + $0xc8] sm:$0xff] %vm1104_vm4, %v911_v33 }
 0x12b   : > { %v1517_v20 = vmul.f32 %v2945_v18, %v911_v33  ;;  %v2274_v24 = vpop.f32.mrb[26].mxu0  ;;  %v3352_v46 = vadd.s32 %v2789_v53, %v1225_v34  ;;  %v3355_v4 = vadd.s32 %v2789_v53, %v1224_v11  ;;  %v1601_v57 = vsel %vm1104_vm4, %v1515_v26, 0.0  ;;  %1129 = vst.msk [vmem:[%s3032_s18 + $0xc0] sm:$0xff] %vm1104_vm4, %v906_v35  ;;  %v3364_v11 = vpop.f32.mrb[24].mxu1 }
 0x12c   : > { %v1600_v2 = vadd.f32 %v1599_v39, %v1598_v43  ;;  %v1797_v28 = vadd.f32 %v1796_v51, %v1795_v6  ;;  %v1798_v47 = vsel %vm1104_vm4, %v1713_v25, 0.0  ;;  %v1516_v18 = vmul.f32 %v2948_v19, %v906_v35  ;;  %v915_v33 = vpop.f32.mrb[27].mxu0  ;;  %v3372_v19 = vpop.f32.mrb[25].mxu1 }
 0x12d   : > { %v1716_v17 = vmul.f32 %v1517_v20, %v1517_v20  ;;  %v921_v34 = vadd.f32 %v2274_v24, %v3008_v15  ;;  %v916_v6 = vadd.f32 %v3008_v15, %v915_v33  ;;  %v1800_v26 = vsel %vm1104_vm4, %v1714_v8, 0.0 }
 0x12e   : > { %v1799_v49 = vadd.f32 %v1798_v47, %v1797_v28  ;;  %v1602_v51 = vadd.f32 %v1601_v57, %v1600_v2  ;;  %v1603_v43 = vsel %vm1104_vm4, %v1516_v18, 0.0  ;;  %v1715_v39 = vmul.f32 %v1516_v18, %v1516_v18 }
 0x12f   : > { %v3370_v25 = vmul.f32 %v2998_v58, %v3084_v54  ;;  %1132 = vst.msk [vmem:[%s3032_s18 + $0xd8] sm:$0xff] %vm1104_vm4, %v921_v34  ;;  %v1519_v2 = vmul.f32 %v2951_v21, %v921_v34  ;;  %1131 = vst.msk [vmem:[%s3032_s18 + $0xd0] sm:$0xff] %vm1104_vm4, %v916_v6  ;;  %v1518_v8 = vmul.f32 %v2956_v23, %v916_v6  ;;  %v2277_v24 = vpop.f32.mrb[28].mxu0  ;;  %v1605_v57 = vsel %vm1104_vm4, %v1517_v20, 0.0  ;;  %v3388_v23 = vpop.f32.mrb[26].mxu1 }
 0x130   : > { %v1604_v35 = vadd.f32 %v1603_v43, %v1602_v51  ;;  %v1801_v28 = vadd.f32 %v1800_v26, %v1799_v49  ;;  %v1802_v58 = vsel %vm1104_vm4, %v1715_v39, 0.0  ;;  %v931_v54 = vadd.f32 %v2277_v24, %v3008_v15  ;;  %v925_v47 = vpop.f32.mrb[29].mxu0 }
 0x131   : > { %v3385_v18 = vadd.f32 %v3146_v1, %v3008_v15  ;;  %v1804_v21 = vsel %vm1104_vm4, %v1716_v17, 0.0  ;;  %v1718_v49 = vmul.f32 %v1519_v2, %v1519_v2  ;;  %v1607_v34 = vsel %vm1104_vm4, %v1518_v8, 0.0  ;;  %v3398_v1 = vpop.f32.mrb[27].mxu1 }
 0x132   : > { %v1803_v33 = vadd.f32 %v1802_v58, %v1801_v28  ;;  %v1606_v51 = vadd.f32 %v1605_v57, %v1604_v35  ;;  %v1717_v20 = vmul.f32 %v1518_v8, %v1518_v8  ;;  %1134 = vst.msk [vmem:[%s3032_s18 + $0xe8] sm:$0xff] %vm1104_vm4, %v931_v54  ;;  %v1521_v6 = vmul.f32 %v2960_v27, %v931_v54 }
 0x133   : > { %v926_v26 = vadd.f32 %v3008_v15, %v925_v47  ;;  %1144 = vst.msk [vmem:[%s3032_s18 + $0x138] sm:$0xff] %vm1104_vm4, %v3385_v18  ;;  %v2280_v39 = vpop.f32.mrb[30].mxu0  ;;  %v3402_v35 = vmul.f32 %v2994_v56, %v3077_v42  ;;  %v3405_v28 = vadd.s32 456, %v2784_v13  ;;  %v1609_v8 = vsel %vm1104_vm4, %v1519_v2, 0.0  ;;  %v3418_v47 = vpop.f32.mrb[28].mxu1 }
 0x134   : > { %v1608_v17 = vadd.f32 %v1607_v34, %v1606_v51  ;;  %v1805_v43 = vadd.f32 %v1804_v21, %v1803_v33  ;;  %v1806_v27 = vsel %vm1104_vm4, %v1717_v20, 0.0  ;;  %v935_v57 = vpop.f32.mrb[31].mxu0  ;;  %v1723_v58 = vmul.f32 %v3370_v25, %v3370_v25  ;;  %v3422_v34 = vpop.f32.mrb[29].mxu1 }
 0x135   : > { %1133 = vst.msk [vmem:[%s3032_s18 + $0xe0] sm:$0xff] %vm1104_vm4, %v926_v26  ;;  %v1520_v24 = vmul.f32 %v2970_v37, %v926_v26  ;;  %vm1355_vm12 = vcmp.lt.s32.totalorder %v3352_v46, 968  ;;  %v941_v54 = vadd.f32 %v2280_v39, %v3008_v15  ;;  %v936_v2 = vadd.f32 %v3008_v15, %v935_v57 }
 0x136   : > { %v1807_v56 = vadd.f32 %v1806_v27, %v1805_v43  ;;  %v1610_v42 = vadd.f32 %v1609_v8, %v1608_v17  ;;  %vm1354_vm13 = vcmp.lt.s32.totalorder %v3355_v4, 968  ;;  %v1808_v37 = vsel %vm1104_vm4, %v1718_v49, 0.0 }
 0x137   : > { %v1720_v21 = vmul.f32 %v1521_v6, %v1521_v6  ;;  %v1611_v33 = vsel %vm1104_vm4, %v1520_v24, 0.0  ;;  %v1719_v51 = vmul.f32 %v1520_v24, %v1520_v24  ;;  %1136 = vst.msk [vmem:[%s3032_s18 + $0xf8] sm:$0xff] %vm1104_vm4, %v941_v54  ;;  %v1523_v17 = vmul.f32 %v2976_v60, %v941_v54  ;;  %1135 = vst.msk [vmem:[%s3032_s18 + $0xf0] sm:$0xff] %vm1104_vm4, %v936_v2 }
 0x138   : > { %v1612_v20 = vadd.f32 %v1611_v33, %v1610_v42  ;;  %v1809_v26 = vadd.f32 %v1808_v37, %v1807_v56  ;;  %v1522_v43 = vmul.f32 %v2979_v61, %v936_v2  ;;  %v1613_v49 = vsel %vm1104_vm4, %v1521_v6, 0.0  ;;  %v3441_v42 = vpop.f32.mrb[30].mxu1 }
 0x139   : > { %v1810_v39 = vsel %vm1104_vm4, %v1719_v51, 0.0  ;;  %v976_v8 = vadd.f32 %v3008_v15, %v3152_v31  ;;  %v3436_v27 = vadd.f32 %v3176_v55, %v3008_v15  ;;  %v1526_v60 = vmul.f32 %v3012_v16, %v3194_v32  ;;  %v3450_v31 = vpop.f32.mrb[31].mxu1 }
 0x13a   : > { %v1811_v24 = vadd.f32 %v1810_v39, %v1809_v26  ;;  %v1614_v57 = vadd.f32 %v1613_v49, %v1612_v20  ;;  %v1226_v56 = vadd.s32 448, %v2784_v13  ;;  %v1812_v61 = vsel %vm1104_vm4, %v1720_v21, 0.0 }
 0x13b   : > { %v1722_v6 = vmul.f32 %v1523_v17, %v1523_v17  ;;  %v1615_v54 = vsel %vm1104_vm4, %v1522_v43, 0.0  ;;  %v1721_v2 = vmul.f32 %v1522_v43, %v1522_v43  ;;  %1143 = vst.msk [vmem:[%s3032_s18 + $0x130] sm:$0xff] %vm1104_vm4, %v976_v8  ;;  %1146 = vst.msk [vmem:[%s3032_s18 + $0x148] sm:$0xff] %vm1104_vm4, %v3436_v27  ;;  %v1724_v32 = vmul.f32 %v3402_v35, %v3402_v35 }
 0x13c   : > { %v1616_v55 = vadd.f32 %v1615_v54, %v1614_v57  ;;  %v1813_v16 = vadd.f32 %v1812_v61, %v1811_v24  ;;  %v1619_v37 = vsel %vm1104_vm4, %v3370_v25, 0.0  ;;  %v1617_v21 = vsel %vm1104_vm4, %v1523_v17, 0.0 }
 0x13d   : > { %v1814_v33 = vsel %vm1104_vm4, %v1721_v2, 0.0  ;;  %v1818_v51 = vsel %vm1104_vm4, %v1723_v58, 0.0  ;;  %v986_v20 = vadd.f32 %v3008_v15, %v3179_v12  ;;  %v1527_v49 = vmul.f32 %v3002_v59, %v3156_v41 }
 0x13e   : > { %v1815_v26 = vadd.f32 %v1814_v33, %v1813_v16  ;;  %v1618_v43 = vadd.f32 %v1617_v21, %v1616_v55  ;;  %v1725_v39 = vmul.f32 %v1526_v60, %v1526_v60  ;;  %v1816_v24 = vsel %vm1104_vm4, %v1722_v6, 0.0  ;;  %v3798_v6 = vld [vmem:[#allocation2_spill] sm:$0xff]  ;;  %v3799_v55 = vld [vmem:[#allocation4_spill] sm:$0xff] }
 0x13f   : > { %v1528_v25 = vmul.f32 %v3020_v22, %v3292_v45  ;;  %1145 = vst.msk [vmem:[%s3032_s18 + $0x140] sm:$0xff] %vm1104_vm4, %v986_v20  ;;  %v3470_v58 = vadd.f32 %v3198_v63, %v3008_v15  ;;  %v996_v12 = vadd.f32 %v3008_v15, %v3208_v48  ;;  %v3476_v59 = vadd.f32 %v3223_v3, %v3008_v15 }
 0x140   : > { %v1620_v17 = vadd.f32 %v1619_v37, %v1618_v43  ;;  %v1817_v57 = vadd.f32 %v1816_v24, %v1815_v26  ;;  %v3481_v22 = vsel %vm1355_vm12, 1.0, %v3790_v0  ;;  %v1621_v41 = vsel %vm1104_vm4, %v3402_v35, 0.0 }
 0x141   : > { %v1820_v63 = vsel %vm1104_vm4, %v1724_v32, 0.0  ;;  %v1623_v45 = vsel %vm1104_vm4, %v1526_v60, 0.0  ;;  %1148 = vst.msk [vmem:[%s3032_s18 + $0x158] sm:$0xff] %vm1104_vm4, %v3470_v58  ;;  %1147 = vst.msk [vmem:[%s3032_s18 + $0x150] sm:$0xff] %vm1104_vm4, %v996_v12  ;;  %v3495_v48 = vsel %vm1354_vm13, 1.0, %v3790_v0  ;;  %v1726_v46 = vmul.f32 %v1527_v49, %v1527_v49 }
 0x142   : > { %v1819_v3 = vadd.f32 %v1818_v51, %v1817_v57  ;;  %v1622_v61 = vadd.f32 %v1621_v41, %v1620_v17  ;;  %1150 = vst.msk [vmem:[%s3032_s18 + $0x168] sm:$0xff] %vm1104_vm4, %v3476_v59  ;;  %v1006_v35 = vadd.f32 %v3008_v15, %v3227_v40  ;;  %v1822_v60 = vsel %vm1104_vm4, %v1725_v39, 0.0  ;;  %v3801_v39 = vld [vmem:[#allocation6_spill] sm:$0xff] }
 0x143   : > { %v1529_v54 = vmul.f32 %v3798_v6, %v3274_v44  ;;  %v1727_v2 = vmul.f32 %v1528_v25, %v1528_v25  ;;  %v1530_v16 = vmul.f32 %v3799_v55, %v976_v8  ;;  %v1293_v37 = vadd.s32 %v2789_v53, %v3405_v28  ;;  %v3800_v44 = vld [vmem:[#allocation3_spill] sm:$0xff] }
 0x144   : > { %v1624_v4 = vadd.f32 %v1623_v45, %v1622_v61  ;;  %v1821_v32 = vadd.f32 %v1820_v63, %v1819_v3  ;;  %1149 = vst.msk [vmem:[%s3032_s18 + $0x160] sm:$0xff] %vm1104_vm4, %v1006_v35  ;;  %v3511_v21 = vadd.s32 %v2789_v53, %v1226_v56  ;;  %v1625_v40 = vsel %vm1104_vm4, %v1527_v49, 0.0  ;;  %v3802_v63 = vld [vmem:[#allocation5_spill] sm:$0xff] }
 0x145   : > { %v1627_v33 = vsel %vm1104_vm4, %v1528_v25, 0.0  ;;  %v1531_v51 = vmul.f32 %v3800_v44, %v3385_v18  ;;  %v3519_v8 = vadd.f32 %v3245_v36, %v3008_v15  ;;  %v1532_v24 = vmul.f32 %v3801_v39, %v986_v20 }
 0x146   : > { %v1823_v26 = vadd.f32 %v1822_v60, %v1821_v32  ;;  %v1626_v43 = vadd.f32 %v1625_v40, %v1624_v4  ;;  %v1016_v28 = vadd.f32 %v3008_v15, %v3252_v5  ;;  %v1824_v56 = vsel %vm1104_vm4, %v1726_v46, 0.0 }
 0x147   : > { %v1728_v49 = vmul.f32 %v1529_v54, %v1529_v54  ;;  %v1826_v25 = vsel %vm1104_vm4, %v1727_v2, 0.0  ;;  %v1729_v17 = vmul.f32 %v1530_v16, %v1530_v16  ;;  %1152 = vst.msk [vmem:[%s3032_s18 + $0x178] sm:$0xff] %vm1104_vm4, %v3519_v8  ;;  %v1629_v36 = vsel %vm1104_vm4, %v1529_v54, 0.0  ;;  %v3803_v54 = vld [vmem:[#allocation8_spill] sm:$0xff] }
 0x148   : > { %v1628_v18 = vadd.f32 %v1627_v33, %v1626_v43  ;;  %v1825_v57 = vadd.f32 %v1824_v56, %v1823_v26  ;;  %1151 = vst.msk [vmem:[%s3032_s18 + $0x170] sm:$0xff] %vm1104_vm4, %v1016_v28  ;;  %v3534_v5 = vadd.f32 %v3267_v9, %v3008_v15  ;;  %v1730_v20 = vmul.f32 %v1531_v51, %v1531_v51  ;;  %v3805_v43 = vld [vmem:[#allocation10_spill] sm:$0xff] }
 0x149   : > { %v1631_v41 = vsel %vm1104_vm4, %v1530_v16, 0.0  ;;  %v1533_v45 = vmul.f32 %v3802_v63, %v3436_v27  ;;  %v1026_v3 = vadd.f32 %v3008_v15, %v3276_v62  ;;  %v1731_v60 = vmul.f32 %v1532_v24, %v1532_v24 }
 0x14a   : > { %v1827_v46 = vadd.f32 %v1826_v25, %v1825_v57  ;;  %v1630_v61 = vadd.f32 %v1629_v36, %v1628_v18  ;;  %1154 = vst.msk [vmem:[%s3032_s18 + $0x188] sm:$0xff] %vm1104_vm4, %v3534_v5  ;;  %vm1357_vm14 = vcmp.lt.s32.totalorder %v1293_v37, 968  ;;  %v1828_v9 = vsel %vm1104_vm4, %v1728_v49, 0.0 }
 0x14b   : > { %v1830_v6 = vsel %vm1104_vm4, %v1729_v17, 0.0  ;;  %v1534_v2 = vmul.f32 %v3803_v54, %v996_v12  ;;  %1153 = vst.msk [vmem:[%s3032_s18 + $0x180] sm:$0xff] %vm1104_vm4, %v1026_v3  ;;  %v3551_v62 = vadd.f32 %v3295_v29, %v3008_v15  ;;  %v3555_v16 = vadd.f32 %v3008_v15, %v3305_v38  ;;  %v3804_v38 = vld [vmem:[#allocation7_spill] sm:$0xff] }
 0x14c   : > { %v1632_v27 = vadd.f32 %v1631_v41, %v1630_v61  ;;  %v1829_v55 = vadd.f32 %v1828_v9, %v1827_v46  ;;  %vm1356_vm15 = vcmp.lt.s32.totalorder %v3511_v21, 968  ;;  %v1633_v4 = vsel %vm1104_vm4, %v1531_v51, 0.0  ;;  %v2371_v21 = vld [vmem:[%s3772_s2] ss:$0 sm:$0xff] }
 0x14d   : > { %v1832_v32 = vsel %vm1104_vm4, %v1730_v20, 0.0  ;;  %v1732_v12 = vmul.f32 %v1533_v45, %v1533_v45  ;;  %v1635_v40 = vsel %vm1104_vm4, %v1532_v24, 0.0  ;;  %1156 = vst.msk [vmem:[%s3032_s18 + $0x198] sm:$0xff] %vm1104_vm4, %v3551_v62  ;;  %v1834_v44 = vsel %vm1104_vm4, %v1731_v60, 0.0  ;;  %1155 = vst.msk [vmem:[%s3032_s18 + $0x190] sm:$0xff] %vm1104_vm4, %v3555_v16  ;;  %v3806_v20 = vld [vmem:[#allocation9_spill] sm:$0xff] }
 0x14e   : > { %v1831_v29 = vadd.f32 %v1830_v6, %v1829_v55  ;;  %v1634_v33 = vadd.f32 %v1633_v4, %v1632_v27  ;;  %v1535_v26 = vmul.f32 %v3804_v38, %v3470_v58  ;;  %v1733_v51 = vmul.f32 %v1534_v2, %v1534_v2  ;;  %v3807_v60 = vld [vmem:[#allocation12_spill] sm:$0xff] }
 0x14f   : > { %v1536_v39 = vmul.f32 %v3805_v43, %v1006_v35  ;;  %v3573_v24 = vadd.f32 %v3316_v10, %v3008_v15  ;;  %v3577_v56 = vadd.f32 %v3008_v15, %v3325_v50  ;;  %v1229_v17 = vadd.s32 472, %v2784_v13  ;;  %v3810_v43 = vld [vmem:[#allocation13_spill] sm:$0xff] }
 0x150   : > { %v1636_v49 = vadd.f32 %v1635_v40, %v1634_v33  ;;  %v1833_v25 = vadd.f32 %v1832_v32, %v1831_v29  ;;  %v1228_v58 = vadd.s32 464, %v2784_v13  ;;  %v1637_v36 = vsel %vm1104_vm4, %v1533_v45, 0.0 }
 0x151   : > { %v1836_v18 = vsel %vm1104_vm4, %v1732_v12, 0.0  ;;  %v1639_v35 = vsel %vm1104_vm4, %v1534_v2, 0.0  ;;  %1158 = vst.msk [vmem:[%s3032_s18 + $0x1a8] sm:$0xff] %vm1104_vm4, %v3573_v24  ;;  %1157 = vst.msk [vmem:[%s3032_s18 + $0x1a0] sm:$0xff] %vm1104_vm4, %v3577_v56  ;;  %v3592_v10 = vsel %vm1357_vm14, 1.0, %v3790_v0  ;;  %v1537_v41 = vmul.f32 %v3806_v20, %v3476_v59  ;;  %v3809_v12 = vld [vmem:[#allocation14_spill] sm:$0xff] }
 0x152   : > { %v1835_v50 = vadd.f32 %v1834_v44, %v1833_v25  ;;  %v1638_v57 = vadd.f32 %v1637_v36, %v1636_v49  ;;  %v3598_v63 = vadd.f32 %v3342_v14, %v3008_v15  ;;  %v1734_v45 = vmul.f32 %v1535_v26, %v1535_v26  ;;  %v3808_v14 = vld [vmem:[#allocation11_spill] sm:$0xff] }
 0x153   : > { %v1838_v46 = vsel %vm1104_vm4, %v1733_v51, 0.0  ;;  %v1735_v61 = vmul.f32 %v1536_v39, %v1536_v39  ;;  %v1538_v9 = vmul.f32 %v3807_v60, %v1016_v28  ;;  %v1641_v6 = vsel %vm1104_vm4, %v1535_v26, 0.0  ;;  %v3812_v60 = vld [vmem:[#allocation15_spill] sm:$0xff] }
 0x154   : > { %v1640_v37 = vadd.f32 %v1639_v35, %v1638_v57  ;;  %v1837_v54 = vadd.f32 %v1836_v18, %v1835_v50  ;;  %v1643_v2 = vsel %vm1104_vm4, %v1536_v39, 0.0  ;;  %1160 = vst.msk [vmem:[%s3032_s18 + $0x1b8] sm:$0xff] %vm1104_vm4, %v3598_v63  ;;  %v1539_v59 = vmul.f32 %v3808_v14, %v3519_v8  ;;  %v3811_v18 = vld [vmem:[#allocation16_spill] sm:$0xff] }
 0x155   : > { %v3611_v27 = vadd.f32 %v3008_v15, %v3349_v7  ;;  %v3615_v28 = vadd.f32 %v3364_v11, %v3008_v15  ;;  %v3619_v55 = vadd.f32 %v3008_v15, %v3372_v19  ;;  %v1540_v40 = vmul.f32 %v3809_v12, %v1026_v3 }
 0x156   : > { %v1839_v4 = vadd.f32 %v1838_v46, %v1837_v54  ;;  %v1642_v32 = vadd.f32 %v1641_v6, %v1640_v37  ;;  %v3625_v8 = vsel %vm1356_vm15, 1.0, %v3790_v0  ;;  %v1840_v7 = vsel %vm1104_vm4, %v1734_v45, 0.0 }
 0x157   : > { %v1736_v29 = vmul.f32 %v1537_v41, %v1537_v41  ;;  %v1842_v33 = vsel %vm1104_vm4, %v1735_v61, 0.0  ;;  %v1737_v11 = vmul.f32 %v1538_v9, %v1538_v9  ;;  %1159 = vst.msk [vmem:[%s3032_s18 + $0x1b0] sm:$0xff] %vm1104_vm4, %v3611_v27  ;;  %1162 = vst.msk [vmem:[%s3032_s18 + $0x1c8] sm:$0xff] %vm1104_vm4, %v3615_v28  ;;  %v3642_v3 = vadd.f32 %v2371_v21, %v3388_v23 }
 0x158   : > { %1161 = vst.msk [vmem:[%s3032_s18 + $0x1c0] sm:$0xff] %vm1104_vm4, %v3619_v55  ;;  %v1644_v15 = vadd.f32 %v1643_v2, %v1642_v32  ;;  %v1841_v19 = vadd.f32 %v1840_v7, %v1839_v4  ;;  %v3645_v44 = vadd.f32 %v2371_v21, %v3398_v1  ;;  %v1645_v38 = vsel %vm1104_vm4, %v1537_v41, 0.0 }
 0x159   : > { %v1738_v26 = vmul.f32 %v1539_v59, %v1539_v59  ;;  %v1647_v51 = vsel %vm1104_vm4, %v1538_v9, 0.0  ;;  %v1541_v39 = vmul.f32 %v3810_v43, %v3534_v5  ;;  %v1739_v36 = vmul.f32 %v1540_v40, %v1540_v40  ;;  %1164 = vst.msk [vmem:[%s3032_s18 + $0x1d8] sm:$0xff] %vm1104_vm4, %v3642_v3 }
 0x15a   : > { %v1843_v49 = vadd.f32 %v1842_v33, %v1841_v19  ;;  %v1646_v25 = vadd.f32 %v1645_v38, %v1644_v15  ;;  %v1542_v35 = vmul.f32 %v3811_v18, %v3555_v16  ;;  %1163 = vst.msk [vmem:[%s3032_s18 + $0x1d0] sm:$0xff] %vm1104_vm4, %v3645_v44  ;;  %v1844_v23 = vsel %vm1104_vm4, %v1736_v29, 0.0 }
 0x15b   : > { %v1846_v1 = vsel %vm1104_vm4, %v1737_v11, 0.0  ;;  %v1295_v50 = vadd.s32 %v2789_v53, %v1229_v17  ;;  %v1294_v5 = vadd.s32 %v2789_v53, %v1228_v58  ;;  %v1649_v57 = vsel %vm1104_vm4, %v1539_v59, 0.0 }
 0x15c   : > { %v1648_v20 = vadd.f32 %v1647_v51, %v1646_v25  ;;  %v1845_v41 = vadd.f32 %v1844_v23, %v1843_v49  ;;  %v3665_v16 = vadd.f32 %v2371_v21, %v3418_v47  ;;  %v1848_v45 = vsel %vm1104_vm4, %v1738_v26, 0.0 }
 0x15d   : > { %v1740_v46 = vmul.f32 %v1541_v39, %v1541_v39  ;;  %v1651_v61 = vsel %vm1104_vm4, %v1540_v40, 0.0  ;;  %v1543_v9 = vmul.f32 %v3812_v60, %v3551_v62  ;;  %v1850_v17 = vsel %vm1104_vm4, %v1739_v36, 0.0 }
 0x15e   : > { %v1847_v6 = vadd.f32 %v1846_v1, %v1845_v41  ;;  %v1650_v37 = vadd.f32 %v1649_v57, %v1648_v20  ;;  %v1741_v58 = vmul.f32 %v1542_v35, %v1542_v35  ;;  %1166 = vst.msk [vmem:[%s3032_s18 + $0x1e8] sm:$0xff] %vm1104_vm4, %v3665_v16  ;;  %v1544_v47 = vmul.f32 %v3339_v30, %v3577_v56 }
 0x15f   : > { %v3678_v54 = vadd.f32 %v2371_v21, %v3422_v34  ;;  %v3681_v2 = vadd.f32 %v2371_v21, %v3441_v42  ;;  %v3684_v62 = vadd.f32 %v2371_v21, %v3450_v31  ;;  %vm1359_vm0 = vcmp.lt.s32.totalorder %v1295_v50, 968 }
 0x160   : > { %v1652_v14 = vadd.f32 %v1651_v61, %v1650_v37  ;;  %v1849_v59 = vadd.f32 %v1848_v45, %v1847_v6  ;;  %v1230_v4 = vadd.s32 480, %v2784_v13  ;;  %v1653_v32 = vsel %vm1104_vm4, %v1541_v39, 0.0 }
 0x161   : > { %v1655_v12 = vsel %vm1104_vm4, %v1542_v35, 0.0  ;;  %vm1358_vm1 = vcmp.lt.s32.totalorder %v1294_v5, 968  ;;  %v1231_v30 = vadd.s32 488, %v2784_v13  ;;  %1165 = vst.msk [vmem:[%s3032_s18 + $0x1e0] sm:$0xff] %vm1104_vm4, %v3678_v54  ;;  %1168 = vst.msk [vmem:[%s3032_s18 + $0x1f8] sm:$0xff] %vm1104_vm4, %v3681_v2  ;;  %v1742_v42 = vmul.f32 %v1543_v9, %v1543_v9 }
 0x162   : > { %1167 = vst.msk [vmem:[%s3032_s18 + $0x1f0] sm:$0xff] %vm1104_vm4, %v3684_v62  ;;  %v1851_v34 = vadd.f32 %v1850_v17, %v1849_v59  ;;  %v1654_v31 = vadd.f32 %v1653_v32, %v1652_v14  ;;  %v1545_v56 = vmul.f32 %v3323_v52, %v3573_v24  ;;  %v1852_v40 = vsel %vm1104_vm4, %v1740_v46, 0.0 }
 0x163   : > { %v1854_v7 = vsel %vm1104_vm4, %v1741_v58, 0.0  ;;  %v1743_v29 = vmul.f32 %v1544_v47, %v1544_v47  ;;  %v1546_v33 = vmul.f32 %v3495_v48, %v3611_v27  ;;  %v2132_v19 = vsel %vm1359_vm0, 1.0, %v3790_v0 }
 0x164   : > { %v1656_v11 = vadd.f32 %v1655_v12, %v1654_v31  ;;  %v1853_v15 = vadd.f32 %v1852_v40, %v1851_v34  ;;  %v1296_v21 = vadd.s32 %v2789_v53, %v1230_v4  ;;  %v1657_v38 = vsel %vm1104_vm4, %v1543_v9, 0.0 }
 0x165   : > { %v1659_v26 = vsel %vm1104_vm4, %v1544_v47, 0.0  ;;  %v2131_v52 = vsel %vm1358_vm1, 1.0, %v3790_v0  ;;  %v1232_v24 = vadd.s32 496, %v2784_v13  ;;  %v1856_v51 = vsel %vm1104_vm4, %v1742_v42, 0.0 }
 0x166   : > { %v1855_v43 = vadd.f32 %v1854_v7, %v1853_v15  ;;  %v1744_v48 = vmul.f32 %v1545_v56, %v1545_v56  ;;  %v1658_v27 = vadd.f32 %v1657_v38, %v1656_v11  ;;  %v1858_v39 = vsel %vm1104_vm4, %v1743_v29, 0.0 }
 0x167   : > { %v1547_v49 = vmul.f32 %v3481_v22, %v3598_v63  ;;  %v1745_v25 = vmul.f32 %v1546_v33, %v1546_v33  ;;  %v1548_v36 = vmul.f32 %v3625_v8, %v3619_v55  ;;  %v1297_v23 = vadd.s32 %v2789_v53, %v1231_v30 }
 0x168   : > { %v1660_v18 = vadd.f32 %v1659_v26, %v1658_v27  ;;  %v1857_v35 = vadd.f32 %v1856_v51, %v1855_v43  ;;  %vm1360_vm2 = vcmp.lt.s32.totalorder %v1296_v21, 968  ;;  %v1661_v1 = vsel %vm1104_vm4, %v1545_v56, 0.0 }
 0x169   : > { %v1663_v50 = vsel %vm1104_vm4, %v1546_v33, 0.0  ;;  %v1233_v5 = vadd.s32 504, %v2784_v13  ;;  %v1298_v57 = vadd.s32 %v2789_v53, %v1232_v24  ;;  %v1860_v20 = vsel %vm1104_vm4, %v1744_v48, 0.0 }
 0x16a   : > { %v1859_v22 = vadd.f32 %v1858_v39, %v1857_v35  ;;  %v1662_v63 = vadd.f32 %v1661_v1, %v1660_v18  ;;  %v1549_v55 = vmul.f32 %v3592_v10, %v3615_v28  ;;  %v1746_v8 = vmul.f32 %v1547_v49, %v1547_v49 }
 0x16b   : > { %v1862_v41 = vsel %vm1104_vm4, %v1745_v25, 0.0  ;;  %v1747_v45 = vmul.f32 %v1548_v36, %v1548_v36  ;;  %v1550_v46 = vmul.f32 %v2131_v52, %v3645_v44  ;;  %vm1361_vm3 = vcmp.lt.s32.totalorder %v1297_v23, 968 }
 0x16c   : > { %v1664_v61 = vadd.f32 %v1663_v50, %v1662_v63  ;;  %v1861_v60 = vadd.f32 %v1860_v20, %v1859_v22  ;;  %v2133_v13 = vsel %vm1360_vm2, 1.0, %v3790_v0  ;;  %v1665_v9 = vsel %vm1104_vm4, %v1547_v49, 0.0 }
 0x16d   : > { %v1667_v6 = vsel %vm1104_vm4, %v1548_v36, 0.0  ;;  %v1299_v37 = vadd.s32 %v2789_v53, %v1233_v5  ;;  %vm1362_vm5 = vcmp.lt.s32.totalorder %v1298_v57, 968  ;;  %v1748_v28 = vmul.f32 %v1549_v55, %v1549_v55 }
 0x16e   : > { %v1863_v10 = vadd.f32 %v1862_v41, %v1861_v60  ;;  %v1666_v17 = vadd.f32 %v1665_v9, %v1664_v61  ;;  %v1551_v58 = vmul.f32 %v2132_v19, %v3642_v3  ;;  %v1864_v44 = vsel %vm1104_vm4, %v1746_v8, 0.0 }
 0x16f   : > { %v1866_v47 = vsel %vm1104_vm4, %v1747_v45, 0.0  ;;  %v1749_v14 = vmul.f32 %v1550_v46, %v1550_v46  ;;  %v1552_v59 = vmul.f32 %v2133_v13, %v3678_v54  ;;  %v2134_v12 = vsel %vm1361_vm3, 1.0, %v3790_v0 }
 0x170   : > { %v1668_v4 = vadd.f32 %v1667_v6, %v1666_v17  ;;  %v1865_v32 = vadd.f32 %v1864_v44, %v1863_v10  ;;  %v2135_v53 = vsel %vm1362_vm5, 1.0, %v3790_v0  ;;  %v1669_v30 = vsel %vm1104_vm4, %v1549_v55, 0.0 }
 0x171   : > { %v1671_v34 = vsel %vm1104_vm4, %v1550_v46, 0.0  ;;  %vm1363_vm6 = vcmp.lt.s32.totalorder %v1299_v37, 968  ;;  %v1868_v3 = vsel %vm1104_vm4, %v1748_v28, 0.0  ;;  %v1750_v31 = vmul.f32 %v1551_v58, %v1551_v58 }
 0x172   : > { %v1867_v42 = vadd.f32 %v1866_v47, %v1865_v32  ;;  %v1670_v56 = vadd.f32 %v1669_v30, %v1668_v4  ;;  %v1870_v40 = vsel %vm1104_vm4, %v1749_v14, 0.0  ;;  %v1553_v54 = vmul.f32 %v2134_v12, %v3665_v16 }
 0x173   : > { %v1751_v7 = vmul.f32 %v1552_v59, %v1552_v59  ;;  %v1554_v29 = vmul.f32 %v2135_v53, %v3684_v62  ;;  %v2136_v15 = vsel %vm1363_vm6, 1.0, %v3790_v0  ;;  %v1673_v19 = vsel %vm1104_vm4, %v1551_v58, 0.0 }
 0x174   : > { %v1672_v33 = vadd.f32 %v1671_v34, %v1670_v56  ;;  %v1869_v11 = vadd.f32 %v1868_v3, %v1867_v42  ;;  %v1675_v21 = vsel %vm1104_vm4, %v1552_v59, 0.0  ;;  %v1872_v38 = vsel %vm1104_vm4, %v1750_v31, 0.0 }
 0x175   : > { %v1752_v24 = vmul.f32 %v1553_v54, %v1553_v54  ;;  %v1874_v51 = vsel %vm1104_vm4, %v1751_v7, 0.0  ;;  %v1555_v16 = vmul.f32 %v2136_v15, %v3681_v2  ;;  %v1753_v43 = vmul.f32 %v1554_v29, %v1554_v29 }
 0x176   : > { %v1871_v26 = vadd.f32 %v1870_v40, %v1869_v11  ;;  %v1674_v52 = vadd.f32 %v1673_v19, %v1672_v33  ;;  %v1677_v27 = vsel %vm1104_vm4, %v1553_v54, 0.0  ;;  %v1679_v0 = vsel %vm1104_vm4, %v1554_v29, 0.0 }
 0x177   : > { %v1876_v25 = vsel %vm1104_vm4, %v1752_v24, 0.0  ;;  %v1754_v36 = vmul.f32 %v1555_v16, %v1555_v16  ;;  %v1878_v18 = vsel %vm1104_vm4, %v1753_v43, 0.0  ;;  %v1681_v2 = vsel %vm1104_vm4, %v1555_v16, 0.0 }
 0x178   : > { %v1676_v48 = vadd.f32 %v1675_v21, %v1674_v52  ;;  %v1873_v62 = vadd.f32 %v1872_v38, %v1871_v26  ;;  %vm1689_vm7 = vcmask 253952  }
 0x179   : > { %v1880_v5 = vsel %vm1104_vm4, %v1754_v36, 0.0 }
 0x17a   : > { %v1875_v39 = vadd.f32 %v1874_v51, %v1873_v62  ;;  %v1678_v49 = vadd.f32 %v1677_v27, %v1676_v48 }
 0x17c   : > { %v1680_v35 = vadd.f32 %v1679_v0, %v1678_v49  ;;  %v1877_v23 = vadd.f32 %v1876_v25, %v1875_v39 }
 0x17e   : > { %v1682_v1 = vadd.f32 %v1681_v2, %v1680_v35  ;;  %v1879_v50 = vadd.f32 %v1878_v18, %v1877_v23 }
 0x180   : > { %v1683_v57 = vrot.slane %v1682_v1, 4  ;;  %v1881_v20 = vadd.f32 %v1880_v5, %v1879_v50 }
 0x182   : > { %v1684_v22 = vadd.f32 %v1683_v57, %v1682_v1  ;;  %v1882_v63 = vrot.slane %v1881_v20, 4 }
 0x184   : > { %v1685_v55 = vrot.slane %v1684_v22, 2  ;;  %v1883_v8 = vadd.f32 %v1882_v63, %v1881_v20 }
 0x186   : > { %v1686_v41 = vadd.f32 %v1685_v55, %v1684_v22  ;;  %v1884_v45 = vrot.slane %v1883_v8, 2 }
 0x188   : > { %v1687_v46 = vrot.slane %v1686_v41, 1  ;;  %v1885_v61 = vadd.f32 %v1884_v45, %v1883_v8 }
 0x18a   : > { %v1688_v60 = vadd.f32 %v1687_v46, %v1686_v41  ;;  %v1886_v13 = vrot.slane %v1885_v61, 1 }
 0x18c   : > { %1690 = vst.msk [vmem:[%s295_s21] sm:$0x1] %vm1689_vm7, %v1688_v60  ;;  %v1887_v9 = vadd.f32 %v1886_v13, %v1885_v61 }
 0x18e   : > { %1888 = vst.msk [vmem:[%s298_s26] sm:$0x1] %vm1689_vm7, %v1887_v9 }
 0x18f PF: > { %s18_s24 = sadd.s32 1, %s2378_s24  }
 0x190   : > { %p15_p5 = scmp.ge.s32.totalorder %s18_s24, 4  }
 0x192   :  { %17 = sbr.rel (!%p15_p5) target bundleno = 1 (0x1), region = 94 }

// kernel: a_call__.5
= control target key start
LH: loop header
LB: loop body
LE: loop exit
PB: predicated region body
PF: predicated region fallthrough
CT: control target
= control target key end

     0   :  { %v2217_v0 = vmov 0.0|0.0   ;;  %v172_v23 = vlaneseq  ;;  %vm2218_vm0 = vmmov 0   ;;  %vm792_vm1 = vcmask 261120   ;;  %s3941_s1 = inlined_call_operand.vmem [shape: f32[800,64], index: 1, kind: input, shape index: {}]   ;;  %s3942_s0 = inlined_call_operand.vmem [shape: f32[168,800], index: 0, kind: input, shape index: {}]   ;;  %s3943_s3 = inlined_call_operand.vmem [shape: f32[1,800], index: 3, kind: input, shape index: {}]   ;;  %s3944_s4 = inlined_call_operand.vmem [shape: f32[1,800], index: 4, kind: input, shape index: {}]   ;;  %s3945_s2 = inlined_call_operand.vmem [shape: f32[1,64], index: 2, kind: input, shape index: {}]   ;;  %s3946_s5 = inlined_call_operand.vmem [shape: f32[168,64], index: 5, kind: output, shape index: {0}]   ;;  %s3947_s6 = inlined_call_operand.vmem [shape: f32[1,1,64], index: 6, kind: output, shape index: {1}]   ;;  %s3948_s7 = inlined_call_operand.vmem [shape: f32[1,1,64], index: 7, kind: output, shape index: {2}]  }
   0x1   :  { %1936 = vmatprep.subr.bf16.mxu1 %v2217_v0  ;;  %2032 = vmatprep.subr.bf16.mxu0 %v2217_v0  ;;  %v685_v1 = vld [vmem:[%s3941_s1] sm:$0xff]  ;;  %v686_v2 = vld [vmem:[%s3941_s1 + $0x8] sm:$0xff]  ;;  %v687_v6 = vld [vmem:[%s3941_s1 + $0x10] sm:$0xff]  ;;  %vm1536_vm2 = vcmask 523264   ;;  %vm1734_vm4 = vcmask 516096  }
   0x2   :  { %v749_v3 = vld [vmem:[%s3941_s1 + $0x200] sm:$0xff]  ;;  %v1937_v4 = vpack.c.bf16 %v686_v2, %v685_v1  ;;  %v750_v5 = vld [vmem:[%s3941_s1 + $0x208] sm:$0xff]  ;;  %v688_v7 = vld [vmem:[%s3941_s1 + $0x18] sm:$0xff]  ;;  %v2328_v30 = vshrl.u32 %v172_v23, 7 }
   0x3   :  { %v2033_v8 = vpack.c.bf16 %v750_v5, %v749_v3  ;;  %v751_v9 = vld [vmem:[%s3941_s1 + $0x210] sm:$0xff]  ;;  %v752_v10 = vld [vmem:[%s3941_s1 + $0x218] sm:$0xff]  ;;  %v1940_v11 = vpack.c.bf16 %v688_v7, %v687_v6  ;;  %v689_v13 = vld [vmem:[%s3941_s1 + $0x20] sm:$0xff] }
   0x4   :  { %1938 = vmatpush1.bf16.msra.mxu1 %v1937_v4  ;;  %v2036_v12 = vpack.c.bf16 %v752_v10, %v751_v9  ;;  %v690_v14 = vld [vmem:[%s3941_s1 + $0x28] sm:$0xff]  ;;  %v753_v15 = vld [vmem:[%s3941_s1 + $0x220] sm:$0xff]  ;;  %v691_v19 = vld [vmem:[%s3941_s1 + $0x30] sm:$0xff]  ;;  %v178_v37 = vsub.s32 1, %v2328_v30  ;;  %v194_v38 = vsub.s32 5, %v2328_v30 }
   0x5   :  { %2034 = vmatpush1.bf16.msra.mxu0 %v2033_v8  ;;  %1939 = vmatprep.subr.bf16.mxu1 %v2217_v0  ;;  %v754_v16 = vld [vmem:[%s3941_s1 + $0x228] sm:$0xff]  ;;  %v1943_v17 = vpack.c.bf16 %v690_v14, %v689_v13  ;;  %v692_v20 = vld [vmem:[%s3941_s1 + $0x38] sm:$0xff]  ;;  %v755_v21 = vld [vmem:[%s3941_s1 + $0x230] sm:$0xff] }
   0x6   :  { %2035 = vmatprep.subr.bf16.mxu0 %v2217_v0  ;;  %v2039_v18 = vpack.c.bf16 %v754_v16, %v753_v15  ;;  %v756_v22 = vld [vmem:[%s3941_s1 + $0x238] sm:$0xff]  ;;  %v1946_v24 = vpack.c.bf16 %v692_v20, %v691_v19  ;;  %v693_v26 = vld [vmem:[%s3941_s1 + $0x40] sm:$0xff]  ;;  %v694_v27 = vld [vmem:[%s3941_s1 + $0x48] sm:$0xff] }
   0x7   :  { %v2042_v25 = vpack.c.bf16 %v756_v22, %v755_v21  ;;  %v757_v28 = vld [vmem:[%s3941_s1 + $0x240] sm:$0xff]  ;;  %v758_v29 = vld [vmem:[%s3941_s1 + $0x248] sm:$0xff]  ;;  %v1949_v31 = vpack.c.bf16 %v694_v27, %v693_v26  ;;  %v695_v33 = vld [vmem:[%s3941_s1 + $0x50] sm:$0xff]  ;;  %v174_v26 = vsub.s32 0, %v2328_v30  ;;  %v190_v27 = vsub.s32 4, %v2328_v30 }
   0x8   :  { %1941 = vmatpush1.bf16.msra.mxu1 %v1940_v11  ;;  %v2045_v32 = vpack.c.bf16 %v758_v29, %v757_v28  ;;  %v696_v34 = vld [vmem:[%s3941_s1 + $0x58] sm:$0xff]  ;;  %v759_v35 = vld [vmem:[%s3941_s1 + $0x250] sm:$0xff]  ;;  %v697_v41 = vld [vmem:[%s3941_s1 + $0x60] sm:$0xff] }
   0x9   :  { %2037 = vmatpush1.bf16.msra.mxu0 %v2036_v12  ;;  %1942 = vmatprep.subr.bf16.mxu1 %v2217_v0  ;;  %v760_v36 = vld [vmem:[%s3941_s1 + $0x258] sm:$0xff]  ;;  %v1952_v39 = vpack.c.bf16 %v696_v34, %v695_v33  ;;  %v698_v42 = vld [vmem:[%s3941_s1 + $0x68] sm:$0xff]  ;;  %v761_v43 = vld [vmem:[%s3941_s1 + $0x260] sm:$0xff] }
   0xa   :  { %2038 = vmatprep.subr.bf16.mxu0 %v2217_v0  ;;  %v2048_v40 = vpack.c.bf16 %v760_v36, %v759_v35  ;;  %v762_v44 = vld [vmem:[%s3941_s1 + $0x268] sm:$0xff]  ;;  %v2366_v46 = vld [vmem:[%s3943_s3] sm:$0x7f]  ;;  %v1955_v51 = vpack.c.bf16 %v698_v42, %v697_v41  ;;  %v699_v55 = vld [vmem:[%s3941_s1 + $0x70] sm:$0xff] }
   0xb   :  { %v24_v45 = vld [vmem:[%s3942_s0 + $0x8] sm:$0xff]  ;;  %v2369_v47 = vrot.slane %v2366_v46, %v178_v37  ;;  %v2374_v48 = vld [vmem:[%s3944_s4] sm:$0x7f]  ;;  %v2380_v50 = vrot.slane %v2366_v46, %v194_v38  ;;  %v2051_v54 = vpack.c.bf16 %v762_v44, %v761_v43  ;;  %v700_v56 = vld [vmem:[%s3941_s1 + $0x78] sm:$0xff]  ;;  %v2510_v42 = vrot.slane %v2366_v46, %v190_v27 }
   0xc   :  { %1944 = vmatpush1.bf16.msra.mxu1 %v1943_v17  ;;  %v28_v49 = vld [vmem:[%s3942_s0 + $0x28] sm:$0xff]  ;;  %v2383_v52 = vrot.slane %v2374_v48, %v178_v37  ;;  %v2386_v53 = vrot.slane %v2374_v48, %v194_v38  ;;  %v763_v59 = vld [vmem:[%s3941_s1 + $0x270] sm:$0xff]  ;;  %v764_v60 = vld [vmem:[%s3941_s1 + $0x278] sm:$0xff]  ;;  %v1958_v63 = vpack.c.bf16 %v700_v56, %v699_v55  ;;  %v2489_v37 = vrot.slane %v2366_v46, %v174_v26 }
   0xd   :  { %2040 = vmatpush1.bf16.msra.mxu0 %v2039_v18  ;;  %1945 = vmatprep.subr.bf16.mxu1 %v2217_v0  ;;  %v208_v57 = vmul.f32 %v2369_v47, %v24_v45  ;;  %v212_v58 = vmul.f32 %v2380_v50, %v28_v49  ;;  %v2054_v1 = vpack.c.bf16 %v764_v60, %v763_v59  ;;  %v701_v2 = vld [vmem:[%s3941_s1 + $0x80] sm:$0xff]  ;;  %v702_v3 = vld [vmem:[%s3941_s1 + $0x88] sm:$0xff]  ;;  %v703_v10 = vld [vmem:[%s3941_s1 + $0x90] sm:$0xff] }
   0xe   :  { %2041 = vmatprep.subr.bf16.mxu0 %v2217_v0  ;;  %v765_v6 = vld [vmem:[%s3941_s1 + $0x280] sm:$0xff]  ;;  %v766_v7 = vld [vmem:[%s3941_s1 + $0x288] sm:$0xff]  ;;  %v1961_v8 = vpack.c.bf16 %v702_v3, %v701_v2  ;;  %v704_v11 = vld [vmem:[%s3941_s1 + $0x98] sm:$0xff]  ;;  %v2553_v60 = vrot.slane %v2374_v48, %v174_v26 }
   0xf   :  { %v392_v61 = vadd.f32 %v2383_v52, %v208_v57  ;;  %v396_v62 = vadd.f32 %v2386_v53, %v212_v58  ;;  %v2057_v9 = vpack.c.bf16 %v766_v7, %v765_v6  ;;  %v767_v12 = vld [vmem:[%s3941_s1 + $0x290] sm:$0xff]  ;;  %v768_v13 = vld [vmem:[%s3941_s1 + $0x298] sm:$0xff]  ;;  %v1964_v14 = vpack.c.bf16 %v704_v11, %v703_v10  ;;  %v705_v16 = vld [vmem:[%s3941_s1 + $0xa0] sm:$0xff] }
  0x10   :  { %1947 = vmatpush1.bf16.msra.mxu1 %v1946_v24  ;;  %v2060_v15 = vpack.c.bf16 %v768_v13, %v767_v12  ;;  %v706_v17 = vld [vmem:[%s3941_s1 + $0xa8] sm:$0xff]  ;;  %v769_v18 = vld [vmem:[%s3941_s1 + $0x2a0] sm:$0xff]  ;;  %v707_v22 = vld [vmem:[%s3941_s1 + $0xb0] sm:$0xff] }
  0x11   :  { %2043 = vmatpush1.bf16.msra.mxu0 %v2042_v25  ;;  %1948 = vmatprep.subr.bf16.mxu1 %v2217_v0  ;;  %v539_v4 = vmax.f32 %v392_v61, 0.0  ;;  %v543_v5 = vmax.f32 %v396_v62, 0.0  ;;  %v770_v19 = vld [vmem:[%s3941_s1 + $0x2a8] sm:$0xff]  ;;  %v1967_v20 = vpack.c.bf16 %v706_v17, %v705_v16  ;;  %v708_v23 = vld [vmem:[%s3941_s1 + $0xb8] sm:$0xff]  ;;  %v771_v24 = vld [vmem:[%s3941_s1 + $0x2b0] sm:$0xff] }
  0x12   :  { %2044 = vmatprep.subr.bf16.mxu0 %v2217_v0  ;;  %v2063_v21 = vpack.c.bf16 %v770_v19, %v769_v18  ;;  %v772_v25 = vld [vmem:[%s3941_s1 + $0x2b8] sm:$0xff]  ;;  %v1970_v28 = vpack.c.bf16 %v708_v23, %v707_v22  ;;  %v773_v33 = vld [vmem:[%s3941_s1 + $0x2c0] sm:$0xff]  ;;  %v774_v34 = vld [vmem:[%s3941_s1 + $0x2c8] sm:$0xff] }
  0x13   :  { %920 = vmatprep.mubr.f32.mxu1 %v539_v4  ;;  %1260 = vmatprep.mubr.f32.mxu0 %v543_v5  ;;  %v2066_v29 = vpack.c.bf16 %v772_v25, %v771_v24  ;;  %v2481_v35 = vld [vmem:[%s3941_s1 + $0xd0] sm:$0xff]  ;;  %v2486_v36 = vld [vmem:[%s3941_s1 + $0xd8] sm:$0xff]  ;;  %v23_v41 = vld [vmem:[%s3942_s0] sm:$0xff]  ;;  %v2572_v5 = vrot.slane %v2374_v48, %v190_v27 }
  0x14   :  { %1950 = vmatpush1.bf16.msra.mxu1 %v1949_v31  ;;  %v709_v31 = vld [vmem:[%s3941_s1 + $0xc0] sm:$0xff]  ;;  %v2494_v38 = vld [vmem:[%s3941_s1 + $0x2d0] sm:$0xff]  ;;  %v80_v43 = vld [vmem:[%s3942_s0 + $0x1c8] sm:$0xff]  ;;  %v207_v59 = vmul.f32 %v2489_v37, %v23_v41  ;;  %v1976_v2 = vpack.c.bf16 %v2486_v36, %v2481_v35 }
  0x15   :  { %2046 = vmatpush1.bf16.msra.mxu0 %v2045_v32  ;;  %1951 = vmatprep.subr.bf16.mxu1 %v2217_v0  ;;  %v710_v32 = vld [vmem:[%s3941_s1 + $0xc8] sm:$0xff]  ;;  %v27_v46 = vld [vmem:[%s3942_s0 + $0x20] sm:$0xff]  ;;  %v2543_v57 = vld [vmem:[%s3941_s1 + $0xf0] sm:$0xff]  ;;  %v264_v62 = vmul.f32 %v2369_v47, %v80_v43 }
  0x16   :  { %2047 = vmatprep.subr.bf16.mxu0 %v2217_v0  ;;  %v84_v44 = vld [vmem:[%s3942_s0 + $0x1e8] sm:$0xff]  ;;  %v1973_v45 = vpack.c.bf16 %v710_v32, %v709_v31  ;;  %v2533_v55 = vld [vmem:[%s3941_s1 + $0x2e0] sm:$0xff]  ;;  %v2549_v58 = vld [vmem:[%s3941_s1 + $0xf8] sm:$0xff]  ;;  %v211_v4 = vmul.f32 %v2510_v42, %v27_v46  ;;  %v2628_v22 = vadd.f32 %v2553_v60, %v207_v59 }
  0x17   :  { %v2521_v49 = vld [vmem:[%s3941_s1 + $0xe8] sm:$0xff]  ;;  %v35_v61 = vld [vmem:[%s3942_s0 + $0x60] sm:$0xff]  ;;  %v2568_v3 = vld [vmem:[%s3941_s1 + $0x2f0] sm:$0xff]  ;;  %v2601_v13 = vadd.f32 %v2383_v52, %v264_v62 }
  0x18   :  { %1953 = vmatpush1.bf16.msra.mxu1 %v1952_v39  ;;  %v2499_v39 = vld [vmem:[%s3941_s1 + $0x2d8] sm:$0xff]  ;;  %v2538_v56 = vld [vmem:[%s3941_s1 + $0x2e8] sm:$0xff]  ;;  %v2593_v11 = vld [vmem:[%s3941_s1 + $0x100] sm:$0xff]  ;;  %v219_v16 = vmul.f32 %v2380_v50, %v35_v61 }
  0x19   :  { %2049 = vmatpush1.bf16.msra.mxu0 %v2048_v40  ;;  %1954 = vmatprep.subr.bf16.mxu1 %v2217_v0  ;;  %v2504_v40 = vld [vmem:[%s3941_s1 + $0xe0] sm:$0xff]  ;;  %v30_v7 = vld [vmem:[%s3942_s0 + $0x38] sm:$0xff]  ;;  %v2598_v12 = vld [vmem:[%s3941_s1 + $0x108] sm:$0xff] }
  0x1a   :  { %2050 = vmatprep.subr.bf16.mxu0 %v2217_v0  ;;  %v1979_v10 = vpack.c.bf16 %v2521_v49, %v2504_v40  ;;  %v2588_v48 = vld [vmem:[%s3941_s1 + $0x2f8] sm:$0xff]  ;;  %v2613_v17 = vld [vmem:[%s3941_s1 + $0x300] sm:$0xff]  ;;  %v2618_v18 = vld [vmem:[%s3941_s1 + $0x308] sm:$0xff]  ;;  %v214_v23 = vmul.f32 %v2489_v37, %v30_v7  ;;  %v2675_v41 = vadd.f32 %v2386_v53, %v219_v16 }
  0x1b   :  { %v34_v24 = vld [vmem:[%s3942_s0 + $0x58] sm:$0xff]  ;;  %v2078_v27 = vpack.c.bf16 %v2588_v48, %v2568_v3  ;;  %v2659_v35 = vld [vmem:[%s3941_s1 + $0x110] sm:$0xff]  ;;  %v44_v16 = vld [vmem:[%s3942_s0 + $0xa8] sm:$0xff] }
  0x1c   :  { %1956 = vmatpush1.bf16.msra.mxu1 %v1955_v51  ;;  %v31_v51 = vld [vmem:[%s3942_s0 + $0x40] sm:$0xff]  ;;  %v98_v26 = vld [vmem:[%s3942_s0 + $0x258] sm:$0xff]  ;;  %v101_v40 = vld [vmem:[%s3942_s0 + $0x270] sm:$0xff]  ;;  %v218_v43 = vmul.f32 %v2510_v42, %v34_v24 }
  0x1d   :  { %2052 = vmatpush1.bf16.msra.mxu0 %v2051_v54  ;;  %1957 = vmatprep.subr.bf16.mxu1 %v2217_v0  ;;  %v2069_v54 = vpack.c.bf16 %v774_v34, %v773_v33  ;;  %v215_v6 = vmul.f32 %v2369_v47, %v31_v51  ;;  %v38_v31 = vld [vmem:[%s3942_s0 + $0x78] sm:$0xff]  ;;  %v1985_v33 = vpack.c.bf16 %v2598_v12, %v2593_v11  ;;  %v41_v49 = vld [vmem:[%s3942_s0 + $0x90] sm:$0xff]  ;;  %v538_v51 = vmax.f32 %v2628_v22, 0.0 }
  0x1e   :  { %2053 = vmatprep.subr.bf16.mxu0 %v2217_v0  ;;  %v2081_v34 = vpack.c.bf16 %v2618_v18, %v2613_v17  ;;  %v2664_v36 = vld [vmem:[%s3941_s1 + $0x118] sm:$0xff]  ;;  %v282_v46 = vmul.f32 %v2380_v50, %v98_v26  ;;  %v105_v59 = vld [vmem:[%s3942_s0 + $0x290] sm:$0xff]  ;;  %v2729_v22 = vadd.f32 %v2572_v5, %v218_v43  ;;  %v2752_v43 = vld [vmem:[%s3941_s1 + $0x120] sm:$0xff] }
  0x20   :  { %1959 = vmatpush1.bf16.msra.mxu1 %v1958_v63  ;;  %v268_v63 = vmul.f32 %v2380_v50, %v84_v44  ;;  %v42_v44 = vld [vmem:[%s3942_s0 + $0x98] sm:$0xff] }
  0x21   :  { %2055 = vmatpush1.bf16.msra.mxu0 %v2054_v1  ;;  %1960 = vmatprep.subr.bf16.mxu1 %v2217_v0  ;;  %v87_v1 = vld [vmem:[%s3942_s0 + $0x200] sm:$0xff]  ;;  %v226_v7 = vmul.f32 %v2380_v50, %v42_v44  ;;  %v2757_v44 = vld [vmem:[%s3941_s1 + $0x128] sm:$0xff] }
  0x22   :  { %2056 = vmatprep.subr.bf16.mxu0 %v2217_v0  ;;  %v271_v19 = vmul.f32 %v2369_v47, %v87_v1  ;;  %v49_v1 = vld [vmem:[%s3942_s0 + $0xd0] sm:$0xff] }
  0x24   :  { %1962 = vmatpush1.bf16.msra.mxu1 %v1961_v8  ;;  %v91_v8 = vld [vmem:[%s3942_s0 + $0x220] sm:$0xff]  ;;  %v2650_v32 = vadd.f32 %v2383_v52, %v271_v19  ;;  %v108_v19 = vld [vmem:[%s3942_s0 + $0x2a8] sm:$0xff] }
  0x25   :  { %2058 = vmatpush1.bf16.msra.mxu0 %v2057_v9  ;;  %1963 = vmatprep.subr.bf16.mxu1 %v2217_v0  ;;  %v2072_v9 = vpack.c.bf16 %v2499_v39, %v2494_v38  ;;  %v275_v25 = vmul.f32 %v2380_v50, %v91_v8 }
  0x26   :  { %2059 = vmatprep.subr.bf16.mxu0 %v2217_v0 }
  0x27   :  { %v2667_v38 = vadd.f32 %v2386_v53, %v275_v25  ;;  %v289_v25 = vmul.f32 %v2380_v50, %v105_v59 }
  0x28   :  { %1965 = vmatpush1.bf16.msra.mxu1 %v1964_v14  ;;  %v2604_v14 = vadd.f32 %v2386_v53, %v268_v63  ;;  %v45_v63 = vld [vmem:[%s3942_s0 + $0xb0] sm:$0xff] }
  0x29   :  { %2061 = vmatpush1.bf16.msra.mxu0 %v2060_v15  ;;  %1966 = vmatprep.subr.bf16.mxu1 %v2217_v0  ;;  %v2075_v15 = vpack.c.bf16 %v2538_v56, %v2533_v55  ;;  %v222_v55 = vmul.f32 %v2369_v47, %v38_v31  ;;  %v229_v31 = vmul.f32 %v2369_v47, %v45_v63 }
  0x2a   :  { %2062 = vmatprep.subr.bf16.mxu0 %v2217_v0 }
  0x2b   :  { %v2741_v26 = vadd.f32 %v2383_v52, %v222_v55  ;;  %v2768_v55 = vadd.f32 %v2386_v53, %v226_v7 }
  0x2c   :  { %1968 = vmatpush1.bf16.msra.mxu1 %v1967_v20  ;;  %v94_v20 = vld [vmem:[%s3942_s0 + $0x238] sm:$0xff] }
  0x2d   :  { %2064 = vmatpush1.bf16.msra.mxu0 %v2063_v21  ;;  %1969 = vmatprep.subr.bf16.mxu1 %v2217_v0  ;;  %v1982_v21 = vpack.c.bf16 %v2549_v58, %v2543_v57  ;;  %v278_v39 = vmul.f32 %v2369_v47, %v94_v20  ;;  %v550_v20 = vmax.f32 %v2675_v41, 0.0  ;;  %v228_v41 = vmul.f32 %v2489_v37, %v44_v16  ;;  %v115_v57 = vld [vmem:[%s3942_s0 + $0x2e0] sm:$0xff] }
  0x2e   :  { %2065 = vmatprep.subr.bf16.mxu0 %v2217_v0  ;;  %v119_v58 = vld [vmem:[%s3942_s0 + $0x300] sm:$0xff]  ;;  %v553_v48 = vmax.f32 %v2741_v26, 0.0 }
  0x2f   :  { %v2695_v56 = vadd.f32 %v2383_v52, %v278_v39  ;;  %v233_v39 = vmul.f32 %v2380_v50, %v49_v1 }
  0x30   :  { %1971 = vmatpush1.bf16.msra.mxu1 %v1970_v28  ;;  %v2641_v28 = vadd.f32 %v2572_v5, %v211_v4  ;;  %v285_v4 = vmul.f32 %v2369_v47, %v101_v40  ;;  %v52_v40 = vld [vmem:[%s3942_s0 + $0xe8] sm:$0xff] }
  0x31   :  { %2067 = vmatpush1.bf16.msra.mxu0 %v2066_v29  ;;  %1972 = vmatprep.subr.bf16.mxu1 %v2217_v0  ;;  %v2644_v29 = vadd.f32 %v2383_v52, %v215_v6  ;;  %v1988_v6 = vpack.c.bf16 %v2664_v36, %v2659_v35  ;;  %v236_v7 = vmul.f32 %v2369_v47, %v52_v40 }
  0x32   :  { %2068 = vmatprep.subr.bf16.mxu0 %v2217_v0  ;;  %v542_v61 = vmax.f32 %v2641_v28, 0.0  ;;  %v2735_v24 = vadd.f32 %v2383_v52, %v285_v4  ;;  %v56_v4 = vld [vmem:[%s3942_s0 + $0x108] sm:$0xff]  ;;  %v299_v40 = vmul.f32 %v2369_v47, %v115_v57  ;;  %v126_v28 = vld [vmem:[%s3942_s0 + $0x338] sm:$0xff] }
  0x33   :  { %v546_v62 = vmax.f32 %v2644_v29, 0.0  ;;  %v240_v26 = vmul.f32 %v2380_v50, %v56_v4  ;;  %v2860_v12 = vadd.f32 %v2383_v52, %v236_v7  ;;  %v129_v7 = vld [vmem:[%s3942_s0 + $0x350] sm:$0xff] }
  0x34   :  { %1974 = vmatpush1.bf16.msra.mxu1 %v1973_v45  ;;  %v37_v45 = vld [vmem:[%s3942_s0 + $0x70] sm:$0xff] }
  0x35   :  { %2070 = vmatpush1.bf16.msra.mxu0 %v2069_v54  ;;  %1975 = vmatprep.subr.bf16.mxu1 %v2217_v0  ;;  %v2691_v54 = vadd.f32 %v2553_v60, %v214_v23  ;;  %v221_v8 = vmul.f32 %v2489_v37, %v37_v45  ;;  %v48_v23 = vld [vmem:[%s3942_s0 + $0xc8] sm:$0xff]  ;;  %v2760_v45 = vadd.f32 %v2386_v53, %v289_v25 }
  0x36   :  { %2071 = vmatprep.subr.bf16.mxu0 %v2217_v0  ;;  %v232_v1 = vmul.f32 %v2510_v42, %v48_v23  ;;  %v2822_v23 = vld [vmem:[%s3941_s1 + $0x138] sm:$0xff]  ;;  %v2825_v25 = vadd.f32 %v2553_v60, %v228_v41  ;;  %v557_v41 = vmax.f32 %v2768_v55, 0.0  ;;  %v2889_v18 = vadd.f32 %v2386_v53, %v240_v26 }
  0x37   :  { %v2771_v59 = vadd.f32 %v2553_v60, %v221_v8  ;;  %v51_v8 = vld [vmem:[%s3942_s0 + $0xe0] sm:$0xff]  ;;  %v66_v26 = vld [vmem:[%s3942_s0 + $0x158] sm:$0xff] }
  0x38   :  { %1977 = vmatpush1.bf16.msra.mxu1 %v1976_v2  ;;  %v2709_v2 = vadd.f32 %v2386_v53, %v282_v46  ;;  %v235_v4 = vmul.f32 %v2489_v37, %v51_v8  ;;  %v310_v8 = vmul.f32 %v2380_v50, %v126_v28  ;;  %v571_v28 = vmax.f32 %v2889_v18, 0.0 }
  0x39   :  { %2073 = vmatpush1.bf16.msra.mxu0 %v2072_v9  ;;  %1978 = vmatprep.subr.bf16.mxu1 %v2217_v0  ;;  %v225_v9 = vmul.f32 %v2510_v42, %v41_v49  ;;  %v292_v49 = vmul.f32 %v2369_v47, %v108_v19  ;;  %v2810_v19 = vadd.f32 %v2386_v53, %v233_v39  ;;  %v784_v39 = vld [vmem:[%s3941_s1 + $0x318] sm:$0xff]  ;;  %v552_v11 = vmax.f32 %v2771_v59, 0.0 }
  0x3a   :  { %2074 = vmatprep.subr.bf16.mxu0 %v2217_v0 }
  0x3b   :  { %v2774_v63 = vadd.f32 %v2572_v5, %v225_v9  ;;  %v55_v9 = vld [vmem:[%s3942_s0 + $0x100] sm:$0xff]  ;;  %v2799_v16 = vadd.f32 %v2383_v52, %v292_v49  ;;  %v303_v49 = vmul.f32 %v2380_v50, %v119_v58 }
  0x3c   :  { %1980 = vmatpush1.bf16.msra.mxu1 %v1979_v10  ;;  %v112_v10 = vld [vmem:[%s3942_s0 + $0x2c8] sm:$0xff]  ;;  %v239_v57 = vmul.f32 %v2510_v42, %v55_v9  ;;  %v59_v58 = vld [vmem:[%s3942_s0 + $0x120] sm:$0xff]  ;;  %v2902_v9 = vadd.f32 %v2553_v60, %v235_v4  ;;  %v250_v4 = vmul.f32 %v2369_v47, %v66_v26 }
  0x3d   :  { %2076 = vmatpush1.bf16.msra.mxu0 %v2075_v15  ;;  %1981 = vmatprep.subr.bf16.mxu1 %v2217_v0  ;;  %v545_v15 = vmax.f32 %v2691_v54, 0.0  ;;  %v296_v46 = vmul.f32 %v2380_v50, %v112_v10  ;;  %v1991_v10 = vpack.c.bf16 %v2757_v44, %v2752_v43  ;;  %v2869_v55 = vadd.f32 %v2386_v53, %v303_v49  ;;  %v133_v54 = vld [vmem:[%s3942_s0 + $0x370] sm:$0xff]  ;;  %v147_v43 = vld [vmem:[%s3942_s0 + $0x3e0] sm:$0xff] }
  0x3e   :  { %2077 = vmatprep.subr.bf16.mxu0 %v2217_v0  ;;  %v556_v29 = vmax.f32 %v2774_v63, 0.0  ;;  %v62_v63 = vld [vmem:[%s3942_s0 + $0x138] sm:$0xff]  ;;  %v2926_v35 = vadd.f32 %v2572_v5, %v239_v57  ;;  %v65_v57 = vld [vmem:[%s3942_s0 + $0x150] sm:$0xff] }
  0x3f   :  { %v2802_v3 = vadd.f32 %v2386_v53, %v296_v46  ;;  %v2846_v46 = vadd.f32 %v2572_v5, %v232_v1  ;;  %v246_v36 = vmul.f32 %v2510_v42, %v62_v63  ;;  %v725_v63 = vld [vmem:[%s3941_s1 + $0x140] sm:$0xff] }
  0x40   :  { %1983 = vmatpush1.bf16.msra.mxu1 %v1982_v21  ;;  %v549_v21 = vmax.f32 %v2729_v22, 0.0  ;;  %v2817_v22 = vld [vmem:[%s3941_s1 + $0x130] sm:$0xff]  ;;  %v570_v44 = vmax.f32 %v2926_v35, 0.0 }
  0x41   :  { %2079 = vmatpush1.bf16.msra.mxu0 %v2078_v27  ;;  %1984 = vmatprep.subr.bf16.mxu1 %v2217_v0  ;;  %v2807_v27 = vadd.f32 %v2383_v52, %v229_v31  ;;  %v783_v31 = vld [vmem:[%s3941_s1 + $0x310] sm:$0xff]  ;;  %v563_v49 = vmax.f32 %v2846_v46, 0.0 }
  0x42   :  { %2080 = vmatprep.subr.bf16.mxu0 %v2217_v0  ;;  %v2084_v59 = vpack.c.bf16 %v784_v39, %v783_v31  ;;  %v313_v39 = vmul.f32 %v2369_v47, %v129_v7 }
  0x43   :  { %921 = vmatmul.mubr.f32.vlgmr.msra.gmra.mrb[0].mxu1 %v538_v51  ;;  %v122_v51 = vld [vmem:[%s3942_s0 + $0x318] sm:$0xff]  ;;  %v560_v17 = vmax.f32 %v2807_v27, 0.0 }
  0x44   :  { %1261 = vmatmul.mubr.f32.vlgmr.msra.gmra.mrb[0].mxu0 %v542_v61  ;;  %1986 = vmatpush1.bf16.msra.mxu1 %v1985_v33  ;;  %v63_v33 = vld [vmem:[%s3942_s0 + $0x140] sm:$0xff]  ;;  %v2866_v61 = vadd.f32 %v2383_v52, %v299_v40  ;;  %v306_v1 = vmul.f32 %v2369_v47, %v122_v51  ;;  %v136_v40 = vld [vmem:[%s3942_s0 + $0x388] sm:$0xff] }
  0x45   :  { %925 = vmatprep.mubr.f32.mxu1 %v546_v62  ;;  %1265 = vmatprep.mubr.f32.mxu0 %v550_v20  ;;  %v1994_v62 = vpack.c.bf16 %v2822_v23, %v2817_v22  ;;  %v58_v20 = vld [vmem:[%s3942_s0 + $0x118] sm:$0xff]  ;;  %v247_v27 = vmul.f32 %v2380_v50, %v63_v33  ;;  %v140_v51 = vld [vmem:[%s3942_s0 + $0x3a8] sm:$0xff]  ;;  %v73_v33 = vld [vmem:[%s3942_s0 + $0x190] sm:$0xff] }
  0x46   :  { %2082 = vmatpush3.bf16.msra.mxu0 %v2081_v34  ;;  %1987 = vmatprep.subr.bf16.mxu1 %v2217_v0  ;;  %v243_v34 = vmul.f32 %v2369_v47, %v59_v58  ;;  %v2909_v31 = vadd.f32 %v2383_v52, %v306_v1  ;;  %v2945_v58 = vadd.f32 %v2383_v52, %v313_v39  ;;  %v727_v22 = vld [vmem:[%s3941_s1 + $0x150] sm:$0xff]  ;;  %v728_v23 = vld [vmem:[%s3941_s1 + $0x158] sm:$0xff] }
  0x47   :  { %926 = vmatmul.mubr.f32.gmra.mrb[2].mxu1 %v545_v15  ;;  %2083 = vmatprep.subr.bf16.mxu0 %v2217_v0  ;;  %v564_v15 = vmax.f32 %v2810_v19, 0.0  ;;  %v2917_v19 = vadd.f32 %v2386_v53, %v310_v8  ;;  %v324_v18 = vmul.f32 %v2380_v50, %v140_v51  ;;  %v726_v8 = vld [vmem:[%s3941_s1 + $0x148] sm:$0xff]  ;;  %v257_v26 = vmul.f32 %v2369_v47, %v73_v33 }
  0x48   :  { %1266 = vmatmul.mubr.f32.gmra.mrb[2].mxu0 %v549_v21  ;;  %930 = vmatprep.mubr.f32.mxu1 %v553_v48  ;;  %v559_v21 = vmax.f32 %v2825_v25, 0.0  ;;  %v242_v48 = vmul.f32 %v2489_v37, %v58_v20  ;;  %v317_v25 = vmul.f32 %v2380_v50, %v133_v54  ;;  %v2938_v46 = vadd.f32 %v2383_v52, %v243_v34  ;;  %v143_v34 = vld [vmem:[%s3942_s0 + $0x3c0] sm:$0xff] }
  0x49   :  { %1989 = vmatpush1.bf16.msra.mxu1 %v1988_v6  ;;  %1270 = vmatprep.mubr.f32.mxu0 %v557_v41  ;;  %v70_v6 = vld [vmem:[%s3942_s0 + $0x178] sm:$0xff]  ;;  %v567_v41 = vmax.f32 %v2860_v12, 0.0  ;;  %v69_v12 = vld [vmem:[%s3942_s0 + $0x170] sm:$0xff]  ;;  %v249_v54 = vmul.f32 %v2489_v37, %v65_v57  ;;  %v3001_v39 = vadd.f32 %v2386_v53, %v324_v18  ;;  %v441_v18 = vadd.f32 %v2383_v52, %v257_v26 }
  0x4a   :  { %1990 = vmatprep.subr.bf16.mxu1 %v2217_v0  ;;  %2085 = vmatpush3.bf16.msra.mxu0 %v2084_v59  ;;  %v2958_v20 = vadd.f32 %v2386_v53, %v317_v25  ;;  %v320_v59 = vmul.f32 %v2369_v47, %v136_v40  ;;  %v2966_v1 = vadd.f32 %v2553_v60, %v242_v48  ;;  %v72_v48 = vld [vmem:[%s3942_s0 + $0x188] sm:$0xff]  ;;  %v574_v40 = vmax.f32 %v2938_v46, 0.0  ;;  %v154_v25 = vld [vmem:[%s3942_s0 + $0x418] sm:$0xff] }
  0x4b   :  { %931 = vmatmul.mubr.f32.gmra.mrb[4].mxu1 %v552_v11  ;;  %v2949_v11 = vadd.f32 %v2386_v53, %v247_v27  ;;  %v254_v7 = vmul.f32 %v2380_v50, %v70_v6  ;;  %v253_v27 = vmul.f32 %v2510_v42, %v69_v12  ;;  %v150_v6 = vld [vmem:[%s3942_s0 + $0x3f8] sm:$0xff]  ;;  %v433_v57 = vadd.f32 %v2553_v60, %v249_v54  ;;  %v729_v54 = vld [vmem:[%s3941_s1 + $0x160] sm:$0xff] }
  0x4c   :  { %1271 = vmatmul.mubr.f32.gmra.mrb[4].mxu0 %v556_v29  ;;  %935 = vmatprep.mubr.f32.mxu1 %v560_v17  ;;  %v566_v29 = vmax.f32 %v2902_v9, 0.0  ;;  %v77_v17 = vld [vmem:[%s3942_s0 + $0x1b0] sm:$0xff]  ;;  %v434_v9 = vadd.f32 %v2383_v52, %v250_v4  ;;  %v573_v51 = vmax.f32 %v2966_v1, 0.0  ;;  %v76_v4 = vld [vmem:[%s3942_s0 + $0x1a8] sm:$0xff]  ;;  %v338_v1 = vmul.f32 %v2380_v50, %v154_v25 }
  0x4d   :  { %1275 = vmatprep.mubr.f32.mxu0 %v564_v15  ;;  %1992 = vmatpush1.bf16.msra.mxu1 %v1991_v10  ;;  %v2982_v10 = vadd.f32 %v2572_v5, %v246_v36  ;;  %v2992_v15 = vadd.f32 %v2383_v52, %v320_v59  ;;  %v261_v35 = vmul.f32 %v2380_v50, %v77_v17 }
  0x4e   :  { %1993 = vmatprep.subr.bf16.mxu1 %v2217_v0  ;;  %v331_v36 = vmul.f32 %v2380_v50, %v147_v43  ;;  %v438_v46 = vadd.f32 %v2386_v53, %v254_v7  ;;  %v437_v33 = vadd.f32 %v2572_v5, %v253_v27  ;;  %v334_v59 = vmul.f32 %v2369_v47, %v150_v6  ;;  %v157_v7 = vld [vmem:[%s3942_s0 + $0x430] sm:$0xff]  ;;  %v79_v43 = vld [vmem:[%s3942_s0 + $0x1c0] sm:$0xff] }
  0x4f   :  { %936 = vmatmul.mubr.f32.gmra.mrb[6].mxu1 %v559_v21  ;;  %v327_v21 = vmul.f32 %v2369_v47, %v143_v34  ;;  %v577_v12 = vmax.f32 %v2982_v10, 0.0  ;;  %v581_v17 = vmax.f32 %v434_v9, 0.0  ;;  %v445_v34 = vadd.f32 %v2386_v53, %v261_v35  ;;  %v83_v10 = vld [vmem:[%s3942_s0 + $0x1e0] sm:$0xff]  ;;  %v730_v9 = vld [vmem:[%s3941_s1 + $0x168] sm:$0xff] }
  0x50   :  { %1276 = vmatmul.mubr.f32.gmra.mrb[6].mxu0 %v563_v49  ;;  %940 = vmatprep.mubr.f32.mxu1 %v567_v41  ;;  %v578_v49 = vmax.f32 %v2949_v11, 0.0  ;;  %v1997_v41 = vpack.c.bf16 %v726_v8, %v725_v63  ;;  %v3035_v11 = vadd.f32 %v2386_v53, %v331_v36  ;;  %v585_v63 = vmax.f32 %v438_v46, 0.0  ;;  %v168_v36 = vld [vmem:[%s3942_s0 + $0x488] sm:$0xff] }
  0x51   :  { %1280 = vmatprep.mubr.f32.mxu0 %v571_v28  ;;  %1995 = vmatpush1.bf16.msra.mxu1 %v1994_v62  ;;  %v256_v28 = vmul.f32 %v2489_v37, %v72_v48  ;;  %v3032_v62 = vadd.f32 %v2383_v52, %v327_v21  ;;  %v2000_v8 = vpack.c.bf16 %v728_v23, %v727_v22  ;;  %v580_v48 = vmax.f32 %v433_v57, 0.0  ;;  %v164_v21 = vld [vmem:[%s3942_s0 + $0x468] sm:$0xff]  ;;  %v90_v23 = vld [vmem:[%s3942_s0 + $0x218] sm:$0xff] }
  0x52   :  { %1996 = vmatprep.subr.bf16.mxu1 %v2217_v0  ;;  %v3063_v27 = vadd.f32 %v2383_v52, %v334_v59  ;;  %v3066_v26 = vadd.f32 %v2386_v53, %v338_v1  ;;  %v341_v35 = vmul.f32 %v2369_v47, %v157_v7  ;;  %v584_v6 = vmax.f32 %v437_v33, 0.0  ;;  %v731_v7 = vld [vmem:[%s3941_s1 + $0x170] sm:$0xff] }
  0x53   :  { %941 = vmatmul.mubr.f32.gmra.mrb[8].mxu1 %v566_v29  ;;  %v260_v29 = vmul.f32 %v2510_v42, %v76_v4  ;;  %v263_v25 = vmul.f32 %v2489_v37, %v79_v43  ;;  %v588_v46 = vmax.f32 %v441_v18, 0.0  ;;  %v2003_v57 = vpack.c.bf16 %v730_v9, %v729_v54  ;;  %v734_v54 = vld [vmem:[%s3941_s1 + $0x188] sm:$0xff] }
  0x54   :  { %1281 = vmatmul.mubr.f32.gmra.mrb[8].mxu0 %v570_v44  ;;  %945 = vmatprep.mubr.f32.mxu1 %v574_v40  ;;  %v161_v44 = vld [vmem:[%s3942_s0 + $0x450] sm:$0xff]  ;;  %v440_v40 = vadd.f32 %v2553_v60, %v256_v28  ;;  %v86_v28 = vld [vmem:[%s3942_s0 + $0x1f8] sm:$0xff]  ;;  %v3085_v22 = vadd.f32 %v2383_v52, %v341_v35  ;;  %v348_v33 = vmul.f32 %v2369_v47, %v164_v21  ;;  %v595_v43 = vmax.f32 %v2601_v13, 0.0  ;;  %v733_v13 = vld [vmem:[%s3941_s1 + $0x180] sm:$0xff] }
  0x55   :  { %1285 = vmatprep.mubr.f32.mxu0 %v578_v49  ;;  %1998 = vmatpush1.bf16.msra.mxu1 %v1997_v41  ;;  %v267_v49 = vmul.f32 %v2510_v42, %v83_v10  ;;  %v345_v41 = vmul.f32 %v2380_v50, %v161_v44  ;;  %v444_v4 = vadd.f32 %v2572_v5, %v260_v29  ;;  %v602_v35 = vmax.f32 %v2650_v32, 0.0  ;;  %v735_v32 = vld [vmem:[%s3941_s1 + $0x190] sm:$0xff] }
  0x56   :  { %1999 = vmatprep.subr.bf16.mxu1 %v2217_v0  ;;  %v352_v59 = vmul.f32 %v2380_v50, %v168_v36  ;;  %v587_v1 = vmax.f32 %v440_v40, 0.0  ;;  %v447_v18 = vadd.f32 %v2553_v60, %v263_v25  ;;  %v3105_v47 = vadd.f32 %v2383_v52, %v348_v33 }
  0x57   :  { %946 = vmatmul.mubr.f32.gmra.mrb[10].mxu1 %v573_v51  ;;  %v592_v51 = vmax.f32 %v445_v34, 0.0  ;;  %v270_v34 = vmul.f32 %v2489_v37, %v86_v28  ;;  %v591_v29 = vmax.f32 %v444_v4, 0.0  ;;  %v451_v10 = vadd.f32 %v2572_v5, %v267_v49 }
  0x58   :  { %1286 = vmatmul.mubr.f32.gmra.mrb[10].mxu0 %v577_v12  ;;  %950 = vmatprep.mubr.f32.mxu1 %v581_v17  ;;  %v3091_v12 = vadd.f32 %v2386_v53, %v345_v41  ;;  %v732_v17 = vld [vmem:[%s3941_s1 + $0x178] sm:$0xff]  ;;  %v3108_v50 = vadd.f32 %v2386_v53, %v352_v59  ;;  %v274_v44 = vmul.f32 %v2510_v42, %v90_v23  ;;  %v599_v52 = vmax.f32 %v2604_v14, 0.0  ;;  %v97_v53 = vld [vmem:[%s3942_s0 + $0x250] sm:$0xff]  ;;  %v104_v41 = vld [vmem:[%s3942_s0 + $0x288] sm:$0xff] }
  0x59   :  { %1290 = vmatprep.mubr.f32.mxu0 %v585_v63  ;;  %2001 = vmatpush1.bf16.msra.mxu1 %v2000_v8  ;;  %v93_v63 = vld [vmem:[%s3942_s0 + $0x230] sm:$0xff]  ;;  %v2006_v8 = vpack.c.bf16 %v732_v17, %v731_v7  ;;  %v594_v9 = vmax.f32 %v447_v18, 0.0  ;;  %v454_v14 = vadd.f32 %v2553_v60, %v270_v34  ;;  %v598_v40 = vmax.f32 %v451_v10, 0.0  ;;  %v107_v59 = vld [vmem:[%s3942_s0 + $0x2a0] sm:$0xff]  ;;  %v738_v18 = vld [vmem:[%s3941_s1 + $0x1a8] sm:$0xff] }
  0x5a   :  { %2002 = vmatprep.subr.bf16.mxu1 %v2217_v0  ;;  %v458_v21 = vadd.f32 %v2572_v5, %v274_v44  ;;  %v281_v36 = vmul.f32 %v2510_v42, %v97_v53  ;;  %v606_v25 = vmax.f32 %v2667_v38, 0.0  ;;  %v2009_v49 = vpack.c.bf16 %v734_v54, %v733_v13  ;;  %v111_v7 = vld [vmem:[%s3942_s0 + $0x2c0] sm:$0xff]  ;;  %v118_v53 = vld [vmem:[%s3942_s0 + $0x2f8] sm:$0xff] }
  0x5b   :  { %951 = vmatmul.mubr.f32.gmra.mrb[12].mxu1 %v580_v48  ;;  %v277_v48 = vmul.f32 %v2489_v37, %v93_v63  ;;  %v601_v4 = vmax.f32 %v454_v14, 0.0  ;;  %v288_v33 = vmul.f32 %v2510_v42, %v104_v41  ;;  %v616_v10 = vmax.f32 %v2735_v24, 0.0  ;;  %v739_v24 = vld [vmem:[%s3941_s1 + $0x1b0] sm:$0xff]  ;;  %v740_v54 = vld [vmem:[%s3941_s1 + $0x1b8] sm:$0xff] }
  0x5c   :  { %1291 = vmatmul.mubr.f32.gmra.mrb[12].mxu0 %v584_v6  ;;  %955 = vmatprep.mubr.f32.mxu1 %v588_v46  ;;  %v100_v6 = vld [vmem:[%s3942_s0 + $0x268] sm:$0xff]  ;;  %v736_v46 = vld [vmem:[%s3941_s1 + $0x198] sm:$0xff]  ;;  %v605_v28 = vmax.f32 %v458_v21, 0.0  ;;  %v465_v23 = vadd.f32 %v2572_v5, %v281_v36  ;;  %v295_v63 = vmul.f32 %v2510_v42, %v111_v7  ;;  %v302_v36 = vmul.f32 %v2510_v42, %v118_v53 }
  0x5d   :  { %1295 = vmatprep.mubr.f32.mxu0 %v592_v51  ;;  %2004 = vmatpush1.bf16.msra.mxu1 %v2003_v57  ;;  %v461_v38 = vadd.f32 %v2553_v60, %v277_v48  ;;  %v284_v57 = vmul.f32 %v2489_v37, %v100_v6  ;;  %v609_v51 = vmax.f32 %v2695_v56, 0.0  ;;  %v2012_v17 = vpack.c.bf16 %v736_v46, %v735_v32  ;;  %v737_v56 = vld [vmem:[%s3941_s1 + $0x1a0] sm:$0xff]  ;;  %v121_v48 = vld [vmem:[%s3942_s0 + $0x310] sm:$0xff]  ;;  %v742_v32 = vld [vmem:[%s3941_s1 + $0x1c8] sm:$0xff] }
  0x5e   :  { %2005 = vmatprep.subr.bf16.mxu1 %v2217_v0  ;;  %v472_v44 = vadd.f32 %v2572_v5, %v288_v33  ;;  %v2015_v13 = vpack.c.bf16 %v738_v18, %v737_v56  ;;  %v479_v21 = vadd.f32 %v2572_v5, %v295_v63  ;;  %v125_v6 = vld [vmem:[%s3942_s0 + $0x330] sm:$0xff]  ;;  %v305_v41 = vmul.f32 %v2489_v37, %v121_v48  ;;  %v132_v33 = vld [vmem:[%s3942_s0 + $0x368] sm:$0xff]  ;;  %v744_v7 = vld [vmem:[%s3941_s1 + $0x1d8] sm:$0xff] }
  0x5f   :  { %956 = vmatmul.mubr.f32.gmra.mrb[14].mxu1 %v587_v1  ;;  %v613_v1 = vmax.f32 %v2709_v2, 0.0  ;;  %v608_v34 = vmax.f32 %v461_v38, 0.0  ;;  %v468_v2 = vadd.f32 %v2553_v60, %v284_v57  ;;  %v630_v57 = vmax.f32 %v2866_v61, 0.0  ;;  %v743_v61 = vld [vmem:[%s3941_s1 + $0x1d0] sm:$0xff]  ;;  %v135_v18 = vld [vmem:[%s3942_s0 + $0x380] sm:$0xff] }
  0x60   :  { %1296 = vmatmul.mubr.f32.gmra.mrb[14].mxu0 %v591_v29  ;;  %960 = vmatprep.mubr.f32.mxu1 %v595_v43  ;;  %v291_v29 = vmul.f32 %v2489_v37, %v107_v59  ;;  %v612_v43 = vmax.f32 %v465_v23, 0.0  ;;  %v626_v38 = vmax.f32 %v479_v21, 0.0  ;;  %v634_v23 = vmax.f32 %v2869_v55, 0.0 }
  0x61   :  { %1300 = vmatprep.mubr.f32.mxu0 %v599_v52  ;;  %2007 = vmatpush1.bf16.msra.mxu1 %v2006_v8  ;;  %v114_v52 = vld [vmem:[%s3942_s0 + $0x2d8] sm:$0xff]  ;;  %v620_v8 = vmax.f32 %v2760_v45, 0.0  ;;  %v641_v63 = vmax.f32 %v2917_v19, 0.0  ;;  %v745_v19 = vld [vmem:[%s3941_s1 + $0x1e0] sm:$0xff] }
  0x62   :  { %2008 = vmatprep.subr.bf16.mxu1 %v2217_v0  ;;  %v475_v45 = vadd.f32 %v2553_v60, %v291_v29  ;;  %v298_v14 = vmul.f32 %v2489_v37, %v114_v52  ;;  %v637_v29 = vmax.f32 %v2909_v31, 0.0  ;;  %v2024_v52 = vpack.c.bf16 %v744_v7, %v743_v61  ;;  %v153_v31 = vld [vmem:[%s3942_s0 + $0x410] sm:$0xff] }
  0x63   :  { %961 = vmatmul.mubr.f32.gmra.mrb[16].mxu1 %v594_v9  ;;  %v615_v9 = vmax.f32 %v468_v2, 0.0  ;;  %v182_v61 = vsub.s32 2, %v2328_v30 }
  0x64   :  { %1301 = vmatmul.mubr.f32.gmra.mrb[16].mxu0 %v598_v40  ;;  %965 = vmatprep.mubr.f32.mxu1 %v602_v35  ;;  %v619_v40 = vmax.f32 %v472_v44, 0.0  ;;  %v623_v35 = vmax.f32 %v2799_v16, 0.0  ;;  %v741_v16 = vld [vmem:[%s3941_s1 + $0x1c0] sm:$0xff]  ;;  %v622_v46 = vmax.f32 %v475_v45, 0.0  ;;  %v146_v44 = vld [vmem:[%s3942_s0 + $0x3d8] sm:$0xff] }
  0x65   :  { %1305 = vmatprep.mubr.f32.mxu0 %v606_v25  ;;  %2010 = vmatpush1.bf16.msra.mxu1 %v2009_v49  ;;  %v627_v25 = vmax.f32 %v2802_v3, 0.0  ;;  %v2018_v49 = vpack.c.bf16 %v740_v54, %v739_v24  ;;  %v309_v3 = vmul.f32 %v2510_v42, %v125_v6  ;;  %v2021_v59 = vpack.c.bf16 %v742_v32, %v741_v16  ;;  %v746_v54 = vld [vmem:[%s3941_s1 + $0x1e8] sm:$0xff]  ;;  %v747_v16 = vld [vmem:[%s3941_s1 + $0x1f0] sm:$0xff] }
  0x66   :  { %2011 = vmatprep.subr.bf16.mxu1 %v2217_v0  ;;  %v330_v48 = vmul.f32 %v2510_v42, %v146_v44  ;;  %v648_v6 = vmax.f32 %v2958_v20, 0.0  ;;  %v748_v20 = vld [vmem:[%s3941_s1 + $0x1f8] sm:$0xff]  ;;  %v137_v44 = vld [vmem:[%s3942_s0 + $0x390] sm:$0xff] }
  0x67   :  { %966 = vmatmul.mubr.f32.gmra.mrb[18].mxu1 %v601_v4  ;;  %v482_v4 = vadd.f32 %v2553_v60, %v298_v14 }
  0x68   :  { %1306 = vmatmul.mubr.f32.gmra.mrb[18].mxu0 %v605_v28  ;;  %970 = vmatprep.mubr.f32.mxu1 %v609_v51  ;;  %v486_v28 = vadd.f32 %v2572_v5, %v302_v36  ;;  %v128_v51 = vld [vmem:[%s3942_s0 + $0x348] sm:$0xff]  ;;  %v337_v36 = vmul.f32 %v2510_v42, %v153_v31  ;;  %v141_v31 = vld [vmem:[%s3942_s0 + $0x3b0] sm:$0xff] }
  0x69   :  { %1310 = vmatprep.mubr.f32.mxu0 %v613_v1  ;;  %2013 = vmatpush1.bf16.msra.mxu1 %v2012_v17  ;;  %v489_v1 = vadd.f32 %v2553_v60, %v305_v41  ;;  %v629_v55 = vmax.f32 %v482_v4, 0.0  ;;  %v493_v17 = vadd.f32 %v2572_v5, %v309_v3  ;;  %v312_v56 = vmul.f32 %v2489_v37, %v128_v51  ;;  %v160_v3 = vld [vmem:[%s3942_s0 + $0x448] sm:$0xff] }
  0x6a   :  { %2014 = vmatprep.subr.bf16.mxu1 %v2217_v0  ;;  %v633_v2 = vmax.f32 %v486_v28, 0.0  ;;  %v3281_v4 = vadd.f32 %v2572_v5, %v330_v48  ;;  %v651_v28 = vmax.f32 %v2992_v15, 0.0  ;;  %v344_v15 = vmul.f32 %v2510_v42, %v160_v3 }
  0x6b   :  { %971 = vmatmul.mubr.f32.gmra.mrb[20].mxu1 %v608_v34  ;;  %v139_v34 = vld [vmem:[%s3942_s0 + $0x3a0] sm:$0xff]  ;;  %v636_v53 = vmax.f32 %v489_v1, 0.0  ;;  %v496_v45 = vadd.f32 %v2553_v60, %v312_v56  ;;  %v2030_v1 = vpack.c.bf16 %v748_v20, %v747_v16  ;;  %v658_v56 = vmax.f32 %v3032_v62, 0.0 }
  0x6c   :  { %1311 = vmatmul.mubr.f32.gmra.mrb[20].mxu0 %v612_v43  ;;  %975 = vmatprep.mubr.f32.mxu1 %v616_v10  ;;  %v316_v43 = vmul.f32 %v2510_v42, %v132_v33  ;;  %v142_v10 = vld [vmem:[%s3942_s0 + $0x3b8] sm:$0xff]  ;;  %v323_v24 = vmul.f32 %v2510_v42, %v139_v34  ;;  %v655_v33 = vmax.f32 %v3001_v39, 0.0  ;;  %v662_v39 = vmax.f32 %v3035_v11, 0.0 }
  0x6d   :  { %1315 = vmatprep.mubr.f32.mxu0 %v620_v8  ;;  %2016 = vmatpush1.bf16.msra.mxu1 %v2015_v13  ;;  %v149_v8 = vld [vmem:[%s3942_s0 + $0x3f0] sm:$0xff]  ;;  %v319_v13 = vmul.f32 %v2489_v37, %v135_v18  ;;  %v326_v14 = vmul.f32 %v2489_v37, %v142_v10  ;;  %v643_v32 = vmax.f32 %v496_v45, 0.0  ;;  %v661_v34 = vmax.f32 %v3281_v4, 0.0  ;;  %v138_v10 = vld [vmem:[%s3942_s0 + $0x398] sm:$0xff] }
  0x6e   :  { %2017 = vmatprep.subr.bf16.mxu1 %v2217_v0  ;;  %v333_v21 = vmul.f32 %v2489_v37, %v149_v8  ;;  %v3265_v41 = vadd.f32 %v2572_v5, %v323_v24  ;;  %v669_v62 = vmax.f32 %v3066_v26, 0.0  ;;  %v26_v45 = vld [vmem:[%s3942_s0 + $0x18] sm:$0xff]  ;;  %v25_v4 = vld [vmem:[%s3942_s0 + $0x10] sm:$0xff] }
  0x6f   :  { %976 = vmatmul.mubr.f32.gmra.mrb[22].mxu1 %v615_v9  ;;  %v640_v9 = vmax.f32 %v493_v17, 0.0  ;;  %v198_v17 = vsub.s32 6, %v2328_v30 }
  0x70   :  { %1316 = vmatmul.mubr.f32.gmra.mrb[22].mxu0 %v619_v40  ;;  %980 = vmatprep.mubr.f32.mxu1 %v623_v35  ;;  %v644_v40 = vmax.f32 %v2945_v58, 0.0  ;;  %v500_v35 = vadd.f32 %v2572_v5, %v316_v43  ;;  %v156_v58 = vld [vmem:[%s3942_s0 + $0x428] sm:$0xff]  ;;  %v3289_v51 = vadd.f32 %v2553_v60, %v333_v21  ;;  %v676_v21 = vmax.f32 %v3091_v12, 0.0 }
  0x71   :  { %1320 = vmatprep.mubr.f32.mxu0 %v627_v25  ;;  %2019 = vmatpush1.bf16.msra.mxu1 %v2018_v49  ;;  %v2027_v25 = vpack.c.bf16 %v746_v54, %v745_v19  ;;  %v503_v49 = vadd.f32 %v2553_v60, %v319_v13  ;;  %v3339_v13 = vadd.f32 %v2572_v5, %v344_v15  ;;  %v162_v15 = vld [vmem:[%s3942_s0 + $0x458] sm:$0xff] }
  0x72   :  { %2020 = vmatprep.subr.bf16.mxu1 %v2217_v0  ;;  %v664_v11 = vmax.f32 %v3289_v51, 0.0  ;;  %v679_v51 = vmax.f32 %v3105_v47, 0.0 }
  0x73   :  { %981 = vmatmul.mubr.f32.gmra.mrb[24].mxu1 %v622_v46  ;;  %v3278_v46 = vadd.f32 %v2553_v60, %v326_v14  ;;  %v650_v7 = vmax.f32 %v503_v49, 0.0  ;;  %v2216_v14 = vld [vmem:[%s3944_s4] sm:$0x7f]  ;;  %v152_v49 = vld [vmem:[%s3942_s0 + $0x408] sm:$0xff] }
  0x74   :  { %1321 = vmatmul.mubr.f32.gmra.mrb[24].mxu0 %v626_v38  ;;  %985 = vmatprep.mubr.f32.mxu1 %v630_v57  ;;  %v186_v38 = vsub.s32 3, %v2328_v30  ;;  %v647_v57 = vmax.f32 %v500_v35, 0.0  ;;  %v148_v35 = vld [vmem:[%s3942_s0 + $0x3e8] sm:$0xff] }
  0x75   :  { %1325 = vmatprep.mubr.f32.mxu0 %v634_v23  ;;  %2022 = vmatpush1.bf16.msra.mxu1 %v2021_v59  ;;  %v3292_v23 = vadd.f32 %v2572_v5, %v337_v36  ;;  %v340_v59 = vmul.f32 %v2489_v37, %v156_v58  ;;  %v657_v18 = vmax.f32 %v3278_v46, 0.0  ;;  %v3364_v36 = vrot.slane %v2216_v14, %v198_v17  ;;  %v33_v58 = vld [vmem:[%s3942_s0 + $0x50] sm:$0xff] }
  0x76   :  { %2023 = vmatprep.subr.bf16.mxu1 %v2217_v0  ;;  %v3354_v48 = vrot.slane %v2216_v14, %v186_v38 }
  0x77   :  { %986 = vmatmul.mubr.f32.gmra.mrb[26].mxu1 %v629_v55  ;;  %v654_v55 = vmax.f32 %v3265_v41, 0.0  ;;  %v668_v43 = vmax.f32 %v3292_v23, 0.0  ;;  %v683_v23 = vmax.f32 %v3108_v50, 0.0 }
  0x78   :  { %1326 = vmatmul.mubr.f32.gmra.mrb[26].mxu0 %v633_v2  ;;  %990 = vmatprep.mubr.f32.mxu1 %v637_v29  ;;  %v163_v2 = vld [vmem:[%s3942_s0 + $0x460] sm:$0xff] }
  0x79   :  { %1330 = vmatprep.mubr.f32.mxu0 %v641_v63  ;;  %2025 = vmatpush1.bf16.msra.mxu1 %v2024_v52  ;;  %v167_v29 = vld [vmem:[%s3942_s0 + $0x480] sm:$0xff]  ;;  %v672_v63 = vmax.f32 %v3085_v22, 0.0  ;;  %v3323_v52 = vadd.f32 %v2553_v60, %v340_v59  ;;  %v347_v24 = vmul.f32 %v2489_v37, %v163_v2  ;;  %v3356_v37 = vrot.slane %v2216_v14, %v182_v61  ;;  %v36_v22 = vld [vmem:[%s3942_s0 + $0x68] sm:$0xff] }
  0x7a   :  { %2026 = vmatprep.subr.bf16.mxu1 %v2217_v0  ;;  %v351_v19 = vmul.f32 %v2510_v42, %v167_v29 }
  0x7b   :  { %991 = vmatmul.mubr.f32.gmra.mrb[28].mxu1 %v636_v53  ;;  %v145_v53 = vld [vmem:[%s3942_s0 + $0x3d0] sm:$0xff]  ;;  %v671_v41 = vmax.f32 %v3323_v52, 0.0  ;;  %v531_v59 = vadd.f32 %v2553_v60, %v347_v24  ;;  %v675_v60 = vmax.f32 %v3339_v13, 0.0  ;;  %v32_v13 = vld [vmem:[%s3942_s0 + $0x48] sm:$0xff] }
  0x7c   :  { %1331 = vmatmul.mubr.f32.gmra.mrb[28].mxu0 %v640_v9  ;;  %995 = vmatprep.mubr.f32.mxu1 %v644_v40  ;;  %v144_v9 = vld [vmem:[%s3942_s0 + $0x3c8] sm:$0xff] }
  0x7d   :  { %1335 = vmatprep.mubr.f32.mxu0 %v648_v6  ;;  %2028 = vmatpush1.bf16.msra.mxu1 %v2027_v25 }
  0x7e   :  { %2029 = vmatprep.subr.bf16.mxu1 %v2217_v0  ;;  %v665_v0 = vmax.f32 %v3063_v27, 0.0  ;;  %v2215_v27 = vld [vmem:[%s3943_s3] sm:$0x7f] }
  0x7f   :  { %996 = vmatmul.mubr.f32.gmra.mrb[30].mxu1 %v643_v32  ;;  %v3328_v26 = vrot.slane %v2215_v27, %v186_v38  ;;  %v3330_v8 = vrot.slane %v2215_v27, %v182_v61  ;;  %v3343_v54 = vrot.slane %v2215_v27, %v198_v17  ;;  %v151_v32 = vld [vmem:[%s3942_s0 + $0x400] sm:$0xff] }
  0x80   :  { %1336 = vmatmul.mubr.f32.gmra.mrb[30].mxu0 %v647_v57  ;;  %1000 = vmatprep.mubr.f32.mxu1 %v651_v28  ;;  %v155_v28 = vld [vmem:[%s3942_s0 + $0x420] sm:$0xff] }
  0x81   :  { %1340 = vmatprep.mubr.f32.mxu0 %v655_v33  ;;  %2031 = vmatpush1.bf16.msra.mxu1 %v2030_v1  ;;  %v322_v42 = vmul.f32 %v3328_v26, %v138_v10  ;;  %v321_v40 = vmul.f32 %v3330_v8, %v137_v44  ;;  %v325_v6 = vmul.f32 %v3343_v54, %v141_v31  ;;  %v159_v33 = vld [vmem:[%s3942_s0 + $0x440] sm:$0xff]  ;;  %v165_v10 = vld [vmem:[%s3942_s0 + $0x470] sm:$0xff] }
  0x82   :  { %v329_v25 = vmul.f32 %v3328_v26, %v145_v53  ;;  %v328_v20 = vmul.f32 %v3330_v8, %v144_v9  ;;  %v210_v46 = vmul.f32 %v3328_v26, %v26_v45  ;;  %v332_v57 = vmul.f32 %v3343_v54, %v148_v35  ;;  %v169_v31 = vld [vmem:[%s3942_s0 + $0x490] sm:$0xff] }
  0x83   :  { %1001 = vmatmul.mubr.f32.gmra.mrb[32].mxu1 %v650_v7  ;;  %v3376_v16 = vadd.f32 %v3354_v48, %v322_v42  ;;  %v3379_v12 = vadd.f32 %v3356_v37, %v321_v40  ;;  %v3390_v3 = vadd.f32 %v3364_v36, %v325_v6  ;;  %v3404_v1 = vadd.f32 %v2572_v5, %v351_v19  ;;  %v29_v5 = vld [vmem:[%s3942_s0 + $0x30] sm:$0xff] }
  0x84   :  { %1341 = vmatmul.mubr.f32.gmra.mrb[32].mxu0 %v654_v55  ;;  %1005 = vmatprep.mubr.f32.mxu1 %v658_v56  ;;  %v3393_v38 = vadd.f32 %v3354_v48, %v329_v25  ;;  %v3407_v61 = vadd.f32 %v3356_v37, %v328_v20  ;;  %v336_v7 = vmul.f32 %v3328_v26, %v152_v49  ;;  %v158_v55 = vld [vmem:[%s3942_s0 + $0x438] sm:$0xff] }
  0x85   :  { %1345 = vmatprep.mubr.f32.mxu0 %v662_v39  ;;  %v217_v17 = vmul.f32 %v3328_v26, %v33_v58  ;;  %v3422_v56 = vadd.f32 %v3364_v36, %v332_v57  ;;  %v335_v39 = vmul.f32 %v3330_v8, %v151_v32  ;;  %v339_v29 = vmul.f32 %v3343_v54, %v155_v28 }
  0x86   :  { %v3430_v2 = vadd.f32 %v3354_v48, %v336_v7  ;;  %v394_v44 = vadd.f32 %v3354_v48, %v210_v46  ;;  %v346_v27 = vmul.f32 %v3343_v54, %v162_v15  ;;  %v213_v53 = vmul.f32 %v3343_v54, %v29_v5  ;;  %v43_v46 = vld [vmem:[%s3942_s0 + $0xa0] sm:$0xff]  ;;  %v46_v5 = vld [vmem:[%s3942_s0 + $0xb8] sm:$0xff] }
  0x87   :  { %1006 = vmatmul.mubr.f32.gmra.mrb[34].mxu1 %v657_v18  ;;  %v166_v18 = vld [vmem:[%s3942_s0 + $0x478] sm:$0xff]  ;;  %v3439_v52 = vadd.f32 %v3356_v37, %v335_v39  ;;  %v3453_v24 = vadd.f32 %v3364_v36, %v339_v29  ;;  %v349_v42 = vmul.f32 %v3330_v8, %v165_v10  ;;  %v216_v40 = vmul.f32 %v3330_v8, %v32_v13 }
  0x88   :  { %1346 = vmatmul.mubr.f32.gmra.mrb[34].mxu0 %v661_v34  ;;  %1010 = vmatprep.mubr.f32.mxu1 %v665_v0  ;;  %v209_v34 = vmul.f32 %v3330_v8, %v25_v4  ;;  %v343_v0 = vmul.f32 %v3328_v26, %v159_v33  ;;  %v350_v9 = vmul.f32 %v3328_v26, %v166_v18  ;;  %v682_v49 = vmax.f32 %v3404_v1, 0.0  ;;  %v47_v4 = vld [vmem:[%s3942_s0 + $0xc0] sm:$0xff]  ;;  %v54_v39 = vld [vmem:[%s3942_s0 + $0xf8] sm:$0xff] }
  0x89   :  { %1350 = vmatprep.mubr.f32.mxu0 %v669_v62  ;;  %v342_v62 = vmul.f32 %v3330_v8, %v158_v55  ;;  %v3471_v14 = vadd.f32 %v3364_v36, %v346_v27  ;;  %v3484_v35 = vadd.f32 %v3356_v37, %v349_v42  ;;  %v401_v50 = vadd.f32 %v3354_v48, %v217_v17  ;;  %v50_v17 = vld [vmem:[%s3942_s0 + $0xd8] sm:$0xff] }
  0x8a   :  { %v3456_v19 = vadd.f32 %v3354_v48, %v343_v0  ;;  %v3479_v47 = vadd.f32 %v3354_v48, %v350_v9  ;;  %v541_v58 = vmax.f32 %v394_v44, 0.0  ;;  %v397_v20 = vadd.f32 %v3364_v36, %v213_v53  ;;  %v57_v9 = vld [vmem:[%s3942_s0 + $0x110] sm:$0xff] }
  0x8b   :  { %1011 = vmatmul.mubr.f32.gmra.mrb[36].mxu1 %v664_v11  ;;  %v40_v11 = vld [vmem:[%s3942_s0 + $0x88] sm:$0xff]  ;;  %v3468_v45 = vadd.f32 %v3356_v37, %v342_v62  ;;  %v220_v32 = vmul.f32 %v3343_v54, %v36_v22  ;;  %v400_v57 = vadd.f32 %v3356_v37, %v216_v40  ;;  %v548_v33 = vmax.f32 %v401_v50, 0.0  ;;  %v53_v62 = vld [vmem:[%s3942_s0 + $0xf0] sm:$0xff] }
  0x8c   :  { %1351 = vmatmul.mubr.f32.gmra.mrb[36].mxu0 %v668_v43  ;;  %1015 = vmatprep.mubr.f32.mxu1 %v672_v63  ;;  %v353_v43 = vmul.f32 %v3343_v54, %v169_v31  ;;  %v678_v63 = vmax.f32 %v531_v59, 0.0  ;;  %v224_v6 = vmul.f32 %v3328_v26, %v40_v11  ;;  %v544_v7 = vmax.f32 %v397_v20, 0.0 }
  0x8d   :  { %1355 = vmatprep.mubr.f32.mxu0 %v676_v21  ;;  %v393_v21 = vadd.f32 %v3356_v37, %v209_v34  ;;  %v404_v55 = vadd.f32 %v3364_v36, %v220_v32  ;;  %v227_v15 = vmul.f32 %v3343_v54, %v43_v46  ;;  %v2219_v18 = vmov 0.0  }
  0x8e   :  { %v3490_v25 = vadd.f32 %v3364_v36, %v353_v43  ;;  %v408_v59 = vadd.f32 %v3354_v48, %v224_v6  ;;  %v547_v34 = vmax.f32 %v400_v57, 0.0  ;;  %v230_v0 = vmul.f32 %v3330_v8, %v46_v5  ;;  %v60_v6 = vld [vmem:[%s3942_s0 + $0x128] sm:$0xff]  ;;  %v67_v57 = vld [vmem:[%s3942_s0 + $0x160] sm:$0xff] }
  0x8f   :  { %1016 = vmatmul.mubr.f32.gmra.mrb[38].mxu1 %v671_v41  ;;  %v39_v41 = vld [vmem:[%s3942_s0 + $0x80] sm:$0xff]  ;;  %v540_v28 = vmax.f32 %v393_v21, 0.0  ;;  %v234_v10 = vmul.f32 %v3343_v54, %v50_v17  ;;  %v238_v44 = vmul.f32 %v3328_v26, %v54_v39  ;;  %v551_v27 = vmax.f32 %v404_v55, 0.0 }
  0x90   :  { %1356 = vmatmul.mubr.f32.gmra.mrb[38].mxu0 %v675_v60  ;;  %1020 = vmatprep.mubr.f32.mxu1 %v679_v51  ;;  %v223_v1 = vmul.f32 %v3330_v8, %v39_v41  ;;  %v231_v60 = vmul.f32 %v3328_v26, %v47_v4  ;;  %v555_v31 = vmax.f32 %v408_v59, 0.0  ;;  %v411_v53 = vadd.f32 %v3364_v36, %v227_v15  ;;  %v61_v51 = vld [vmem:[%s3942_s0 + $0x130] sm:$0xff]  ;;  %v75_v55 = vld [vmem:[%s3942_s0 + $0x1a0] sm:$0xff] }
  0x91   :  { %1360 = vmatprep.mubr.f32.mxu0 %v683_v23  ;;  %v237_v11 = vmul.f32 %v3330_v8, %v53_v62  ;;  %v414_v23 = vadd.f32 %v3356_v37, %v230_v0  ;;  %v418_v22 = vadd.f32 %v3364_v36, %v234_v10  ;;  %v422_v43 = vadd.f32 %v3354_v48, %v238_v44  ;;  %v74_v44 = vld [vmem:[%s3942_s0 + $0x198] sm:$0xff] }
  0x92   :  { %v407_v29 = vadd.f32 %v3356_v37, %v223_v1  ;;  %v415_v13 = vadd.f32 %v3354_v48, %v231_v60  ;;  %v241_v21 = vmul.f32 %v3343_v54, %v57_v9  ;;  %v245_v50 = vmul.f32 %v3328_v26, %v61_v51  ;;  %v78_v62 = vld [vmem:[%s3942_s0 + $0x1b8] sm:$0xff] }
  0x93   :  { %1021 = vmatmul.mubr.f32.gmra.mrb[40].mxu1 %v678_v63  ;;  %v558_v63 = vmax.f32 %v411_v53, 0.0  ;;  %v421_v20 = vadd.f32 %v3356_v37, %v237_v11  ;;  %v561_v32 = vmax.f32 %v414_v23, 0.0  ;;  %v565_v41 = vmax.f32 %v418_v22, 0.0 }
  0x94   :  { %1361 = vmatmul.mubr.f32.gmra.mrb[40].mxu0 %v682_v49  ;;  %1090 = vmatprep.mubr.f32.mxu1 %v541_v58  ;;  %v554_v42 = vmax.f32 %v407_v29, 0.0  ;;  %v562_v40 = vmax.f32 %v415_v13, 0.0  ;;  %v64_v49 = vld [vmem:[%s3942_s0 + $0x148] sm:$0xff]  ;;  %v244_v46 = vmul.f32 %v3330_v8, %v60_v6  ;;  %v429_v59 = vadd.f32 %v3354_v48, %v245_v50 }
  0x95   :  { %1873 = vmatprep.mubr.msk.f32.mxu0 %vm2218_vm0, %v2219_v18  ;;  %v68_v58 = vld [vmem:[%s3942_s0 + $0x168] sm:$0xff]  ;;  %v248_v4 = vmul.f32 %v3343_v54, %v64_v49  ;;  %v251_v15 = vmul.f32 %v3330_v8, %v67_v57  ;;  %v568_v60 = vmax.f32 %v421_v20, 0.0  ;;  %v259_v10 = vmul.f32 %v3328_v26, %v75_v55 }
  0x96   :  { %v252_v1 = vmul.f32 %v3328_v26, %v68_v58  ;;  %v428_v5 = vadd.f32 %v3356_v37, %v244_v46  ;;  %v576_v29 = vmax.f32 %v429_v59, 0.0  ;;  %v258_v51 = vmul.f32 %v3330_v8, %v74_v44  ;;  %v88_v20 = vld [vmem:[%s3942_s0 + $0x208] sm:$0xff] }
  0x97   :  { %1091 = vmatmul.mubr.f32.vlgmr.msra.gmra.mrb[0].mxu1 %v540_v28  ;;  %v569_v28 = vmax.f32 %v422_v43, 0.0  ;;  %v432_v17 = vadd.f32 %v3364_v36, %v248_v4  ;;  %v262_v23 = vmul.f32 %v3343_v54, %v78_v62  ;;  %v81_v43 = vld [vmem:[%s3942_s0 + $0x1d0] sm:$0xff]  ;;  %v92_v57 = vld [vmem:[%s3942_s0 + $0x228] sm:$0xff] }
  0x98   :  { %1874 = vmatmul.mubr.msk.f32.vlgmr.msra.gmra.mrb[0].mxu0 %vm792_vm1, %v544_v7  ;;  %1095 = vmatprep.mubr.f32.mxu1 %v548_v33  ;;  %v425_v33 = vadd.f32 %v3364_v36, %v241_v21  ;;  %v71_v7 = vld [vmem:[%s3942_s0 + $0x180] sm:$0xff]  ;;  %v436_v0 = vadd.f32 %v3354_v48, %v252_v1  ;;  %v575_v53 = vmax.f32 %v428_v5, 0.0  ;;  %v442_v6 = vadd.f32 %v3356_v37, %v258_v51  ;;  %v102_v51 = vld [vmem:[%s3942_s0 + $0x278] sm:$0xff] }
  0x99   :  { %1876 = vmatprep.mubr.msk.f32.mxu0 %vm2218_vm0, %v2219_v18  ;;  %v255_v39 = vmul.f32 %v3343_v54, %v71_v7  ;;  %v579_v13 = vmax.f32 %v432_v17, 0.0  ;;  %v265_v49 = vmul.f32 %v3330_v8, %v81_v43  ;;  %v276_v55 = vmul.f32 %v3343_v54, %v92_v57 }
  0x9a   :  { %v583_v11 = vmax.f32 %v436_v0, 0.0  ;;  %v589_v59 = vmax.f32 %v442_v6, 0.0 }
  0x9b   :  { %1096 = vmatmul.mubr.f32.gmra.mrb[2].mxu1 %v547_v34  ;;  %v572_v34 = vmax.f32 %v425_v33, 0.0  ;;  %v439_v9 = vadd.f32 %v3364_v36, %v255_v39  ;;  %v272_v33 = vmul.f32 %v3330_v8, %v88_v20  ;;  %v449_v1 = vadd.f32 %v3356_v37, %v265_v49  ;;  %v95_v39 = vld [vmem:[%s3942_s0 + $0x240] sm:$0xff]  ;;  %v113_v20 = vld [vmem:[%s3942_s0 + $0x2d0] sm:$0xff] }
  0x9c   :  { %1877 = vmatmul.mubr.msk.f32.gmra.mrb[2].mxu0 %vm792_vm1, %v551_v27  ;;  %1100 = vmatprep.mubr.f32.mxu1 %v555_v31  ;;  %v82_v27 = vld [vmem:[%s3942_s0 + $0x1d8] sm:$0xff]  ;;  %v435_v31 = vadd.f32 %v3356_v37, %v251_v15  ;;  %v460_v62 = vadd.f32 %v3364_v36, %v276_v55  ;;  %v116_v55 = vld [vmem:[%s3942_s0 + $0x2e8] sm:$0xff] }
  0x9d   :  { %1879 = vmatprep.mubr.msk.f32.mxu0 %vm2218_vm0, %v2219_v18  ;;  %v266_v22 = vmul.f32 %v3328_v26, %v82_v27  ;;  %v586_v50 = vmax.f32 %v439_v9, 0.0  ;;  %v456_v0 = vadd.f32 %v3356_v37, %v272_v33  ;;  %v279_v27 = vmul.f32 %v3330_v8, %v95_v39 }
  0x9e   :  { %v582_v21 = vmax.f32 %v435_v31, 0.0 }
  0x9f   :  { %1101 = vmatmul.mubr.f32.gmra.mrb[4].mxu1 %v554_v42  ;;  %v443_v42 = vadd.f32 %v3354_v48, %v259_v10  ;;  %v450_v46 = vadd.f32 %v3354_v48, %v266_v22  ;;  %v596_v10 = vmax.f32 %v449_v1, 0.0  ;;  %v607_v22 = vmax.f32 %v460_v62, 0.0 }
  0xa0   :  { %1880 = vmatmul.mubr.msk.f32.gmra.mrb[4].mxu0 %vm792_vm1, %v558_v63  ;;  %1105 = vmatprep.mubr.f32.mxu1 %v562_v40  ;;  %v85_v63 = vld [vmem:[%s3942_s0 + $0x1f0] sm:$0xff]  ;;  %v463_v43 = vadd.f32 %v3356_v37, %v279_v27  ;;  %v123_v27 = vld [vmem:[%s3942_s0 + $0x320] sm:$0xff] }
  0xa1   :  { %1882 = vmatprep.mubr.msk.f32.mxu0 %vm2218_vm0, %v2219_v18  ;;  %v89_v40 = vld [vmem:[%s3942_s0 + $0x210] sm:$0xff]  ;;  %v269_v58 = vmul.f32 %v3343_v54, %v85_v63  ;;  %v286_v63 = vmul.f32 %v3330_v8, %v102_v51 }
  0xa2   :  { %v273_v4 = vmul.f32 %v3328_v26, %v89_v40 }
  0xa3   :  { %1106 = vmatmul.mubr.f32.gmra.mrb[6].mxu1 %v561_v32  ;;  %v590_v32 = vmax.f32 %v443_v42, 0.0  ;;  %v453_v7 = vadd.f32 %v3364_v36, %v269_v58  ;;  %v110_v42 = vld [vmem:[%s3942_s0 + $0x2b8] sm:$0xff] }
  0xa4   :  { %1883 = vmatmul.mubr.msk.f32.gmra.mrb[6].mxu0 %vm792_vm1, %v565_v41  ;;  %1110 = vmatprep.mubr.f32.mxu1 %v569_v28  ;;  %v446_v41 = vadd.f32 %v3364_v36, %v262_v23  ;;  %v96_v28 = vld [vmem:[%s3942_s0 + $0x248] sm:$0xff]  ;;  %v457_v5 = vadd.f32 %v3354_v48, %v273_v4  ;;  %v603_v23 = vmax.f32 %v456_v0, 0.0  ;;  %v294_v58 = vmul.f32 %v3328_v26, %v110_v42 }
  0xa5   :  { %1885 = vmatprep.mubr.msk.f32.mxu0 %vm2218_vm0, %v2219_v18  ;;  %v280_v17 = vmul.f32 %v3328_v26, %v96_v28  ;;  %v600_v44 = vmax.f32 %v453_v7, 0.0  ;;  %v470_v4 = vadd.f32 %v3356_v37, %v286_v63  ;;  %v297_v28 = vmul.f32 %v3343_v54, %v113_v20 }
  0xa6   :  { %v593_v15 = vmax.f32 %v446_v41, 0.0  ;;  %v604_v31 = vmax.f32 %v457_v5, 0.0  ;;  %v478_v1 = vadd.f32 %v3354_v48, %v294_v58  ;;  %v307_v42 = vmul.f32 %v3330_v8, %v123_v27 }
  0xa7   :  { %1111 = vmatmul.mubr.f32.gmra.mrb[8].mxu1 %v568_v60  ;;  %v597_v60 = vmax.f32 %v450_v46, 0.0  ;;  %v610_v46 = vmax.f32 %v463_v43, 0.0  ;;  %v481_v39 = vadd.f32 %v3364_v36, %v297_v28 }
  0xa8   :  { %1886 = vmatmul.mubr.msk.f32.gmra.mrb[8].mxu0 %vm792_vm1, %v572_v34  ;;  %1115 = vmatprep.mubr.f32.mxu1 %v576_v29  ;;  %v99_v34 = vld [vmem:[%s3942_s0 + $0x260] sm:$0xff] }
  0xa9   :  { %1888 = vmatprep.mubr.msk.f32.mxu0 %vm2218_vm0, %v2219_v18  ;;  %v103_v29 = vld [vmem:[%s3942_s0 + $0x280] sm:$0xff] }
  0xaa   :  { %v287_v9 = vmul.f32 %v3328_v26, %v103_v29 }
  0xab   :  { %1116 = vmatmul.mubr.f32.gmra.mrb[10].mxu1 %v575_v53  ;;  %v464_v53 = vadd.f32 %v3354_v48, %v280_v17  ;;  %v617_v17 = vmax.f32 %v470_v4, 0.0 }
  0xac   :  { %1889 = vmatmul.mubr.msk.f32.gmra.mrb[10].mxu0 %vm792_vm1, %v579_v13  ;;  %1120 = vmatprep.mubr.f32.mxu1 %v583_v11  ;;  %v283_v13 = vmul.f32 %v3343_v54, %v99_v34  ;;  %v106_v11 = vld [vmem:[%s3942_s0 + $0x298] sm:$0xff]  ;;  %v471_v49 = vadd.f32 %v3354_v48, %v287_v9  ;;  %v300_v34 = vmul.f32 %v3330_v8, %v116_v55  ;;  %v628_v9 = vmax.f32 %v481_v39, 0.0 }
  0xad   :  { %1891 = vmatprep.mubr.msk.f32.mxu0 %vm2218_vm0, %v2219_v18  ;;  %v290_v40 = vmul.f32 %v3343_v54, %v106_v11 }
  0xae   :  { %v467_v6 = vadd.f32 %v3364_v36, %v283_v13  ;;  %v484_v51 = vadd.f32 %v3356_v37, %v300_v34 }
  0xaf   :  { %1121 = vmatmul.mubr.f32.gmra.mrb[12].mxu1 %v582_v21  ;;  %v109_v21 = vld [vmem:[%s3942_s0 + $0x2b0] sm:$0xff]  ;;  %v474_v57 = vadd.f32 %v3364_v36, %v290_v40  ;;  %v130_v40 = vld [vmem:[%s3942_s0 + $0x358] sm:$0xff] }
  0xb0   :  { %1892 = vmatmul.mubr.msk.f32.gmra.mrb[12].mxu0 %vm792_vm1, %v586_v50  ;;  %1125 = vmatprep.mubr.f32.mxu1 %v590_v32  ;;  %v611_v50 = vmax.f32 %v464_v53, 0.0  ;;  %v117_v32 = vld [vmem:[%s3942_s0 + $0x2f0] sm:$0xff]  ;;  %v293_v41 = vmul.f32 %v3330_v8, %v109_v21  ;;  %v614_v33 = vmax.f32 %v467_v6, 0.0  ;;  %v131_v53 = vld [vmem:[%s3942_s0 + $0x360] sm:$0xff]  ;;  %v134_v21 = vld [vmem:[%s3942_s0 + $0x378] sm:$0xff]  ;;  %v314_v58 = vmul.f32 %v3330_v8, %v130_v40 }
  0xb1   :  { %1894 = vmatprep.mubr.msk.f32.mxu0 %vm2218_vm0, %v2219_v18  ;;  %v301_v7 = vmul.f32 %v3328_v26, %v117_v32  ;;  %v621_v0 = vmax.f32 %v474_v57, 0.0  ;;  %v315_v63 = vmul.f32 %v3328_v26, %v131_v53 }
  0xb2   :  { %v477_v5 = vadd.f32 %v3356_v37, %v293_v41  ;;  %v318_v41 = vmul.f32 %v3343_v54, %v134_v21  ;;  %v498_v4 = vadd.f32 %v3356_v37, %v314_v58 }
  0xb3   :  { %1126 = vmatmul.mubr.f32.gmra.mrb[14].mxu1 %v589_v59  ;;  %v618_v59 = vmax.f32 %v471_v49, 0.0  ;;  %v491_v49 = vadd.f32 %v3356_v37, %v307_v42  ;;  %v499_v32 = vadd.f32 %v3354_v48, %v315_v63  ;;  %v652_v37 = vmax.f32 %v3379_v12, 0.0 }
  0xb4   :  { %1895 = vmatmul.mubr.msk.f32.gmra.mrb[14].mxu0 %vm792_vm1, %v593_v15  ;;  %1130 = vmatprep.mubr.f32.mxu1 %v597_v60  ;;  %v120_v15 = vld [vmem:[%s3942_s0 + $0x308] sm:$0xff]  ;;  %v624_v13 = vmax.f32 %v477_v5, 0.0  ;;  %v502_v28 = vadd.f32 %v3364_v36, %v318_v41  ;;  %v667_v12 = vmax.f32 %v3430_v2, 0.0  ;;  %v677_v2 = vmax.f32 %v3471_v14, 0.0 }
  0xb5   :  { %1897 = vmatprep.mubr.msk.f32.mxu0 %vm2218_vm0, %v2219_v18  ;;  %v124_v60 = vld [vmem:[%s3942_s0 + $0x328] sm:$0xff]  ;;  %v304_v29 = vmul.f32 %v3343_v54, %v120_v15  ;;  %v646_v57 = vmax.f32 %v499_v32, 0.0 }
  0xb6   :  { %v308_v62 = vmul.f32 %v3328_v26, %v124_v60 }
  0xb7   :  { %1131 = vmatmul.mubr.f32.gmra.mrb[16].mxu1 %v596_v10  ;;  %v625_v10 = vmax.f32 %v478_v1, 0.0  ;;  %v488_v11 = vadd.f32 %v3364_v36, %v304_v29  ;;  %v659_v1 = vmax.f32 %v3407_v61, 0.0  ;;  %v674_v61 = vmax.f32 %v3456_v19, 0.0 }
  0xb8   :  { %1898 = vmatmul.mubr.msk.f32.gmra.mrb[16].mxu0 %vm792_vm1, %v600_v44  ;;  %1135 = vmatprep.mubr.f32.mxu1 %v604_v31  ;;  %v485_v44 = vadd.f32 %v3354_v48, %v301_v7  ;;  %v127_v31 = vld [vmem:[%s3942_s0 + $0x340] sm:$0xff]  ;;  %v684_v19 = vmax.f32 %v3490_v25, 0.0 }
  0xb9   :  { %1900 = vmatprep.mubr.msk.f32.mxu0 %vm2218_vm0, %v2219_v18  ;;  %v311_v43 = vmul.f32 %v3343_v54, %v127_v31  ;;  %v635_v6 = vmax.f32 %v488_v11, 0.0  ;;  %v649_v54 = vmax.f32 %v502_v28, 0.0 }
  0xbb   :  { %1136 = vmatmul.mubr.f32.gmra.mrb[18].mxu1 %v603_v23  ;;  %v632_v23 = vmax.f32 %v485_v44, 0.0  ;;  %v495_v20 = vadd.f32 %v3364_v36, %v311_v43  ;;  %v656_v36 = vmax.f32 %v3390_v3, 0.0  ;;  %v666_v3 = vmax.f32 %v3439_v52, 0.0 }
  0xbc   :  { %1901 = vmatmul.mubr.msk.f32.gmra.mrb[18].mxu0 %vm792_vm1, %v607_v22  ;;  %1140 = vmatprep.mubr.f32.mxu1 %v611_v50  ;;  %v492_v22 = vadd.f32 %v3354_v48, %v308_v62  ;;  %v631_v50 = vmax.f32 %v484_v51, 0.0  ;;  %v645_v48 = vmax.f32 %v498_v4, 0.0  ;;  %v681_v52 = vmax.f32 %v3479_v47, 0.0 }
  0xbd   :  { %1903 = vmatprep.mubr.msk.f32.mxu0 %vm2218_vm0, %v2219_v18  ;;  %v642_v8 = vmax.f32 %v495_v20, 0.0 }
  0xbe   :  { %v639_v26 = vmax.f32 %v492_v22, 0.0 }
  0xbf   :  { %1141 = vmatmul.mubr.f32.gmra.mrb[20].mxu1 %v610_v46  ;;  %v638_v46 = vmax.f32 %v491_v49, 0.0 }
  0xc0   :  { %1904 = vmatmul.mubr.msk.f32.gmra.mrb[20].mxu0 %vm792_vm1, %v614_v33  ;;  %1145 = vmatprep.mubr.f32.mxu1 %v618_v59  ;;  %v653_v33 = vmax.f32 %v3376_v16, 0.0  ;;  %v660_v59 = vmax.f32 %v3393_v38, 0.0  ;;  %v663_v16 = vmax.f32 %v3422_v56, 0.0  ;;  %v670_v38 = vmax.f32 %v3453_v24, 0.0 }
  0xc1   :  { %1906 = vmatprep.mubr.msk.f32.mxu0 %vm2218_vm0, %v2219_v18  ;;  %v673_v56 = vmax.f32 %v3468_v45, 0.0  ;;  %v680_v24 = vmax.f32 %v3484_v35, 0.0  ;;  %v3784_v45 = vld [vmem:[%s3945_s2] ss:$0 sm:$0xff] }
  0xc3   :  { %1146 = vmatmul.mubr.f32.gmra.mrb[22].mxu1 %v617_v17 }
  0xc4   :  { %1907 = vmatmul.mubr.msk.f32.gmra.mrb[22].mxu0 %vm792_vm1, %v621_v0  ;;  %1150 = vmatprep.mubr.f32.mxu1 %v625_v10 }
  0xc5   :  { %1909 = vmatprep.mubr.msk.f32.mxu0 %vm2218_vm0, %v2219_v18 }
  0xc7   :  { %1151 = vmatmul.mubr.f32.gmra.mrb[24].mxu1 %v624_v13 }
  0xc8   :  { %1910 = vmatmul.mubr.msk.f32.gmra.mrb[24].mxu0 %vm792_vm1, %v628_v9  ;;  %1155 = vmatprep.mubr.f32.mxu1 %v632_v23 }
  0xc9   :  { %1912 = vmatprep.mubr.msk.f32.mxu0 %vm2218_vm0, %v2219_v18 }
  0xcb   :  { %1156 = vmatmul.mubr.f32.gmra.mrb[26].mxu1 %v631_v50 }
  0xcc   :  { %1913 = vmatmul.mubr.msk.f32.gmra.mrb[26].mxu0 %vm792_vm1, %v635_v6  ;;  %1160 = vmatprep.mubr.f32.mxu1 %v639_v26 }
  0xcd   :  { %1915 = vmatprep.mubr.msk.f32.mxu0 %vm2218_vm0, %v2219_v18 }
  0xcf   :  { %1161 = vmatmul.mubr.f32.gmra.mrb[28].mxu1 %v638_v46 }
  0xd0   :  { %1916 = vmatmul.mubr.msk.f32.gmra.mrb[28].mxu0 %vm792_vm1, %v642_v8  ;;  %1165 = vmatprep.mubr.f32.mxu1 %v646_v57 }
  0xd1   :  { %1918 = vmatprep.mubr.msk.f32.mxu0 %vm2218_vm0, %v2219_v18 }
  0xd3   :  { %1166 = vmatmul.mubr.f32.gmra.mrb[30].mxu1 %v645_v48 }
  0xd4   :  { %1919 = vmatmul.mubr.msk.f32.gmra.mrb[30].mxu0 %vm792_vm1, %v649_v54  ;;  %1170 = vmatprep.mubr.f32.mxu1 %v653_v33 }
  0xd5   :  { %1921 = vmatprep.mubr.msk.f32.mxu0 %vm2218_vm0, %v2219_v18 }
  0xd7   :  { %1171 = vmatmul.mubr.f32.gmra.mrb[32].mxu1 %v652_v37 }
  0xd8   :  { %1922 = vmatmul.mubr.msk.f32.gmra.mrb[32].mxu0 %vm792_vm1, %v656_v36  ;;  %1175 = vmatprep.mubr.f32.mxu1 %v660_v59 }
  0xd9   :  { %1924 = vmatprep.mubr.msk.f32.mxu0 %vm2218_vm0, %v2219_v18 }
  0xdb   :  { %1176 = vmatmul.mubr.f32.gmra.mrb[34].mxu1 %v659_v1 }
  0xdc   :  { %1925 = vmatmul.mubr.msk.f32.gmra.mrb[34].mxu0 %vm792_vm1, %v663_v16  ;;  %1180 = vmatprep.mubr.f32.mxu1 %v667_v12 }
  0xdd   :  { %1927 = vmatprep.mubr.msk.f32.mxu0 %vm2218_vm0, %v2219_v18 }
  0xdf   :  { %1181 = vmatmul.mubr.f32.gmra.mrb[36].mxu1 %v666_v3 }
  0xe0   :  { %1928 = vmatmul.mubr.msk.f32.gmra.mrb[36].mxu0 %vm792_vm1, %v670_v38  ;;  %1185 = vmatprep.mubr.f32.mxu1 %v674_v61 }
  0xe1   :  { %1930 = vmatprep.mubr.msk.f32.mxu0 %vm2218_vm0, %v2219_v18 }
  0xe3   :  { %1186 = vmatmul.mubr.f32.gmra.mrb[38].mxu1 %v673_v56 }
  0xe4   :  { %1931 = vmatmul.mubr.msk.f32.gmra.mrb[38].mxu0 %vm792_vm1, %v677_v2  ;;  %1190 = vmatprep.mubr.f32.mxu1 %v681_v52 }
  0xe5   :  { %1933 = vmatprep.mubr.msk.f32.mxu0 %vm2218_vm0, %v2219_v18 }
  0xe7   :  { %1191 = vmatmul.mubr.f32.gmra.mrb[40].mxu1 %v680_v24 }
  0xe8   :  { %1934 = vmatmul.mubr.msk.f32.gmra.mrb[40].mxu0 %vm792_vm1, %v684_v19 }
 0x16a   :  { %v1092_v14 = vpop.f32.mrb[0].mxu1 }
 0x16b   :  { %v2086_v47 = vadd.f32 %v3784_v45, %v1092_v14  ;;  %v1432_v35 = vpop.f32.mrb[0].mxu0  ;;  %v1094_v7 = vpop.f32.mrb[1].mxu1 }
 0x16c   :  { %v1875_v55 = vpop.f32.mrb[1].mxu0 }
 0x16d   :  { %v2087_v15 = vadd.f32 %v2086_v47, %v1432_v35 }
 0x16e   :  { %v1097_v25 = vpop.f32.mrb[2].mxu1 }
 0x16f   :  { %1537 = vst.msk [vmem:[%s3946_s5] sm:$0xff] %vm1536_vm2, %v2087_v15  ;;  %v2088_v60 = vadd.f32 %v3784_v45, %v1097_v25  ;;  %v1437_v5 = vpop.f32.mrb[2].mxu0  ;;  %v1099_v17 = vpop.f32.mrb[3].mxu1  ;;  %v1736_v34 = vmul.f32 %v2087_v15, %v2087_v15  ;;  %v1687_v10 = vsel %vm1536_vm2, %v2087_v15, 0.0 }
 0x170   :  { %v1878_v39 = vpop.f32.mrb[3].mxu0 }
 0x171   :  { %v2089_v29 = vadd.f32 %v2088_v60, %v1437_v5  ;;  %v1757_v51 = vsel %vm1536_vm2, %v1736_v34, 0.0 }
 0x172   :  { %v1102_v0 = vpop.f32.mrb[4].mxu1 }
 0x173   :  { %1538 = vst.msk [vmem:[%s3946_s5 + $0x8] sm:$0xff] %vm1536_vm2, %v2089_v29  ;;  %v1688_v44 = vsel %vm1536_vm2, %v2089_v29, 0.0  ;;  %v1737_v62 = vmul.f32 %v2089_v29, %v2089_v29  ;;  %v2090_v27 = vadd.f32 %v3784_v45, %v1102_v0  ;;  %v1442_v31 = vpop.f32.mrb[4].mxu0  ;;  %v1104_v53 = vpop.f32.mrb[5].mxu1 }
 0x174   :  { %v1689_v13 = vadd.f32 %v1688_v44, %v1687_v10  ;;  %v1881_v9 = vpop.f32.mrb[5].mxu0 }
 0x175   :  { %v1758_v11 = vsel %vm1536_vm2, %v1737_v62, 0.0  ;;  %v2091_v42 = vadd.f32 %v2090_v27, %v1442_v31 }
 0x176   :  { %v1759_v23 = vadd.f32 %v1758_v11, %v1757_v51  ;;  %v1107_v22 = vpop.f32.mrb[6].mxu1 }
 0x177   :  { %1539 = vst.msk [vmem:[%s3946_s5 + $0x10] sm:$0xff] %vm1536_vm2, %v2091_v42  ;;  %v1690_v43 = vsel %vm1536_vm2, %v2091_v42, 0.0  ;;  %v1738_v63 = vmul.f32 %v2091_v42, %v2091_v42  ;;  %v2092_v40 = vadd.f32 %v3784_v45, %v1107_v22  ;;  %v1447_v21 = vpop.f32.mrb[6].mxu0  ;;  %v1109_v50 = vpop.f32.mrb[7].mxu1 }
 0x178   :  { %v1691_v6 = vadd.f32 %v1690_v43, %v1689_v13  ;;  %v1884_v49 = vpop.f32.mrb[7].mxu0 }
 0x179   :  { %v1760_v58 = vsel %vm1536_vm2, %v1738_v63, 0.0  ;;  %v2093_v26 = vadd.f32 %v2092_v40, %v1447_v21 }
 0x17a   :  { %v1761_v20 = vadd.f32 %v1760_v58, %v1759_v23  ;;  %v1112_v32 = vpop.f32.mrb[8].mxu1 }
 0x17b   :  { %1540 = vst.msk [vmem:[%s3946_s5 + $0x18] sm:$0xff] %vm1536_vm2, %v2093_v26  ;;  %v1692_v41 = vsel %vm1536_vm2, %v2093_v26, 0.0  ;;  %v1739_v46 = vmul.f32 %v2093_v26, %v2093_v26  ;;  %v2094_v4 = vadd.f32 %v3784_v45, %v1112_v32  ;;  %v1452_v8 = vpop.f32.mrb[8].mxu0  ;;  %v1114_v57 = vpop.f32.mrb[9].mxu1 }
 0x17c   :  { %v1693_v28 = vadd.f32 %v1692_v41, %v1691_v6  ;;  %v1887_v48 = vpop.f32.mrb[9].mxu0 }
 0x17d   :  { %v1762_v54 = vsel %vm1536_vm2, %v1739_v46, 0.0  ;;  %v2095_v33 = vadd.f32 %v2094_v4, %v1452_v8 }
 0x17e   :  { %v1763_v37 = vadd.f32 %v1762_v54, %v1761_v20  ;;  %v1117_v36 = vpop.f32.mrb[10].mxu1 }
 0x17f   :  { %1541 = vst.msk [vmem:[%s3946_s5 + $0x20] sm:$0xff] %vm1536_vm2, %v2095_v33  ;;  %v1694_v59 = vsel %vm1536_vm2, %v2095_v33, 0.0  ;;  %v1740_v1 = vmul.f32 %v2095_v33, %v2095_v33  ;;  %v2096_v16 = vadd.f32 %v3784_v45, %v1117_v36  ;;  %v1457_v12 = vpop.f32.mrb[10].mxu0  ;;  %v1119_v3 = vpop.f32.mrb[11].mxu1 }
 0x180   :  { %v1695_v38 = vadd.f32 %v1694_v59, %v1693_v28  ;;  %v1890_v61 = vpop.f32.mrb[11].mxu0 }
 0x181   :  { %v1764_v56 = vsel %vm1536_vm2, %v1740_v1, 0.0  ;;  %v2097_v2 = vadd.f32 %v2096_v16, %v1457_v12 }
 0x182   :  { %v1765_v52 = vadd.f32 %v1764_v56, %v1763_v37  ;;  %v1122_v24 = vpop.f32.mrb[12].mxu1 }
 0x183   :  { %1542 = vst.msk [vmem:[%s3946_s5 + $0x28] sm:$0xff] %vm1536_vm2, %v2097_v2  ;;  %v1696_v19 = vsel %vm1536_vm2, %v2097_v2, 0.0  ;;  %v1741_v14 = vmul.f32 %v2097_v2, %v2097_v2  ;;  %v2098_v47 = vadd.f32 %v3784_v45, %v1122_v24  ;;  %v1462_v35 = vpop.f32.mrb[12].mxu0  ;;  %v1124_v7 = vpop.f32.mrb[13].mxu1 }
 0x184   :  { %v1697_v55 = vadd.f32 %v1696_v19, %v1695_v38  ;;  %v1893_v15 = vpop.f32.mrb[13].mxu0 }
 0x185   :  { %v1766_v25 = vsel %vm1536_vm2, %v1741_v14, 0.0  ;;  %v2099_v60 = vadd.f32 %v2098_v47, %v1462_v35 }
 0x186   :  { %v1767_v5 = vadd.f32 %v1766_v25, %v1765_v52  ;;  %v1127_v17 = vpop.f32.mrb[14].mxu1 }
 0x187   :  { %1543 = vst.msk [vmem:[%s3946_s5 + $0x30] sm:$0xff] %vm1536_vm2, %v2099_v60  ;;  %v1698_v39 = vsel %vm1536_vm2, %v2099_v60, 0.0  ;;  %v1742_v34 = vmul.f32 %v2099_v60, %v2099_v60  ;;  %v2100_v29 = vadd.f32 %v3784_v45, %v1127_v17  ;;  %v1467_v0 = vpop.f32.mrb[14].mxu0  ;;  %v1129_v10 = vpop.f32.mrb[15].mxu1 }
 0x188   :  { %v1699_v44 = vadd.f32 %v1698_v39, %v1697_v55  ;;  %v1896_v62 = vpop.f32.mrb[15].mxu0 }
 0x189   :  { %v1768_v27 = vsel %vm1536_vm2, %v1742_v34, 0.0  ;;  %v2101_v31 = vadd.f32 %v2100_v29, %v1467_v0 }
 0x18a   :  { %v1769_v53 = vadd.f32 %v1768_v27, %v1767_v5  ;;  %v1132_v13 = vpop.f32.mrb[16].mxu1 }
 0x18b   :  { %1544 = vst.msk [vmem:[%s3946_s5 + $0x38] sm:$0xff] %vm1536_vm2, %v2101_v31  ;;  %v1700_v9 = vsel %vm1536_vm2, %v2101_v31, 0.0  ;;  %v1743_v51 = vmul.f32 %v2101_v31, %v2101_v31  ;;  %v2102_v11 = vadd.f32 %v3784_v45, %v1132_v13  ;;  %v1472_v42 = vpop.f32.mrb[16].mxu0  ;;  %v1134_v23 = vpop.f32.mrb[17].mxu1 }
 0x18c   :  { %v1701_v22 = vadd.f32 %v1700_v9, %v1699_v44  ;;  %v1899_v43 = vpop.f32.mrb[17].mxu0 }
 0x18d   :  { %v1770_v63 = vsel %vm1536_vm2, %v1743_v51, 0.0  ;;  %v2103_v40 = vadd.f32 %v2102_v11, %v1472_v42 }
 0x18e   :  { %v1771_v21 = vadd.f32 %v1770_v63, %v1769_v53  ;;  %v1137_v50 = vpop.f32.mrb[18].mxu1 }
 0x18f   :  { %1545 = vst.msk [vmem:[%s3946_s5 + $0x40] sm:$0xff] %vm1536_vm2, %v2103_v40  ;;  %v1702_v6 = vsel %vm1536_vm2, %v2103_v40, 0.0  ;;  %v1744_v49 = vmul.f32 %v2103_v40, %v2103_v40  ;;  %v2104_v58 = vadd.f32 %v3784_v45, %v1137_v50  ;;  %v1477_v26 = vpop.f32.mrb[18].mxu0  ;;  %v1139_v20 = vpop.f32.mrb[19].mxu1 }
 0x190   :  { %v1703_v32 = vadd.f32 %v1702_v6, %v1701_v22  ;;  %v1902_v41 = vpop.f32.mrb[19].mxu0 }
 0x191   :  { %v1772_v46 = vsel %vm1536_vm2, %v1744_v49, 0.0  ;;  %v2105_v4 = vadd.f32 %v2104_v58, %v1477_v26 }
 0x192   :  { %v1773_v8 = vadd.f32 %v1772_v46, %v1771_v21  ;;  %v1142_v57 = vpop.f32.mrb[20].mxu1 }
 0x193   :  { %1546 = vst.msk [vmem:[%s3946_s5 + $0x48] sm:$0xff] %vm1536_vm2, %v2105_v4  ;;  %v1704_v28 = vsel %vm1536_vm2, %v2105_v4, 0.0  ;;  %v1745_v48 = vmul.f32 %v2105_v4, %v2105_v4  ;;  %v2106_v54 = vadd.f32 %v3784_v45, %v1142_v57  ;;  %v1482_v33 = vpop.f32.mrb[20].mxu0  ;;  %v1144_v37 = vpop.f32.mrb[21].mxu1 }
 0x194   :  { %v1705_v36 = vadd.f32 %v1704_v28, %v1703_v32  ;;  %v1905_v59 = vpop.f32.mrb[21].mxu0 }
 0x195   :  { %v1774_v1 = vsel %vm1536_vm2, %v1745_v48, 0.0  ;;  %v2107_v16 = vadd.f32 %v2106_v54, %v1482_v33 }
 0x196   :  { %v1775_v12 = vadd.f32 %v1774_v1, %v1773_v8  ;;  %v1147_v3 = vpop.f32.mrb[22].mxu1 }
 0x197   :  { %1547 = vst.msk [vmem:[%s3946_s5 + $0x50] sm:$0xff] %vm1536_vm2, %v2107_v16  ;;  %v1706_v38 = vsel %vm1536_vm2, %v2107_v16, 0.0  ;;  %v1746_v61 = vmul.f32 %v2107_v16, %v2107_v16  ;;  %v2108_v56 = vadd.f32 %v3784_v45, %v1147_v3  ;;  %v1487_v2 = vpop.f32.mrb[22].mxu0  ;;  %v1149_v52 = vpop.f32.mrb[23].mxu1 }
 0x198   :  { %v1707_v24 = vadd.f32 %v1706_v38, %v1705_v36  ;;  %v1908_v19 = vpop.f32.mrb[23].mxu0 }
 0x199   :  { %v1776_v14 = vsel %vm1536_vm2, %v1746_v61, 0.0  ;;  %v2109_v47 = vadd.f32 %v2108_v56, %v1487_v2 }
 0x19a   :  { %v1777_v35 = vadd.f32 %v1776_v14, %v1775_v12  ;;  %v1152_v7 = vpop.f32.mrb[24].mxu1 }
 0x19b   :  { %1548 = vst.msk [vmem:[%s3946_s5 + $0x58] sm:$0xff] %vm1536_vm2, %v2109_v47  ;;  %v1708_v55 = vsel %vm1536_vm2, %v2109_v47, 0.0  ;;  %v1747_v15 = vmul.f32 %v2109_v47, %v2109_v47  ;;  %v2110_v25 = vadd.f32 %v3784_v45, %v1152_v7  ;;  %v1492_v60 = vpop.f32.mrb[24].mxu0  ;;  %v1154_v5 = vpop.f32.mrb[25].mxu1 }
 0x19c   :  { %v1709_v17 = vadd.f32 %v1708_v55, %v1707_v24  ;;  %v1911_v39 = vpop.f32.mrb[25].mxu0 }
 0x19d   :  { %v1778_v34 = vsel %vm1536_vm2, %v1747_v15, 0.0  ;;  %v2111_v29 = vadd.f32 %v2110_v25, %v1492_v60 }
 0x19e   :  { %v1779_v0 = vadd.f32 %v1778_v34, %v1777_v35  ;;  %v1157_v10 = vpop.f32.mrb[26].mxu1 }
 0x19f   :  { %1549 = vst.msk [vmem:[%s3946_s5 + $0x60] sm:$0xff] %vm1536_vm2, %v2111_v29  ;;  %v1710_v44 = vsel %vm1536_vm2, %v2111_v29, 0.0  ;;  %v1748_v62 = vmul.f32 %v2111_v29, %v2111_v29  ;;  %v2112_v27 = vadd.f32 %v3784_v45, %v1157_v10  ;;  %v1497_v31 = vpop.f32.mrb[26].mxu0  ;;  %v1159_v53 = vpop.f32.mrb[27].mxu1 }
 0x1a0   :  { %v1711_v13 = vadd.f32 %v1710_v44, %v1709_v17  ;;  %v1914_v9 = vpop.f32.mrb[27].mxu0 }
 0x1a1   :  { %v1780_v51 = vsel %vm1536_vm2, %v1748_v62, 0.0  ;;  %v2113_v11 = vadd.f32 %v2112_v27, %v1497_v31  ;;  %v1579_v31 = vadd.s32 160, %v2328_v30 }
 0x1a2   :  { %v1781_v42 = vadd.f32 %v1780_v51, %v1779_v0  ;;  %v1162_v23 = vpop.f32.mrb[28].mxu1 }
 0x1a3   :  { %1550 = vst.msk [vmem:[%s3946_s5 + $0x68] sm:$0xff] %vm1536_vm2, %v2113_v11  ;;  %v1712_v22 = vsel %vm1536_vm2, %v2113_v11, 0.0  ;;  %v1749_v43 = vmul.f32 %v2113_v11, %v2113_v11  ;;  %v2114_v63 = vadd.f32 %v3784_v45, %v1162_v23  ;;  %v1502_v40 = vpop.f32.mrb[28].mxu0  ;;  %v1164_v21 = vpop.f32.mrb[29].mxu1  ;;  %vm1623_vm3 = vcmp.lt.s32.totalorder %v1579_v31, 162 }
 0x1a4   :  { %v1713_v50 = vadd.f32 %v1712_v22, %v1711_v13  ;;  %v1917_v6 = vpop.f32.mrb[29].mxu0 }
 0x1a5   :  { %v1782_v49 = vsel %vm1536_vm2, %v1749_v43, 0.0  ;;  %v2115_v58 = vadd.f32 %v2114_v63, %v1502_v40 }
 0x1a6   :  { %v1783_v26 = vadd.f32 %v1782_v49, %v1781_v42  ;;  %v1167_v20 = vpop.f32.mrb[30].mxu1 }
 0x1a7   :  { %1551 = vst.msk [vmem:[%s3946_s5 + $0x70] sm:$0xff] %vm1536_vm2, %v2115_v58  ;;  %v1714_v32 = vsel %vm1536_vm2, %v2115_v58, 0.0  ;;  %v1750_v41 = vmul.f32 %v2115_v58, %v2115_v58  ;;  %v2116_v46 = vadd.f32 %v3784_v45, %v1167_v20  ;;  %v1507_v4 = vpop.f32.mrb[30].mxu0  ;;  %v1169_v8 = vpop.f32.mrb[31].mxu1 }
 0x1a8   :  { %v1715_v57 = vadd.f32 %v1714_v32, %v1713_v50  ;;  %v1920_v28 = vpop.f32.mrb[31].mxu0  ;;  %v1839_v32 = vsel %vm1623_vm3, 1.0, %v2219_v18 }
 0x1a9   :  { %v1784_v48 = vsel %vm1536_vm2, %v1750_v41, 0.0  ;;  %v2117_v54 = vadd.f32 %v2116_v46, %v1507_v4 }
 0x1aa   :  { %v1785_v33 = vadd.f32 %v1784_v48, %v1783_v26  ;;  %v1172_v37 = vpop.f32.mrb[32].mxu1 }
 0x1ab   :  { %1552 = vst.msk [vmem:[%s3946_s5 + $0x78] sm:$0xff] %vm1536_vm2, %v2117_v54  ;;  %v1716_v36 = vsel %vm1536_vm2, %v2117_v54, 0.0  ;;  %v1751_v59 = vmul.f32 %v2117_v54, %v2117_v54  ;;  %v2118_v1 = vadd.f32 %v3784_v45, %v1172_v37  ;;  %v1512_v16 = vpop.f32.mrb[32].mxu0  ;;  %v1174_v12 = vpop.f32.mrb[33].mxu1 }
 0x1ac   :  { %v1717_v3 = vadd.f32 %v1716_v36, %v1715_v57  ;;  %v1923_v38 = vpop.f32.mrb[33].mxu0 }
 0x1ad   :  { %v1786_v61 = vsel %vm1536_vm2, %v1751_v59, 0.0  ;;  %v2119_v56 = vadd.f32 %v2118_v1, %v1512_v16 }
 0x1ae   :  { %v1787_v2 = vadd.f32 %v1786_v61, %v1785_v33  ;;  %v1177_v52 = vpop.f32.mrb[34].mxu1 }
 0x1af   :  { %1553 = vst.msk [vmem:[%s3946_s5 + $0x80] sm:$0xff] %vm1536_vm2, %v2119_v56  ;;  %v1718_v24 = vsel %vm1536_vm2, %v2119_v56, 0.0  ;;  %v1752_v19 = vmul.f32 %v2119_v56, %v2119_v56  ;;  %v2120_v14 = vadd.f32 %v3784_v45, %v1177_v52  ;;  %v1517_v47 = vpop.f32.mrb[34].mxu0  ;;  %v1179_v35 = vpop.f32.mrb[35].mxu1 }
 0x1b0   :  { %v1719_v7 = vadd.f32 %v1718_v24, %v1717_v3  ;;  %v1926_v55 = vpop.f32.mrb[35].mxu0 }
 0x1b1   :  { %v1788_v15 = vsel %vm1536_vm2, %v1752_v19, 0.0  ;;  %v2121_v25 = vadd.f32 %v2120_v14, %v1517_v47 }
 0x1b2   :  { %v1789_v60 = vadd.f32 %v1788_v15, %v1787_v2  ;;  %v1182_v5 = vpop.f32.mrb[36].mxu1 }
 0x1b3   :  { %1554 = vst.msk [vmem:[%s3946_s5 + $0x88] sm:$0xff] %vm1536_vm2, %v2121_v25  ;;  %v1720_v17 = vsel %vm1536_vm2, %v2121_v25, 0.0  ;;  %v1753_v39 = vmul.f32 %v2121_v25, %v2121_v25  ;;  %v2122_v34 = vadd.f32 %v3784_v45, %v1182_v5  ;;  %v1522_v29 = vpop.f32.mrb[36].mxu0  ;;  %v1184_v0 = vpop.f32.mrb[37].mxu1 }
 0x1b4   :  { %v1721_v10 = vadd.f32 %v1720_v17, %v1719_v7  ;;  %v1929_v44 = vpop.f32.mrb[37].mxu0 }
 0x1b5   :  { %v1790_v62 = vsel %vm1536_vm2, %v1753_v39, 0.0  ;;  %v2123_v27 = vadd.f32 %v2122_v34, %v1522_v29 }
 0x1b6   :  { %v1791_v53 = vadd.f32 %v1790_v62, %v1789_v60  ;;  %v1187_v13 = vpop.f32.mrb[38].mxu1 }
 0x1b7   :  { %1555 = vst.msk [vmem:[%s3946_s5 + $0x90] sm:$0xff] %vm1536_vm2, %v2123_v27  ;;  %v1722_v9 = vsel %vm1536_vm2, %v2123_v27, 0.0  ;;  %v1754_v51 = vmul.f32 %v2123_v27, %v2123_v27  ;;  %v2124_v11 = vadd.f32 %v3784_v45, %v1187_v13  ;;  %v1527_v42 = vpop.f32.mrb[38].mxu0  ;;  %v1189_v23 = vpop.f32.mrb[39].mxu1 }
 0x1b8   :  { %v1723_v22 = vadd.f32 %v1722_v9, %v1721_v10  ;;  %v1932_v43 = vpop.f32.mrb[39].mxu0 }
 0x1b9   :  { %v1792_v63 = vsel %vm1536_vm2, %v1754_v51, 0.0  ;;  %v2125_v40 = vadd.f32 %v2124_v11, %v1527_v42 }
 0x1ba   :  { %v1793_v30 = vadd.f32 %v1792_v63, %v1791_v53  ;;  %v1192_v21 = vpop.f32.mrb[40].mxu1 }
 0x1bb   :  { %1556 = vst.msk [vmem:[%s3946_s5 + $0x98] sm:$0xff] %vm1536_vm2, %v2125_v40  ;;  %v1724_v50 = vsel %vm1536_vm2, %v2125_v40, 0.0  ;;  %v1755_v6 = vmul.f32 %v2125_v40, %v2125_v40  ;;  %v2126_v49 = vadd.f32 %v3784_v45, %v1192_v21  ;;  %v1532_v58 = vpop.f32.mrb[40].mxu0  ;;  %v1194_v26 = vpop.f32.mrb[41].mxu1 }
 0x1bc   :  { %v1725_v20 = vadd.f32 %v1724_v50, %v1723_v22  ;;  %v1935_v41 = vpop.f32.mrb[41].mxu0 }
 0x1bd   :  { %v1794_v46 = vsel %vm1536_vm2, %v1755_v6, 0.0  ;;  %v2127_v4 = vadd.f32 %v2126_v49, %v1532_v58 }
 0x1be   :  { %v1795_v8 = vadd.f32 %v1794_v46, %v1793_v30 }
 0x1bf   :  { %1557 = vst.msk [vmem:[%s3946_s5 + $0xa0] sm:$0xff] %vm1536_vm2, %v2127_v4  ;;  %v1686_v57 = vmul.f32 %v2127_v4, %v1839_v32 }
 0x1c1   :  { %v1726_v28 = vsel %vm1536_vm2, %v1686_v57, 0.0  ;;  %v1756_v48 = vmul.f32 %v1686_v57, %v1686_v57 }
 0x1c2   :  { %v1727_v45 = vadd.f32 %v1726_v28, %v1725_v20 }
 0x1c3   :  { %v1796_v54 = vsel %vm1536_vm2, %v1756_v48, 0.0 }
 0x1c4   :  { %v1728_v33 = vrot.slane %v1727_v45, 4  ;;  %v1797_v37 = vadd.f32 %v1796_v54, %v1795_v8 }
 0x1c6   :  { %v1729_v18 = vadd.f32 %v1728_v33, %v1727_v45  ;;  %v1798_v36 = vrot.slane %v1797_v37, 4 }
 0x1c8   :  { %v1730_v59 = vrot.slane %v1729_v18, 2  ;;  %v1799_v1 = vadd.f32 %v1798_v36, %v1797_v37 }
 0x1ca   :  { %v1731_v16 = vadd.f32 %v1730_v59, %v1729_v18  ;;  %v1800_v12 = vrot.slane %v1799_v1, 2 }
 0x1cc   :  { %v1732_v3 = vrot.slane %v1731_v16, 1  ;;  %v1801_v38 = vadd.f32 %v1800_v12, %v1799_v1 }
 0x1ce   :  { %v1733_v61 = vadd.f32 %v1732_v3, %v1731_v16  ;;  %v1802_v56 = vrot.slane %v1801_v38, 1 }
 0x1d0   :  { %1735 = vst.msk [vmem:[%s3947_s6] sm:$0x1] %vm1734_vm4, %v1733_v61  ;;  %v1803_v2 = vadd.f32 %v1802_v56, %v1801_v38 }
 0x1d2   :  { %1804 = vst.msk [vmem:[%s3948_s7] sm:$0x1] %vm1734_vm4, %v1803_v2 }

// kernel: a_call__.6
= control target key start
LH: loop header
LB: loop body
LE: loop exit
PB: predicated region body
PF: predicated region fallthrough
CT: control target
= control target key end

     0   :  { %v66_v47 = vlaneseq  ;;  %vm1661_vm0 = vmmov 0   ;;  %vm524_vm1 = vcmask 523264   ;;  %vm1129_vm3 = vcmask 516096   ;;  %s2684_s1 = inlined_call_operand.vmem [shape: f32[1600,64], index: 1, kind: input, shape index: {}]   ;;  %s2685_s0 = inlined_call_operand.vmem [shape: f32[24,1600], index: 0, kind: input, shape index: {}]   ;;  %s2686_s3 = inlined_call_operand.vmem [shape: f32[1,1600], index: 3, kind: input, shape index: {}]   ;;  %s2687_s4 = inlined_call_operand.vmem [shape: f32[1,1600], index: 4, kind: input, shape index: {}]   ;;  %s2688_s2 = inlined_call_operand.vmem [shape: f32[1,64], index: 2, kind: input, shape index: {}]   ;;  %s2689_s5 = inlined_call_operand.vmem [shape: f32[24,64], index: 5, kind: output, shape index: {0}]   ;;  %s2690_s6 = inlined_call_operand.vmem [shape: f32[1,1,64], index: 6, kind: output, shape index: {1}]   ;;  %s2691_s7 = inlined_call_operand.vmem [shape: f32[1,1,64], index: 7, kind: output, shape index: {2}]  }
   0x1   :  { %v333_v0 = vld [vmem:[%s2684_s1 + $0x80] sm:$0xff]  ;;  %v334_v1 = vld [vmem:[%s2684_s1 + $0x88] sm:$0xff]  ;;  %v335_v11 = vld [vmem:[%s2684_s1 + $0x90] sm:$0xff] }
   0x2   :  { %v365_v2 = vld [vmem:[%s2684_s1 + $0x180] sm:$0xff]  ;;  %v1445_v3 = vpack.c.bf16 %v334_v1, %v333_v0  ;;  %v366_v4 = vld [vmem:[%s2684_s1 + $0x188] sm:$0xff]  ;;  %v336_v13 = vld [vmem:[%s2684_s1 + $0x98] sm:$0xff]  ;;  %v1829_v61 = vshrl.u32 %v66_v47, 7 }
   0x3   :  { %v317_v5 = vld [vmem:[%s2684_s1] sm:$0xff]  ;;  %v318_v6 = vld [vmem:[%s2684_s1 + $0x8] sm:$0xff]  ;;  %v1477_v7 = vpack.c.bf16 %v366_v4, %v365_v2  ;;  %v367_v14 = vld [vmem:[%s2684_s1 + $0x190] sm:$0xff]  ;;  %v1449_v16 = vpack.c.bf16 %v336_v13, %v335_v11 }
   0x4   :  { %v1447_v8 = vpack.c.bf16 %v318_v6, %v317_v5  ;;  %v349_v9 = vld [vmem:[%s2684_s1 + $0x100] sm:$0xff]  ;;  %v350_v10 = vld [vmem:[%s2684_s1 + $0x108] sm:$0xff]  ;;  %1446 = vmatprep.subr.bf16.mxu0 %v1445_v3  ;;  %v368_v15 = vld [vmem:[%s2684_s1 + $0x198] sm:$0xff]  ;;  %v1865_v13 = vsub.s32 3, %v1829_v61 }
   0x5   :  { %v1479_v12 = vpack.c.bf16 %v350_v10, %v349_v9  ;;  %1478 = vmatprep.subr.bf16.mxu1 %v1477_v7  ;;  %v1481_v17 = vpack.c.bf16 %v368_v15, %v367_v14  ;;  %v319_v18 = vld [vmem:[%s2684_s1 + $0x10] sm:$0xff]  ;;  %v320_v19 = vld [vmem:[%s2684_s1 + $0x18] sm:$0xff]  ;;  %v337_v23 = vld [vmem:[%s2684_s1 + $0xa0] sm:$0xff]  ;;  %v1868_v14 = vsub.s32 0, %v1829_v61 }
   0x6   :  { %1448 = vmatpush3.bf16.msra.mxu0 %v1447_v8  ;;  %v351_v20 = vld [vmem:[%s2684_s1 + $0x110] sm:$0xff]  ;;  %v1451_v21 = vpack.c.bf16 %v320_v19, %v319_v18  ;;  %v352_v22 = vld [vmem:[%s2684_s1 + $0x118] sm:$0xff]  ;;  %v338_v24 = vld [vmem:[%s2684_s1 + $0xa8] sm:$0xff] }
   0x7   :  { %1480 = vmatpush3.bf16.msra.mxu1 %v1479_v12  ;;  %1450 = vmatprep.subr.bf16.mxu0 %v1449_v16  ;;  %v1483_v25 = vpack.c.bf16 %v352_v22, %v351_v20  ;;  %v1453_v26 = vpack.c.bf16 %v338_v24, %v337_v23  ;;  %v369_v27 = vld [vmem:[%s2684_s1 + $0x1a0] sm:$0xff]  ;;  %v370_v28 = vld [vmem:[%s2684_s1 + $0x1a8] sm:$0xff]  ;;  %v339_v35 = vld [vmem:[%s2684_s1 + $0xb0] sm:$0xff]  ;;  %v1862_v12 = vsub.s32 1, %v1829_v61 }
   0x8   :  { %1482 = vmatprep.subr.bf16.mxu1 %v1481_v17  ;;  %v321_v29 = vld [vmem:[%s2684_s1 + $0x20] sm:$0xff]  ;;  %v1485_v30 = vpack.c.bf16 %v370_v28, %v369_v27  ;;  %v322_v31 = vld [vmem:[%s2684_s1 + $0x28] sm:$0xff]  ;;  %v340_v36 = vld [vmem:[%s2684_s1 + $0xb8] sm:$0xff]  ;;  %v1877_v17 = vsub.s32 2, %v1829_v61 }
   0x9   :  { %v353_v32 = vld [vmem:[%s2684_s1 + $0x120] sm:$0xff]  ;;  %v354_v33 = vld [vmem:[%s2684_s1 + $0x128] sm:$0xff]  ;;  %v1455_v34 = vpack.c.bf16 %v322_v31, %v321_v29  ;;  %v371_v37 = vld [vmem:[%s2684_s1 + $0x1b0] sm:$0xff]  ;;  %v1457_v39 = vpack.c.bf16 %v340_v36, %v339_v35 }
   0xa   :  { %1452 = vmatpush3.bf16.msra.mxu0 %v1451_v21  ;;  %v1487_v38 = vpack.c.bf16 %v354_v33, %v353_v32  ;;  %v372_v40 = vld [vmem:[%s2684_s1 + $0x1b8] sm:$0xff]  ;;  %v323_v41 = vld [vmem:[%s2684_s1 + $0x30] sm:$0xff]  ;;  %v341_v46 = vld [vmem:[%s2684_s1 + $0xc0] sm:$0xff] }
   0xb   :  { %1484 = vmatpush3.bf16.msra.mxu1 %v1483_v25  ;;  %1454 = vmatprep.subr.bf16.mxu0 %v1453_v26  ;;  %v324_v42 = vld [vmem:[%s2684_s1 + $0x38] sm:$0xff]  ;;  %v1489_v43 = vpack.c.bf16 %v372_v40, %v371_v37  ;;  %v355_v44 = vld [vmem:[%s2684_s1 + $0x130] sm:$0xff]  ;;  %v342_v48 = vld [vmem:[%s2684_s1 + $0xc8] sm:$0xff] }
   0xc   :  { %1486 = vmatprep.subr.bf16.mxu1 %v1485_v30  ;;  %v356_v45 = vld [vmem:[%s2684_s1 + $0x138] sm:$0xff]  ;;  %v373_v49 = vld [vmem:[%s2684_s1 + $0x1c0] sm:$0xff]  ;;  %v374_v50 = vld [vmem:[%s2684_s1 + $0x1c8] sm:$0xff]  ;;  %v1459_v51 = vpack.c.bf16 %v324_v42, %v323_v41  ;;  %v1461_v53 = vpack.c.bf16 %v342_v48, %v341_v46 }
   0xd   :  { %v1491_v52 = vpack.c.bf16 %v356_v45, %v355_v44  ;;  %v325_v54 = vld [vmem:[%s2684_s1 + $0x40] sm:$0xff]  ;;  %v326_v55 = vld [vmem:[%s2684_s1 + $0x48] sm:$0xff]  ;;  %v1493_v57 = vpack.c.bf16 %v374_v50, %v373_v49  ;;  %v343_v59 = vld [vmem:[%s2684_s1 + $0xd0] sm:$0xff] }
   0xe   :  { %1456 = vmatpush3.bf16.msra.mxu0 %v1455_v34  ;;  %v357_v56 = vld [vmem:[%s2684_s1 + $0x140] sm:$0xff]  ;;  %v358_v58 = vld [vmem:[%s2684_s1 + $0x148] sm:$0xff]  ;;  %v344_v60 = vld [vmem:[%s2684_s1 + $0xd8] sm:$0xff]  ;;  %v1463_v0 = vpack.c.bf16 %v326_v55, %v325_v54 }
   0xf   :  { %1488 = vmatpush3.bf16.msra.mxu1 %v1487_v38  ;;  %1458 = vmatprep.subr.bf16.mxu0 %v1457_v39  ;;  %v375_v62 = vld [vmem:[%s2684_s1 + $0x1d0] sm:$0xff]  ;;  %v376_v63 = vld [vmem:[%s2684_s1 + $0x1d8] sm:$0xff]  ;;  %v1495_v3 = vpack.c.bf16 %v358_v58, %v357_v56  ;;  %v1465_v4 = vpack.c.bf16 %v344_v60, %v343_v59  ;;  %v345_v7 = vld [vmem:[%s2684_s1 + $0xe0] sm:$0xff] }
  0x10   :  { %1490 = vmatprep.subr.bf16.mxu1 %v1489_v43  ;;  %v327_v1 = vld [vmem:[%s2684_s1 + $0x50] sm:$0xff]  ;;  %v328_v2 = vld [vmem:[%s2684_s1 + $0x58] sm:$0xff]  ;;  %v1497_v8 = vpack.c.bf16 %v376_v63, %v375_v62  ;;  %v346_v9 = vld [vmem:[%s2684_s1 + $0xe8] sm:$0xff] }
  0x11   :  { %v359_v5 = vld [vmem:[%s2684_s1 + $0x150] sm:$0xff]  ;;  %v360_v6 = vld [vmem:[%s2684_s1 + $0x158] sm:$0xff]  ;;  %v377_v10 = vld [vmem:[%s2684_s1 + $0x1e0] sm:$0xff]  ;;  %v1467_v18 = vpack.c.bf16 %v328_v2, %v327_v1  ;;  %v1469_v23 = vpack.c.bf16 %v346_v9, %v345_v7 }
  0x12   :  { %1460 = vmatpush3.bf16.msra.mxu0 %v1459_v51  ;;  %v378_v11 = vld [vmem:[%s2684_s1 + $0x1e8] sm:$0xff]  ;;  %v329_v15 = vld [vmem:[%s2684_s1 + $0x60] sm:$0xff]  ;;  %v347_v21 = vld [vmem:[%s2684_s1 + $0xf0] sm:$0xff]  ;;  %v1499_v22 = vpack.c.bf16 %v360_v6, %v359_v5 }
  0x13   :  { %1492 = vmatpush3.bf16.msra.mxu1 %v1491_v52  ;;  %1462 = vmatprep.subr.bf16.mxu0 %v1461_v53  ;;  %v330_v16 = vld [vmem:[%s2684_s1 + $0x68] sm:$0xff]  ;;  %v361_v19 = vld [vmem:[%s2684_s1 + $0x160] sm:$0xff]  ;;  %v1501_v24 = vpack.c.bf16 %v378_v11, %v377_v10  ;;  %v348_v25 = vld [vmem:[%s2684_s1 + $0xf8] sm:$0xff] }
  0x14   :  { %1494 = vmatprep.subr.bf16.mxu1 %v1493_v57  ;;  %v362_v20 = vld [vmem:[%s2684_s1 + $0x168] sm:$0xff]  ;;  %v1897_v27 = vld [vmem:[%s2686_s3] sm:$0xff]  ;;  %v1471_v28 = vpack.c.bf16 %v330_v16, %v329_v15  ;;  %v26_v31 = vld [vmem:[%s2685_s0 + $0x18] sm:$0xff]  ;;  %v1473_v47 = vpack.c.bf16 %v348_v25, %v347_v21 }
  0x15   :  { %v24_v26 = vld [vmem:[%s2685_s0 + $0x8] sm:$0xff]  ;;  %v1901_v29 = vrot.slane %v1897_v27, %v1862_v12  ;;  %v1906_v30 = vld [vmem:[%s2687_s4] sm:$0xff]  ;;  %v1913_v32 = vrot.slane %v1897_v27, %v1865_v13  ;;  %v1920_v34 = vrot.slane %v1897_v27, %v1868_v14  ;;  %v379_v35 = vld [vmem:[%s2684_s1 + $0x1f0] sm:$0xff]  ;;  %v1945_v41 = vrot.slane %v1897_v27, %v1877_v17 }
  0x16   :  { %1464 = vmatpush3.bf16.msra.mxu0 %v1463_v0  ;;  %v23_v33 = vld [vmem:[%s2685_s0] sm:$0xff]  ;;  %v380_v36 = vld [vmem:[%s2684_s1 + $0x1f8] sm:$0xff]  ;;  %v1930_v37 = vrot.slane %v1906_v30, %v1862_v12  ;;  %v1934_v38 = vrot.slane %v1906_v30, %v1865_v13  ;;  %v1938_v39 = vrot.slane %v1906_v30, %v1868_v14  ;;  %v25_v40 = vld [vmem:[%s2685_s0 + $0x10] sm:$0xff]  ;;  %v1952_v45 = vrot.slane %v1906_v30, %v1877_v17 }
  0x17   :  { %1496 = vmatpush3.bf16.msra.mxu1 %v1495_v3  ;;  %1466 = vmatprep.subr.bf16.mxu0 %v1465_v4  ;;  %v132_v42 = vmul.f32 %v1901_v29, %v24_v26  ;;  %v134_v43 = vmul.f32 %v1913_v32, %v26_v31  ;;  %v131_v44 = vmul.f32 %v1920_v34, %v23_v33  ;;  %v331_v48 = vld [vmem:[%s2684_s1 + $0x70] sm:$0xff]  ;;  %v332_v49 = vld [vmem:[%s2684_s1 + $0x78] sm:$0xff]  ;;  %v397_v56 = vld [vmem:[%s2684_s1 + $0x280] sm:$0xff] }
  0x18   :  { %1498 = vmatprep.subr.bf16.mxu1 %v1497_v8  ;;  %v1503_v46 = vpack.c.bf16 %v362_v20, %v361_v19  ;;  %v363_v50 = vld [vmem:[%s2684_s1 + $0x170] sm:$0xff]  ;;  %v133_v51 = vmul.f32 %v1945_v41, %v25_v40  ;;  %v1505_v52 = vpack.c.bf16 %v380_v36, %v379_v35  ;;  %v364_v53 = vld [vmem:[%s2684_s1 + $0x178] sm:$0xff]  ;;  %v398_v57 = vld [vmem:[%s2684_s1 + $0x288] sm:$0xff]  ;;  %v1475_v62 = vpack.c.bf16 %v332_v49, %v331_v48 }
  0x19   :  { %v240_v54 = vadd.f32 %v1930_v37, %v132_v42  ;;  %v242_v55 = vadd.f32 %v1934_v38, %v134_v43  ;;  %v239_v58 = vadd.f32 %v1938_v39, %v131_v44  ;;  %v429_v59 = vld [vmem:[%s2684_s1 + $0x380] sm:$0xff]  ;;  %v430_v60 = vld [vmem:[%s2684_s1 + $0x388] sm:$0xff]  ;;  %v1507_v2 = vpack.c.bf16 %v364_v53, %v363_v50  ;;  %v399_v9 = vld [vmem:[%s2684_s1 + $0x290] sm:$0xff] }
  0x1a   :  { %1468 = vmatpush3.bf16.msra.mxu0 %v1467_v18  ;;  %v241_v1 = vadd.f32 %v1952_v45, %v133_v51  ;;  %v1509_v3 = vpack.c.bf16 %v398_v57, %v397_v56  ;;  %v381_v4 = vld [vmem:[%s2684_s1 + $0x200] sm:$0xff]  ;;  %v382_v5 = vld [vmem:[%s2684_s1 + $0x208] sm:$0xff]  ;;  %v1541_v7 = vpack.c.bf16 %v430_v60, %v429_v59  ;;  %v400_v10 = vld [vmem:[%s2684_s1 + $0x298] sm:$0xff]  ;;  %v88_v36 = vsub.s32 5, %v1829_v61 }
  0x1b   :  { %1500 = vmatpush3.bf16.msra.mxu1 %v1499_v22  ;;  %1470 = vmatprep.subr.bf16.mxu0 %v1469_v23  ;;  %v279_v63 = vmax.f32 %v240_v54, 0.0  ;;  %v281_v0 = vmax.f32 %v242_v55, 0.0  ;;  %v413_v6 = vld [vmem:[%s2684_s1 + $0x300] sm:$0xff]  ;;  %v414_v8 = vld [vmem:[%s2684_s1 + $0x308] sm:$0xff]  ;;  %v278_v11 = vmax.f32 %v239_v58, 0.0  ;;  %v431_v15 = vld [vmem:[%s2684_s1 + $0x390] sm:$0xff]  ;;  %v1511_v19 = vpack.c.bf16 %v382_v5, %v381_v4 }
  0x1c   :  { %1502 = vmatprep.subr.bf16.mxu1 %v1501_v24  ;;  %v432_v16 = vld [vmem:[%s2684_s1 + $0x398] sm:$0xff]  ;;  %v280_v18 = vmax.f32 %v241_v1, 0.0  ;;  %v1543_v20 = vpack.c.bf16 %v414_v8, %v413_v6  ;;  %v1513_v21 = vpack.c.bf16 %v400_v10, %v399_v9  ;;  %v383_v22 = vld [vmem:[%s2684_s1 + $0x210] sm:$0xff]  ;;  %v402_v31 = vld [vmem:[%s2684_s1 + $0x2a8] sm:$0xff]  ;;  %v96_v55 = vsub.s32 7, %v1829_v61 }
  0x1d   :  { %598 = vmatprep.mubr.f32.mxu0 %v279_v63  ;;  %678 = vmatprep.mubr.f32.mxu1 %v281_v0  ;;  %v384_v23 = vld [vmem:[%s2684_s1 + $0x218] sm:$0xff]  ;;  %v415_v24 = vld [vmem:[%s2684_s1 + $0x310] sm:$0xff]  ;;  %v1545_v25 = vpack.c.bf16 %v432_v16, %v431_v15  ;;  %v433_v33 = vld [vmem:[%s2684_s1 + $0x3a0] sm:$0xff]  ;;  %v2075_v60 = vrot.slane %v1897_v27, %v88_v36 }
  0x1e   :  { %1472 = vmatpush3.bf16.msra.mxu0 %v1471_v28  ;;  %v416_v26 = vld [vmem:[%s2684_s1 + $0x318] sm:$0xff]  ;;  %v401_v28 = vld [vmem:[%s2684_s1 + $0x2a0] sm:$0xff]  ;;  %v434_v35 = vld [vmem:[%s2684_s1 + $0x3a8] sm:$0xff]  ;;  %v1515_v40 = vpack.c.bf16 %v384_v23, %v383_v22 }
  0x1f   :  { %1504 = vmatpush3.bf16.msra.mxu1 %v1503_v46  ;;  %1474 = vmatprep.subr.bf16.mxu0 %v1473_v47  ;;  %v385_v42 = vld [vmem:[%s2684_s1 + $0x220] sm:$0xff]  ;;  %v386_v43 = vld [vmem:[%s2684_s1 + $0x228] sm:$0xff]  ;;  %v1547_v46 = vpack.c.bf16 %v416_v26, %v415_v24  ;;  %v1517_v47 = vpack.c.bf16 %v402_v31, %v401_v28  ;;  %v403_v49 = vld [vmem:[%s2684_s1 + $0x2b0] sm:$0xff]  ;;  %v1549_v51 = vpack.c.bf16 %v434_v35, %v433_v33 }
  0x20   :  { %1506 = vmatprep.subr.bf16.mxu1 %v1505_v52  ;;  %v417_v44 = vld [vmem:[%s2684_s1 + $0x320] sm:$0xff]  ;;  %v418_v48 = vld [vmem:[%s2684_s1 + $0x328] sm:$0xff]  ;;  %v404_v50 = vld [vmem:[%s2684_s1 + $0x2b8] sm:$0xff]  ;;  %v1519_v63 = vpack.c.bf16 %v386_v43, %v385_v42 }
  0x21   :  { %v435_v52 = vld [vmem:[%s2684_s1 + $0x3b0] sm:$0xff]  ;;  %v436_v53 = vld [vmem:[%s2684_s1 + $0x3b8] sm:$0xff]  ;;  %v36_v59 = vld [vmem:[%s2685_s0 + $0x68] sm:$0xff]  ;;  %v1551_v0 = vpack.c.bf16 %v418_v48, %v417_v44  ;;  %v1521_v1 = vpack.c.bf16 %v404_v50, %v403_v49 }
  0x22   :  { %1476 = vmatpush3.bf16.msra.mxu0 %v1475_v62  ;;  %v37_v54 = vld [vmem:[%s2685_s0 + $0x70] sm:$0xff]  ;;  %v2068_v57 = vld [vmem:[%s2684_s1 + $0x238] sm:$0xff]  ;;  %v2078_v62 = vrot.slane %v1906_v30, %v88_v36  ;;  %v39_v4 = vld [vmem:[%s2685_s0 + $0x80] sm:$0xff]  ;;  %v1553_v15 = vpack.c.bf16 %v436_v53, %v435_v52 }
  0x23   :  { %1508 = vmatpush3.bf16.msra.mxu1 %v1507_v2  ;;  %1510 = vmatprep.subr.bf16.mxu0 %v1509_v3  ;;  %v2063_v56 = vld [vmem:[%s2684_s1 + $0x230] sm:$0xff]  ;;  %v145_v58 = vmul.f32 %v1901_v29, %v37_v54  ;;  %v144_v3 = vmul.f32 %v1920_v34, %v36_v59  ;;  %v38_v5 = vld [vmem:[%s2685_s0 + $0x78] sm:$0xff]  ;;  %v406_v8 = vld [vmem:[%s2684_s1 + $0x2c8] sm:$0xff]  ;;  %v147_v10 = vmul.f32 %v1913_v32, %v39_v4 }
  0x24   :  { %1542 = vmatprep.subr.bf16.mxu1 %v1541_v7  ;;  %v2083_v2 = vld [vmem:[%s2684_s1 + $0x330] sm:$0xff]  ;;  %v420_v6 = vld [vmem:[%s2684_s1 + $0x338] sm:$0xff]  ;;  %v405_v7 = vld [vmem:[%s2684_s1 + $0x2c0] sm:$0xff]  ;;  %v1523_v16 = vpack.c.bf16 %v2068_v57, %v2063_v56 }
  0x25   :  { %599 = vmatmul.mubr.f32.vlgmr.msra.gmra.mrb[0].mxu0 %v278_v11  ;;  %v253_v9 = vadd.f32 %v1930_v37, %v145_v58  ;;  %v146_v11 = vmul.f32 %v1945_v41, %v38_v5  ;;  %v438_v22 = vld [vmem:[%s2684_s1 + $0x3c8] sm:$0xff]  ;;  %v255_v24 = vadd.f32 %v1934_v38, %v147_v10  ;;  %v49_v28 = vld [vmem:[%s2685_s0 + $0xd0] sm:$0xff]  ;;  %v1555_v31 = vpack.c.bf16 %v420_v6, %v2083_v2  ;;  %v389_v35 = vld [vmem:[%s2684_s1 + $0x240] sm:$0xff] }
  0x26   :  { %679 = vmatmul.mubr.f32.vlgmr.msra.gmra.mrb[0].mxu1 %v280_v18  ;;  %1512 = vmatpush3.bf16.msra.mxu0 %v1511_v19  ;;  %v252_v18 = vadd.f32 %v1938_v39, %v144_v3  ;;  %v50_v19 = vld [vmem:[%s2685_s0 + $0xd8] sm:$0xff]  ;;  %v1525_v33 = vpack.c.bf16 %v406_v8, %v405_v7  ;;  %v52_v42 = vld [vmem:[%s2685_s0 + $0xe8] sm:$0xff]  ;;  %v421_v44 = vld [vmem:[%s2684_s1 + $0x340] sm:$0xff] }
  0x27   :  { %1544 = vmatpush3.bf16.msra.mxu1 %v1543_v20  ;;  %1514 = vmatprep.subr.bf16.mxu0 %v1513_v21  ;;  %v2113_v20 = vrot.slane %v1897_v27, %v96_v55  ;;  %v437_v21 = vld [vmem:[%s2684_s1 + $0x3c0] sm:$0xff]  ;;  %v292_v23 = vmax.f32 %v253_v9, 0.0  ;;  %v158_v26 = vmul.f32 %v1901_v29, %v50_v19  ;;  %v390_v43 = vld [vmem:[%s2684_s1 + $0x248] sm:$0xff]  ;;  %v160_v49 = vmul.f32 %v1913_v32, %v52_v42  ;;  %v408_v52 = vld [vmem:[%s2684_s1 + $0x2d8] sm:$0xff] }
  0x28   :  { %1546 = vmatprep.subr.bf16.mxu1 %v1545_v25  ;;  %v254_v25 = vadd.f32 %v1952_v45, %v146_v11  ;;  %v291_v36 = vmax.f32 %v252_v18, 0.0  ;;  %v51_v29 = vld [vmem:[%s2685_s0 + $0xe0] sm:$0xff]  ;;  %v1557_v50 = vpack.c.bf16 %v438_v22, %v437_v21  ;;  %v439_v53 = vld [vmem:[%s2684_s1 + $0x3d0] sm:$0xff]  ;;  %v2161_v32 = vsub.s32 4, %v1829_v61  ;;  %v440_v56 = vld [vmem:[%s2684_s1 + $0x3d8] sm:$0xff] }
  0x29   :  { %v266_v48 = vadd.f32 %v1930_v37, %v158_v26  ;;  %603 = vmatprep.mubr.f32.mxu0 %v292_v23  ;;  %v159_v37 = vmul.f32 %v1945_v41, %v51_v29  ;;  %v268_v58 = vadd.f32 %v1934_v38, %v160_v49  ;;  %v28_v59 = vld [vmem:[%s2685_s0 + $0x28] sm:$0xff]  ;;  %v2176_v41 = vrot.slane %v1906_v30, %v96_v55  ;;  %v391_v5 = vld [vmem:[%s2684_s1 + $0x250] sm:$0xff]  ;;  %v392_v55 = vld [vmem:[%s2684_s1 + $0x258] sm:$0xff] }
  0x2a   :  { %1516 = vmatpush3.bf16.msra.mxu0 %v1515_v40  ;;  %v157_v40 = vmul.f32 %v1920_v34, %v49_v28  ;;  %v422_v34 = vld [vmem:[%s2684_s1 + $0x348] sm:$0xff]  ;;  %v136_v2 = vmul.f32 %v2075_v60, %v28_v59  ;;  %v423_v6 = vld [vmem:[%s2684_s1 + $0x350] sm:$0xff]  ;;  %v1561_v8 = vpack.c.bf16 %v440_v56, %v439_v53  ;;  %v424_v9 = vld [vmem:[%s2684_s1 + $0x358] sm:$0xff]  ;;  %v2203_v18 = vrot.slane %v1897_v27, %v2161_v32 }
  0x2b   :  { %1548 = vmatpush3.bf16.msra.mxu1 %v1547_v46  ;;  %1518 = vmatprep.subr.bf16.mxu0 %v1517_v47  ;;  %v294_v46 = vmax.f32 %v255_v24, 0.0  ;;  %v293_v47 = vmax.f32 %v254_v25, 0.0  ;;  %v305_v57 = vmax.f32 %v266_v48, 0.0  ;;  %v267_v38 = vadd.f32 %v1952_v45, %v159_v37  ;;  %v409_v10 = vld [vmem:[%s2684_s1 + $0x2e0] sm:$0xff]  ;;  %v410_v11 = vld [vmem:[%s2684_s1 + $0x2e8] sm:$0xff]  ;;  %v29_v29 = vld [vmem:[%s2685_s0 + $0x30] sm:$0xff] }
  0x2c   :  { %1550 = vmatprep.subr.bf16.mxu1 %v1549_v51  ;;  %v407_v51 = vld [vmem:[%s2684_s1 + $0x2d0] sm:$0xff]  ;;  %v265_v54 = vadd.f32 %v1938_v39, %v157_v40  ;;  %604 = vmatmul.mubr.f32.gmra.mrb[2].mxu0 %v291_v36  ;;  %v30_v39 = vld [vmem:[%s2685_s0 + $0x38] sm:$0xff]  ;;  %v1559_v3 = vpack.c.bf16 %v422_v34, %v421_v44  ;;  %v307_v7 = vmax.f32 %v268_v58, 0.0  ;;  %v441_v19 = vld [vmem:[%s2684_s1 + $0x3e0] sm:$0xff]  ;;  %v1531_v24 = vpack.c.bf16 %v392_v55, %v391_v5 }
  0x2d   :  { %683 = vmatprep.mubr.f32.mxu1 %v294_v46  ;;  %v1529_v4 = vpack.c.bf16 %v408_v52, %v407_v51  ;;  %v138_v45 = vmul.f32 %v2113_v20, %v30_v39  ;;  %608 = vmatprep.mubr.f32.mxu0 %v305_v57  ;;  %v442_v21 = vld [vmem:[%s2684_s1 + $0x3e8] sm:$0xff]  ;;  %v27_v23 = vld [vmem:[%s2685_s0 + $0x20] sm:$0xff]  ;;  %v412_v44 = vld [vmem:[%s2684_s1 + $0x2f8] sm:$0xff]  ;;  %v2242_v46 = vrot.slane %v1906_v30, %v2161_v32 }
  0x2e   :  { %1520 = vmatpush3.bf16.msra.mxu0 %v1519_v63  ;;  %v92_v63 = vsub.s32 6, %v1829_v61  ;;  %684 = vmatmul.mubr.f32.gmra.mrb[2].mxu1 %v293_v47  ;;  %v393_v25 = vld [vmem:[%s2684_s1 + $0x260] sm:$0xff]  ;;  %v394_v26 = vld [vmem:[%s2684_s1 + $0x268] sm:$0xff]  ;;  %v135_v34 = vmul.f32 %v2203_v18, %v27_v23  ;;  %v41_v47 = vld [vmem:[%s2685_s0 + $0x90] sm:$0xff] }
  0x2f   :  { %1552 = vmatpush3.bf16.msra.mxu1 %v1551_v0  ;;  %1522 = vmatprep.subr.bf16.mxu0 %v1521_v1  ;;  %v1527_v0 = vpack.c.bf16 %v390_v43, %v389_v35  ;;  %v304_v1 = vmax.f32 %v265_v54, 0.0  ;;  %v246_v22 = vadd.f32 %v2176_v41, %v138_v45  ;;  %v1533_v35 = vpack.c.bf16 %v410_v11, %v409_v10  ;;  %v425_v36 = vld [vmem:[%s2684_s1 + $0x360] sm:$0xff]  ;;  %v426_v40 = vld [vmem:[%s2684_s1 + $0x368] sm:$0xff]  ;;  %v411_v43 = vld [vmem:[%s2684_s1 + $0x2f0] sm:$0xff] }
  0x30   :  { %1554 = vmatprep.subr.bf16.mxu1 %v1553_v15  ;;  %v306_v15 = vmax.f32 %v267_v38, 0.0  ;;  %688 = vmatprep.mubr.f32.mxu1 %v307_v7  ;;  %v443_v48 = vld [vmem:[%s2684_s1 + $0x3f0] sm:$0xff]  ;;  %v444_v49 = vld [vmem:[%s2684_s1 + $0x3f8] sm:$0xff]  ;;  %v1535_v51 = vpack.c.bf16 %v394_v26, %v393_v25  ;;  %v2261_v54 = vrot.slane %v1906_v30, %v92_v63  ;;  %v40_v37 = vld [vmem:[%s2685_s0 + $0x88] sm:$0xff]  ;;  %v1567_v57 = vpack.c.bf16 %v426_v40, %v425_v36 }
  0x31   :  { %609 = vmatmul.mubr.f32.gmra.mrb[4].mxu0 %v304_v1  ;;  %v285_v42 = vmax.f32 %v246_v22, 0.0  ;;  %v396_v52 = vld [vmem:[%s2684_s1 + $0x278] sm:$0xff]  ;;  %v43_v56 = vld [vmem:[%s2685_s0 + $0xa0] sm:$0xff]  ;;  %v1537_v58 = vpack.c.bf16 %v412_v44, %v411_v43  ;;  %v427_v59 = vld [vmem:[%s2684_s1 + $0x370] sm:$0xff]  ;;  %v149_v39 = vmul.f32 %v2075_v60, %v41_v47  ;;  %v243_v1 = vadd.f32 %v2242_v46, %v135_v34 }
  0x32   :  { %1524 = vmatpush3.bf16.msra.mxu0 %v1523_v16  ;;  %v244_v16 = vadd.f32 %v2078_v62, %v136_v2  ;;  %689 = vmatmul.mubr.f32.gmra.mrb[4].mxu1 %v306_v15  ;;  %v428_v30 = vld [vmem:[%s2684_s1 + $0x378] sm:$0xff]  ;;  %v461_v38 = vld [vmem:[%s2684_s1 + $0x480] sm:$0xff]  ;;  %v462_v2 = vld [vmem:[%s2684_s1 + $0x488] sm:$0xff]  ;;  %v148_v55 = vmul.f32 %v2203_v18, %v40_v37 }
  0x33   :  { %1556 = vmatpush3.bf16.msra.mxu1 %v1555_v31  ;;  %1526 = vmatprep.subr.bf16.mxu0 %v1525_v33  ;;  %v2222_v31 = vrot.slane %v1897_v27, %v92_v63  ;;  %v1563_v33 = vpack.c.bf16 %v424_v9, %v423_v6  ;;  %v1565_v27 = vpack.c.bf16 %v442_v21, %v441_v19  ;;  %v42_v63 = vld [vmem:[%s2685_s0 + $0x98] sm:$0xff]  ;;  %v494_v5 = vld [vmem:[%s2684_s1 + $0x588] sm:$0xff]  ;;  %v53_v10 = vld [vmem:[%s2685_s0 + $0xf0] sm:$0xff] }
  0x34   :  { %1558 = vmatprep.subr.bf16.mxu1 %v1557_v50  ;;  %v283_v28 = vmax.f32 %v244_v16, 0.0  ;;  %v395_v50 = vld [vmem:[%s2684_s1 + $0x270] sm:$0xff]  ;;  %838 = vmatprep.mubr.f32.mxu1 %v285_v42  ;;  %v151_v6 = vmul.f32 %v2113_v20, %v43_v56  ;;  %v1571_v45 = vpack.c.bf16 %v428_v30, %v427_v59  ;;  %v56_v11 = vld [vmem:[%s2685_s0 + $0x108] sm:$0xff]  ;;  %v1573_v15 = vpack.c.bf16 %v462_v2, %v461_v38  ;;  %v445_v16 = vld [vmem:[%s2684_s1 + $0x400] sm:$0xff] }
  0x35   :  { %v137_v53 = vmul.f32 %v2222_v31, %v29_v29  ;;  %v1539_v7 = vpack.c.bf16 %v396_v52, %v395_v50  ;;  %v150_v9 = vmul.f32 %v2222_v31, %v42_v63  ;;  %v446_v19 = vld [vmem:[%s2684_s1 + $0x408] sm:$0xff]  ;;  %v257_v21 = vadd.f32 %v2078_v62, %v149_v39  ;;  %v55_v23 = vld [vmem:[%s2685_s0 + $0x100] sm:$0xff]  ;;  %v495_v36 = vld [vmem:[%s2684_s1 + $0x590] sm:$0xff] }
  0x36   :  { %1528 = vmatpush3.bf16.msra.mxu0 %v1527_v0  ;;  %758 = vmatprep.mubr.f32.mxu0 %v283_v28  ;;  %v1569_v0 = vpack.c.bf16 %v444_v49, %v443_v48  ;;  %v477_v26 = vld [vmem:[%s2684_s1 + $0x500] sm:$0xff]  ;;  %v478_v28 = vld [vmem:[%s2684_s1 + $0x508] sm:$0xff]  ;;  %v496_v40 = vld [vmem:[%s2684_s1 + $0x598] sm:$0xff]  ;;  %v259_v42 = vadd.f32 %v2176_v41, %v151_v6  ;;  %v161_v29 = vmul.f32 %v2203_v18, %v53_v10 }
  0x37   :  { %1560 = vmatpush3.bf16.msra.mxu1 %v1559_v3  ;;  %1530 = vmatprep.subr.bf16.mxu0 %v1529_v4  ;;  %v54_v3 = vld [vmem:[%s2685_s0 + $0xf8] sm:$0xff]  ;;  %v493_v4 = vld [vmem:[%s2684_s1 + $0x580] sm:$0xff]  ;;  %v1575_v44 = vpack.c.bf16 %v446_v19, %v445_v16  ;;  %v258_v34 = vadd.f32 %v2261_v54, %v150_v9  ;;  %v163_v47 = vmul.f32 %v2222_v31, %v55_v23  ;;  %v296_v49 = vmax.f32 %v257_v21, 0.0  ;;  %v447_v50 = vld [vmem:[%s2684_s1 + $0x410] sm:$0xff] }
  0x38   :  { %1562 = vmatprep.subr.bf16.mxu1 %v1561_v8  ;;  %v245_v8 = vadd.f32 %v2261_v54, %v137_v53  ;;  %v162_v22 = vmul.f32 %v2075_v60, %v54_v3  ;;  %v1605_v25 = vpack.c.bf16 %v494_v5, %v493_v4  ;;  %v256_v60 = vadd.f32 %v2242_v46, %v148_v55  ;;  %v448_v18 = vld [vmem:[%s2684_s1 + $0x418] sm:$0xff]  ;;  %v465_v37 = vld [vmem:[%s2684_s1 + $0x4a0] sm:$0xff]  ;;  %v466_v56 = vld [vmem:[%s2684_s1 + $0x4a8] sm:$0xff] }
  0x39   :  { %v1607_v48 = vpack.c.bf16 %v478_v28, %v477_v26  ;;  %v1609_v52 = vpack.c.bf16 %v496_v40, %v495_v36  ;;  %v480_v53 = vld [vmem:[%s2684_s1 + $0x518] sm:$0xff]  ;;  %v497_v59 = vld [vmem:[%s2684_s1 + $0x5a0] sm:$0xff]  ;;  %v498_v30 = vld [vmem:[%s2684_s1 + $0x5a8] sm:$0xff]  ;;  %v271_v2 = vadd.f32 %v2261_v54, %v163_v47 }
  0x3a   :  { %1532 = vmatpush3.bf16.msra.mxu0 %v1531_v24  ;;  %v282_v24 = vmax.f32 %v243_v1, 0.0  ;;  %v284_v43 = vmax.f32 %v245_v8, 0.0  ;;  %v449_v63 = vld [vmem:[%s2684_s1 + $0x420] sm:$0xff]  ;;  %v297_v1 = vmax.f32 %v258_v34, 0.0  ;;  %v467_v5 = vld [vmem:[%s2684_s1 + $0x4b0] sm:$0xff]  ;;  %v468_v55 = vld [vmem:[%s2684_s1 + $0x4b8] sm:$0xff]  ;;  %v1613_v54 = vpack.c.bf16 %v498_v30, %v497_v59 }
  0x3b   :  { %1564 = vmatpush3.bf16.msra.mxu1 %v1563_v33  ;;  %1534 = vmatprep.subr.bf16.mxu0 %v1533_v35  ;;  %v463_v33 = vld [vmem:[%s2684_s1 + $0x490] sm:$0xff]  ;;  %v464_v35 = vld [vmem:[%s2684_s1 + $0x498] sm:$0xff]  ;;  %v481_v38 = vld [vmem:[%s2684_s1 + $0x520] sm:$0xff] }
  0x3c   :  { %1566 = vmatprep.subr.bf16.mxu1 %v1565_v27  ;;  %v164_v27 = vmul.f32 %v2113_v20, %v56_v11  ;;  %v479_v20 = vld [vmem:[%s2684_s1 + $0x510] sm:$0xff]  ;;  %v1577_v31 = vpack.c.bf16 %v464_v35, %v463_v33  ;;  %v2400_v9 = vld [vmem:[%s2684_s1 + $0x438] sm:$0xff]  ;;  %v469_v23 = vld [vmem:[%s2684_s1 + $0x4c0] sm:$0xff] }
  0x3d   :  { %v1611_v3 = vpack.c.bf16 %v480_v53, %v479_v20  ;;  %v499_v6 = vld [vmem:[%s2684_s1 + $0x5b0] sm:$0xff]  ;;  %v2410_v16 = vld [vmem:[%s2684_s1 + $0x538] sm:$0xff]  ;;  %v32_v33 = vld [vmem:[%s2685_s0 + $0x48] sm:$0xff] }
  0x3e   :  { %1536 = vmatpush3.bf16.msra.mxu0 %v1535_v51  ;;  %v270_v51 = vadd.f32 %v2078_v62, %v162_v22  ;;  %v269_v62 = vadd.f32 %v2242_v46, %v161_v29  ;;  %v272_v39 = vadd.f32 %v2176_v41, %v164_v27  ;;  %v450_v46 = vld [vmem:[%s2684_s1 + $0x428] sm:$0xff]  ;;  %v2395_v8 = vld [vmem:[%s2684_s1 + $0x430] sm:$0xff]  ;;  %v310_v22 = vmax.f32 %v271_v2, 0.0  ;;  %v34_v29 = vld [vmem:[%s2685_s0 + $0x58] sm:$0xff] }
  0x3f   :  { %1568 = vmatpush3.bf16.msra.mxu1 %v1567_v57  ;;  %1538 = vmatprep.subr.bf16.mxu0 %v1537_v58  ;;  %v295_v57 = vmax.f32 %v256_v60, 0.0  ;;  %v298_v58 = vmax.f32 %v259_v42, 0.0  ;;  %v482_v41 = vld [vmem:[%s2684_s1 + $0x528] sm:$0xff]  ;;  %v1583_v19 = vpack.c.bf16 %v450_v46, %v449_v63  ;;  %v1587_v28 = vpack.c.bf16 %v2400_v9, %v2395_v8  ;;  %v31_v47 = vld [vmem:[%s2685_s0 + $0x40] sm:$0xff]  ;;  %v503_v30 = vld [vmem:[%s2684_s1 + $0x5d0] sm:$0xff] }
  0x40   :  { %1570 = vmatprep.subr.bf16.mxu1 %v1569_v0  ;;  %v1579_v0 = vpack.c.bf16 %v448_v18, %v447_v50  ;;  %v309_v4 = vmax.f32 %v270_v51, 0.0  ;;  %v308_v10 = vmax.f32 %v269_v62, 0.0  ;;  %v311_v11 = vmax.f32 %v272_v39, 0.0  ;;  %v2426_v60 = vld [vmem:[%s2686_s3 + $0x8] sm:$0x1f] }
  0x41   :  { %v1615_v21 = vpack.c.bf16 %v482_v41, %v481_v38  ;;  %v2431_v35 = vld [vmem:[%s2687_s4 + $0x8] sm:$0x1f]  ;;  %v2437_v40 = vrot.slane %v2426_v60, %v1862_v12  ;;  %v2454_v34 = vrot.slane %v2426_v60, %v1865_v13  ;;  %v101_v50 = vrot.slane %v2426_v60, %v1868_v14  ;;  %v455_v41 = vld [vmem:[%s2684_s1 + $0x450] sm:$0xff] }
  0x42   :  { %1540 = vmatpush3.bf16.msra.mxu0 %v1539_v7  ;;  %v1581_v7 = vpack.c.bf16 %v466_v56, %v465_v37  ;;  %v2441_v42 = vrot.slane %v2431_v35, %v1862_v12  ;;  %v2458_v12 = vrot.slane %v2431_v35, %v1865_v13  ;;  %v209_v18 = vrot.slane %v2431_v35, %v1868_v14  ;;  %v33_v13 = vld [vmem:[%s2685_s0 + $0x50] sm:$0xff]  ;;  %v44_v20 = vld [vmem:[%s2685_s0 + $0xa8] sm:$0xff] }
  0x43   :  { %1572 = vmatpush3.bf16.msra.mxu1 %v1571_v45  ;;  %1574 = vmatprep.subr.bf16.mxu0 %v1573_v15  ;;  %v500_v45 = vld [vmem:[%s2684_s1 + $0x5b8] sm:$0xff]  ;;  %v2405_v15 = vld [vmem:[%s2684_s1 + $0x530] sm:$0xff]  ;;  %v454_v51 = vld [vmem:[%s2684_s1 + $0x448] sm:$0xff]  ;;  %v109_v53 = vrot.slane %v2426_v60, %v1877_v17  ;;  %v217_v37 = vrot.slane %v2431_v35, %v1877_v17  ;;  %v139_v59 = vmul.f32 %v101_v50, %v31_v47 }
  0x44   :  { %1606 = vmatprep.subr.bf16.mxu1 %v1605_v25  ;;  %v1585_v25 = vpack.c.bf16 %v468_v55, %v467_v5  ;;  %v1617_v26 = vpack.c.bf16 %v500_v45, %v499_v6  ;;  %v1619_v36 = vpack.c.bf16 %v2410_v16, %v2405_v15  ;;  %v486_v14 = vld [vmem:[%s2684_s1 + $0x548] sm:$0xff]  ;;  %v504_v17 = vld [vmem:[%s2684_s1 + $0x5d8] sm:$0xff]  ;;  %v487_v6 = vld [vmem:[%s2684_s1 + $0x550] sm:$0xff] }
  0x45   :  { %759 = vmatmul.mubr.f32.vlgmr.msra.gmra.mrb[6].mxu0 %v282_v24  ;;  %v470_v24 = vld [vmem:[%s2684_s1 + $0x4c8] sm:$0xff]  ;;  %v141_v63 = vmul.f32 %v109_v53, %v33_v13  ;;  %v456_v55 = vld [vmem:[%s2684_s1 + $0x458] sm:$0xff]  ;;  %v1625_v9 = vpack.c.bf16 %v504_v17, %v503_v30  ;;  %v59_v16 = vld [vmem:[%s2685_s0 + $0x120] sm:$0xff] }
  0x46   :  { %839 = vmatmul.mubr.f32.vlgmr.msra.gmra.mrb[6].mxu1 %v284_v43  ;;  %1576 = vmatpush3.bf16.msra.mxu0 %v1575_v44  ;;  %v1589_v27 = vpack.c.bf16 %v470_v24, %v469_v23  ;;  %v501_v43 = vld [vmem:[%s2684_s1 + $0x5c0] sm:$0xff]  ;;  %v502_v44 = vld [vmem:[%s2684_s1 + $0x5c8] sm:$0xff]  ;;  %v1595_v23 = vpack.c.bf16 %v456_v55, %v455_v41  ;;  %v475_v47 = vld [vmem:[%s2684_s1 + $0x4f0] sm:$0xff]  ;;  %v1660_v55 = vmov 0.0|0.0  }
  0x47   :  { %1608 = vmatpush3.bf16.msra.mxu1 %v1607_v48  ;;  %763 = vmatprep.mubr.f32.mxu0 %v296_v49  ;;  %v453_v48 = vld [vmem:[%s2684_s1 + $0x440] sm:$0xff]  ;;  %v140_v49 = vmul.f32 %v2437_v40, %v32_v33  ;;  %v1621_v56 = vpack.c.bf16 %v502_v44, %v501_v43  ;;  %v2525_v45 = vadd.f32 %v217_v37, %v141_v63  ;;  %v458_v33 = vld [vmem:[%s2684_s1 + $0x468] sm:$0xff] }
  0x48   :  { %1578 = vmatprep.subr.bf16.mxu0 %v1577_v31  ;;  %1610 = vmatprep.subr.bf16.mxu1 %v1609_v52  ;;  %v485_v31 = vld [vmem:[%s2684_s1 + $0x540] sm:$0xff]  ;;  %v142_v52 = vmul.f32 %v2454_v34, %v34_v29  ;;  %v1591_v46 = vpack.c.bf16 %v454_v51, %v453_v48  ;;  %v490_v29 = vld [vmem:[%s2684_s1 + $0x568] sm:$0xff]  ;;  %v167_v43 = vmul.f32 %v109_v53, %v59_v16  ;;  %v476_v48 = vld [vmem:[%s2684_s1 + $0x4f8] sm:$0xff] }
  0x49   :  { %764 = vmatmul.mubr.f32.gmra.mrb[8].mxu0 %v295_v57  ;;  %843 = vmatprep.mubr.f32.mxu1 %v298_v58  ;;  %v471_v57 = vld [vmem:[%s2684_s1 + $0x4d0] sm:$0xff]  ;;  %v472_v58 = vld [vmem:[%s2684_s1 + $0x4d8] sm:$0xff]  ;;  %v248_v62 = vadd.f32 %v2441_v42, %v140_v49  ;;  %v1623_v38 = vpack.c.bf16 %v486_v14, %v485_v31  ;;  %v47_v51 = vld [vmem:[%s2685_s0 + $0xc0] sm:$0xff]  ;;  %v1601_v14 = vpack.c.bf16 %v476_v48, %v475_v47 }
  0x4a   :  { %1580 = vmatpush3.bf16.msra.mxu0 %v1579_v0  ;;  %844 = vmatmul.mubr.f32.gmra.mrb[8].mxu1 %v297_v1  ;;  %v250_v39 = vadd.f32 %v2458_v12, %v142_v52  ;;  %v152_v0 = vmul.f32 %v101_v50, %v44_v20  ;;  %v46_v1 = vld [vmem:[%s2685_s0 + $0xb8] sm:$0xff]  ;;  %v1593_v5 = vpack.c.bf16 %v472_v58, %v471_v57  ;;  %v45_v49 = vld [vmem:[%s2685_s0 + $0xb0] sm:$0xff]  ;;  %v60_v17 = vld [vmem:[%s2685_s0 + $0x128] sm:$0xff] }
  0x4b   :  { %1612 = vmatpush3.bf16.msra.mxu1 %v1611_v3  ;;  %768 = vmatprep.mubr.f32.mxu0 %v309_v4  ;;  %v287_v2 = vmax.f32 %v248_v62, 0.0  ;;  %v2511_v3 = vadd.f32 %v209_v18, %v139_v59  ;;  %v57_v4 = vld [vmem:[%s2685_s0 + $0x110] sm:$0xff]  ;;  %v154_v15 = vmul.f32 %v109_v53, %v46_v1  ;;  %v2575_v13 = vadd.f32 %v217_v37, %v167_v43  ;;  %v460_v53 = vld [vmem:[%s2684_s1 + $0x478] sm:$0xff]  ;;  %v509_v63 = vld [vmem:[%s2684_s1 + $0x600] sm:$0xff] }
  0x4c   :  { %1582 = vmatprep.subr.bf16.mxu0 %v1581_v7  ;;  %1614 = vmatprep.subr.bf16.mxu1 %v1613_v54  ;;  %v488_v7 = vld [vmem:[%s2684_s1 + $0x558] sm:$0xff]  ;;  %v289_v54 = vmax.f32 %v250_v39, 0.0  ;;  %v2527_v8 = vadd.f32 %v209_v18, %v152_v0  ;;  %v459_v52 = vld [vmem:[%s2684_s1 + $0x470] sm:$0xff]  ;;  %v155_v59 = vmul.f32 %v2454_v34, %v47_v51  ;;  %v510_v0 = vld [vmem:[%s2684_s1 + $0x608] sm:$0xff]  ;;  %v225_v16 = vrot.slane %v2431_v35, %v2161_v32 }
  0x4d   :  { %769 = vmatmul.mubr.f32.gmra.mrb[10].mxu0 %v308_v10  ;;  %848 = vmatprep.mubr.f32.mxu1 %v311_v11  ;;  %v473_v10 = vld [vmem:[%s2684_s1 + $0x4e0] sm:$0xff]  ;;  %v474_v11 = vld [vmem:[%s2684_s1 + $0x4e8] sm:$0xff]  ;;  %v1627_v24 = vpack.c.bf16 %v488_v7, %v487_v6  ;;  %v491_v57 = vld [vmem:[%s2684_s1 + $0x570] sm:$0xff]  ;;  %v1603_v30 = vpack.c.bf16 %v460_v53, %v459_v52 }
  0x4e   :  { %1584 = vmatpush3.bf16.msra.mxu0 %v1583_v19  ;;  %849 = vmatmul.mubr.f32.gmra.mrb[10].mxu1 %v310_v22  ;;  %v505_v19 = vld [vmem:[%s2684_s1 + $0x5e0] sm:$0xff]  ;;  %v165_v22 = vmul.f32 %v101_v50, %v57_v4  ;;  %v507_v50 = vld [vmem:[%s2684_s1 + $0x5f0] sm:$0xff]  ;;  %v492_v58 = vld [vmem:[%s2684_s1 + $0x578] sm:$0xff]  ;;  %v263_v41 = vadd.f32 %v2458_v12, %v155_v59  ;;  %v288_v4 = vmax.f32 %v2525_v45, 0.0 }
  0x4f   :  { %1616 = vmatpush3.bf16.msra.mxu1 %v1615_v21  ;;  %1586 = vmatprep.subr.bf16.mxu0 %v1585_v25  ;;  %v506_v21 = vld [vmem:[%s2684_s1 + $0x5e8] sm:$0xff]  ;;  %v457_v25 = vld [vmem:[%s2684_s1 + $0x460] sm:$0xff]  ;;  %v58_v62 = vld [vmem:[%s2685_s0 + $0x118] sm:$0xff]  ;;  %v1635_v39 = vpack.c.bf16 %v492_v58, %v491_v57 }
  0x50   :  { %1618 = vmatprep.subr.bf16.mxu1 %v1617_v26  ;;  %918 = vmatprep.mubr.f32.mxu0 %v287_v2  ;;  %v2547_v26 = vadd.f32 %v217_v37, %v154_v15  ;;  %v1629_v44 = vpack.c.bf16 %v506_v21, %v505_v19  ;;  %v1599_v20 = vpack.c.bf16 %v458_v33, %v457_v25  ;;  %v511_v7 = vld [vmem:[%s2684_s1 + $0x610] sm:$0xff]  ;;  %v302_v45 = vmax.f32 %v263_v41, 0.0  ;;  %v35_v15 = vld [vmem:[%s2685_s0 + $0x60] sm:$0xff] }
  0x51   :  { %998 = vmatprep.mubr.f32.mxu1 %v289_v54  ;;  %v153_v37 = vmul.f32 %v2437_v40, %v45_v49  ;;  %v168_v2 = vmul.f32 %v2454_v34, %v60_v17  ;;  %v117_v34 = vrot.slane %v2426_v60, %v2161_v32  ;;  %v299_v54 = vmax.f32 %v2527_v8, 0.0  ;;  %v513_v60 = vld [vmem:[%s2684_s1 + $0x620] sm:$0xff]  ;;  %v48_v8 = vld [vmem:[%s2685_s0 + $0xc8] sm:$0xff]  ;;  %v516_v32 = vld [vmem:[%s2684_s1 + $0x638] sm:$0xff] }
  0x52   :  { %1588 = vmatpush3.bf16.msra.mxu0 %v1587_v28  ;;  %v1597_v28 = vpack.c.bf16 %v474_v11, %v473_v10  ;;  %v301_v11 = vmax.f32 %v2547_v26, 0.0  ;;  %v515_v26 = vld [vmem:[%s2684_s1 + $0x630] sm:$0xff] }
  0x53   :  { %1620 = vmatpush3.bf16.msra.mxu1 %v1619_v36  ;;  %1590 = vmatprep.subr.bf16.mxu0 %v1589_v27  ;;  %v489_v36 = vld [vmem:[%s2684_s1 + $0x560] sm:$0xff]  ;;  %v2558_v27 = vadd.f32 %v209_v18, %v165_v22  ;;  %v508_v18 = vld [vmem:[%s2684_s1 + $0x5f8] sm:$0xff]  ;;  %v261_v1 = vadd.f32 %v2441_v42, %v153_v37  ;;  %v143_v22 = vmul.f32 %v117_v34, %v35_v15  ;;  %v61_v35 = vld [vmem:[%s2685_s0 + $0x130] sm:$0xff] }
  0x54   :  { %1622 = vmatprep.subr.bf16.mxu1 %v1621_v56  ;;  %v1631_v31 = vpack.c.bf16 %v490_v29, %v489_v36  ;;  %v1633_v56 = vpack.c.bf16 %v508_v18, %v507_v50  ;;  %v156_v25 = vmul.f32 %v117_v34, %v48_v8  ;;  %v1647_v33 = vpack.c.bf16 %v516_v32, %v515_v26  ;;  %v1158_v18 = vld [vmem:[%s2688_s2] ss:$0 sm:$0xff] }
  0x55   :  { %v300_v6 = vmax.f32 %v261_v1, 0.0  ;;  %v312_v19 = vmax.f32 %v2558_v27, 0.0  ;;  %v169_v29 = vmul.f32 %v117_v34, %v61_v35  ;;  %v1662_v27 = vmov 0.0  }
  0x56   :  { %1592 = vmatpush3.bf16.msra.mxu0 %v1591_v46  ;;  %v166_v46 = vmul.f32 %v2437_v40, %v58_v62  ;;  %v512_v40 = vld [vmem:[%s2684_s1 + $0x618] sm:$0xff]  ;;  %v264_v36 = vadd.f32 %v225_v16, %v156_v25 }
  0x57   :  { %1624 = vmatpush3.bf16.msra.mxu1 %v1623_v38  ;;  %1594 = vmatprep.subr.bf16.mxu0 %v1593_v5  ;;  %v286_v38 = vmax.f32 %v2511_v3, 0.0  ;;  %v1638_v5 = vpack.c.bf16 %v510_v0, %v509_v63  ;;  %v1641_v10 = vpack.c.bf16 %v512_v40, %v511_v7  ;;  %v277_v47 = vadd.f32 %v225_v16, %v169_v29 }
  0x58   :  { %1626 = vmatprep.subr.bf16.mxu1 %v1625_v9  ;;  %v274_v3 = vadd.f32 %v2441_v42, %v166_v46  ;;  %v276_v9 = vadd.f32 %v2458_v12, %v168_v2  ;;  %v514_v12 = vld [vmem:[%s2684_s1 + $0x628] sm:$0xff] }
  0x59   :  { %v316_v48 = vmax.f32 %v277_v47, 0.0 }
  0x5a   :  { %1596 = vmatpush3.bf16.msra.mxu0 %v1595_v23  ;;  %v313_v42 = vmax.f32 %v274_v3, 0.0  ;;  %v315_v21 = vmax.f32 %v276_v9, 0.0  ;;  %v1644_v23 = vpack.c.bf16 %v514_v12, %v513_v60 }
  0x5b   :  { %1628 = vmatpush3.bf16.msra.mxu1 %v1627_v24  ;;  %1598 = vmatprep.subr.bf16.mxu0 %v1597_v28  ;;  %v314_v24 = vmax.f32 %v2575_v13, 0.0  ;;  %v251_v28 = vadd.f32 %v225_v16, %v143_v22 }
  0x5c   :  { %1630 = vmatprep.subr.bf16.mxu1 %v1629_v44  ;;  %v303_v44 = vmax.f32 %v264_v36, 0.0 }
  0x5d   :  { %v290_v43 = vmax.f32 %v251_v28, 0.0 }
  0x5e   :  { %1600 = vmatpush3.bf16.msra.mxu0 %v1599_v20 }
  0x5f   :  { %1632 = vmatpush3.bf16.msra.mxu1 %v1631_v31  ;;  %1602 = vmatprep.subr.bf16.mxu0 %v1601_v14 }
  0x60   :  { %1634 = vmatprep.subr.bf16.mxu1 %v1633_v56 }
  0x62   :  { %1604 = vmatpush3.bf16.msra.mxu0 %v1603_v30 }
  0x63   :  { %1636 = vmatpush3.bf16.msra.mxu1 %v1635_v39  ;;  %1637 = vmatprep.subr.bf16.mxu0 %v1660_v55 }
  0x64   :  { %1649 = vmatprep.subr.bf16.mxu1 %v1660_v55 }
  0x65   :  { %919 = vmatmul.mubr.f32.vlgmr.msra.gmra.mrb[12].mxu0 %v286_v38 }
  0x66   :  { %999 = vmatmul.mubr.f32.vlgmr.msra.gmra.mrb[12].mxu1 %v288_v4  ;;  %1639 = vmatpush3.bf16.msra.mxu0 %v1638_v5 }
  0x67   :  { %1653 = vmatpush3.bf16.msra.mxu1 %v1638_v5  ;;  %923 = vmatprep.mubr.f32.mxu0 %v300_v6 }
  0x68   :  { %1640 = vmatprep.subr.bf16.mxu0 %v1660_v55  ;;  %1650 = vmatprep.subr.bf16.mxu1 %v1660_v55 }
  0x69   :  { %924 = vmatmul.mubr.f32.gmra.mrb[14].mxu0 %v299_v54  ;;  %1003 = vmatprep.mubr.f32.mxu1 %v302_v45 }
  0x6a   :  { %1642 = vmatpush3.bf16.msra.mxu0 %v1641_v10  ;;  %1004 = vmatmul.mubr.f32.gmra.mrb[14].mxu1 %v301_v11 }
  0x6b   :  { %1654 = vmatpush3.bf16.msra.mxu1 %v1641_v10  ;;  %928 = vmatprep.mubr.f32.mxu0 %v313_v42 }
  0x6c   :  { %1643 = vmatprep.subr.bf16.mxu0 %v1660_v55  ;;  %1651 = vmatprep.subr.bf16.mxu1 %v1660_v55 }
  0x6d   :  { %929 = vmatmul.mubr.f32.gmra.mrb[16].mxu0 %v312_v19  ;;  %1008 = vmatprep.mubr.f32.mxu1 %v315_v21 }
  0x6e   :  { %1645 = vmatpush3.bf16.msra.mxu0 %v1644_v23  ;;  %1009 = vmatmul.mubr.f32.gmra.mrb[16].mxu1 %v314_v24 }
  0x6f   :  { %1655 = vmatpush3.bf16.msra.mxu1 %v1644_v23  ;;  %1646 = vmatprep.subr.bf16.mxu0 %v1660_v55 }
  0x70   :  { %1652 = vmatprep.subr.bf16.mxu1 %v1660_v55  ;;  %1436 = vmatprep.mubr.msk.f32.mxu0 %vm1661_vm0, %v1662_v27 }
  0x71   :  { %1439 = vmatprep.mubr.msk.f32.mxu1 %vm1661_vm0, %v1662_v27 }
  0x72   :  { %1648 = vmatpush3.bf16.msra.mxu0 %v1647_v33 }
  0x73   :  { %1656 = vmatpush3.bf16.msra.mxu1 %v1647_v33 }
  0x75   :  { %1437 = vmatmul.mubr.msk.f32.vlgmr.msra.gmra.mrb[18].mxu0 %vm524_vm1, %v290_v43 }
  0x76   :  { %1440 = vmatmul.mubr.msk.f32.vlgmr.msra.gmra.mrb[18].mxu1 %vm524_vm1, %v303_v44 }
  0x77   :  { %1442 = vmatprep.mubr.msk.f32.mxu1 %vm1661_vm0, %v1662_v27 }
  0x7a   :  { %1443 = vmatmul.mubr.msk.f32.gmra.mrb[20].mxu1 %vm524_vm1, %v316_v48 }
  0xf8   :  { %v1195_v49 = vpop.f32.mrb[0].mxu0 }
  0xf9   :  { %v1236_v50 = vpop.f32.mrb[0].mxu1  ;;  %v1196_v13 = vpop.f32.mrb[1].mxu0 }
  0xfa   :  { %v1197_v20 = vadd.f32 %v1196_v13, %v1195_v49  ;;  %v1237_v51 = vpop.f32.mrb[1].mxu1 }
  0xfb   :  { %v1238_v31 = vadd.f32 %v1237_v51, %v1236_v50 }
  0xfc   :  { %v601_v14 = vadd.f32 %v1197_v20, %v1158_v18 }
  0xfe   :  { %v681_v52 = vadd.f32 %v1238_v31, %v601_v14 }
  0xff   :  { %v1198_v53 = vpop.f32.mrb[2].mxu0 }
 0x100   :  { %v1199_v37 = vpop.f32.mrb[3].mxu0 }
 0x101   :  { %v1239_v56 = vpop.f32.mrb[2].mxu1  ;;  %v1200_v57 = vadd.f32 %v1199_v37, %v1198_v53 }
 0x102   :  { %v1240_v58 = vpop.f32.mrb[3].mxu1 }
 0x103   :  { %v1241_v62 = vadd.f32 %v1240_v58, %v1239_v56  ;;  %v606_v59 = vadd.f32 %v1200_v57, %v1158_v18  ;;  %v1100_v56 = vadd.s32 16, %v1829_v61 }
 0x104   :  { %v1201_v30 = vpop.f32.mrb[4].mxu0 }
 0x105   :  { %v1202_v17 = vpop.f32.mrb[5].mxu0  ;;  %v1242_v39 = vpop.f32.mrb[4].mxu1  ;;  %v686_v63 = vadd.f32 %v1241_v62, %v606_v59  ;;  %vm1108_vm2 = vcmp.lt.s32.totalorder %v1100_v56, 18 }
 0x106   :  { %v1203_v0 = vadd.f32 %v1202_v17, %v1201_v30  ;;  %v1243_v1 = vpop.f32.mrb[5].mxu1 }
 0x107   :  { %v1244_v46 = vadd.f32 %v1243_v1, %v1242_v39 }
 0x108   :  { %v611_v38 = vadd.f32 %v1203_v0, %v1158_v18 }
 0x10a   :  { %v691_v41 = vadd.f32 %v1244_v46, %v611_v38 }
 0x118   :  { %v1277_v2 = vpop.f32.mrb[6].mxu0 }
 0x119   :  { %v1318_v4 = vpop.f32.mrb[6].mxu1  ;;  %v1278_v5 = vpop.f32.mrb[7].mxu0 }
 0x11a   :  { %v1279_v55 = vadd.f32 %v1278_v5, %v1277_v2  ;;  %v1319_v6 = vpop.f32.mrb[7].mxu1 }
 0x11b   :  { %v1320_v7 = vadd.f32 %v1319_v6, %v1318_v4 }
 0x11c   :  { %v761_v40 = vadd.f32 %v1279_v55, %v681_v52  ;;  %v1280_v3 = vpop.f32.mrb[8].mxu0 }
 0x11d   :  { %v1281_v34 = vpop.f32.mrb[9].mxu0  ;;  %v1321_v54 = vpop.f32.mrb[8].mxu1 }
 0x11e   :  { %v841_v45 = vadd.f32 %v1320_v7, %v761_v40  ;;  %v1282_v9 = vadd.f32 %v1281_v34, %v1280_v3  ;;  %v1322_v10 = vpop.f32.mrb[9].mxu1 }
 0x11f   :  { %v1323_v11 = vadd.f32 %v1322_v10, %v1321_v54 }
 0x120   :  { %v766_v15 = vadd.f32 %v1282_v9, %v686_v63  ;;  %v1283_v42 = vpop.f32.mrb[10].mxu0 }
 0x121   :  { %v1284_v60 = vpop.f32.mrb[11].mxu0  ;;  %v1324_v12 = vpop.f32.mrb[10].mxu1 }
 0x122   :  { %v846_v8 = vadd.f32 %v1323_v11, %v766_v15  ;;  %v1285_v16 = vadd.f32 %v1284_v60, %v1283_v42  ;;  %v1325_v19 = vpop.f32.mrb[11].mxu1 }
 0x123   :  { %v1326_v21 = vadd.f32 %v1325_v19, %v1324_v12 }
 0x124   :  { %v771_v22 = vadd.f32 %v1285_v16, %v691_v41  ;;  %v1162_v41 = vsel %vm1108_vm2, 1.0, %v1662_v27 }
 0x126   :  { %v851_v23 = vadd.f32 %v1326_v21, %v771_v22 }
 0x138   :  { %v1359_v24 = vpop.f32.mrb[12].mxu0 }
 0x139   :  { %v1400_v25 = vpop.f32.mrb[12].mxu1  ;;  %v1360_v26 = vpop.f32.mrb[13].mxu0 }
 0x13a   :  { %v1361_v32 = vadd.f32 %v1360_v26, %v1359_v24  ;;  %v1401_v35 = vpop.f32.mrb[13].mxu1 }
 0x13b   :  { %v1402_v28 = vadd.f32 %v1401_v35, %v1400_v25 }
 0x13c   :  { %v921_v33 = vadd.f32 %v1361_v32, %v841_v45  ;;  %v1362_v36 = vpop.f32.mrb[14].mxu0 }
 0x13d   :  { %v1363_v29 = vpop.f32.mrb[15].mxu0  ;;  %v1403_v43 = vpop.f32.mrb[14].mxu1 }
 0x13e   :  { %v1364_v44 = vadd.f32 %v1363_v29, %v1362_v36  ;;  %v1404_v47 = vpop.f32.mrb[15].mxu1  ;;  %v1001_v48 = vadd.f32 %v1402_v28, %v921_v33 }
 0x13f   :  { %v1405_v49 = vadd.f32 %v1404_v47, %v1403_v43 }
 0x140   :  { %v926_v50 = vadd.f32 %v1364_v44, %v846_v8  ;;  %v1365_v18 = vpop.f32.mrb[16].mxu0 }
 0x141   :  { %v1366_v13 = vpop.f32.mrb[17].mxu0  ;;  %v1406_v20 = vpop.f32.mrb[16].mxu1 }
 0x142   :  { %v1367_v51 = vadd.f32 %v1366_v13, %v1365_v18  ;;  %v1407_v31 = vpop.f32.mrb[17].mxu1  ;;  %v1006_v14 = vadd.f32 %v1405_v49, %v926_v50 }
 0x143   :  { %v1408_v52 = vadd.f32 %v1407_v31, %v1406_v20 }
 0x144   :  { %v931_v53 = vadd.f32 %v1367_v51, %v851_v23 }
 0x146   :  { %v1011_v37 = vadd.f32 %v1408_v52, %v931_v53 }
 0x148   :  { %v1080_v57 = vpop.f32.mrb[18].mxu0 }
 0x149   :  { %v1081_v58 = vadd.f32 %v1080_v57, %v1001_v48  ;;  %v1085_v62 = vpop.f32.mrb[18].mxu1  ;;  %v1438_v59 = vpop.f32.mrb[19].mxu0 }
 0x14a   :  { %v1086_v30 = vadd.f32 %v1085_v62, %v1006_v14  ;;  %v1441_v17 = vpop.f32.mrb[19].mxu1 }
 0x14b   :  { %1094 = vst.msk [vmem:[%s2689_s5] sm:$0xff] %vm524_vm1, %v1081_v58  ;;  %v1118_v39 = vsel %vm524_vm1, %v1081_v58, 0.0  ;;  %v1131_v63 = vmul.f32 %v1081_v58, %v1081_v58 }
 0x14c   :  { %1095 = vst.msk [vmem:[%s2689_s5 + $0x8] sm:$0xff] %vm524_vm1, %v1086_v30  ;;  %v1119_v61 = vsel %vm524_vm1, %v1086_v30, 0.0  ;;  %v1132_v0 = vmul.f32 %v1086_v30, %v1086_v30 }
 0x14d   :  { %v1134_v1 = vsel %vm524_vm1, %v1131_v63, 0.0  ;;  %v1120_v46 = vadd.f32 %v1119_v61, %v1118_v39  ;;  %v1090_v38 = vpop.f32.mrb[20].mxu1 }
 0x14e   :  { %v1135_v2 = vsel %vm524_vm1, %v1132_v0, 0.0  ;;  %v1091_v4 = vadd.f32 %v1090_v38, %v1011_v37  ;;  %v1444_v5 = vpop.f32.mrb[21].mxu1 }
 0x14f   :  { %v1136_v55 = vadd.f32 %v1135_v2, %v1134_v1 }
 0x150   :  { %1096 = vst.msk [vmem:[%s2689_s5 + $0x10] sm:$0xff] %vm524_vm1, %v1091_v4  ;;  %v1117_v6 = vmul.f32 %v1162_v41, %v1091_v4 }
 0x152   :  { %v1121_v7 = vsel %vm524_vm1, %v1117_v6, 0.0  ;;  %v1133_v40 = vmul.f32 %v1117_v6, %v1117_v6 }
 0x153   :  { %v1122_v3 = vadd.f32 %v1121_v7, %v1120_v46 }
 0x154   :  { %v1137_v34 = vsel %vm524_vm1, %v1133_v40, 0.0 }
 0x155   :  { %v1123_v54 = vrot.slane %v1122_v3, 4  ;;  %v1138_v45 = vadd.f32 %v1137_v34, %v1136_v55 }
 0x157   :  { %v1124_v27 = vadd.f32 %v1123_v54, %v1122_v3  ;;  %v1139_v9 = vrot.slane %v1138_v45, 4 }
 0x159   :  { %v1125_v10 = vrot.slane %v1124_v27, 2  ;;  %v1140_v11 = vadd.f32 %v1139_v9, %v1138_v45 }
 0x15b   :  { %v1126_v15 = vadd.f32 %v1125_v10, %v1124_v27  ;;  %v1141_v42 = vrot.slane %v1140_v11, 2 }
 0x15d   :  { %v1127_v60 = vrot.slane %v1126_v15, 1  ;;  %v1142_v12 = vadd.f32 %v1141_v42, %v1140_v11 }
 0x15f   :  { %v1128_v8 = vadd.f32 %v1127_v60, %v1126_v15  ;;  %v1143_v16 = vrot.slane %v1142_v12, 1 }
 0x161   :  { %1130 = vst.msk [vmem:[%s2690_s6] sm:$0x1] %vm1129_vm3, %v1128_v8  ;;  %v1144_v19 = vadd.f32 %v1143_v16, %v1142_v12 }
 0x163   :  { %1145 = vst.msk [vmem:[%s2691_s7] sm:$0x1] %vm1129_vm3, %v1144_v19 }

// kernel: a_call__.7
= control target key start
LH: loop header
LB: loop body
LE: loop exit
PB: predicated region body
PF: predicated region fallthrough
CT: control target
= control target key end

     0   :  { %13 = vsyncpa [#allocation3], 0  ;;  %s2393_s0 = inlined_call_operand.vmem [shape: f32[8,576], index: 0, kind: input, shape index: {}]   ;;  %s2394_s1 = inlined_call_operand.vmem [shape: f32[576,512], index: 1, kind: input, shape index: {}]   ;;  %s2395_s2 = inlined_call_operand.vmem [shape: f32[1,512], index: 2, kind: input, shape index: {}]   ;;  %s2396_s3 = inlined_call_operand.vmem [shape: f32[1,576], index: 3, kind: input, shape index: {}]   ;;  %s2397_s4 = inlined_call_operand.vmem [shape: f32[1,576], index: 4, kind: input, shape index: {}]   ;;  %s2398_s5 = inlined_call_operand.vmem [shape: f32[8,512], index: 5, kind: output, shape index: {0}]   ;;  %s2399_s6 = inlined_call_operand.hbm [shape: f32[1,1,512], index: 6, kind: output, shape index: {1}]   ;;  %s2400_s7 = inlined_call_operand.hbm [shape: f32[1,1,512], index: 7, kind: output, shape index: {2}]  }
   0x1   :  { %v100_v0 = vld [vmem:[%s2394_s1 + $0x8] sm:$0xff]  ;;  %v102_v2 = vld [vmem:[%s2394_s1 + $0x18] sm:$0xff]  ;;  %v99_v5 = vld [vmem:[%s2394_s1] sm:$0xff] }
   0x2   :  { %v104_v1 = vld [vmem:[%s2394_s1 + $0x28] sm:$0xff]  ;;  %v106_v4 = vld [vmem:[%s2394_s1 + $0x38] sm:$0xff]  ;;  %v103_v6 = vld [vmem:[%s2394_s1 + $0x20] sm:$0xff] }
   0x3   :  { %v1006_v3 = vpack.c.bf16 %v104_v1, %v100_v0  ;;  %v1150_v7 = vpack.c.bf16 %v106_v4, %v102_v2  ;;  %v1008_v8 = vpack.c.bf16 %v103_v6, %v99_v5  ;;  %v101_v9 = vld [vmem:[%s2394_s1 + $0x10] sm:$0xff]  ;;  %v108_v11 = vld [vmem:[%s2394_s1 + $0x48] sm:$0xff]  ;;  %v110_v14 = vld [vmem:[%s2394_s1 + $0x58] sm:$0xff] }
   0x4   :  { %v105_v10 = vld [vmem:[%s2394_s1 + $0x30] sm:$0xff]  ;;  %v112_v13 = vld [vmem:[%s2394_s1 + $0x68] sm:$0xff]  ;;  %v114_v15 = vld [vmem:[%s2394_s1 + $0x78] sm:$0xff] }
   0x5   :  { %1007 = vmatprep.subr.bf16.mxu0 %v1006_v3  ;;  %v1152_v12 = vpack.c.bf16 %v105_v10, %v101_v9  ;;  %1151 = vmatprep.subr.bf16.mxu1 %v1150_v7  ;;  %v1010_v16 = vpack.c.bf16 %v112_v13, %v108_v11  ;;  %v1154_v17 = vpack.c.bf16 %v114_v15, %v110_v14  ;;  %v107_v18 = vld [vmem:[%s2394_s1 + $0x40] sm:$0xff]  ;;  %v109_v20 = vld [vmem:[%s2394_s1 + $0x50] sm:$0xff]  ;;  %v116_v23 = vld [vmem:[%s2394_s1 + $0x88] sm:$0xff] }
   0x6   :  { %1009 = vmatpush1.bf16.msra.mxu0 %v1008_v8  ;;  %v111_v19 = vld [vmem:[%s2394_s1 + $0x60] sm:$0xff]  ;;  %v113_v22 = vld [vmem:[%s2394_s1 + $0x70] sm:$0xff]  ;;  %v120_v24 = vld [vmem:[%s2394_s1 + $0xa8] sm:$0xff] }
   0x7   :  { %1153 = vmatpush1.bf16.msra.mxu1 %v1152_v12  ;;  %v1012_v21 = vpack.c.bf16 %v111_v19, %v107_v18  ;;  %1011 = vmatprep.subr.bf16.mxu0 %v1010_v16  ;;  %v1156_v25 = vpack.c.bf16 %v113_v22, %v109_v20  ;;  %v1014_v26 = vpack.c.bf16 %v120_v24, %v116_v23  ;;  %v118_v27 = vld [vmem:[%s2394_s1 + $0x98] sm:$0xff]  ;;  %v115_v29 = vld [vmem:[%s2394_s1 + $0x80] sm:$0xff]  ;;  %v117_v32 = vld [vmem:[%s2394_s1 + $0x90] sm:$0xff] }
   0x8   :  { %1155 = vmatprep.subr.bf16.mxu1 %v1154_v17  ;;  %v122_v28 = vld [vmem:[%s2394_s1 + $0xb8] sm:$0xff]  ;;  %v119_v31 = vld [vmem:[%s2394_s1 + $0xa0] sm:$0xff]  ;;  %v121_v33 = vld [vmem:[%s2394_s1 + $0xb0] sm:$0xff] }
   0x9   :  { %v1158_v30 = vpack.c.bf16 %v122_v28, %v118_v27  ;;  %v1016_v34 = vpack.c.bf16 %v119_v31, %v115_v29  ;;  %v124_v35 = vld [vmem:[%s2394_s1 + $0xc8] sm:$0xff]  ;;  %v126_v37 = vld [vmem:[%s2394_s1 + $0xd8] sm:$0xff]  ;;  %v1160_v38 = vpack.c.bf16 %v121_v33, %v117_v32  ;;  %v123_v41 = vld [vmem:[%s2394_s1 + $0xc0] sm:$0xff] }
   0xa   :  { %1013 = vmatpush1.bf16.msra.mxu0 %v1012_v21  ;;  %v128_v36 = vld [vmem:[%s2394_s1 + $0xe8] sm:$0xff]  ;;  %v130_v40 = vld [vmem:[%s2394_s1 + $0xf8] sm:$0xff]  ;;  %v127_v42 = vld [vmem:[%s2394_s1 + $0xe0] sm:$0xff] }
   0xb   :  { %1157 = vmatpush1.bf16.msra.mxu1 %v1156_v25  ;;  %1015 = vmatprep.subr.bf16.mxu0 %v1014_v26  ;;  %v1018_v39 = vpack.c.bf16 %v128_v36, %v124_v35  ;;  %v1162_v43 = vpack.c.bf16 %v130_v40, %v126_v37  ;;  %v125_v44 = vld [vmem:[%s2394_s1 + $0xd0] sm:$0xff]  ;;  %v132_v46 = vld [vmem:[%s2394_s1 + $0x108] sm:$0xff]  ;;  %v134_v48 = vld [vmem:[%s2394_s1 + $0x118] sm:$0xff]  ;;  %v1020_v50 = vpack.c.bf16 %v127_v42, %v123_v41 }
   0xc   :  { %1159 = vmatprep.subr.bf16.mxu1 %v1158_v30  ;;  %v129_v45 = vld [vmem:[%s2394_s1 + $0xf0] sm:$0xff]  ;;  %v136_v47 = vld [vmem:[%s2394_s1 + $0x128] sm:$0xff]  ;;  %v138_v49 = vld [vmem:[%s2394_s1 + $0x138] sm:$0xff] }
   0xd   :  { %v1164_v51 = vpack.c.bf16 %v129_v45, %v125_v44  ;;  %v1022_v52 = vpack.c.bf16 %v136_v47, %v132_v46  ;;  %v131_v53 = vld [vmem:[%s2394_s1 + $0x100] sm:$0xff]  ;;  %v133_v55 = vld [vmem:[%s2394_s1 + $0x110] sm:$0xff]  ;;  %v1166_v56 = vpack.c.bf16 %v138_v49, %v134_v48  ;;  %v140_v58 = vld [vmem:[%s2394_s1 + $0x148] sm:$0xff]  ;;  %v32_v47 = vlaneseq }
   0xe   :  { %1017 = vmatpush1.bf16.msra.mxu0 %v1016_v34  ;;  %v135_v54 = vld [vmem:[%s2394_s1 + $0x120] sm:$0xff]  ;;  %v137_v57 = vld [vmem:[%s2394_s1 + $0x130] sm:$0xff]  ;;  %v144_v59 = vld [vmem:[%s2394_s1 + $0x168] sm:$0xff] }
   0xf   :  { %1161 = vmatpush1.bf16.msra.mxu1 %v1160_v38  ;;  %1019 = vmatprep.subr.bf16.mxu0 %v1018_v39  ;;  %v142_v60 = vld [vmem:[%s2394_s1 + $0x158] sm:$0xff]  ;;  %v1024_v62 = vpack.c.bf16 %v135_v54, %v131_v53  ;;  %v1168_v63 = vpack.c.bf16 %v137_v57, %v133_v55  ;;  %v1026_v0 = vpack.c.bf16 %v144_v59, %v140_v58  ;;  %v139_v1 = vld [vmem:[%s2394_s1 + $0x140] sm:$0xff]  ;;  %v141_v3 = vld [vmem:[%s2394_s1 + $0x150] sm:$0xff] }
  0x10   :  { %1163 = vmatprep.subr.bf16.mxu1 %v1162_v43  ;;  %v146_v61 = vld [vmem:[%s2394_s1 + $0x178] sm:$0xff]  ;;  %v143_v2 = vld [vmem:[%s2394_s1 + $0x160] sm:$0xff]  ;;  %v145_v5 = vld [vmem:[%s2394_s1 + $0x170] sm:$0xff] }
  0x11   :  { %v1170_v4 = vpack.c.bf16 %v146_v61, %v142_v60  ;;  %v148_v6 = vld [vmem:[%s2394_s1 + $0x188] sm:$0xff]  ;;  %v150_v8 = vld [vmem:[%s2394_s1 + $0x198] sm:$0xff]  ;;  %v1028_v10 = vpack.c.bf16 %v143_v2, %v139_v1  ;;  %v1172_v11 = vpack.c.bf16 %v145_v5, %v141_v3  ;;  %v147_v13 = vld [vmem:[%s2394_s1 + $0x180] sm:$0xff]  ;;  %v1655_v60 = vshrl.u32 %v32_v47, 7 }
  0x12   :  { %1021 = vmatpush1.bf16.msra.mxu0 %v1020_v50  ;;  %v152_v7 = vld [vmem:[%s2394_s1 + $0x1a8] sm:$0xff]  ;;  %v154_v9 = vld [vmem:[%s2394_s1 + $0x1b8] sm:$0xff]  ;;  %v151_v14 = vld [vmem:[%s2394_s1 + $0x1a0] sm:$0xff] }
  0x13   :  { %1165 = vmatpush1.bf16.msra.mxu1 %v1164_v51  ;;  %1023 = vmatprep.subr.bf16.mxu0 %v1022_v52  ;;  %v1030_v12 = vpack.c.bf16 %v152_v7, %v148_v6  ;;  %v149_v15 = vld [vmem:[%s2394_s1 + $0x190] sm:$0xff]  ;;  %v1174_v16 = vpack.c.bf16 %v154_v9, %v150_v8  ;;  %v156_v18 = vld [vmem:[%s2394_s1 + $0x1c8] sm:$0xff]  ;;  %v158_v20 = vld [vmem:[%s2394_s1 + $0x1d8] sm:$0xff]  ;;  %v1032_v22 = vpack.c.bf16 %v151_v14, %v147_v13 }
  0x14   :  { %1167 = vmatprep.subr.bf16.mxu1 %v1166_v56  ;;  %v153_v17 = vld [vmem:[%s2394_s1 + $0x1b0] sm:$0xff]  ;;  %v160_v19 = vld [vmem:[%s2394_s1 + $0x1e8] sm:$0xff]  ;;  %v162_v21 = vld [vmem:[%s2394_s1 + $0x1f8] sm:$0xff] }
  0x15   :  { %v1176_v23 = vpack.c.bf16 %v153_v17, %v149_v15  ;;  %v1034_v24 = vpack.c.bf16 %v160_v19, %v156_v18  ;;  %v155_v25 = vld [vmem:[%s2394_s1 + $0x1c0] sm:$0xff]  ;;  %v157_v27 = vld [vmem:[%s2394_s1 + $0x1d0] sm:$0xff]  ;;  %v1178_v28 = vpack.c.bf16 %v162_v21, %v158_v20  ;;  %v164_v30 = vld [vmem:[%s2394_s1 + $0x208] sm:$0xff] }
  0x16   :  { %1025 = vmatpush1.bf16.msra.mxu0 %v1024_v62  ;;  %v159_v26 = vld [vmem:[%s2394_s1 + $0x1e0] sm:$0xff]  ;;  %v161_v29 = vld [vmem:[%s2394_s1 + $0x1f0] sm:$0xff]  ;;  %v168_v31 = vld [vmem:[%s2394_s1 + $0x228] sm:$0xff] }
  0x17   :  { %1169 = vmatpush1.bf16.msra.mxu1 %v1168_v63  ;;  %1027 = vmatprep.subr.bf16.mxu0 %v1026_v0  ;;  %v166_v32 = vld [vmem:[%s2394_s1 + $0x218] sm:$0xff]  ;;  %v1036_v34 = vpack.c.bf16 %v159_v26, %v155_v25  ;;  %v1180_v35 = vpack.c.bf16 %v161_v29, %v157_v27  ;;  %v1038_v36 = vpack.c.bf16 %v168_v31, %v164_v30  ;;  %v163_v37 = vld [vmem:[%s2394_s1 + $0x200] sm:$0xff]  ;;  %v165_v39 = vld [vmem:[%s2394_s1 + $0x210] sm:$0xff] }
  0x18   :  { %1171 = vmatprep.subr.bf16.mxu1 %v1170_v4  ;;  %v170_v33 = vld [vmem:[%s2394_s1 + $0x238] sm:$0xff]  ;;  %v167_v38 = vld [vmem:[%s2394_s1 + $0x220] sm:$0xff]  ;;  %v169_v41 = vld [vmem:[%s2394_s1 + $0x230] sm:$0xff] }
  0x19   :  { %v1182_v40 = vpack.c.bf16 %v170_v33, %v166_v32  ;;  %v172_v42 = vld [vmem:[%s2394_s1 + $0x248] sm:$0xff]  ;;  %v174_v44 = vld [vmem:[%s2394_s1 + $0x258] sm:$0xff]  ;;  %v1040_v46 = vpack.c.bf16 %v167_v38, %v163_v37  ;;  %v1184_v48 = vpack.c.bf16 %v169_v41, %v165_v39  ;;  %v171_v50 = vld [vmem:[%s2394_s1 + $0x240] sm:$0xff]  ;;  %v1750_v39 = vsub.s32 0, %v1655_v60 }
  0x1a   :  { %1029 = vmatpush1.bf16.msra.mxu0 %v1028_v10  ;;  %v176_v43 = vld [vmem:[%s2394_s1 + $0x268] sm:$0xff]  ;;  %v178_v45 = vld [vmem:[%s2394_s1 + $0x278] sm:$0xff]  ;;  %v175_v51 = vld [vmem:[%s2394_s1 + $0x260] sm:$0xff] }
  0x1b   :  { %1173 = vmatpush1.bf16.msra.mxu1 %v1172_v11  ;;  %1031 = vmatprep.subr.bf16.mxu0 %v1030_v12  ;;  %v1042_v49 = vpack.c.bf16 %v176_v43, %v172_v42  ;;  %v173_v52 = vld [vmem:[%s2394_s1 + $0x250] sm:$0xff]  ;;  %v1186_v53 = vpack.c.bf16 %v178_v45, %v174_v44  ;;  %v180_v55 = vld [vmem:[%s2394_s1 + $0x288] sm:$0xff]  ;;  %v182_v57 = vld [vmem:[%s2394_s1 + $0x298] sm:$0xff]  ;;  %v1044_v59 = vpack.c.bf16 %v175_v51, %v171_v50  ;;  %v1688_v11 = vsub.s32 1, %v1655_v60 }
  0x1c   :  { %1175 = vmatprep.subr.bf16.mxu1 %v1174_v16  ;;  %v177_v54 = vld [vmem:[%s2394_s1 + $0x270] sm:$0xff]  ;;  %v184_v56 = vld [vmem:[%s2394_s1 + $0x2a8] sm:$0xff]  ;;  %v186_v58 = vld [vmem:[%s2394_s1 + $0x2b8] sm:$0xff] }
  0x1d   :  { %v1188_v61 = vpack.c.bf16 %v177_v54, %v173_v52  ;;  %v1046_v62 = vpack.c.bf16 %v184_v56, %v180_v55  ;;  %v179_v63 = vld [vmem:[%s2394_s1 + $0x280] sm:$0xff]  ;;  %v181_v1 = vld [vmem:[%s2394_s1 + $0x290] sm:$0xff]  ;;  %v1190_v2 = vpack.c.bf16 %v186_v58, %v182_v57  ;;  %v188_v4 = vld [vmem:[%s2394_s1 + $0x2c8] sm:$0xff] }
  0x1e   :  { %1033 = vmatpush1.bf16.msra.mxu0 %v1032_v22  ;;  %v183_v0 = vld [vmem:[%s2394_s1 + $0x2a0] sm:$0xff]  ;;  %v185_v3 = vld [vmem:[%s2394_s1 + $0x2b0] sm:$0xff]  ;;  %v192_v5 = vld [vmem:[%s2394_s1 + $0x2e8] sm:$0xff] }
  0x1f   :  { %1177 = vmatpush1.bf16.msra.mxu1 %v1176_v23  ;;  %1035 = vmatprep.subr.bf16.mxu0 %v1034_v24  ;;  %v190_v6 = vld [vmem:[%s2394_s1 + $0x2d8] sm:$0xff]  ;;  %v1048_v8 = vpack.c.bf16 %v183_v0, %v179_v63  ;;  %v187_v9 = vld [vmem:[%s2394_s1 + $0x2c0] sm:$0xff]  ;;  %v1192_v12 = vpack.c.bf16 %v185_v3, %v181_v1  ;;  %v1050_v13 = vpack.c.bf16 %v192_v5, %v188_v4  ;;  %v189_v14 = vld [vmem:[%s2394_s1 + $0x2d0] sm:$0xff] }
  0x20   :  { %1179 = vmatprep.subr.bf16.mxu1 %v1178_v28  ;;  %v194_v7 = vld [vmem:[%s2394_s1 + $0x2f8] sm:$0xff]  ;;  %v191_v10 = vld [vmem:[%s2394_s1 + $0x2e0] sm:$0xff]  ;;  %v193_v15 = vld [vmem:[%s2394_s1 + $0x2f0] sm:$0xff] }
  0x21   :  { %v196_v16 = vld [vmem:[%s2394_s1 + $0x308] sm:$0xff]  ;;  %v1194_v17 = vpack.c.bf16 %v194_v7, %v190_v6  ;;  %v198_v19 = vld [vmem:[%s2394_s1 + $0x318] sm:$0xff]  ;;  %v1714_v22 = vld [vmem:[%s2396_s3] sm:$0x1f]  ;;  %v1052_v24 = vpack.c.bf16 %v191_v10, %v187_v9  ;;  %v1196_v27 = vpack.c.bf16 %v193_v15, %v189_v14 }
  0x22   :  { %1037 = vmatpush1.bf16.msra.mxu0 %v1036_v34  ;;  %v200_v18 = vld [vmem:[%s2394_s1 + $0x328] sm:$0xff]  ;;  %v202_v20 = vld [vmem:[%s2394_s1 + $0x338] sm:$0xff]  ;;  %v1719_v23 = vld [vmem:[%s2397_s4] sm:$0x1f]  ;;  %v39_v25 = vrot.slane %v1714_v22, %v1688_v11  ;;  %v35_v55 = vrot.slane %v1714_v22, %v1750_v39 }
  0x23   :  { %1181 = vmatpush1.bf16.msra.mxu1 %v1180_v35  ;;  %1039 = vmatprep.subr.bf16.mxu0 %v1038_v36  ;;  %v26_v21 = vld [vmem:[%s2393_s0 + $0x8] sm:$0xff]  ;;  %v71_v26 = vrot.slane %v1719_v23, %v1688_v11  ;;  %v1054_v28 = vpack.c.bf16 %v200_v18, %v196_v16  ;;  %v195_v29 = vld [vmem:[%s2394_s1 + $0x300] sm:$0xff]  ;;  %v197_v31 = vld [vmem:[%s2394_s1 + $0x310] sm:$0xff]  ;;  %v1198_v32 = vpack.c.bf16 %v202_v20, %v198_v19 }
  0x24   :  { %1183 = vmatprep.subr.bf16.mxu1 %v1182_v40  ;;  %v199_v30 = vld [vmem:[%s2394_s1 + $0x320] sm:$0xff]  ;;  %v201_v33 = vld [vmem:[%s2394_s1 + $0x330] sm:$0xff]  ;;  %v204_v34 = vld [vmem:[%s2394_s1 + $0x348] sm:$0xff]  ;;  %v58_v36 = vmul.f32 %v39_v25, %v26_v21  ;;  %v67_v7 = vrot.slane %v1719_v23, %v1750_v39 }
  0x25   :  { %v208_v35 = vld [vmem:[%s2394_s1 + $0x368] sm:$0xff]  ;;  %v206_v37 = vld [vmem:[%s2394_s1 + $0x358] sm:$0xff]  ;;  %v1056_v40 = vpack.c.bf16 %v199_v30, %v195_v29  ;;  %v1200_v42 = vpack.c.bf16 %v201_v33, %v197_v31  ;;  %v203_v44 = vld [vmem:[%s2394_s1 + $0x340] sm:$0xff] }
  0x26   :  { %1041 = vmatpush1.bf16.msra.mxu0 %v1040_v46  ;;  %v210_v38 = vld [vmem:[%s2394_s1 + $0x378] sm:$0xff]  ;;  %v90_v41 = vadd.f32 %v71_v26, %v58_v36  ;;  %v1058_v43 = vpack.c.bf16 %v208_v35, %v204_v34  ;;  %v207_v45 = vld [vmem:[%s2394_s1 + $0x360] sm:$0xff]  ;;  %v205_v46 = vld [vmem:[%s2394_s1 + $0x350] sm:$0xff] }
  0x27   :  { %1185 = vmatpush1.bf16.msra.mxu1 %v1184_v48  ;;  %1043 = vmatprep.subr.bf16.mxu0 %v1042_v49  ;;  %v1202_v48 = vpack.c.bf16 %v210_v38, %v206_v37  ;;  %v209_v49 = vld [vmem:[%s2394_s1 + $0x370] sm:$0xff]  ;;  %v212_v50 = vld [vmem:[%s2394_s1 + $0x388] sm:$0xff]  ;;  %v218_v54 = vld [vmem:[%s2394_s1 + $0x3b8] sm:$0xff]  ;;  %v1060_v56 = vpack.c.bf16 %v207_v45, %v203_v44 }
  0x28   :  { %1187 = vmatprep.subr.bf16.mxu1 %v1186_v53  ;;  %v216_v51 = vld [vmem:[%s2394_s1 + $0x3a8] sm:$0xff]  ;;  %v95_v52 = vmax.f32 %v90_v41, 0.0  ;;  %v214_v53 = vld [vmem:[%s2394_s1 + $0x398] sm:$0xff]  ;;  %v25_v57 = vld [vmem:[%s2393_s0] sm:$0xff]  ;;  %v1204_v58 = vpack.c.bf16 %v209_v49, %v205_v46 }
  0x29   :  { %v213_v63 = vld [vmem:[%s2394_s1 + $0x390] sm:$0xff]  ;;  %v1206_v0 = vpack.c.bf16 %v218_v54, %v214_v53  ;;  %v224_v3 = vld [vmem:[%s2394_s1 + $0x3e8] sm:$0xff]  ;;  %v222_v4 = vld [vmem:[%s2394_s1 + $0x3d8] sm:$0xff]  ;;  %v57_v6 = vmul.f32 %v35_v55, %v25_v57 }
  0x2a   :  { %1045 = vmatpush1.bf16.msra.mxu0 %v1044_v59  ;;  %477 = vmatprep.mubr.f32.mxu0 %v95_v52  ;;  %v1062_v59 = vpack.c.bf16 %v216_v51, %v212_v50  ;;  %v217_v1 = vld [vmem:[%s2394_s1 + $0x3b0] sm:$0xff]  ;;  %v226_v5 = vld [vmem:[%s2394_s1 + $0x3f8] sm:$0xff]  ;;  %v232_v18 = vld [vmem:[%s2394_s1 + $0x428] sm:$0xff] }
  0x2b   :  { %1189 = vmatpush1.bf16.msra.mxu1 %v1188_v61  ;;  %1047 = vmatprep.subr.bf16.mxu0 %v1046_v62  ;;  %v211_v61 = vld [vmem:[%s2394_s1 + $0x380] sm:$0xff]  ;;  %v1208_v9 = vpack.c.bf16 %v217_v1, %v213_v63  ;;  %v221_v14 = vld [vmem:[%s2394_s1 + $0x3d0] sm:$0xff]  ;;  %v1210_v15 = vpack.c.bf16 %v226_v5, %v222_v4  ;;  %v230_v19 = vld [vmem:[%s2394_s1 + $0x418] sm:$0xff]  ;;  %v89_v21 = vadd.f32 %v67_v7, %v57_v6 }
  0x2c   :  { %1191 = vmatprep.subr.bf16.mxu1 %v1190_v2  ;;  %v215_v62 = vld [vmem:[%s2394_s1 + $0x3a0] sm:$0xff]  ;;  %v220_v2 = vld [vmem:[%s2394_s1 + $0x3c8] sm:$0xff]  ;;  %690 = vmatprep.mubr.f32.mxu1 %v95_v52  ;;  %v225_v16 = vld [vmem:[%s2394_s1 + $0x3f0] sm:$0xff] }
  0x2d   :  { %v1066_v10 = vpack.c.bf16 %v224_v3, %v220_v2  ;;  %v234_v20 = vld [vmem:[%s2394_s1 + $0x438] sm:$0xff]  ;;  %v1212_v25 = vpack.c.bf16 %v225_v16, %v221_v14  ;;  %v229_v29 = vld [vmem:[%s2394_s1 + $0x410] sm:$0xff]  ;;  %v240_v33 = vld [vmem:[%s2394_s1 + $0x468] sm:$0xff]  ;;  %v94_v34 = vmax.f32 %v89_v21, 0.0 }
  0x2e   :  { %1049 = vmatpush1.bf16.msra.mxu0 %v1048_v8  ;;  %v1064_v8 = vpack.c.bf16 %v215_v62, %v211_v61  ;;  %v1214_v30 = vpack.c.bf16 %v234_v20, %v230_v19  ;;  %v233_v31 = vld [vmem:[%s2394_s1 + $0x430] sm:$0xff]  ;;  %v238_v35 = vld [vmem:[%s2394_s1 + $0x458] sm:$0xff]  ;;  %v235_v41 = vld [vmem:[%s2394_s1 + $0x440] sm:$0xff] }
  0x2f   :  { %1193 = vmatpush1.bf16.msra.mxu1 %v1192_v12  ;;  %1051 = vmatprep.subr.bf16.mxu0 %v1050_v13  ;;  %v219_v12 = vld [vmem:[%s2394_s1 + $0x3c0] sm:$0xff]  ;;  %v242_v36 = vld [vmem:[%s2394_s1 + $0x478] sm:$0xff]  ;;  %v1216_v38 = vpack.c.bf16 %v233_v31, %v229_v29  ;;  %v241_v45 = vld [vmem:[%s2394_s1 + $0x470] sm:$0xff] }
  0x30   :  { %1195 = vmatprep.subr.bf16.mxu1 %v1194_v17  ;;  %v223_v13 = vld [vmem:[%s2394_s1 + $0x3e0] sm:$0xff]  ;;  %v228_v17 = vld [vmem:[%s2394_s1 + $0x408] sm:$0xff]  ;;  %v1218_v44 = vpack.c.bf16 %v242_v36, %v238_v35  ;;  %v246_v49 = vld [vmem:[%s2394_s1 + $0x498] sm:$0xff] }
  0x31   :  { %v1070_v26 = vpack.c.bf16 %v232_v18, %v228_v17  ;;  %v244_v46 = vld [vmem:[%s2394_s1 + $0x488] sm:$0xff]  ;;  %v250_v50 = vld [vmem:[%s2394_s1 + $0x4b8] sm:$0xff]  ;;  %v243_v54 = vld [vmem:[%s2394_s1 + $0x480] sm:$0xff] }
  0x32   :  { %1053 = vmatpush1.bf16.msra.mxu0 %v1052_v24  ;;  %v1068_v24 = vpack.c.bf16 %v223_v13, %v219_v12  ;;  %v247_v55 = vld [vmem:[%s2394_s1 + $0x4a0] sm:$0xff]  ;;  %v1222_v57 = vpack.c.bf16 %v250_v50, %v246_v49  ;;  %v256_v61 = vld [vmem:[%s2394_s1 + $0x4e8] sm:$0xff]  ;;  %v254_v62 = vld [vmem:[%s2394_s1 + $0x4d8] sm:$0xff] }
  0x33   :  { %1197 = vmatpush1.bf16.msra.mxu1 %v1196_v27  ;;  %1055 = vmatprep.subr.bf16.mxu0 %v1054_v28  ;;  %v227_v27 = vld [vmem:[%s2394_s1 + $0x400] sm:$0xff]  ;;  %v258_v63 = vld [vmem:[%s2394_s1 + $0x4f8] sm:$0xff]  ;;  %v253_v5 = vld [vmem:[%s2394_s1 + $0x4d0] sm:$0xff] }
  0x34   :  { %1199 = vmatprep.subr.bf16.mxu1 %v1198_v32  ;;  %v231_v28 = vld [vmem:[%s2394_s1 + $0x420] sm:$0xff]  ;;  %v236_v32 = vld [vmem:[%s2394_s1 + $0x448] sm:$0xff]  ;;  %v1226_v6 = vpack.c.bf16 %v258_v63, %v254_v62  ;;  %v257_v7 = vld [vmem:[%s2394_s1 + $0x4f0] sm:$0xff] }
  0x35   :  { %v1072_v37 = vpack.c.bf16 %v231_v28, %v227_v27  ;;  %v251_v3 = vld [vmem:[%s2394_s1 + $0x4c0] sm:$0xff]  ;;  %v266_v12 = vld [vmem:[%s2394_s1 + $0x538] sm:$0xff]  ;;  %v1228_v14 = vpack.c.bf16 %v257_v7, %v253_v5  ;;  %v261_v18 = vld [vmem:[%s2394_s1 + $0x510] sm:$0xff]  ;;  %v1952_v27 = vsub.s32 3, %v1655_v60 }
  0x36   :  { %1057 = vmatpush1.bf16.msra.mxu0 %v1056_v40  ;;  %v1074_v40 = vpack.c.bf16 %v240_v33, %v236_v32  ;;  %v255_v4 = vld [vmem:[%s2394_s1 + $0x4e0] sm:$0xff]  ;;  %v265_v20 = vld [vmem:[%s2394_s1 + $0x530] sm:$0xff]  ;;  %v268_v21 = vld [vmem:[%s2394_s1 + $0x548] sm:$0xff] }
  0x37   :  { %1201 = vmatpush1.bf16.msra.mxu1 %v1200_v42  ;;  %1059 = vmatprep.subr.bf16.mxu0 %v1058_v43  ;;  %v239_v42 = vld [vmem:[%s2394_s1 + $0x460] sm:$0xff]  ;;  %v237_v43 = vld [vmem:[%s2394_s1 + $0x450] sm:$0xff]  ;;  %v1084_v13 = vpack.c.bf16 %v255_v4, %v251_v3  ;;  %v1232_v29 = vpack.c.bf16 %v265_v20, %v261_v18 }
  0x38   :  { %1203 = vmatprep.subr.bf16.mxu1 %v1202_v48  ;;  %v248_v48 = vld [vmem:[%s2394_s1 + $0x4a8] sm:$0xff]  ;;  %v1076_v51 = vpack.c.bf16 %v239_v42, %v235_v41  ;;  %v1220_v52 = vpack.c.bf16 %v241_v45, %v237_v43  ;;  %v259_v16 = vld [vmem:[%s2394_s1 + $0x500] sm:$0xff]  ;;  %v269_v33 = vld [vmem:[%s2394_s1 + $0x550] sm:$0xff]  ;;  %v47_v42 = vrot.slane %v1714_v22, %v1952_v27  ;;  %v79_v45 = vrot.slane %v1719_v23, %v1952_v27 }
  0x39   :  { %v1078_v53 = vpack.c.bf16 %v248_v48, %v244_v46  ;;  %v263_v17 = vld [vmem:[%s2394_s1 + $0x520] sm:$0xff]  ;;  %v273_v36 = vld [vmem:[%s2394_s1 + $0x570] sm:$0xff]  ;;  %v282_v41 = vld [vmem:[%s2394_s1 + $0x5b8] sm:$0xff] }
  0x3a   :  { %1061 = vmatpush1.bf16.msra.mxu0 %v1060_v56  ;;  %v245_v56 = vld [vmem:[%s2394_s1 + $0x490] sm:$0xff]  ;;  %v1088_v28 = vpack.c.bf16 %v263_v17, %v259_v16  ;;  %v267_v31 = vld [vmem:[%s2394_s1 + $0x540] sm:$0xff]  ;;  %v1236_v46 = vpack.c.bf16 %v273_v36, %v269_v33  ;;  %v50_v16 = vsub.s32 4, %v1655_v60 }
  0x3b   :  { %1205 = vmatpush1.bf16.msra.mxu1 %v1204_v58  ;;  %1063 = vmatprep.subr.bf16.mxu0 %v1062_v59  ;;  %v249_v58 = vld [vmem:[%s2394_s1 + $0x4b0] sm:$0xff]  ;;  %v252_v59 = vld [vmem:[%s2394_s1 + $0x4c8] sm:$0xff]  ;;  %v271_v32 = vld [vmem:[%s2394_s1 + $0x560] sm:$0xff] }
  0x3c   :  { %1207 = vmatprep.subr.bf16.mxu1 %v1206_v0  ;;  %v1080_v0 = vpack.c.bf16 %v247_v55, %v243_v54  ;;  %v1224_v1 = vpack.c.bf16 %v249_v58, %v245_v56  ;;  %v1082_v2 = vpack.c.bf16 %v256_v61, %v252_v59  ;;  %v1092_v43 = vpack.c.bf16 %v271_v32, %v267_v31  ;;  %v279_v49 = vld [vmem:[%s2394_s1 + $0x5a0] sm:$0xff]  ;;  %v277_v50 = vld [vmem:[%s2394_s1 + $0x590] sm:$0xff]  ;;  %v284_v54 = vld [vmem:[%s2394_s1 + $0x5c8] sm:$0xff] }
  0x3d   :  { %v288_v55 = vld [vmem:[%s2394_s1 + $0x5e8] sm:$0xff]  ;;  %v28_v56 = vld [vmem:[%s2393_s0 + $0x18] sm:$0xff]  ;;  %v287_v3 = vld [vmem:[%s2394_s1 + $0x5e0] sm:$0xff]  ;;  %v51_v32 = vrot.slane %v1714_v22, %v50_v16 }
  0x3e   :  { %1065 = vmatpush1.bf16.msra.mxu0 %v1064_v8  ;;  %v260_v8 = vld [vmem:[%s2394_s1 + $0x508] sm:$0xff]  ;;  %v290_v58 = vld [vmem:[%s2394_s1 + $0x5f8] sm:$0xff]  ;;  %v60_v59 = vmul.f32 %v47_v42, %v28_v56  ;;  %v285_v4 = vld [vmem:[%s2394_s1 + $0x5d0] sm:$0xff]  ;;  %v83_v42 = vrot.slane %v1719_v23, %v50_v16 }
  0x3f   :  { %1209 = vmatpush1.bf16.msra.mxu1 %v1208_v9  ;;  %1067 = vmatprep.subr.bf16.mxu0 %v1066_v10  ;;  %v264_v9 = vld [vmem:[%s2394_s1 + $0x528] sm:$0xff]  ;;  %v262_v10 = vld [vmem:[%s2394_s1 + $0x518] sm:$0xff]  ;;  %v291_v20 = vld [vmem:[%s2394_s1 + $0x600] sm:$0xff] }
  0x40   :  { %1211 = vmatprep.subr.bf16.mxu1 %v1210_v15  ;;  %v1086_v15 = vpack.c.bf16 %v264_v9, %v260_v8  ;;  %v1230_v19 = vpack.c.bf16 %v266_v12, %v262_v10  ;;  %v92_v5 = vadd.f32 %v79_v45, %v60_v59  ;;  %v289_v8 = vld [vmem:[%s2394_s1 + $0x5f0] sm:$0xff]  ;;  %v292_v9 = vld [vmem:[%s2394_s1 + $0x608] sm:$0xff]  ;;  %v294_v12 = vld [vmem:[%s2394_s1 + $0x618] sm:$0xff] }
  0x41   :  { %v296_v10 = vld [vmem:[%s2394_s1 + $0x628] sm:$0xff]  ;;  %v1244_v18 = vpack.c.bf16 %v289_v8, %v285_v4  ;;  %v306_v31 = vld [vmem:[%s2394_s1 + $0x678] sm:$0xff]  ;;  %v303_v36 = vld [vmem:[%s2394_s1 + $0x660] sm:$0xff] }
  0x42   :  { %1069 = vmatpush1.bf16.msra.mxu0 %v1068_v24  ;;  %v272_v24 = vld [vmem:[%s2394_s1 + $0x568] sm:$0xff]  ;;  %v29_v45 = vld [vmem:[%s2393_s0 + $0x20] sm:$0xff] }
  0x43   :  { %1213 = vmatpush1.bf16.msra.mxu1 %v1212_v25  ;;  %1071 = vmatprep.subr.bf16.mxu0 %v1070_v26  ;;  %v270_v25 = vld [vmem:[%s2394_s1 + $0x558] sm:$0xff] }
  0x44   :  { %1215 = vmatprep.subr.bf16.mxu1 %v1214_v30  ;;  %v274_v26 = vld [vmem:[%s2394_s1 + $0x578] sm:$0xff]  ;;  %v1090_v30 = vpack.c.bf16 %v272_v24, %v268_v21  ;;  %v295_v21 = vld [vmem:[%s2394_s1 + $0x620] sm:$0xff]  ;;  %v293_v24 = vld [vmem:[%s2394_s1 + $0x610] sm:$0xff] }
  0x45   :  { %478 = vmatmul.mubr.f32.vlgmr.msra.gmra.mrb[0].mxu0 %v94_v34  ;;  %v1234_v35 = vpack.c.bf16 %v274_v26, %v270_v25  ;;  %v297_v26 = vld [vmem:[%s2394_s1 + $0x630] sm:$0xff]  ;;  %v1104_v33 = vpack.c.bf16 %v295_v21, %v291_v20 }
  0x46   :  { %1073 = vmatpush1.bf16.msra.mxu0 %v1072_v37  ;;  %691 = vmatmul.mubr.f32.vlgmr.msra.gmra.mrb[0].mxu1 %v94_v34  ;;  %v1964_v34 = vsub.s32 2, %v1655_v60  ;;  %v276_v37 = vld [vmem:[%s2394_s1 + $0x588] sm:$0xff] }
  0x47   :  { %1217 = vmatpush1.bf16.msra.mxu1 %v1216_v38  ;;  %1075 = vmatprep.subr.bf16.mxu0 %v1074_v40  ;;  %v280_v38 = vld [vmem:[%s2394_s1 + $0x5a8] sm:$0xff]  ;;  %v278_v40 = vld [vmem:[%s2394_s1 + $0x598] sm:$0xff] }
  0x48   :  { %1219 = vmatprep.subr.bf16.mxu1 %v1218_v44  ;;  %v275_v44 = vld [vmem:[%s2394_s1 + $0x580] sm:$0xff]  ;;  %v1094_v48 = vpack.c.bf16 %v280_v38, %v276_v37  ;;  %v75_v61 = vrot.slane %v1719_v23, %v1964_v34  ;;  %v1248_v37 = vpack.c.bf16 %v297_v26, %v293_v24 }
  0x49   :  { %v1096_v62 = vpack.c.bf16 %v279_v49, %v275_v44  ;;  %v312_v44 = vld [vmem:[%s2394_s1 + $0x6a8] sm:$0xff] }
  0x4a   :  { %1077 = vmatpush1.bf16.msra.mxu0 %v1076_v51  ;;  %v281_v51 = vld [vmem:[%s2394_s1 + $0x5b0] sm:$0xff] }
  0x4b   :  { %1221 = vmatpush1.bf16.msra.mxu1 %v1220_v52  ;;  %1079 = vmatprep.subr.bf16.mxu0 %v1078_v53  ;;  %v43_v52 = vrot.slane %v1714_v22, %v1964_v34  ;;  %v1238_v53 = vpack.c.bf16 %v282_v41, %v278_v40  ;;  %v1240_v63 = vpack.c.bf16 %v281_v51, %v277_v50  ;;  %v301_v40 = vld [vmem:[%s2394_s1 + $0x650] sm:$0xff]  ;;  %v308_v41 = vld [vmem:[%s2394_s1 + $0x688] sm:$0xff] }
  0x4c   :  { %1223 = vmatprep.subr.bf16.mxu1 %v1222_v57  ;;  %v286_v57 = vld [vmem:[%s2394_s1 + $0x5d8] sm:$0xff]  ;;  %v305_v22 = vld [vmem:[%s2394_s1 + $0x670] sm:$0xff] }
  0x4d   :  { %v1242_v7 = vpack.c.bf16 %v290_v58, %v286_v57 }
  0x4e   :  { %1081 = vmatpush1.bf16.msra.mxu0 %v1080_v0  ;;  %v27_v0 = vld [vmem:[%s2393_s0 + $0x10] sm:$0xff] }
  0x4f   :  { %1225 = vmatpush1.bf16.msra.mxu1 %v1224_v1  ;;  %1083 = vmatprep.subr.bf16.mxu0 %v1082_v2  ;;  %v1098_v1 = vpack.c.bf16 %v288_v55, %v284_v54  ;;  %v283_v2 = vld [vmem:[%s2394_s1 + $0x5c0] sm:$0xff] }
  0x50   :  { %1227 = vmatprep.subr.bf16.mxu1 %v1226_v6  ;;  %v59_v6 = vmul.f32 %v43_v52, %v27_v0  ;;  %v1100_v17 = vpack.c.bf16 %v287_v3, %v283_v2 }
  0x52   :  { %1085 = vmatpush1.bf16.msra.mxu0 %v1084_v13  ;;  %v298_v13 = vld [vmem:[%s2394_s1 + $0x638] sm:$0xff] }
  0x53   :  { %1229 = vmatpush1.bf16.msra.mxu1 %v1228_v14  ;;  %1087 = vmatprep.subr.bf16.mxu0 %v1086_v15  ;;  %v97_v14 = vmax.f32 %v92_v5, 0.0  ;;  %v2043_v15 = vadd.f32 %v75_v61, %v59_v6  ;;  %v1246_v25 = vpack.c.bf16 %v298_v13, %v294_v12 }
  0x54   :  { %1231 = vmatprep.subr.bf16.mxu1 %v1230_v19  ;;  %v1102_v19 = vpack.c.bf16 %v296_v10, %v292_v9 }
  0x55   :  { %548 = vmatprep.mubr.f32.mxu0 %v97_v14  ;;  %761 = vmatprep.mubr.f32.mxu1 %v97_v14 }
  0x56   :  { %1089 = vmatpush1.bf16.msra.mxu0 %v1088_v28  ;;  %v300_v28 = vld [vmem:[%s2394_s1 + $0x648] sm:$0xff] }
  0x57   :  { %1233 = vmatpush1.bf16.msra.mxu1 %v1232_v29  ;;  %1091 = vmatprep.subr.bf16.mxu0 %v1090_v30  ;;  %v304_v29 = vld [vmem:[%s2394_s1 + $0x668] sm:$0xff]  ;;  %v302_v30 = vld [vmem:[%s2394_s1 + $0x658] sm:$0xff] }
  0x58   :  { %1235 = vmatprep.subr.bf16.mxu1 %v1234_v35  ;;  %v299_v35 = vld [vmem:[%s2394_s1 + $0x640] sm:$0xff]  ;;  %v1106_v38 = vpack.c.bf16 %v304_v29, %v300_v28 }
  0x5a   :  { %1093 = vmatpush1.bf16.msra.mxu0 %v1092_v43  ;;  %v1250_v43 = vpack.c.bf16 %v306_v31, %v302_v30 }
  0x5b   :  { %1237 = vmatpush1.bf16.msra.mxu1 %v1236_v46  ;;  %1095 = vmatprep.subr.bf16.mxu0 %v1094_v48 }
  0x5c   :  { %1239 = vmatprep.subr.bf16.mxu1 %v1238_v53 }
  0x5e   :  { %1097 = vmatpush1.bf16.msra.mxu0 %v1096_v62 }
  0x5f   :  { %1241 = vmatpush1.bf16.msra.mxu1 %v1240_v63  ;;  %1099 = vmatprep.subr.bf16.mxu0 %v1098_v1 }
  0x60   :  { %1243 = vmatprep.subr.bf16.mxu1 %v1242_v7 }
  0x62   :  { %1101 = vmatpush1.bf16.msra.mxu0 %v1100_v17 }
  0x63   :  { %1245 = vmatpush1.bf16.msra.mxu1 %v1244_v18  ;;  %1103 = vmatprep.subr.bf16.mxu0 %v1102_v19 }
  0x64   :  { %1247 = vmatprep.subr.bf16.mxu1 %v1246_v25 }
  0x65   :  { %14 = vsyncpa [#allocation5], 0  ;;  %v310_v46 = vld [vmem:[%s2394_s1 + $0x698] sm:$0xff]  ;;  %v61_v23 = vmul.f32 %v51_v32, %v29_v45  ;;  %v1108_v49 = vpack.c.bf16 %v303_v36, %v299_v35  ;;  %v1252_v50 = vpack.c.bf16 %v305_v22, %v301_v40  ;;  %v1110_v51 = vpack.c.bf16 %v312_v44, %v308_v41  ;;  %v307_v52 = vld [vmem:[%s2394_s1 + $0x680] sm:$0xff]  ;;  %s1361_s9 = smov [#allocation4]  }
  0x66   :  { %v314_v48 = vld [vmem:[%s2394_s1 + $0x6b8] sm:$0xff]  ;;  %1105 = vmatpush1.bf16.msra.mxu0 %v1104_v33  ;;  %v311_v53 = vld [vmem:[%s2394_s1 + $0x6a0] sm:$0xff]  ;;  %v309_v54 = vld [vmem:[%s2394_s1 + $0x690] sm:$0xff]  ;;  %vm409_vm0 = vcmask 523264   ;;  %vm848_vm1 = vcmp.lt.s32.totalorder %v1655_v60, 2  ;;  %vm2359_vm2 = vcmp.lt.s32.totalorder %v32_v47, 512 }
  0x67   :  { %1249 = vmatpush1.bf16.msra.mxu1 %v1248_v37  ;;  %1107 = vmatprep.subr.bf16.mxu0 %v1106_v38  ;;  %v2108_v55 = vadd.f32 %v83_v42, %v61_v23  ;;  %v1254_v56 = vpack.c.bf16 %v314_v48, %v310_v46  ;;  %v313_v57 = vld [vmem:[%s2394_s1 + $0x6b0] sm:$0xff]  ;;  %v316_v58 = vld [vmem:[%s2394_s1 + $0x6c8] sm:$0xff]  ;;  %v318_v61 = vld [vmem:[%s2394_s1 + $0x6d8] sm:$0xff]  ;;  %v1112_v63 = vpack.c.bf16 %v311_v53, %v307_v52  ;;  %s989_s10 = sshll.u32 %s1361_s9, 4  ;;  %s990_s10 = int_to_ptr.vmem [resolvable:$true] %s989_s10 }
  0x68   :  { %1251 = vmatprep.subr.bf16.mxu1 %v1250_v43  ;;  %v320_v59 = vld [vmem:[%s2394_s1 + $0x6e8] sm:$0xff]  ;;  %v322_v62 = vld [vmem:[%s2394_s1 + $0x6f8] sm:$0xff]  ;;  %v1256_v0 = vpack.c.bf16 %v313_v57, %v309_v54  ;;  %v315_v2 = vld [vmem:[%s2394_s1 + $0x6c0] sm:$0xff] }
  0x69   :  { %v1114_v1 = vpack.c.bf16 %v320_v59, %v316_v58  ;;  %v319_v3 = vld [vmem:[%s2394_s1 + $0x6e0] sm:$0xff]  ;;  %v317_v4 = vld [vmem:[%s2394_s1 + $0x6d0] sm:$0xff]  ;;  %v1258_v5 = vpack.c.bf16 %v322_v62, %v318_v61  ;;  %v324_v7 = vld [vmem:[%s2394_s1 + $0x708] sm:$0xff] }
  0x6a   :  { %1109 = vmatpush1.bf16.msra.mxu0 %v1108_v49  ;;  %v321_v6 = vld [vmem:[%s2394_s1 + $0x6f0] sm:$0xff]  ;;  %v328_v8 = vld [vmem:[%s2394_s1 + $0x728] sm:$0xff]  ;;  %v326_v9 = vld [vmem:[%s2394_s1 + $0x718] sm:$0xff]  ;;  %v1116_v12 = vpack.c.bf16 %v319_v3, %v315_v2 }
  0x6b   :  { %1253 = vmatpush1.bf16.msra.mxu1 %v1252_v50  ;;  %1111 = vmatprep.subr.bf16.mxu0 %v1110_v51  ;;  %v330_v10 = vld [vmem:[%s2394_s1 + $0x738] sm:$0xff]  ;;  %v1260_v13 = vpack.c.bf16 %v321_v6, %v317_v4  ;;  %v1118_v14 = vpack.c.bf16 %v328_v8, %v324_v7  ;;  %v323_v16 = vld [vmem:[%s2394_s1 + $0x700] sm:$0xff]  ;;  %v325_v18 = vld [vmem:[%s2394_s1 + $0x710] sm:$0xff] }
  0x6c   :  { %1255 = vmatprep.subr.bf16.mxu1 %v1254_v56  ;;  %v327_v17 = vld [vmem:[%s2394_s1 + $0x720] sm:$0xff]  ;;  %v1262_v19 = vpack.c.bf16 %v330_v10, %v326_v9  ;;  %v329_v20 = vld [vmem:[%s2394_s1 + $0x730] sm:$0xff]  ;;  %v332_v21 = vld [vmem:[%s2394_s1 + $0x748] sm:$0xff] }
  0x6d   :  { %v336_v24 = vld [vmem:[%s2394_s1 + $0x768] sm:$0xff]  ;;  %v334_v25 = vld [vmem:[%s2394_s1 + $0x758] sm:$0xff]  ;;  %v1120_v28 = vpack.c.bf16 %v327_v17, %v323_v16  ;;  %v1264_v29 = vpack.c.bf16 %v329_v20, %v325_v18  ;;  %v331_v31 = vld [vmem:[%s2394_s1 + $0x740] sm:$0xff] }
  0x6e   :  { %1113 = vmatpush1.bf16.msra.mxu0 %v1112_v63  ;;  %v338_v26 = vld [vmem:[%s2394_s1 + $0x778] sm:$0xff]  ;;  %v1122_v30 = vpack.c.bf16 %v336_v24, %v332_v21  ;;  %v335_v32 = vld [vmem:[%s2394_s1 + $0x760] sm:$0xff]  ;;  %v333_v33 = vld [vmem:[%s2394_s1 + $0x750] sm:$0xff] }
  0x6f   :  { %1257 = vmatpush1.bf16.msra.mxu1 %v1256_v0  ;;  %1115 = vmatprep.subr.bf16.mxu0 %v1114_v1  ;;  %v1266_v35 = vpack.c.bf16 %v338_v26, %v334_v25  ;;  %v337_v36 = vld [vmem:[%s2394_s1 + $0x770] sm:$0xff]  ;;  %v340_v37 = vld [vmem:[%s2394_s1 + $0x788] sm:$0xff]  ;;  %v342_v40 = vld [vmem:[%s2394_s1 + $0x798] sm:$0xff]  ;;  %v1124_v41 = vpack.c.bf16 %v335_v32, %v331_v31 }
  0x70   :  { %1259 = vmatprep.subr.bf16.mxu1 %v1258_v5  ;;  %v344_v38 = vld [vmem:[%s2394_s1 + $0x7a8] sm:$0xff]  ;;  %v346_v22 = vld [vmem:[%s2394_s1 + $0x7b8] sm:$0xff]  ;;  %v1268_v42 = vpack.c.bf16 %v337_v36, %v333_v33  ;;  %v339_v44 = vld [vmem:[%s2394_s1 + $0x780] sm:$0xff] }
  0x71   :  { %v1126_v43 = vpack.c.bf16 %v344_v38, %v340_v37  ;;  %v343_v45 = vld [vmem:[%s2394_s1 + $0x7a0] sm:$0xff]  ;;  %v341_v46 = vld [vmem:[%s2394_s1 + $0x790] sm:$0xff]  ;;  %v1270_v48 = vpack.c.bf16 %v346_v22, %v342_v40  ;;  %v348_v49 = vld [vmem:[%s2394_s1 + $0x7c8] sm:$0xff] }
  0x72   :  { %1117 = vmatpush1.bf16.msra.mxu0 %v1116_v12  ;;  %v345_v23 = vld [vmem:[%s2394_s1 + $0x7b0] sm:$0xff]  ;;  %v352_v50 = vld [vmem:[%s2394_s1 + $0x7e8] sm:$0xff]  ;;  %v350_v51 = vld [vmem:[%s2394_s1 + $0x7d8] sm:$0xff]  ;;  %v1128_v53 = vpack.c.bf16 %v343_v45, %v339_v44 }
  0x73   :  { %1261 = vmatpush1.bf16.msra.mxu1 %v1260_v13  ;;  %1119 = vmatprep.subr.bf16.mxu0 %v1118_v14  ;;  %v354_v52 = vld [vmem:[%s2394_s1 + $0x7f8] sm:$0xff]  ;;  %v1272_v54 = vpack.c.bf16 %v345_v23, %v341_v46  ;;  %v1130_v56 = vpack.c.bf16 %v352_v50, %v348_v49  ;;  %v347_v57 = vld [vmem:[%s2394_s1 + $0x7c0] sm:$0xff]  ;;  %v349_v59 = vld [vmem:[%s2394_s1 + $0x7d0] sm:$0xff]  ;;  %v96_v14 = vmax.f32 %v2043_v15, 0.0 }
  0x74   :  { %1263 = vmatprep.subr.bf16.mxu1 %v1262_v19  ;;  %v351_v58 = vld [vmem:[%s2394_s1 + $0x7e0] sm:$0xff]  ;;  %v1274_v61 = vpack.c.bf16 %v354_v52, %v350_v51  ;;  %v353_v62 = vld [vmem:[%s2394_s1 + $0x7f0] sm:$0xff]  ;;  %v356_v63 = vld [vmem:[%s2394_s1 + $0x808] sm:$0xff] }
  0x75   :  { %v360_v0 = vld [vmem:[%s2394_s1 + $0x828] sm:$0xff]  ;;  %v358_v1 = vld [vmem:[%s2394_s1 + $0x818] sm:$0xff]  ;;  %v1132_v3 = vpack.c.bf16 %v351_v58, %v347_v57  ;;  %v1276_v4 = vpack.c.bf16 %v353_v62, %v349_v59  ;;  %v355_v6 = vld [vmem:[%s2394_s1 + $0x800] sm:$0xff]  ;;  %v98_v57 = vmax.f32 %v2108_v55, 0.0 }
  0x76   :  { %1121 = vmatpush1.bf16.msra.mxu0 %v1120_v28  ;;  %v362_v2 = vld [vmem:[%s2394_s1 + $0x838] sm:$0xff]  ;;  %v1134_v5 = vpack.c.bf16 %v360_v0, %v356_v63  ;;  %v359_v7 = vld [vmem:[%s2394_s1 + $0x820] sm:$0xff]  ;;  %v357_v8 = vld [vmem:[%s2394_s1 + $0x810] sm:$0xff] }
  0x77   :  { %1265 = vmatpush1.bf16.msra.mxu1 %v1264_v29  ;;  %1123 = vmatprep.subr.bf16.mxu0 %v1122_v30  ;;  %v1278_v9 = vpack.c.bf16 %v362_v2, %v358_v1  ;;  %v361_v10 = vld [vmem:[%s2394_s1 + $0x830] sm:$0xff]  ;;  %v364_v12 = vld [vmem:[%s2394_s1 + $0x848] sm:$0xff]  ;;  %v366_v16 = vld [vmem:[%s2394_s1 + $0x858] sm:$0xff]  ;;  %v1136_v18 = vpack.c.bf16 %v359_v7, %v355_v6 }
  0x78   :  { %1267 = vmatprep.subr.bf16.mxu1 %v1266_v35  ;;  %v368_v13 = vld [vmem:[%s2394_s1 + $0x868] sm:$0xff]  ;;  %v370_v17 = vld [vmem:[%s2394_s1 + $0x878] sm:$0xff]  ;;  %v1280_v19 = vpack.c.bf16 %v361_v10, %v357_v8  ;;  %v363_v21 = vld [vmem:[%s2394_s1 + $0x840] sm:$0xff] }
  0x79   :  { %v1138_v20 = vpack.c.bf16 %v368_v13, %v364_v12  ;;  %v367_v15 = vld [vmem:[%s2394_s1 + $0x860] sm:$0xff]  ;;  %v365_v24 = vld [vmem:[%s2394_s1 + $0x850] sm:$0xff]  ;;  %v1282_v25 = vpack.c.bf16 %v370_v17, %v366_v16  ;;  %v372_v28 = vld [vmem:[%s2394_s1 + $0x888] sm:$0xff] }
  0x7a   :  { %1125 = vmatpush1.bf16.msra.mxu0 %v1124_v41  ;;  %v369_v26 = vld [vmem:[%s2394_s1 + $0x870] sm:$0xff]  ;;  %v376_v29 = vld [vmem:[%s2394_s1 + $0x8a8] sm:$0xff]  ;;  %v374_v30 = vld [vmem:[%s2394_s1 + $0x898] sm:$0xff]  ;;  %v1140_v32 = vpack.c.bf16 %v367_v15, %v363_v21 }
  0x7b   :  { %1269 = vmatpush1.bf16.msra.mxu1 %v1268_v42  ;;  %1127 = vmatprep.subr.bf16.mxu0 %v1126_v43  ;;  %v378_v31 = vld [vmem:[%s2394_s1 + $0x8b8] sm:$0xff]  ;;  %v1284_v33 = vpack.c.bf16 %v369_v26, %v365_v24  ;;  %v1142_v35 = vpack.c.bf16 %v376_v29, %v372_v28  ;;  %v371_v36 = vld [vmem:[%s2394_s1 + $0x880] sm:$0xff]  ;;  %v373_v38 = vld [vmem:[%s2394_s1 + $0x890] sm:$0xff]  ;;  %v1358_v43 = vmov 0.0  }
  0x7c   :  { %1271 = vmatprep.subr.bf16.mxu1 %v1270_v48  ;;  %v375_v37 = vld [vmem:[%s2394_s1 + $0x8a0] sm:$0xff]  ;;  %v1286_v40 = vpack.c.bf16 %v378_v31, %v374_v30  ;;  %v377_v22 = vld [vmem:[%s2394_s1 + $0x8b0] sm:$0xff]  ;;  %v380_v41 = vld [vmem:[%s2394_s1 + $0x8c8] sm:$0xff]  ;;  %v1005_v1 = vsel %vm848_vm1, 1.0, %v1358_v43 }
  0x7d   :  { %v384_v42 = vld [vmem:[%s2394_s1 + $0x8e8] sm:$0xff]  ;;  %v382_v44 = vld [vmem:[%s2394_s1 + $0x8d8] sm:$0xff]  ;;  %v1144_v46 = vpack.c.bf16 %v375_v37, %v371_v36  ;;  %v1288_v48 = vpack.c.bf16 %v377_v22, %v373_v38  ;;  %v379_v49 = vld [vmem:[%s2394_s1 + $0x8c0] sm:$0xff] }
  0x7e   :  { %1129 = vmatpush1.bf16.msra.mxu0 %v1128_v53  ;;  %v386_v45 = vld [vmem:[%s2394_s1 + $0x8f8] sm:$0xff]  ;;  %v1146_v23 = vpack.c.bf16 %v384_v42, %v380_v41  ;;  %v383_v50 = vld [vmem:[%s2394_s1 + $0x8e0] sm:$0xff]  ;;  %v381_v52 = vld [vmem:[%s2394_s1 + $0x8d0] sm:$0xff] }
  0x7f   :  { %1273 = vmatpush1.bf16.msra.mxu1 %v1272_v54  ;;  %1131 = vmatprep.subr.bf16.mxu0 %v1130_v56  ;;  %v1290_v51 = vpack.c.bf16 %v386_v45, %v382_v44  ;;  %v385_v53 = vld [vmem:[%s2394_s1 + $0x8f0] sm:$0xff]  ;;  %v1148_v54 = vpack.c.bf16 %v383_v50, %v379_v49  ;;  %v387_v58 = vld [vmem:[%s2395_s2] sm:$0xf] }
  0x80   :  { %1275 = vmatprep.subr.bf16.mxu1 %v1274_v61  ;;  %v1292_v56 = vpack.c.bf16 %v385_v53, %v381_v52  ;;  %v392_v59 = vrot.slane %v387_v58, %v1750_v39  ;;  %v1359_v61 = vmov 1966171168   ;;  %v400_v63 = vrot.slane %v387_v58, %v1964_v34 }
  0x81   :  { %v886_v62 = vunpack.c.l.s4 %v1359_v61  ;;  %v396_v0 = vrot.slane %v387_v58, %v1688_v11  ;;  %v404_v55 = vrot.slane %v387_v58, %v1952_v27 }
  0x82   :  { %1133 = vmatpush1.bf16.msra.mxu0 %v1132_v3 }
  0x83   :  { %1277 = vmatpush1.bf16.msra.mxu1 %v1276_v4  ;;  %1135 = vmatprep.subr.bf16.mxu0 %v1134_v5  ;;  %v887_v6 = vunpack.c.0.s8 %v886_v62 }
  0x84   :  { %1279 = vmatprep.subr.bf16.mxu1 %v1278_v9 }
  0x85   :  { %549 = vmatmul.mubr.f32.vlgmr.msra.gmra.mrb[0].mxu0 %v96_v14 }
  0x86   :  { %1137 = vmatpush1.bf16.msra.mxu0 %v1136_v18  ;;  %762 = vmatmul.mubr.f32.vlgmr.msra.gmra.mrb[0].mxu1 %v96_v14  ;;  %v2352_v14 = vsub.s32 %v887_v6, %v1655_v60 }
  0x87   :  { %1281 = vmatpush1.bf16.msra.mxu1 %v1280_v19  ;;  %1139 = vmatprep.subr.bf16.mxu0 %v1138_v20 }
  0x88   :  { %1283 = vmatprep.subr.bf16.mxu1 %v1282_v25  ;;  %619 = vmatprep.mubr.f32.mxu0 %v1358_v43 }
  0x89   :  { %832 = vmatprep.mubr.f32.mxu1 %v1358_v43 }
  0x8a   :  { %1141 = vmatpush1.bf16.msra.mxu0 %v1140_v32 }
  0x8b   :  { %1285 = vmatpush1.bf16.msra.mxu1 %v1284_v33  ;;  %1143 = vmatprep.subr.bf16.mxu0 %v1142_v35 }
  0x8c   :  { %1287 = vmatprep.subr.bf16.mxu1 %v1286_v40 }
  0x8e   :  { %1145 = vmatpush1.bf16.msra.mxu0 %v1144_v46 }
  0x8f   :  { %1289 = vmatpush1.bf16.msra.mxu1 %v1288_v48  ;;  %1147 = vmatprep.subr.bf16.mxu0 %v1146_v23 }
  0x90   :  { %1291 = vmatprep.subr.bf16.mxu1 %v1290_v51 }
  0x92   :  { %1149 = vmatpush1.bf16.msra.mxu0 %v1148_v54 }
  0x93   :  { %1293 = vmatpush1.bf16.msra.mxu1 %v1292_v56 }
  0x95   :  { %1003 = vmatmul.mubr.msk.f32.vlgmr.msra.gmra.mrb[0].mxu0 %vm409_vm0, %v98_v57 }
  0x96   :  { %1004 = vmatmul.mubr.msk.f32.vlgmr.msra.gmra.mrb[0].mxu1 %vm409_vm0, %v98_v57 }
 0x168   :  { %v621_v2 = vpop.f32.mrb[0].mxu0 }
 0x169   :  { %v1294_v3 = vadd.f32 %v621_v2, %v392_v59  ;;  %v834_v4 = vpop.f32.mrb[0].mxu1  ;;  %v623_v5 = vpop.f32.mrb[1].mxu0 }
 0x16a   :  { %v1296_v7 = vadd.f32 %v834_v4, %v400_v63  ;;  %v1295_v8 = vadd.f32 %v623_v5, %v396_v0  ;;  %v836_v9 = vpop.f32.mrb[1].mxu1 }
 0x16b   :  { %839 = vst [vmem:[%s2398_s5] sm:$0xff] %v1294_v3  ;;  %v851_v39 = vmul.f32 %v1294_v3, %v1005_v1  ;;  %v1297_v10 = vadd.f32 %v836_v9, %v404_v55 }
 0x16c   :  { %841 = vst [vmem:[%s2398_s5 + $0x10] sm:$0xff] %v1296_v7  ;;  %v853_v11 = vmul.f32 %v1296_v7, %v1005_v1  ;;  %840 = vst [vmem:[%s2398_s5 + $0x8] sm:$0xff] %v1295_v8  ;;  %v852_v27 = vmul.f32 %v1295_v8, %v1005_v1 }
 0x16d   :  { %v855_v34 = vrot.slane %v851_v39, 4  ;;  %v913_v12 = vmul.f32 %v851_v39, %v851_v39  ;;  %842 = vst [vmem:[%s2398_s5 + $0x18] sm:$0xff] %v1297_v10  ;;  %v854_v13 = vmul.f32 %v1297_v10, %v1005_v1  ;;  %s1360_s5 = smov [#allocation2]  }
 0x16e   :  { %v867_v16 = vrot.slane %v853_v11, 4  ;;  %v915_v17 = vmul.f32 %v853_v11, %v853_v11  ;;  %v861_v18 = vrot.slane %v852_v27, 4  ;;  %v914_v19 = vmul.f32 %v852_v27, %v852_v27  ;;  %s979_s8 = sshll.u32 %s1360_s5, 4  ;;  %s980_s8 = int_to_ptr.vmem [resolvable:$true] %s979_s8 }
 0x16f   :  { %v856_v20 = vadd.f32 %v855_v34, %v851_v39  ;;  %v917_v21 = vrot.slane %v913_v12, 4  ;;  %v873_v15 = vrot.slane %v854_v13, 4  ;;  %v916_v24 = vmul.f32 %v854_v13, %v854_v13  ;;  %s1310_s11 = scalar_lea.vmem %s980_s8, 64  ;;  %p1315_p1 = scmp.lt.s32.totalorder %s980_s8, %s980_s8 }
 0x170   :  { %v868_v25 = vadd.f32 %v867_v16, %v853_v11  ;;  %v929_v26 = vrot.slane %v915_v17, 4  ;;  %v862_v28 = vadd.f32 %v861_v18, %v852_v27  ;;  %v923_v29 = vrot.slane %v914_v19, 4  ;;  %p1311_p0 = scmp.ne.s32.totalorder %s980_s8, %s1310_s11  ;;  %p1316_p2 = scmp.lt.s32.totalorder %s1310_s11, %s1310_s11 }
 0x171   :  { %v857_v30 = vrot.slane %v856_v20, 2  ;;  %v918_v31 = vadd.f32 %v917_v21, %v913_v12  ;;  %v874_v32 = vadd.f32 %v873_v15, %v854_v13  ;;  %v935_v33 = vrot.slane %v916_v24, 4 }
 0x172   :  { %v869_v35 = vrot.slane %v868_v25, 2  ;;  %v930_v36 = vadd.f32 %v929_v26, %v915_v17  ;;  %v863_v60 = vrot.slane %v862_v28, 2  ;;  %v924_v37 = vadd.f32 %v923_v29, %v914_v19  ;;  %p1317_p3 = por %p1316_p2, %p1315_p1 }
 0x173   :  { %v858_v38 = vadd.f32 %v857_v30, %v856_v20  ;;  %v919_v40 = vrot.slane %v918_v31, 2  ;;  %v875_v22 = vrot.slane %v874_v32, 2  ;;  %v936_v41 = vadd.f32 %v935_v33, %v916_v24 }
 0x174   :  { %v870_v42 = vadd.f32 %v869_v35, %v868_v25  ;;  %v931_v43 = vrot.slane %v930_v36, 2  ;;  %v864_v44 = vadd.f32 %v863_v60, %v862_v28  ;;  %v925_v45 = vrot.slane %v924_v37, 2  ;;  %p1318_p4 = pnand %p1317_p3, %p1311_p0 }
 0x175   :  { %v859_v46 = vrot.slane %v858_v38, 1  ;;  %v920_v48 = vadd.f32 %v919_v40, %v918_v31  ;;  %v876_v23 = vadd.f32 %v875_v22, %v874_v32  ;;  %v937_v49 = vrot.slane %v936_v41, 2 }
 0x176   :  { %v871_v50 = vrot.slane %v870_v42, 1  ;;  %v932_v51 = vadd.f32 %v931_v43, %v930_v36  ;;  %v865_v52 = vrot.slane %v864_v44, 1  ;;  %v926_v53 = vadd.f32 %v925_v45, %v924_v37 }
 0x177   :  { %v921_v54 = vrot.slane %v920_v48, 1  ;;  %v877_v56 = vrot.slane %v876_v23, 1  ;;  %v938_v57 = vadd.f32 %v937_v49, %v936_v41  ;;  %v860_v58 = vadd.f32 %v859_v46, %v858_v38 }
 0x178   :  { %v933_v59 = vrot.slane %v932_v51, 1  ;;  %v927_v61 = vrot.slane %v926_v53, 1  ;;  %v866_v62 = vadd.f32 %v865_v52, %v864_v44  ;;  %v872_v63 = vadd.f32 %v871_v50, %v870_v42 }
 0x179   :  { %v939_v0 = vrot.slane %v938_v57, 1  ;;  %v878_v55 = vadd.f32 %v877_v56, %v876_v23  ;;  %v922_v1 = vadd.f32 %v921_v54, %v920_v48 }
 0x17a   :  { %v883_v2 = vcombine.low %v860_v58, %v866_v62  ;;  %v928_v3 = vadd.f32 %v927_v61, %v926_v53  ;;  %v934_v4 = vadd.f32 %v933_v59, %v932_v51 }
 0x17b   :  { %v884_v5 = vcombine.low %v872_v63, %v878_v55  ;;  %v940_v6 = vadd.f32 %v939_v0, %v938_v57 }
 0x17c   :  { %v891_v7 = vrot.slane %v883_v2, %v2352_v14  ;;  %v945_v8 = vcombine.low %v922_v1, %v928_v3 }
 0x17d   :  { %v898_v9 = vrot.slane %v884_v5, %v2352_v14  ;;  %v946_v39 = vcombine.low %v934_v4, %v940_v6 }
 0x17e   :  { %v953_v10 = vrot.slane %v945_v8, %v2352_v14 }
 0x17f   :  { %v899_v11 = vcombine.low %v891_v7, %v898_v9  ;;  %v960_v27 = vrot.slane %v946_v39, %v2352_v14 }
 0x181   :  { %v906_v12 = vrot.slane %v899_v11, %v2352_v14  ;;  %v961_v13 = vcombine.low %v953_v10, %v960_v27 }
 0x183   :  { %912 = vst.msk [vmem:[#allocation2] sm:$0xf] %vm2359_vm2, %v906_v12  ;;  %v968_v16 = vrot.slane %v961_v13, %v2352_v14 }
 0x184   :  { %1321 = shalt.err (!%p1318_p4)
}
 0x185   :  { %s1322_s14 = scalar_lea.hbm %s2399_s6, 64 }
 0x186   :  { %p1323_p5 = scmp.ne.s32.totalorder %s2399_s6, %s1322_s14  ;;  %p1326_p6 = scmp.lt.u32.totalorder %s1322_s14, %s2399_s6 }
 0x188   :  { %p1328_p7 = pnand %p1326_p6, %p1323_p5 }
 0x18a   :  { %1331 = shalt.err (!%p1328_p7)
}
 0x18b   :  { %982 = dma.vmem_to_hbm [thread:$0]  %s980_s8, 64, %s2399_s6, [#allocation3]   ;;  %970 = vst.msk [vmem:[#allocation4] sm:$0xf] %vm2359_vm2, %v968_v16 }
 0x18c   :  { %s1332_s21 = scalar_lea.vmem %s990_s10, 64  ;;  %p1337_p9 = scmp.lt.s32.totalorder %s990_s10, %s990_s10 }
 0x18d   :  { %p1333_p8 = scmp.ne.s32.totalorder %s990_s10, %s1332_s21  ;;  %p1338_p10 = scmp.lt.s32.totalorder %s1332_s21, %s1332_s21 }
 0x18f   :  { %p1339_p11 = por %p1338_p10, %p1337_p9 }
 0x191   :  { %p1340_p12 = pnand %p1339_p11, %p1333_p8 }
 0x193   :  { %1343 = shalt.err (!%p1340_p12)
}
 0x194   :  { %s1344_s3 = scalar_lea.hbm %s2400_s7, 64 }
 0x195   :  { %p1345_p13 = scmp.ne.s32.totalorder %s2400_s7, %s1344_s3  ;;  %p1348_p0 = scmp.lt.u32.totalorder %s1344_s3, %s2400_s7 }
 0x197   :  { %p1350_p1 = pnand %p1348_p0, %p1345_p13 }
 0x199   :  { %1353 = shalt.err (!%p1350_p1)
}
 0x19a   :  { %992 = dma.vmem_to_hbm [thread:$0]  %s990_s10, 64, %s2400_s7, [#allocation5]  }
 0x19b   :  { %1354 = dma.done.wait [#allocation3], 64  }
 0x19c   :  { %1355 = vsyncadd [#allocation3], 4294967232 }
 0x19d   :  { %1356 = dma.done.wait [#allocation5], 64  }
 0x19e   :  { %1357 = vsyncadd [#allocation5], 4294967232 }
 0x19f   :  { %1001 = vsyncpa [#allocation3], 1 }
 0x1a0   :  { %1002 = vsyncpa [#allocation5], 1 }

</bundles_post_ra>
